<compile_context>
chip_gen: v7x
topology: tpu7x:2x2x1
jax: 0.10.0
libtpu: 0.0.40
codegen_flags: <defaults>
</compile_context>

<pallas_src>
import functools

import jax
import jax.numpy as jnp
from jax.experimental import pallas as pl
from jax.experimental.pallas import tpu as pltpu


# ----------------------------- in-kernel helpers -----------------------------

_INV_SQRT2 = 0.7071067811865476


def _layernorm(x, gamma, beta, eps=1e-5):
    # PyTorch nn.LayerNorm: biased variance, eps inside rsqrt, affine.
    mean = jnp.mean(x, axis=-1, keepdims=True)
    var = jnp.mean((x - mean) ** 2, axis=-1, keepdims=True)
    return (x - mean) * jax.lax.rsqrt(var + eps) * gamma + beta


def _softmax_attn(x):
    # numerically stable softmax; reciprocal runs on the otherwise-idle EUP slot.
    m = jnp.max(x, axis=-1, keepdims=True)
    e = jnp.exp(x - m)
    s = jnp.sum(e, axis=-1, keepdims=True)
    return e * pl.reciprocal(s, approx=True)


def _softmax_exact(x):
    # exact division for the final head softmax (probabilities sum to 1).
    m = jnp.max(x, axis=-1, keepdims=True)
    e = jnp.exp(x - m)
    return e / jnp.sum(e, axis=-1, keepdims=True)


def _erf(x):
    # TODO(synk): lax.erf has no guaranteed Mosaic lowering; use the
    # Abramowitz & Stegun 7.1.26 rational approximation (|err| < 1.5e-7, i.e.
    # float32-exact for the erf-form GELU that nn.GELU() uses).
    a1, a2, a3, a4, a5 = 0.254829592, -0.284496736, 1.421413741, -1.453152027, 1.061405429
    p = 0.3275911
    sgn = jnp.where(x >= 0.0, 1.0, -1.0)
    ax = jnp.abs(x)
    t = 1.0 / (1.0 + p * ax)
    poly = ((((a5 * t + a4) * t + a3) * t + a2) * t + a1) * t
    return sgn * (1.0 - poly * jnp.exp(-ax * ax))


def _gelu_exact(x):
    # PyTorch nn.GELU() default = exact erf form.
    return 0.5 * x * (1.0 + _erf(x * _INV_SQRT2))


# ------------------------------- fused kernel --------------------------------

def _fused_vit_kernel(N, T, n_blocks, n_heads, d_head,
                      patches_ref,            # (N*T, input_d), cls-slot rows zeroed
                      wmap_ref,               # (input_d, D)
                      addtok_ref,             # (T, D) = [cls+pos[0]; b_map+pos[1:]]
                      ln1g_ref, ln1b_ref,     # (nb, 1, D)
                      wqkv_ref, bqkv_ref,     # (nb, D, 3D), (nb, 1, 3D); Q part pre-scaled
                      ln2g_ref, ln2b_ref,     # (nb, 1, D)
                      w1_ref, b1_ref,         # (nb, D, mlp_d), (nb, 1, mlp_d)
                      w2_ref, b2_ref,         # (nb, mlp_d, D), (nb, 1, D)
                      whead_ref, bhead_ref,   # (D, out_d), (1, out_d)
                      out_ref):               # (N, out_d)
    D = n_heads * d_head

    # patch embedding + class token + positional embedding, whole batch at once:
    #   x[b*T + 0]   = class_token + pos[0]              (cls-slot patch row is zero)
    #   x[b*T + t>0] = patches[b, t-1] @ Wmap + b_map + pos[t]
    x = jnp.dot(patches_ref[...], wmap_ref[...], preferred_element_type=jnp.float32)
    addtok = addtok_ref[...]
    x = x + jnp.concatenate([addtok] * N, axis=0)        # (N*T, D)

    for blk in range(n_blocks):                           # static unroll (tiny)
        ln1_g, ln1_b = ln1g_ref[blk], ln1b_ref[blk]
        ln2_g, ln2_b = ln2g_ref[blk], ln2b_ref[blk]

        # --- out = x + MSA(LayerNorm1(x)) ---  (LN + QKV batched over all rows)
        h1 = _layernorm(x, ln1_g, ln1_b)
        # one lane-dense (N*T, D) @ (D, 3D) projection covers all images/heads/qkv;
        # the 1/sqrt(d_head) score scale is pre-folded into the Q columns.
        qkv = jnp.dot(h1, wqkv_ref[blk],
                      preferred_element_type=jnp.float32) + bqkv_ref[blk]

        per_image = []
        for b in range(N):                                # static unroll
            r0, r1 = b * T, (b + 1) * T
            heads = []
            for h in range(n_heads):                      # static unroll (keep)
                lo, hi = h * d_head, (h + 1) * d_head
                qh = qkv[r0:r1, lo:hi]
                kh = qkv[r0:r1, D + lo:D + hi]
                vh = qkv[r0:r1, 2 * D + lo:2 * D + hi]
                # q @ k.T via dot_general dnums (no explicit VMEM transpose)
                s = jax.lax.dot_general(
                    qh, kh, (((1,), (1,)), ((), ())),
                    preferred_element_type=jnp.float32)
                heads.append(jnp.dot(_softmax_attn(s), vh,
                                     preferred_element_type=jnp.float32))
            per_image.append(jnp.concatenate(heads, axis=-1))   # (T, D)
        msa = jnp.concatenate(per_image, axis=0)          # (N*T, D)
        x = x + msa

        # --- out = out + MLP(LayerNorm2(out)) ---  (fully batched over all rows)
        h2 = _layernorm(x, ln2_g, ln2_b)
        m = jnp.dot(h2, w1_ref[blk], preferred_element_type=jnp.float32) + b1_ref[blk]
        m = _gelu_exact(m)
        x = x + jnp.dot(m, w2_ref[blk],
                        preferred_element_type=jnp.float32) + b2_ref[blk]

    # classification head: class token (row b*T of each image) -> Linear -> Softmax
    cls = jnp.concatenate([x[b * T:b * T + 1, :] for b in range(N)], axis=0)  # (N, D)
    logits = (jnp.dot(cls, whead_ref[...], preferred_element_type=jnp.float32)
              + bhead_ref[...])
    out_ref[...] = _softmax_exact(logits)


def pallas_myvit_forward(images, packed, *, n_patches, n_heads):
    # images: (N, H, W) -> channel dim of 1 added implicitly (like unsqueeze(1)).
    N, H, W = images.shape
    C = 1
    ps = H // n_patches
    P = n_patches * n_patches
    input_d = C * ps * ps
    D = packed["wmap_T"].shape[1]
    T = P + 1
    n_blocks = packed["wqkv"].shape[0]
    out_d = packed["whead_T"].shape[1]

    # patchify (pure reshape/transpose): per-patch flatten order (C, ph, pw),
    # patches row-major over (i, j) -- matches the reference double loop.
    x = images.reshape(N, C, n_patches, ps, n_patches, ps)
    x = x.transpose(0, 2, 4, 1, 3, 5).reshape(N, P, input_d)
    # prepend one zero row per image (class-token slot: value comes from addtok),
    # then flatten batch into the row dimension for fully batched in-kernel matmuls.
    patches = jnp.concatenate(
        [jnp.zeros((N, 1, input_d), jnp.float32), x], axis=1)         # (N, T, input_d)
    patches2d = patches.reshape(N * T, input_d)                       # (N*T, input_d)

    kernel = functools.partial(_fused_vit_kernel, N, T, n_blocks, n_heads,
                               D // n_heads)
    return pl.pallas_call(
        kernel,
        out_shape=jax.ShapeDtypeStruct((N, out_d), jnp.float32),
        # no grid / BlockSpecs: single invocation, every operand is a full-array
        # VMEM-resident ref (tens of KB total at this model size).
        compiler_params=pltpu.CompilerParams(vmem_limit_bytes=32 * 1024 * 1024),
    )(patches2d, packed["wmap_T"], packed["addtok"],
      packed["ln1_g"], packed["ln1_b"], packed["wqkv"], packed["bqkv"],
      packed["ln2_g"], packed["ln2_b"], packed["w1_T"], packed["b1"],
      packed["w2_T"], packed["b2"], packed["whead_T"], packed["bhead"])


# ------------------------------ parameter setup -------------------------------

def _uniform(key, shape, bound):
    return jax.random.uniform(key, shape, jnp.float32, -bound, bound)


def init_params(key, chw, n_patches, n_blocks, hidden_d, n_heads, out_d, mlp_ratio=4):
    """Raw parameters, PyTorch layout/conventions (Linear weight is (out, in))."""
    c, h, w = chw
    ps = h // n_patches
    input_d = int(c * ps * ps)
    dh = hidden_d // n_heads
    mlp_d = mlp_ratio * hidden_d
    n_tokens = n_patches * n_patches + 1
    keys = iter(jax.random.split(key, 8 + 16 * n_blocks))

    params = {
        "W_map": _uniform(next(keys), (hidden_d, input_d), 1.0 / input_d ** 0.5),
        "b_map": _uniform(next(keys), (hidden_d,), 1.0 / input_d ** 0.5),
        "class_token": jax.random.uniform(next(keys), (1, hidden_d), jnp.float32),
        "pos_emb": jax.random.uniform(next(keys), (1, n_tokens, hidden_d), jnp.float32),
        "W_head": _uniform(next(keys), (out_d, hidden_d), 1.0 / hidden_d ** 0.5),
        "b_head": _uniform(next(keys), (out_d,), 1.0 / hidden_d ** 0.5),
        "blocks": [],
    }
    for _ in range(n_blocks):
        bd = 1.0 / dh ** 0.5
        hd = 1.0 / hidden_d ** 0.5
        md = 1.0 / mlp_d ** 0.5
        params["blocks"].append({
            "ln1_g": jnp.ones((hidden_d,), jnp.float32),
            "ln1_b": jnp.zeros((hidden_d,), jnp.float32),
            "wq": _uniform(next(keys), (n_heads, dh, dh), bd),
            "bq": _uniform(next(keys), (n_heads, dh), bd),
            "wk": _uniform(next(keys), (n_heads, dh, dh), bd),
            "bk": _uniform(next(keys), (n_heads, dh), bd),
            "wv": _uniform(next(keys), (n_heads, dh, dh), bd),
            "bv": _uniform(next(keys), (n_heads, dh), bd),
            "ln2_g": jnp.ones((hidden_d,), jnp.float32),
            "ln2_b": jnp.zeros((hidden_d,), jnp.float32),
            "w1": _uniform(next(keys), (mlp_d, hidden_d), hd),
            "b1": _uniform(next(keys), (mlp_d,), hd),
            "w2": _uniform(next(keys), (hidden_d, mlp_d), md),
            "b2": _uniform(next(keys), (hidden_d,), md),
        })
    return params


def _block_diag_headsT(w):
    """(n_heads, dh, dh) per-head PyTorch (out, in) weights -> (D, D) block-diagonal
    matrix holding each head's W.T, so (x @ M)[:, h-slice] == x_h @ W_h.T.
    Off-diagonal blocks are explicit zeros (no head mixing)."""
    nh, dh, _ = w.shape
    D = nh * dh
    m = jnp.zeros((D, D), jnp.float32)
    for h in range(nh):
        m = m.at[h * dh:(h + 1) * dh, h * dh:(h + 1) * dh].set(w[h].T)
    return m


def pack_params(params):
    """One-time host-side repack: fused block-diagonal QKV (with 1/sqrt(d_head)
    folded into the Q columns + biases), pre-transposed (in, out) weights,
    2-D biases, per-block weights stacked along axis 0."""
    blocks = params["blocks"]
    dh = blocks[0]["wq"].shape[-1]
    scale = 1.0 / dh ** 0.5     # attention score scale, folded into Q host-side
    return {
        "wmap_T": params["W_map"].T,                                   # (input_d, D)
        # additive token init: row 0 = class_token + pos[0], rows 1: = b_map + pos[1:]
        "addtok": jnp.concatenate(
            [params["class_token"] + params["pos_emb"][0, 0:1],
             params["b_map"][None, :] + params["pos_emb"][0, 1:]], axis=0),
        "ln1_g": jnp.stack([b["ln1_g"][None, :] for b in blocks]),     # (nb, 1, D)
        "ln1_b": jnp.stack([b["ln1_b"][None, :] for b in blocks]),
        "wqkv": jnp.stack([jnp.concatenate(
            [_block_diag_headsT(b["wq"]) * scale,
             _block_diag_headsT(b["wk"]),
             _block_diag_headsT(b["wv"])], axis=1) for b in blocks]),  # (nb, D, 3D)
        "bqkv": jnp.stack([jnp.concatenate(
            [b["bq"].reshape(-1) * scale,
             b["bk"].reshape(-1),
             b["bv"].reshape(-1)])[None, :] for b in blocks]),         # (nb, 1, 3D)
        "ln2_g": jnp.stack([b["ln2_g"][None, :] for b in blocks]),
        "ln2_b": jnp.stack([b["ln2_b"][None, :] for b in blocks]),
        "w1_T": jnp.stack([b["w1"].T for b in blocks]),                # (nb, D, mlp_d)
        "b1": jnp.stack([b["b1"][None, :] for b in blocks]),           # (nb, 1, mlp_d)
        "w2_T": jnp.stack([b["w2"].T for b in blocks]),                # (nb, mlp_d, D)
        "b2": jnp.stack([b["b2"][None, :] for b in blocks]),           # (nb, 1, D)
        "whead_T": params["W_head"].T,                                 # (D, out_d)
        "bhead": params["b_head"][None, :],                            # (1, out_d)
    }


# ----------------------------------- main --------------------------------------

if __name__ == "__main__":
    # small config: chw=(1,14,14), 7x7 patches of 2x2 -> input_d=4, T=50
    chw = (1, 14, 14)
    n_patches = 7
    n_blocks = 2
    hidden_d = 32
    n_heads = 2
    out_d = 10
    batch = 2

    key = jax.random.PRNGKey(0)
    pkey, xkey = jax.random.split(key)
    params = init_params(pkey, chw, n_patches, n_blocks, hidden_d, n_heads, out_d)
    packed = pack_params(params)
    images = jax.random.uniform(xkey, (batch, chw[1], chw[2]), jnp.float32)

    fwd = jax.jit(functools.partial(pallas_myvit_forward,
                                    n_patches=n_patches, n_heads=n_heads))
    preds = fwd(images, packed)
    jax.block_until_ready(preds)

    assert preds.shape == (batch, out_d)
    assert bool(jnp.all(jnp.isfinite(preds)))
    # the module returns post-softmax probabilities (despite the docstring)
    assert bool(jnp.allclose(jnp.sum(preds, axis=-1), 1.0, atol=1e-5))
    print("KERNEL_OK")
</pallas_src>

<mosaic_0001>
module attributes {stable_mosaic.version = 11 : i64} {
  func.func @_fused_vit_kernel(%arg0: memref<100x4xf32, #tpu.memory_space<vmem>>, %arg1: memref<4x32xf32, #tpu.memory_space<vmem>>, %arg2: memref<50x32xf32, #tpu.memory_space<vmem>>, %arg3: memref<2x1x32xf32, #tpu.memory_space<vmem>>, %arg4: memref<2x1x32xf32, #tpu.memory_space<vmem>>, %arg5: memref<2x32x96xf32, #tpu.memory_space<vmem>>, %arg6: memref<2x1x96xf32, #tpu.memory_space<vmem>>, %arg7: memref<2x1x32xf32, #tpu.memory_space<vmem>>, %arg8: memref<2x1x32xf32, #tpu.memory_space<vmem>>, %arg9: memref<2x32x128xf32, #tpu.memory_space<vmem>>, %arg10: memref<2x1x128xf32, #tpu.memory_space<vmem>>, %arg11: memref<2x128x32xf32, #tpu.memory_space<vmem>>, %arg12: memref<2x1x32xf32, #tpu.memory_space<vmem>>, %arg13: memref<32x10xf32, #tpu.memory_space<vmem>>, %arg14: memref<1x10xf32, #tpu.memory_space<vmem>>, %arg15: memref<2x10xf32, #tpu.memory_space<vmem>>) attributes {dimension_semantics = [], scalar_prefetch = 0 : i64, scratch_operands = 0 : i64, tpu.core_type = #tpu.core_type<tc>} {
    %c0 = arith.constant 0 : index
    %c0_0 = arith.constant 0 : index
    %0 = vector.load %arg0[%c0, %c0_0] : memref<100x4xf32, #tpu.memory_space<vmem>>, vector<100x4xf32>
    %c0_1 = arith.constant 0 : index
    %c0_2 = arith.constant 0 : index
    %1 = vector.load %arg1[%c0_1, %c0_2] : memref<4x32xf32, #tpu.memory_space<vmem>>, vector<4x32xf32>
    %cst = arith.constant dense<0.000000e+00> : vector<100x32xf32>
    %2 = tpu.matmul %0, %1, %cst {dimension_numbers = #tpu.dot_dimension_numbers<[1], [0], [0], [1], [0, 0, 1, 1], [], []>} : vector<100x4xf32>, vector<4x32xf32>, vector<100x32xf32> -> vector<100x32xf32>
    %c0_3 = arith.constant 0 : index
    %c0_4 = arith.constant 0 : index
    %3 = vector.load %arg2[%c0_3, %c0_4] : memref<50x32xf32, #tpu.memory_space<vmem>>, vector<50x32xf32>
    %4 = tpu.concatenate %3, %3 in 0 : vector<50x32xf32>, vector<50x32xf32> -> vector<100x32xf32>
    %5 = arith.addf %2, %4 : vector<100x32xf32>
    %c0_5 = arith.constant 0 : index
    %c0_6 = arith.constant 0 : index
    %c0_7 = arith.constant 0 : index
    %6 = vector.load %arg3[%c0_5, %c0_6, %c0_7] : memref<2x1x32xf32, #tpu.memory_space<vmem>>, vector<1x1x32xf32>
    %7 = vector.shape_cast %6 : vector<1x1x32xf32> to vector<1x32xf32>
    %c0_8 = arith.constant 0 : index
    %c0_9 = arith.constant 0 : index
    %c0_10 = arith.constant 0 : index
    %8 = vector.load %arg4[%c0_8, %c0_9, %c0_10] : memref<2x1x32xf32, #tpu.memory_space<vmem>>, vector<1x1x32xf32>
    %9 = vector.shape_cast %8 : vector<1x1x32xf32> to vector<1x32xf32>
    %c0_11 = arith.constant 0 : index
    %c0_12 = arith.constant 0 : index
    %c0_13 = arith.constant 0 : index
    %10 = vector.load %arg7[%c0_11, %c0_12, %c0_13] : memref<2x1x32xf32, #tpu.memory_space<vmem>>, vector<1x1x32xf32>
    %11 = vector.shape_cast %10 : vector<1x1x32xf32> to vector<1x32xf32>
    %c0_14 = arith.constant 0 : index
    %c0_15 = arith.constant 0 : index
    %c0_16 = arith.constant 0 : index
    %12 = vector.load %arg8[%c0_14, %c0_15, %c0_16] : memref<2x1x32xf32, #tpu.memory_space<vmem>>, vector<1x1x32xf32>
    %13 = vector.shape_cast %12 : vector<1x1x32xf32> to vector<1x32xf32>
    %cst_17 = arith.constant dense<0.000000e+00> : vector<100xf32>
    %14 = vector.multi_reduction <add>, %5, %cst_17 [1] : vector<100x32xf32> to vector<100xf32>
    %15 = vector.shape_cast %14 : vector<100xf32> to vector<100x1xf32>
    %cst_18 = arith.constant 3.200000e+01 : f32
    %16 = vector.broadcast %cst_18 : f32 to vector<100x1xf32>
    %17 = arith.divf %15, %16 : vector<100x1xf32>
    %18 = vector.broadcast %17 : vector<100x1xf32> to vector<100x32xf32>
    %19 = arith.subf %5, %18 : vector<100x32xf32>
    %20 = arith.mulf %19, %19 : vector<100x32xf32>
    %cst_19 = arith.constant dense<0.000000e+00> : vector<100xf32>
    %21 = vector.multi_reduction <add>, %20, %cst_19 [1] : vector<100x32xf32> to vector<100xf32>
    %22 = vector.shape_cast %21 : vector<100xf32> to vector<100x1xf32>
    %cst_20 = arith.constant 3.200000e+01 : f32
    %23 = vector.broadcast %cst_20 : f32 to vector<100x1xf32>
    %24 = arith.divf %22, %23 : vector<100x1xf32>
    %25 = vector.broadcast %17 : vector<100x1xf32> to vector<100x32xf32>
    %26 = arith.subf %5, %25 : vector<100x32xf32>
    %cst_21 = arith.constant 9.99999974E-6 : f32
    %27 = vector.broadcast %cst_21 : f32 to vector<100x1xf32>
    %28 = arith.addf %24, %27 : vector<100x1xf32>
    %29 = math.rsqrt %28 : vector<100x1xf32>
    %30 = vector.broadcast %29 : vector<100x1xf32> to vector<100x32xf32>
    %31 = arith.mulf %26, %30 : vector<100x32xf32>
    %32 = vector.broadcast %7 : vector<1x32xf32> to vector<100x32xf32>
    %33 = arith.mulf %31, %32 : vector<100x32xf32>
    %34 = vector.broadcast %9 : vector<1x32xf32> to vector<100x32xf32>
    %35 = arith.addf %33, %34 : vector<100x32xf32>
    %c0_22 = arith.constant 0 : index
    %c0_23 = arith.constant 0 : index
    %c0_24 = arith.constant 0 : index
    %36 = vector.load %arg5[%c0_22, %c0_23, %c0_24] : memref<2x32x96xf32, #tpu.memory_space<vmem>>, vector<1x32x96xf32>
    %37 = vector.shape_cast %36 : vector<1x32x96xf32> to vector<32x96xf32>
    %cst_25 = arith.constant dense<0.000000e+00> : vector<100x96xf32>
    %38 = tpu.matmul %35, %37, %cst_25 {dimension_numbers = #tpu.dot_dimension_numbers<[1], [0], [0], [1], [0, 0, 1, 1], [], []>} : vector<100x32xf32>, vector<32x96xf32>, vector<100x96xf32> -> vector<100x96xf32>
    %c0_26 = arith.constant 0 : index
    %c0_27 = arith.constant 0 : index
    %c0_28 = arith.constant 0 : index
    %39 = vector.load %arg6[%c0_26, %c0_27, %c0_28] : memref<2x1x96xf32, #tpu.memory_space<vmem>>, vector<1x1x96xf32>
    %40 = vector.shape_cast %39 : vector<1x1x96xf32> to vector<1x96xf32>
    %41 = vector.broadcast %40 : vector<1x96xf32> to vector<100x96xf32>
    %42 = arith.addf %38, %41 : vector<100x96xf32>
    %43 = vector.extract_strided_slice %42 {offsets = [0, 0], sizes = [50, 16], strides = [1, 1]} : vector<100x96xf32> to vector<50x16xf32>
    %44 = vector.extract_strided_slice %42 {offsets = [0, 32], sizes = [50, 16], strides = [1, 1]} : vector<100x96xf32> to vector<50x16xf32>
    %45 = vector.extract_strided_slice %42 {offsets = [0, 64], sizes = [50, 16], strides = [1, 1]} : vector<100x96xf32> to vector<50x16xf32>
    %cst_29 = arith.constant dense<0.000000e+00> : vector<50x50xf32>
    %46 = tpu.matmul %43, %44, %cst_29 {dimension_numbers = #tpu.dot_dimension_numbers<[1], [1], [0], [0], [0, 0, 1, 0], [], []>} : vector<50x16xf32>, vector<50x16xf32>, vector<50x50xf32> -> vector<50x50xf32>
    %cst_30 = arith.constant dense<0xFF800000> : vector<50xf32>
    %47 = vector.multi_reduction <maximumf>, %46, %cst_30 [1] : vector<50x50xf32> to vector<50xf32>
    %48 = vector.shape_cast %47 : vector<50xf32> to vector<50x1xf32>
    %49 = vector.broadcast %48 : vector<50x1xf32> to vector<50x50xf32>
    %50 = arith.subf %46, %49 : vector<50x50xf32>
    %51 = math.exp %50 : vector<50x50xf32>
    %cst_31 = arith.constant dense<0.000000e+00> : vector<50xf32>
    %52 = vector.multi_reduction <add>, %51, %cst_31 [1] : vector<50x50xf32> to vector<50xf32>
    %53 = vector.shape_cast %52 : vector<50xf32> to vector<50x1xf32>
    %54 = tpu.reciprocal %53 {approx = true} : vector<50x1xf32> -> vector<50x1xf32>
    %55 = vector.broadcast %54 : vector<50x1xf32> to vector<50x50xf32>
    %56 = arith.mulf %51, %55 : vector<50x50xf32>
    %cst_32 = arith.constant dense<0.000000e+00> : vector<50x16xf32>
    %57 = tpu.matmul %56, %45, %cst_32 {dimension_numbers = #tpu.dot_dimension_numbers<[1], [0], [0], [1], [0, 0, 1, 1], [], []>} : vector<50x50xf32>, vector<50x16xf32>, vector<50x16xf32> -> vector<50x16xf32>
    %58 = vector.extract_strided_slice %42 {offsets = [0, 16], sizes = [50, 16], strides = [1, 1]} : vector<100x96xf32> to vector<50x16xf32>
    %59 = vector.extract_strided_slice %42 {offsets = [0, 48], sizes = [50, 16], strides = [1, 1]} : vector<100x96xf32> to vector<50x16xf32>
    %60 = vector.extract_strided_slice %42 {offsets = [0, 80], sizes = [50, 16], strides = [1, 1]} : vector<100x96xf32> to vector<50x16xf32>
    %cst_33 = arith.constant dense<0.000000e+00> : vector<50x50xf32>
    %61 = tpu.matmul %58, %59, %cst_33 {dimension_numbers = #tpu.dot_dimension_numbers<[1], [1], [0], [0], [0, 0, 1, 0], [], []>} : vector<50x16xf32>, vector<50x16xf32>, vector<50x50xf32> -> vector<50x50xf32>
    %cst_34 = arith.constant dense<0xFF800000> : vector<50xf32>
    %62 = vector.multi_reduction <maximumf>, %61, %cst_34 [1] : vector<50x50xf32> to vector<50xf32>
    %63 = vector.shape_cast %62 : vector<50xf32> to vector<50x1xf32>
    %64 = vector.broadcast %63 : vector<50x1xf32> to vector<50x50xf32>
    %65 = arith.subf %61, %64 : vector<50x50xf32>
    %66 = math.exp %65 : vector<50x50xf32>
    %cst_35 = arith.constant dense<0.000000e+00> : vector<50xf32>
    %67 = vector.multi_reduction <add>, %66, %cst_35 [1] : vector<50x50xf32> to vector<50xf32>
    %68 = vector.shape_cast %67 : vector<50xf32> to vector<50x1xf32>
    %69 = tpu.reciprocal %68 {approx = true} : vector<50x1xf32> -> vector<50x1xf32>
    %70 = vector.broadcast %69 : vector<50x1xf32> to vector<50x50xf32>
    %71 = arith.mulf %66, %70 : vector<50x50xf32>
    %cst_36 = arith.constant dense<0.000000e+00> : vector<50x16xf32>
    %72 = tpu.matmul %71, %60, %cst_36 {dimension_numbers = #tpu.dot_dimension_numbers<[1], [0], [0], [1], [0, 0, 1, 1], [], []>} : vector<50x50xf32>, vector<50x16xf32>, vector<50x16xf32> -> vector<50x16xf32>
    %73 = tpu.concatenate %57, %72 in 1 : vector<50x16xf32>, vector<50x16xf32> -> vector<50x32xf32>
    %74 = vector.extract_strided_slice %42 {offsets = [50, 0], sizes = [50, 16], strides = [1, 1]} : vector<100x96xf32> to vector<50x16xf32>
    %75 = vector.extract_strided_slice %42 {offsets = [50, 32], sizes = [50, 16], strides = [1, 1]} : vector<100x96xf32> to vector<50x16xf32>
    %76 = vector.extract_strided_slice %42 {offsets = [50, 64], sizes = [50, 16], strides = [1, 1]} : vector<100x96xf32> to vector<50x16xf32>
    %cst_37 = arith.constant dense<0.000000e+00> : vector<50x50xf32>
    %77 = tpu.matmul %74, %75, %cst_37 {dimension_numbers = #tpu.dot_dimension_numbers<[1], [1], [0], [0], [0, 0, 1, 0], [], []>} : vector<50x16xf32>, vector<50x16xf32>, vector<50x50xf32> -> vector<50x50xf32>
    %cst_38 = arith.constant dense<0xFF800000> : vector<50xf32>
    %78 = vector.multi_reduction <maximumf>, %77, %cst_38 [1] : vector<50x50xf32> to vector<50xf32>
    %79 = vector.shape_cast %78 : vector<50xf32> to vector<50x1xf32>
    %80 = vector.broadcast %79 : vector<50x1xf32> to vector<50x50xf32>
    %81 = arith.subf %77, %80 : vector<50x50xf32>
    %82 = math.exp %81 : vector<50x50xf32>
    %cst_39 = arith.constant dense<0.000000e+00> : vector<50xf32>
    %83 = vector.multi_reduction <add>, %82, %cst_39 [1] : vector<50x50xf32> to vector<50xf32>
    %84 = vector.shape_cast %83 : vector<50xf32> to vector<50x1xf32>
    %85 = tpu.reciprocal %84 {approx = true} : vector<50x1xf32> -> vector<50x1xf32>
    %86 = vector.broadcast %85 : vector<50x1xf32> to vector<50x50xf32>
    %87 = arith.mulf %82, %86 : vector<50x50xf32>
    %cst_40 = arith.constant dense<0.000000e+00> : vector<50x16xf32>
    %88 = tpu.matmul %87, %76, %cst_40 {dimension_numbers = #tpu.dot_dimension_numbers<[1], [0], [0], [1], [0, 0, 1, 1], [], []>} : vector<50x50xf32>, vector<50x16xf32>, vector<50x16xf32> -> vector<50x16xf32>
    %89 = vector.extract_strided_slice %42 {offsets = [50, 16], sizes = [50, 16], strides = [1, 1]} : vector<100x96xf32> to vector<50x16xf32>
    %90 = vector.extract_strided_slice %42 {offsets = [50, 48], sizes = [50, 16], strides = [1, 1]} : vector<100x96xf32> to vector<50x16xf32>
    %91 = vector.extract_strided_slice %42 {offsets = [50, 80], sizes = [50, 16], strides = [1, 1]} : vector<100x96xf32> to vector<50x16xf32>
    %cst_41 = arith.constant dense<0.000000e+00> : vector<50x50xf32>
    %92 = tpu.matmul %89, %90, %cst_41 {dimension_numbers = #tpu.dot_dimension_numbers<[1], [1], [0], [0], [0, 0, 1, 0], [], []>} : vector<50x16xf32>, vector<50x16xf32>, vector<50x50xf32> -> vector<50x50xf32>
    %cst_42 = arith.constant dense<0xFF800000> : vector<50xf32>
    %93 = vector.multi_reduction <maximumf>, %92, %cst_42 [1] : vector<50x50xf32> to vector<50xf32>
    %94 = vector.shape_cast %93 : vector<50xf32> to vector<50x1xf32>
    %95 = vector.broadcast %94 : vector<50x1xf32> to vector<50x50xf32>
    %96 = arith.subf %92, %95 : vector<50x50xf32>
    %97 = math.exp %96 : vector<50x50xf32>
    %cst_43 = arith.constant dense<0.000000e+00> : vector<50xf32>
    %98 = vector.multi_reduction <add>, %97, %cst_43 [1] : vector<50x50xf32> to vector<50xf32>
    %99 = vector.shape_cast %98 : vector<50xf32> to vector<50x1xf32>
    %100 = tpu.reciprocal %99 {approx = true} : vector<50x1xf32> -> vector<50x1xf32>
    %101 = vector.broadcast %100 : vector<50x1xf32> to vector<50x50xf32>
    %102 = arith.mulf %97, %101 : vector<50x50xf32>
    %cst_44 = arith.constant dense<0.000000e+00> : vector<50x16xf32>
    %103 = tpu.matmul %102, %91, %cst_44 {dimension_numbers = #tpu.dot_dimension_numbers<[1], [0], [0], [1], [0, 0, 1, 1], [], []>} : vector<50x50xf32>, vector<50x16xf32>, vector<50x16xf32> -> vector<50x16xf32>
    %104 = tpu.concatenate %88, %103 in 1 : vector<50x16xf32>, vector<50x16xf32> -> vector<50x32xf32>
    %105 = tpu.concatenate %73, %104 in 0 : vector<50x32xf32>, vector<50x32xf32> -> vector<100x32xf32>
    %106 = arith.addf %5, %105 : vector<100x32xf32>
    %cst_45 = arith.constant dense<0.000000e+00> : vector<100xf32>
    %107 = vector.multi_reduction <add>, %106, %cst_45 [1] : vector<100x32xf32> to vector<100xf32>
    %108 = vector.shape_cast %107 : vector<100xf32> to vector<100x1xf32>
    %cst_46 = arith.constant 3.200000e+01 : f32
    %109 = vector.broadcast %cst_46 : f32 to vector<100x1xf32>
    %110 = arith.divf %108, %109 : vector<100x1xf32>
    %111 = vector.broadcast %110 : vector<100x1xf32> to vector<100x32xf32>
    %112 = arith.subf %106, %111 : vector<100x32xf32>
    %113 = arith.mulf %112, %112 : vector<100x32xf32>
    %cst_47 = arith.constant dense<0.000000e+00> : vector<100xf32>
    %114 = vector.multi_reduction <add>, %113, %cst_47 [1] : vector<100x32xf32> to vector<100xf32>
    %115 = vector.shape_cast %114 : vector<100xf32> to vector<100x1xf32>
    %cst_48 = arith.constant 3.200000e+01 : f32
    %116 = vector.broadcast %cst_48 : f32 to vector<100x1xf32>
    %117 = arith.divf %115, %116 : vector<100x1xf32>
    %118 = vector.broadcast %110 : vector<100x1xf32> to vector<100x32xf32>
    %119 = arith.subf %106, %118 : vector<100x32xf32>
    %cst_49 = arith.constant 9.99999974E-6 : f32
    %120 = vector.broadcast %cst_49 : f32 to vector<100x1xf32>
    %121 = arith.addf %117, %120 : vector<100x1xf32>
    %122 = math.rsqrt %121 : vector<100x1xf32>
    %123 = vector.broadcast %122 : vector<100x1xf32> to vector<100x32xf32>
    %124 = arith.mulf %119, %123 : vector<100x32xf32>
    %125 = vector.broadcast %11 : vector<1x32xf32> to vector<100x32xf32>
    %126 = arith.mulf %124, %125 : vector<100x32xf32>
    %127 = vector.broadcast %13 : vector<1x32xf32> to vector<100x32xf32>
    %128 = arith.addf %126, %127 : vector<100x32xf32>
    %c0_50 = arith.constant 0 : index
    %c0_51 = arith.constant 0 : index
    %c0_52 = arith.constant 0 : index
    %129 = vector.load %arg9[%c0_50, %c0_51, %c0_52] : memref<2x32x128xf32, #tpu.memory_space<vmem>>, vector<1x32x128xf32>
    %130 = vector.shape_cast %129 : vector<1x32x128xf32> to vector<32x128xf32>
    %cst_53 = arith.constant dense<0.000000e+00> : vector<100x128xf32>
    %131 = tpu.matmul %128, %130, %cst_53 {dimension_numbers = #tpu.dot_dimension_numbers<[1], [0], [0], [1], [0, 0, 1, 1], [], []>} : vector<100x32xf32>, vector<32x128xf32>, vector<100x128xf32> -> vector<100x128xf32>
    %c0_54 = arith.constant 0 : index
    %c0_55 = arith.constant 0 : index
    %c0_56 = arith.constant 0 : index
    %132 = vector.load %arg10[%c0_54, %c0_55, %c0_56] : memref<2x1x128xf32, #tpu.memory_space<vmem>>, vector<1x1x128xf32>
    %133 = vector.shape_cast %132 : vector<1x1x128xf32> to vector<1x128xf32>
    %134 = vector.broadcast %133 : vector<1x128xf32> to vector<100x128xf32>
    %135 = arith.addf %131, %134 : vector<100x128xf32>
    %cst_57 = arith.constant 5.000000e-01 : f32
    %136 = vector.broadcast %cst_57 : f32 to vector<100x128xf32>
    %137 = arith.mulf %136, %135 : vector<100x128xf32>
    %cst_58 = arith.constant 0.707106769 : f32
    %138 = vector.broadcast %cst_58 : f32 to vector<100x128xf32>
    %139 = arith.mulf %135, %138 : vector<100x128xf32>
    %cst_59 = arith.constant 0.000000e+00 : f32
    %140 = vector.broadcast %cst_59 : f32 to vector<100x128xf32>
    %141 = arith.cmpf oge, %139, %140 : vector<100x128xf32>
    %cst_60 = arith.constant 1.000000e+00 : f32
    %cst_61 = arith.constant -1.000000e+00 : f32
    %142 = vector.broadcast %cst_60 : f32 to vector<100x128xf32>
    %143 = vector.broadcast %cst_61 : f32 to vector<100x128xf32>
    %144 = arith.select %141, %142, %143 : vector<100x128xi1>, vector<100x128xf32>
    %145 = math.absf %139 : vector<100x128xf32>
    %cst_62 = arith.constant 0.327591091 : f32
    %146 = vector.broadcast %cst_62 : f32 to vector<100x128xf32>
    %147 = arith.mulf %146, %145 : vector<100x128xf32>
    %cst_63 = arith.constant 1.000000e+00 : f32
    %148 = vector.broadcast %cst_63 : f32 to vector<100x128xf32>
    %149 = arith.addf %148, %147 : vector<100x128xf32>
    %cst_64 = arith.constant 1.000000e+00 : f32
    %150 = vector.broadcast %cst_64 : f32 to vector<100x128xf32>
    %151 = arith.divf %150, %149 : vector<100x128xf32>
    %cst_65 = arith.constant 1.06140542 : f32
    %152 = vector.broadcast %cst_65 : f32 to vector<100x128xf32>
    %153 = arith.mulf %152, %151 : vector<100x128xf32>
    %cst_66 = arith.constant -1.45315206 : f32
    %154 = vector.broadcast %cst_66 : f32 to vector<100x128xf32>
    %155 = arith.addf %153, %154 : vector<100x128xf32>
    %156 = arith.mulf %155, %151 : vector<100x128xf32>
    %cst_67 = arith.constant 1.42141378 : f32
    %157 = vector.broadcast %cst_67 : f32 to vector<100x128xf32>
    %158 = arith.addf %156, %157 : vector<100x128xf32>
    %159 = arith.mulf %158, %151 : vector<100x128xf32>
    %cst_68 = arith.constant -0.284496725 : f32
    %160 = vector.broadcast %cst_68 : f32 to vector<100x128xf32>
    %161 = arith.addf %159, %160 : vector<100x128xf32>
    %162 = arith.mulf %161, %151 : vector<100x128xf32>
    %cst_69 = arith.constant 0.254829586 : f32
    %163 = vector.broadcast %cst_69 : f32 to vector<100x128xf32>
    %164 = arith.addf %162, %163 : vector<100x128xf32>
    %165 = arith.mulf %164, %151 : vector<100x128xf32>
    %cst_70 = arith.constant 0.000000e+00 : f32
    %166 = vector.broadcast %cst_70 : f32 to vector<100x128xf32>
    %167 = arith.subf %166, %145 : vector<100x128xf32>
    %168 = arith.mulf %167, %145 : vector<100x128xf32>
    %169 = math.exp %168 : vector<100x128xf32>
    %170 = arith.mulf %165, %169 : vector<100x128xf32>
    %cst_71 = arith.constant 1.000000e+00 : f32
    %171 = vector.broadcast %cst_71 : f32 to vector<100x128xf32>
    %172 = arith.subf %171, %170 : vector<100x128xf32>
    %173 = arith.mulf %144, %172 : vector<100x128xf32>
    %cst_72 = arith.constant 1.000000e+00 : f32
    %174 = vector.broadcast %cst_72 : f32 to vector<100x128xf32>
    %175 = arith.addf %174, %173 : vector<100x128xf32>
    %176 = arith.mulf %137, %175 : vector<100x128xf32>
    %c0_73 = arith.constant 0 : index
    %c0_74 = arith.constant 0 : index
    %c0_75 = arith.constant 0 : index
    %177 = vector.load %arg11[%c0_73, %c0_74, %c0_75] : memref<2x128x32xf32, #tpu.memory_space<vmem>>, vector<1x128x32xf32>
    %178 = vector.shape_cast %177 : vector<1x128x32xf32> to vector<128x32xf32>
    %cst_76 = arith.constant dense<0.000000e+00> : vector<100x32xf32>
    %179 = tpu.matmul %176, %178, %cst_76 {dimension_numbers = #tpu.dot_dimension_numbers<[1], [0], [0], [1], [0, 0, 1, 1], [], []>} : vector<100x128xf32>, vector<128x32xf32>, vector<100x32xf32> -> vector<100x32xf32>
    %180 = arith.addf %106, %179 : vector<100x32xf32>
    %c0_77 = arith.constant 0 : index
    %c0_78 = arith.constant 0 : index
    %c0_79 = arith.constant 0 : index
    %181 = vector.load %arg12[%c0_77, %c0_78, %c0_79] : memref<2x1x32xf32, #tpu.memory_space<vmem>>, vector<1x1x32xf32>
    %182 = vector.shape_cast %181 : vector<1x1x32xf32> to vector<1x32xf32>
    %183 = vector.broadcast %182 : vector<1x32xf32> to vector<100x32xf32>
    %184 = arith.addf %180, %183 : vector<100x32xf32>
    %c1 = arith.constant 1 : index
    %c0_80 = arith.constant 0 : index
    %c0_81 = arith.constant 0 : index
    %185 = vector.load %arg3[%c1, %c0_80, %c0_81] : memref<2x1x32xf32, #tpu.memory_space<vmem>>, vector<1x1x32xf32>
    %186 = vector.shape_cast %185 : vector<1x1x32xf32> to vector<1x32xf32>
    %c1_82 = arith.constant 1 : index
    %c0_83 = arith.constant 0 : index
    %c0_84 = arith.constant 0 : index
    %187 = vector.load %arg4[%c1_82, %c0_83, %c0_84] : memref<2x1x32xf32, #tpu.memory_space<vmem>>, vector<1x1x32xf32>
    %188 = vector.shape_cast %187 : vector<1x1x32xf32> to vector<1x32xf32>
    %c1_85 = arith.constant 1 : index
    %c0_86 = arith.constant 0 : index
    %c0_87 = arith.constant 0 : index
    %189 = vector.load %arg7[%c1_85, %c0_86, %c0_87] : memref<2x1x32xf32, #tpu.memory_space<vmem>>, vector<1x1x32xf32>
    %190 = vector.shape_cast %189 : vector<1x1x32xf32> to vector<1x32xf32>
    %c1_88 = arith.constant 1 : index
    %c0_89 = arith.constant 0 : index
    %c0_90 = arith.constant 0 : index
    %191 = vector.load %arg8[%c1_88, %c0_89, %c0_90] : memref<2x1x32xf32, #tpu.memory_space<vmem>>, vector<1x1x32xf32>
    %192 = vector.shape_cast %191 : vector<1x1x32xf32> to vector<1x32xf32>
    %cst_91 = arith.constant dense<0.000000e+00> : vector<100xf32>
    %193 = vector.multi_reduction <add>, %184, %cst_91 [1] : vector<100x32xf32> to vector<100xf32>
    %194 = vector.shape_cast %193 : vector<100xf32> to vector<100x1xf32>
    %cst_92 = arith.constant 3.200000e+01 : f32
    %195 = vector.broadcast %cst_92 : f32 to vector<100x1xf32>
    %196 = arith.divf %194, %195 : vector<100x1xf32>
    %197 = vector.broadcast %196 : vector<100x1xf32> to vector<100x32xf32>
    %198 = arith.subf %184, %197 : vector<100x32xf32>
    %199 = arith.mulf %198, %198 : vector<100x32xf32>
    %cst_93 = arith.constant dense<0.000000e+00> : vector<100xf32>
    %200 = vector.multi_reduction <add>, %199, %cst_93 [1] : vector<100x32xf32> to vector<100xf32>
    %201 = vector.shape_cast %200 : vector<100xf32> to vector<100x1xf32>
    %cst_94 = arith.constant 3.200000e+01 : f32
    %202 = vector.broadcast %cst_94 : f32 to vector<100x1xf32>
    %203 = arith.divf %201, %202 : vector<100x1xf32>
    %204 = vector.broadcast %196 : vector<100x1xf32> to vector<100x32xf32>
    %205 = arith.subf %184, %204 : vector<100x32xf32>
    %cst_95 = arith.constant 9.99999974E-6 : f32
    %206 = vector.broadcast %cst_95 : f32 to vector<100x1xf32>
    %207 = arith.addf %203, %206 : vector<100x1xf32>
    %208 = math.rsqrt %207 : vector<100x1xf32>
    %209 = vector.broadcast %208 : vector<100x1xf32> to vector<100x32xf32>
    %210 = arith.mulf %205, %209 : vector<100x32xf32>
    %211 = vector.broadcast %186 : vector<1x32xf32> to vector<100x32xf32>
    %212 = arith.mulf %210, %211 : vector<100x32xf32>
    %213 = vector.broadcast %188 : vector<1x32xf32> to vector<100x32xf32>
    %214 = arith.addf %212, %213 : vector<100x32xf32>
    %c1_96 = arith.constant 1 : index
    %c0_97 = arith.constant 0 : index
    %c0_98 = arith.constant 0 : index
    %215 = vector.load %arg5[%c1_96, %c0_97, %c0_98] : memref<2x32x96xf32, #tpu.memory_space<vmem>>, vector<1x32x96xf32>
    %216 = vector.shape_cast %215 : vector<1x32x96xf32> to vector<32x96xf32>
    %cst_99 = arith.constant dense<0.000000e+00> : vector<100x96xf32>
    %217 = tpu.matmul %214, %216, %cst_99 {dimension_numbers = #tpu.dot_dimension_numbers<[1], [0], [0], [1], [0, 0, 1, 1], [], []>} : vector<100x32xf32>, vector<32x96xf32>, vector<100x96xf32> -> vector<100x96xf32>
    %c1_100 = arith.constant 1 : index
    %c0_101 = arith.constant 0 : index
    %c0_102 = arith.constant 0 : index
    %218 = vector.load %arg6[%c1_100, %c0_101, %c0_102] : memref<2x1x96xf32, #tpu.memory_space<vmem>>, vector<1x1x96xf32>
    %219 = vector.shape_cast %218 : vector<1x1x96xf32> to vector<1x96xf32>
    %220 = vector.broadcast %219 : vector<1x96xf32> to vector<100x96xf32>
    %221 = arith.addf %217, %220 : vector<100x96xf32>
    %222 = vector.extract_strided_slice %221 {offsets = [0, 0], sizes = [50, 16], strides = [1, 1]} : vector<100x96xf32> to vector<50x16xf32>
    %223 = vector.extract_strided_slice %221 {offsets = [0, 32], sizes = [50, 16], strides = [1, 1]} : vector<100x96xf32> to vector<50x16xf32>
    %224 = vector.extract_strided_slice %221 {offsets = [0, 64], sizes = [50, 16], strides = [1, 1]} : vector<100x96xf32> to vector<50x16xf32>
    %cst_103 = arith.constant dense<0.000000e+00> : vector<50x50xf32>
    %225 = tpu.matmul %222, %223, %cst_103 {dimension_numbers = #tpu.dot_dimension_numbers<[1], [1], [0], [0], [0, 0, 1, 0], [], []>} : vector<50x16xf32>, vector<50x16xf32>, vector<50x50xf32> -> vector<50x50xf32>
    %cst_104 = arith.constant dense<0xFF800000> : vector<50xf32>
    %226 = vector.multi_reduction <maximumf>, %225, %cst_104 [1] : vector<50x50xf32> to vector<50xf32>
    %227 = vector.shape_cast %226 : vector<50xf32> to vector<50x1xf32>
    %228 = vector.broadcast %227 : vector<50x1xf32> to vector<50x50xf32>
    %229 = arith.subf %225, %228 : vector<50x50xf32>
    %230 = math.exp %229 : vector<50x50xf32>
    %cst_105 = arith.constant dense<0.000000e+00> : vector<50xf32>
    %231 = vector.multi_reduction <add>, %230, %cst_105 [1] : vector<50x50xf32> to vector<50xf32>
    %232 = vector.shape_cast %231 : vector<50xf32> to vector<50x1xf32>
    %233 = tpu.reciprocal %232 {approx = true} : vector<50x1xf32> -> vector<50x1xf32>
    %234 = vector.broadcast %233 : vector<50x1xf32> to vector<50x50xf32>
    %235 = arith.mulf %230, %234 : vector<50x50xf32>
    %cst_106 = arith.constant dense<0.000000e+00> : vector<50x16xf32>
    %236 = tpu.matmul %235, %224, %cst_106 {dimension_numbers = #tpu.dot_dimension_numbers<[1], [0], [0], [1], [0, 0, 1, 1], [], []>} : vector<50x50xf32>, vector<50x16xf32>, vector<50x16xf32> -> vector<50x16xf32>
    %237 = vector.extract_strided_slice %221 {offsets = [0, 16], sizes = [50, 16], strides = [1, 1]} : vector<100x96xf32> to vector<50x16xf32>
    %238 = vector.extract_strided_slice %221 {offsets = [0, 48], sizes = [50, 16], strides = [1, 1]} : vector<100x96xf32> to vector<50x16xf32>
    %239 = vector.extract_strided_slice %221 {offsets = [0, 80], sizes = [50, 16], strides = [1, 1]} : vector<100x96xf32> to vector<50x16xf32>
    %cst_107 = arith.constant dense<0.000000e+00> : vector<50x50xf32>
    %240 = tpu.matmul %237, %238, %cst_107 {dimension_numbers = #tpu.dot_dimension_numbers<[1], [1], [0], [0], [0, 0, 1, 0], [], []>} : vector<50x16xf32>, vector<50x16xf32>, vector<50x50xf32> -> vector<50x50xf32>
    %cst_108 = arith.constant dense<0xFF800000> : vector<50xf32>
    %241 = vector.multi_reduction <maximumf>, %240, %cst_108 [1] : vector<50x50xf32> to vector<50xf32>
    %242 = vector.shape_cast %241 : vector<50xf32> to vector<50x1xf32>
    %243 = vector.broadcast %242 : vector<50x1xf32> to vector<50x50xf32>
    %244 = arith.subf %240, %243 : vector<50x50xf32>
    %245 = math.exp %244 : vector<50x50xf32>
    %cst_109 = arith.constant dense<0.000000e+00> : vector<50xf32>
    %246 = vector.multi_reduction <add>, %245, %cst_109 [1] : vector<50x50xf32> to vector<50xf32>
    %247 = vector.shape_cast %246 : vector<50xf32> to vector<50x1xf32>
    %248 = tpu.reciprocal %247 {approx = true} : vector<50x1xf32> -> vector<50x1xf32>
    %249 = vector.broadcast %248 : vector<50x1xf32> to vector<50x50xf32>
    %250 = arith.mulf %245, %249 : vector<50x50xf32>
    %cst_110 = arith.constant dense<0.000000e+00> : vector<50x16xf32>
    %251 = tpu.matmul %250, %239, %cst_110 {dimension_numbers = #tpu.dot_dimension_numbers<[1], [0], [0], [1], [0, 0, 1, 1], [], []>} : vector<50x50xf32>, vector<50x16xf32>, vector<50x16xf32> -> vector<50x16xf32>
    %252 = tpu.concatenate %236, %251 in 1 : vector<50x16xf32>, vector<50x16xf32> -> vector<50x32xf32>
    %253 = vector.extract_strided_slice %221 {offsets = [50, 0], sizes = [50, 16], strides = [1, 1]} : vector<100x96xf32> to vector<50x16xf32>
    %254 = vector.extract_strided_slice %221 {offsets = [50, 32], sizes = [50, 16], strides = [1, 1]} : vector<100x96xf32> to vector<50x16xf32>
    %255 = vector.extract_strided_slice %221 {offsets = [50, 64], sizes = [50, 16], strides = [1, 1]} : vector<100x96xf32> to vector<50x16xf32>
    %cst_111 = arith.constant dense<0.000000e+00> : vector<50x50xf32>
    %256 = tpu.matmul %253, %254, %cst_111 {dimension_numbers = #tpu.dot_dimension_numbers<[1], [1], [0], [0], [0, 0, 1, 0], [], []>} : vector<50x16xf32>, vector<50x16xf32>, vector<50x50xf32> -> vector<50x50xf32>
    %cst_112 = arith.constant dense<0xFF800000> : vector<50xf32>
    %257 = vector.multi_reduction <maximumf>, %256, %cst_112 [1] : vector<50x50xf32> to vector<50xf32>
    %258 = vector.shape_cast %257 : vector<50xf32> to vector<50x1xf32>
    %259 = vector.broadcast %258 : vector<50x1xf32> to vector<50x50xf32>
    %260 = arith.subf %256, %259 : vector<50x50xf32>
    %261 = math.exp %260 : vector<50x50xf32>
    %cst_113 = arith.constant dense<0.000000e+00> : vector<50xf32>
    %262 = vector.multi_reduction <add>, %261, %cst_113 [1] : vector<50x50xf32> to vector<50xf32>
    %263 = vector.shape_cast %262 : vector<50xf32> to vector<50x1xf32>
    %264 = tpu.reciprocal %263 {approx = true} : vector<50x1xf32> -> vector<50x1xf32>
    %265 = vector.broadcast %264 : vector<50x1xf32> to vector<50x50xf32>
    %266 = arith.mulf %261, %265 : vector<50x50xf32>
    %cst_114 = arith.constant dense<0.000000e+00> : vector<50x16xf32>
    %267 = tpu.matmul %266, %255, %cst_114 {dimension_numbers = #tpu.dot_dimension_numbers<[1], [0], [0], [1], [0, 0, 1, 1], [], []>} : vector<50x50xf32>, vector<50x16xf32>, vector<50x16xf32> -> vector<50x16xf32>
    %268 = vector.extract_strided_slice %221 {offsets = [50, 16], sizes = [50, 16], strides = [1, 1]} : vector<100x96xf32> to vector<50x16xf32>
    %269 = vector.extract_strided_slice %221 {offsets = [50, 48], sizes = [50, 16], strides = [1, 1]} : vector<100x96xf32> to vector<50x16xf32>
    %270 = vector.extract_strided_slice %221 {offsets = [50, 80], sizes = [50, 16], strides = [1, 1]} : vector<100x96xf32> to vector<50x16xf32>
    %cst_115 = arith.constant dense<0.000000e+00> : vector<50x50xf32>
    %271 = tpu.matmul %268, %269, %cst_115 {dimension_numbers = #tpu.dot_dimension_numbers<[1], [1], [0], [0], [0, 0, 1, 0], [], []>} : vector<50x16xf32>, vector<50x16xf32>, vector<50x50xf32> -> vector<50x50xf32>
    %cst_116 = arith.constant dense<0xFF800000> : vector<50xf32>
    %272 = vector.multi_reduction <maximumf>, %271, %cst_116 [1] : vector<50x50xf32> to vector<50xf32>
    %273 = vector.shape_cast %272 : vector<50xf32> to vector<50x1xf32>
    %274 = vector.broadcast %273 : vector<50x1xf32> to vector<50x50xf32>
    %275 = arith.subf %271, %274 : vector<50x50xf32>
    %276 = math.exp %275 : vector<50x50xf32>
    %cst_117 = arith.constant dense<0.000000e+00> : vector<50xf32>
    %277 = vector.multi_reduction <add>, %276, %cst_117 [1] : vector<50x50xf32> to vector<50xf32>
    %278 = vector.shape_cast %277 : vector<50xf32> to vector<50x1xf32>
    %279 = tpu.reciprocal %278 {approx = true} : vector<50x1xf32> -> vector<50x1xf32>
    %280 = vector.broadcast %279 : vector<50x1xf32> to vector<50x50xf32>
    %281 = arith.mulf %276, %280 : vector<50x50xf32>
    %cst_118 = arith.constant dense<0.000000e+00> : vector<50x16xf32>
    %282 = tpu.matmul %281, %270, %cst_118 {dimension_numbers = #tpu.dot_dimension_numbers<[1], [0], [0], [1], [0, 0, 1, 1], [], []>} : vector<50x50xf32>, vector<50x16xf32>, vector<50x16xf32> -> vector<50x16xf32>
    %283 = tpu.concatenate %267, %282 in 1 : vector<50x16xf32>, vector<50x16xf32> -> vector<50x32xf32>
    %284 = tpu.concatenate %252, %283 in 0 : vector<50x32xf32>, vector<50x32xf32> -> vector<100x32xf32>
    %285 = arith.addf %184, %284 : vector<100x32xf32>
    %cst_119 = arith.constant dense<0.000000e+00> : vector<100xf32>
    %286 = vector.multi_reduction <add>, %285, %cst_119 [1] : vector<100x32xf32> to vector<100xf32>
    %287 = vector.shape_cast %286 : vector<100xf32> to vector<100x1xf32>
    %cst_120 = arith.constant 3.200000e+01 : f32
    %288 = vector.broadcast %cst_120 : f32 to vector<100x1xf32>
    %289 = arith.divf %287, %288 : vector<100x1xf32>
    %290 = vector.broadcast %289 : vector<100x1xf32> to vector<100x32xf32>
    %291 = arith.subf %285, %290 : vector<100x32xf32>
    %292 = arith.mulf %291, %291 : vector<100x32xf32>
    %cst_121 = arith.constant dense<0.000000e+00> : vector<100xf32>
    %293 = vector.multi_reduction <add>, %292, %cst_121 [1] : vector<100x32xf32> to vector<100xf32>
    %294 = vector.shape_cast %293 : vector<100xf32> to vector<100x1xf32>
    %cst_122 = arith.constant 3.200000e+01 : f32
    %295 = vector.broadcast %cst_122 : f32 to vector<100x1xf32>
    %296 = arith.divf %294, %295 : vector<100x1xf32>
    %297 = vector.broadcast %289 : vector<100x1xf32> to vector<100x32xf32>
    %298 = arith.subf %285, %297 : vector<100x32xf32>
    %cst_123 = arith.constant 9.99999974E-6 : f32
    %299 = vector.broadcast %cst_123 : f32 to vector<100x1xf32>
    %300 = arith.addf %296, %299 : vector<100x1xf32>
    %301 = math.rsqrt %300 : vector<100x1xf32>
    %302 = vector.broadcast %301 : vector<100x1xf32> to vector<100x32xf32>
    %303 = arith.mulf %298, %302 : vector<100x32xf32>
    %304 = vector.broadcast %190 : vector<1x32xf32> to vector<100x32xf32>
    %305 = arith.mulf %303, %304 : vector<100x32xf32>
    %306 = vector.broadcast %192 : vector<1x32xf32> to vector<100x32xf32>
    %307 = arith.addf %305, %306 : vector<100x32xf32>
    %c1_124 = arith.constant 1 : index
    %c0_125 = arith.constant 0 : index
    %c0_126 = arith.constant 0 : index
    %308 = vector.load %arg9[%c1_124, %c0_125, %c0_126] : memref<2x32x128xf32, #tpu.memory_space<vmem>>, vector<1x32x128xf32>
    %309 = vector.shape_cast %308 : vector<1x32x128xf32> to vector<32x128xf32>
    %cst_127 = arith.constant dense<0.000000e+00> : vector<100x128xf32>
    %310 = tpu.matmul %307, %309, %cst_127 {dimension_numbers = #tpu.dot_dimension_numbers<[1], [0], [0], [1], [0, 0, 1, 1], [], []>} : vector<100x32xf32>, vector<32x128xf32>, vector<100x128xf32> -> vector<100x128xf32>
    %c1_128 = arith.constant 1 : index
    %c0_129 = arith.constant 0 : index
    %c0_130 = arith.constant 0 : index
    %311 = vector.load %arg10[%c1_128, %c0_129, %c0_130] : memref<2x1x128xf32, #tpu.memory_space<vmem>>, vector<1x1x128xf32>
    %312 = vector.shape_cast %311 : vector<1x1x128xf32> to vector<1x128xf32>
    %313 = vector.broadcast %312 : vector<1x128xf32> to vector<100x128xf32>
    %314 = arith.addf %310, %313 : vector<100x128xf32>
    %cst_131 = arith.constant 5.000000e-01 : f32
    %315 = vector.broadcast %cst_131 : f32 to vector<100x128xf32>
    %316 = arith.mulf %315, %314 : vector<100x128xf32>
    %cst_132 = arith.constant 0.707106769 : f32
    %317 = vector.broadcast %cst_132 : f32 to vector<100x128xf32>
    %318 = arith.mulf %314, %317 : vector<100x128xf32>
    %cst_133 = arith.constant 0.000000e+00 : f32
    %319 = vector.broadcast %cst_133 : f32 to vector<100x128xf32>
    %320 = arith.cmpf oge, %318, %319 : vector<100x128xf32>
    %cst_134 = arith.constant 1.000000e+00 : f32
    %cst_135 = arith.constant -1.000000e+00 : f32
    %321 = vector.broadcast %cst_134 : f32 to vector<100x128xf32>
    %322 = vector.broadcast %cst_135 : f32 to vector<100x128xf32>
    %323 = arith.select %320, %321, %322 : vector<100x128xi1>, vector<100x128xf32>
    %324 = math.absf %318 : vector<100x128xf32>
    %cst_136 = arith.constant 0.327591091 : f32
    %325 = vector.broadcast %cst_136 : f32 to vector<100x128xf32>
    %326 = arith.mulf %325, %324 : vector<100x128xf32>
    %cst_137 = arith.constant 1.000000e+00 : f32
    %327 = vector.broadcast %cst_137 : f32 to vector<100x128xf32>
    %328 = arith.addf %327, %326 : vector<100x128xf32>
    %cst_138 = arith.constant 1.000000e+00 : f32
    %329 = vector.broadcast %cst_138 : f32 to vector<100x128xf32>
    %330 = arith.divf %329, %328 : vector<100x128xf32>
    %cst_139 = arith.constant 1.06140542 : f32
    %331 = vector.broadcast %cst_139 : f32 to vector<100x128xf32>
    %332 = arith.mulf %331, %330 : vector<100x128xf32>
    %cst_140 = arith.constant -1.45315206 : f32
    %333 = vector.broadcast %cst_140 : f32 to vector<100x128xf32>
    %334 = arith.addf %332, %333 : vector<100x128xf32>
    %335 = arith.mulf %334, %330 : vector<100x128xf32>
    %cst_141 = arith.constant 1.42141378 : f32
    %336 = vector.broadcast %cst_141 : f32 to vector<100x128xf32>
    %337 = arith.addf %335, %336 : vector<100x128xf32>
    %338 = arith.mulf %337, %330 : vector<100x128xf32>
    %cst_142 = arith.constant -0.284496725 : f32
    %339 = vector.broadcast %cst_142 : f32 to vector<100x128xf32>
    %340 = arith.addf %338, %339 : vector<100x128xf32>
    %341 = arith.mulf %340, %330 : vector<100x128xf32>
    %cst_143 = arith.constant 0.254829586 : f32
    %342 = vector.broadcast %cst_143 : f32 to vector<100x128xf32>
    %343 = arith.addf %341, %342 : vector<100x128xf32>
    %344 = arith.mulf %343, %330 : vector<100x128xf32>
    %cst_144 = arith.constant 0.000000e+00 : f32
    %345 = vector.broadcast %cst_144 : f32 to vector<100x128xf32>
    %346 = arith.subf %345, %324 : vector<100x128xf32>
    %347 = arith.mulf %346, %324 : vector<100x128xf32>
    %348 = math.exp %347 : vector<100x128xf32>
    %349 = arith.mulf %344, %348 : vector<100x128xf32>
    %cst_145 = arith.constant 1.000000e+00 : f32
    %350 = vector.broadcast %cst_145 : f32 to vector<100x128xf32>
    %351 = arith.subf %350, %349 : vector<100x128xf32>
    %352 = arith.mulf %323, %351 : vector<100x128xf32>
    %cst_146 = arith.constant 1.000000e+00 : f32
    %353 = vector.broadcast %cst_146 : f32 to vector<100x128xf32>
    %354 = arith.addf %353, %352 : vector<100x128xf32>
    %355 = arith.mulf %316, %354 : vector<100x128xf32>
    %c1_147 = arith.constant 1 : index
    %c0_148 = arith.constant 0 : index
    %c0_149 = arith.constant 0 : index
    %356 = vector.load %arg11[%c1_147, %c0_148, %c0_149] : memref<2x128x32xf32, #tpu.memory_space<vmem>>, vector<1x128x32xf32>
    %357 = vector.shape_cast %356 : vector<1x128x32xf32> to vector<128x32xf32>
    %cst_150 = arith.constant dense<0.000000e+00> : vector<100x32xf32>
    %358 = tpu.matmul %355, %357, %cst_150 {dimension_numbers = #tpu.dot_dimension_numbers<[1], [0], [0], [1], [0, 0, 1, 1], [], []>} : vector<100x128xf32>, vector<128x32xf32>, vector<100x32xf32> -> vector<100x32xf32>
    %359 = arith.addf %285, %358 : vector<100x32xf32>
    %c1_151 = arith.constant 1 : index
    %c0_152 = arith.constant 0 : index
    %c0_153 = arith.constant 0 : index
    %360 = vector.load %arg12[%c1_151, %c0_152, %c0_153] : memref<2x1x32xf32, #tpu.memory_space<vmem>>, vector<1x1x32xf32>
    %361 = vector.shape_cast %360 : vector<1x1x32xf32> to vector<1x32xf32>
    %362 = vector.broadcast %361 : vector<1x32xf32> to vector<100x32xf32>
    %363 = arith.addf %359, %362 : vector<100x32xf32>
    %364 = vector.extract_strided_slice %363 {offsets = [0, 0], sizes = [1, 32], strides = [1, 1]} : vector<100x32xf32> to vector<1x32xf32>
    %365 = vector.extract_strided_slice %363 {offsets = [50, 0], sizes = [1, 32], strides = [1, 1]} : vector<100x32xf32> to vector<1x32xf32>
    %366 = tpu.concatenate %364, %365 in 0 : vector<1x32xf32>, vector<1x32xf32> -> vector<2x32xf32>
    %c0_154 = arith.constant 0 : index
    %c0_155 = arith.constant 0 : index
    %367 = vector.load %arg13[%c0_154, %c0_155] : memref<32x10xf32, #tpu.memory_space<vmem>>, vector<32x10xf32>
    %cst_156 = arith.constant dense<0.000000e+00> : vector<2x10xf32>
    %368 = tpu.matmul %366, %367, %cst_156 {dimension_numbers = #tpu.dot_dimension_numbers<[1], [0], [0], [1], [0, 0, 1, 1], [], []>} : vector<2x32xf32>, vector<32x10xf32>, vector<2x10xf32> -> vector<2x10xf32>
    %c0_157 = arith.constant 0 : index
    %c0_158 = arith.constant 0 : index
    %369 = vector.load %arg14[%c0_157, %c0_158] : memref<1x10xf32, #tpu.memory_space<vmem>>, vector<1x10xf32>
    %370 = vector.broadcast %369 : vector<1x10xf32> to vector<2x10xf32>
    %371 = arith.addf %368, %370 : vector<2x10xf32>
    %cst_159 = arith.constant dense<0xFF800000> : vector<2xf32>
    %372 = vector.multi_reduction <maximumf>, %371, %cst_159 [1] : vector<2x10xf32> to vector<2xf32>
    %373 = vector.shape_cast %372 : vector<2xf32> to vector<2x1xf32>
    %374 = vector.broadcast %373 : vector<2x1xf32> to vector<2x10xf32>
    %375 = arith.subf %371, %374 : vector<2x10xf32>
    %376 = math.exp %375 : vector<2x10xf32>
    %cst_160 = arith.constant dense<0.000000e+00> : vector<2xf32>
    %377 = vector.multi_reduction <add>, %376, %cst_160 [1] : vector<2x10xf32> to vector<2xf32>
    %378 = vector.shape_cast %377 : vector<2xf32> to vector<2x1xf32>
    %379 = vector.broadcast %378 : vector<2x1xf32> to vector<2x10xf32>
    %380 = arith.divf %376, %379 : vector<2x10xf32>
    %c0_161 = arith.constant 0 : index
    %c0_162 = arith.constant 0 : index
    %381 = vector.load %arg15[%c0_161, %c0_162] : memref<2x10xf32, #tpu.memory_space<vmem>>, vector<2x10xf32>
    tpu.vector_store %arg15[%c0_161, %c0_162], %380 {strides = array<i32>} : memref<2x10xf32, #tpu.memory_space<vmem>>, vector<2x10xf32>,
    return
  }
}

</mosaic_0001>

<bundles_post_ra>
// kernel: pallas_myvit_forward.1
= control target key start
LH: loop header
LB: loop body
LE: loop exit
PB: predicated region body
PF: predicated region fallthrough
CT: control target
= control target key end

     0   :  { %vm141_vm0 = vcmask 1043456   ;;  %v12207_v2 = vmov 0.0   ;;  %vm8775_vm1 = vmmov 0   ;;  %vm101_vm2 = vcmask 31744   ;;  %s12189_s0 = inlined_call_operand.vmem [shape: f32[100,4], index: 0, kind: input, shape index: {}]   ;;  %s12190_s1 = inlined_call_operand.vmem [shape: f32[4,32], index: 1, kind: input, shape index: {}]   ;;  %s12191_s2 = inlined_call_operand.vmem [shape: f32[50,32], index: 2, kind: input, shape index: {}]   ;;  %s12192_s3 = inlined_call_operand.vmem [shape: f32[2,1,32], index: 3, kind: input, shape index: {}]   ;;  %s12193_s4 = inlined_call_operand.vmem [shape: f32[2,1,32], index: 4, kind: input, shape index: {}]   ;;  %s12194_s5 = inlined_call_operand.vmem [shape: f32[2,32,96], index: 5, kind: input, shape index: {}]   ;;  %s12195_s6 = inlined_call_operand.vmem [shape: f32[2,1,96], index: 6, kind: input, shape index: {}]   ;;  %s12196_s7 = inlined_call_operand.vmem [shape: f32[2,1,32], index: 7, kind: input, shape index: {}]   ;;  %s12197_s8 = inlined_call_operand.vmem [shape: f32[2,1,32], index: 8, kind: input, shape index: {}]   ;;  %s12198_s9 = inlined_call_operand.vmem [shape: f32[2,32,128], index: 9, kind: input, shape index: {}]   ;;  %s12199_s10 = inlined_call_operand.vmem [shape: f32[2,1,128], index: 10, kind: input, shape index: {}]   ;;  %s12200_s11 = inlined_call_operand.vmem [shape: f32[2,128,32], index: 11, kind: input, shape index: {}]   ;;  %s12201_s12 = inlined_call_operand.vmem [shape: f32[2,1,32], index: 12, kind: input, shape index: {}]   ;;  %s12202_s13 = inlined_call_operand.vmem [shape: f32[32,10], index: 13, kind: input, shape index: {}]   ;;  %s12203_s14 = inlined_call_operand.vmem [shape: f32[1,10], index: 14, kind: input, shape index: {}]   ;;  %s12204_s15 = inlined_call_operand.hbm [shape: f32[2,10], index: 15, kind: output, shape index: {}]  }
   0x1   :  { %v64_v0 = vld [vmem:[%s12190_s1] sm:$0xf]  ;;  %6875 = vmatprep.subr.mxu0 %v12207_v2  ;;  %6877 = vmatprep.mubr.msk.f32.mxu0 %vm8775_vm1, %v12207_v2  ;;  %v52_v3 = vld [vmem:[%s12189_s0 + $0x8] sm:$0xff] }
   0x2   :  { %v51_v1 = vld [vmem:[%s12189_s0] sm:$0xff]  ;;  %6876 = vmatpush3.msk.msra.mxu0 %vm141_vm0, %v64_v0  ;;  %6924 = vmatprep.mubr.msk.f32.mxu1 %vm8775_vm1, %v12207_v2 }
   0x3   :  { %6878 = vmatmul.mubr.msk.f32.vlgmr.msra.gmra.mrb[0].mxu0 %vm101_vm2, %v51_v1 }
   0x4   :  { %6880 = vmatprep.mubr.msk.f32.mxu0 %vm8775_vm1, %v12207_v2 }
   0x5   :  { %20 = vsyncpa [#allocation3], 0  ;;  %v53_v4 = vld [vmem:[%s12189_s0 + $0x10] sm:$0xff]  ;;  %v54_v5 = vld [vmem:[%s12189_s0 + $0x18] sm:$0xff]  ;;  %vm279_vm3 = vcmask 261120   ;;  %vm79_vm4 = vcmask 1041408  }
   0x6   :  { %v55_v6 = vld [vmem:[%s12189_s0 + $0x20] sm:$0xff]  ;;  %v56_v7 = vld [vmem:[%s12189_s0 + $0x28] sm:$0xff]  ;;  %v57_v8 = vld [vmem:[%s12189_s0 + $0x30] sm:$0xff]  ;;  %vm316_vm5 = vcmask 257024   ;;  %s8777_s22 = smov 96   ;;  %s8778_s23 = smov 80  }
   0x7   :  { %6881 = vmatmul.mubr.msk.f32.gmra.mrb[2].mxu0 %vm101_vm2, %v52_v3  ;;  %v58_v9 = vld [vmem:[%s12189_s0 + $0x38] sm:$0xff]  ;;  %v59_v10 = vld [vmem:[%s12189_s0 + $0x40] sm:$0xff]  ;;  %v60_v11 = vld [vmem:[%s12189_s0 + $0x48] sm:$0xff]  ;;  %vm1458_vm6 = vcmask 1045504   ;;  %s8779_s24 = smov 112   ;;  %s8780_s25 = smov 64  }
   0x8   :  { %6883 = vmatprep.mubr.msk.f32.mxu0 %vm8775_vm1, %v12207_v2  ;;  %v61_v12 = vld [vmem:[%s12189_s0 + $0x50] sm:$0xff]  ;;  %v62_v13 = vld [vmem:[%s12189_s0 + $0x58] sm:$0xff]  ;;  %v63_v14 = vld [vmem:[%s12189_s0 + $0x60] sm:$0xf]  ;;  %vm690_vm7 = vcmask 130048   ;;  %vm819_vm9 = vcmask 408576  }
   0x9   :  { %v65_v15 = vld [vmem:[%s12191_s2] sm:$0xff]  ;;  %v66_v19 = vld [vmem:[%s12191_s2 + $0x8] sm:$0xff]  ;;  %v67_v24 = vld [vmem:[%s12191_s2 + $0x10] sm:$0xff]  ;;  %vm838_vm10 = vcmask 402432   ;;  %s8782_s26 = smov 16  }
   0xa   :  { %v68_v29 = vld [vmem:[%s12191_s2 + $0x18] sm:$0xff]  ;;  %v69_v34 = vld [vmem:[%s12191_s2 + $0x20] sm:$0xff]  ;;  %v80_v39 = vrot.slane %v65_v15, 6  ;;  %v70_v40 = vld [vmem:[%s12191_s2 + $0x28] sm:$0xff]  ;;  %v81_v46 = vrot.slane %v66_v19, 6  ;;  %v83_v52 = vrot.slane %v67_v24, 6 }
   0xb   :  { %6884 = vmatmul.mubr.msk.f32.gmra.mrb[4].mxu0 %vm101_vm2, %v53_v4  ;;  %v71_v42 = vld [vmem:[%s12191_s2 + $0x30] sm:$0x3]  ;;  %v85_v58 = vrot.slane %v68_v29, 6  ;;  %v87_v0 = vrot.slane %v69_v34, 6  ;;  %s8781_s2 = smov 48   ;;  %vm9371_vm8 = vmpackc.low %vm690_vm7, %vm690_vm7 }
   0xc   :  { %6886 = vmatprep.mubr.msk.f32.mxu0 %vm8775_vm1, %v12207_v2  ;;  %v100_v47 = vsel %vm79_vm4, %v71_v42, %v80_v39  ;;  %v82_v53 = vsel %vm79_vm4, %v80_v39, %v81_v46  ;;  %v84_v59 = vsel %vm79_vm4, %v81_v46, %v83_v52 }
   0xd   :  { %v86_v1 = vsel %vm79_vm4, %v83_v52, %v85_v58 }
   0xf   :  { %6887 = vmatmul.mubr.msk.f32.gmra.mrb[6].mxu0 %vm101_vm2, %v54_v5 }
  0x10   :  { %6889 = vmatprep.mubr.msk.f32.mxu0 %vm8775_vm1, %v12207_v2 }
  0x13   :  { %6890 = vmatmul.mubr.msk.f32.gmra.mrb[8].mxu0 %vm101_vm2, %v55_v6 }
  0x14   :  { %6892 = vmatprep.mubr.msk.f32.mxu0 %vm8775_vm1, %v12207_v2 }
  0x17   :  { %6893 = vmatmul.mubr.msk.f32.gmra.mrb[10].mxu0 %vm101_vm2, %v56_v7  ;;  %v89_v7 = vrot.slane %v70_v40, 6 }
  0x18   :  { %6895 = vmatprep.mubr.msk.f32.mxu0 %vm8775_vm1, %v12207_v2 }
  0x1b   :  { %6896 = vmatmul.mubr.msk.f32.gmra.mrb[12].mxu0 %vm101_vm2, %v57_v8  ;;  %v88_v8 = vsel %vm79_vm4, %v85_v58, %v87_v0 }
  0x1c   :  { %6898 = vmatprep.mubr.msk.f32.mxu0 %vm8775_vm1, %v12207_v2 }
  0x1f   :  { %6899 = vmatmul.mubr.msk.f32.gmra.mrb[14].mxu0 %vm101_vm2, %v58_v9 }
  0x20   :  { %6901 = vmatprep.mubr.msk.f32.mxu0 %vm8775_vm1, %v12207_v2 }
  0x23   :  { %6902 = vmatmul.mubr.msk.f32.gmra.mrb[16].mxu0 %vm101_vm2, %v59_v10 }
  0x24   :  { %6904 = vmatprep.mubr.msk.f32.mxu0 %vm8775_vm1, %v12207_v2 }
  0x27   :  { %6905 = vmatmul.mubr.msk.f32.gmra.mrb[18].mxu0 %vm101_vm2, %v60_v11 }
  0x28   :  { %6907 = vmatprep.mubr.msk.f32.mxu0 %vm8775_vm1, %v12207_v2 }
  0x2b   :  { %6908 = vmatmul.mubr.msk.f32.gmra.mrb[20].mxu0 %vm101_vm2, %v61_v12 }
  0x2c   :  { %6910 = vmatprep.mubr.msk.f32.mxu0 %vm8775_vm1, %v12207_v2 }
  0x2f   :  { %6911 = vmatmul.mubr.msk.f32.gmra.mrb[22].mxu0 %vm101_vm2, %v62_v13  ;;  %v91_v13 = vrot.slane %v71_v42, 6 }
  0x30   :  { %6913 = vmatprep.mubr.msk.f32.mxu0 %vm8775_vm1, %v12207_v2 }
  0x33   :  { %6914 = vmatmul.mubr.msk.f32.gmra.mrb[24].mxu0 %vm101_vm2, %v63_v14  ;;  %v90_v14 = vsel %vm79_vm4, %v87_v0, %v89_v7 }
  0x34   :  { %6977 = vmatprep.mubr.msk.f32.mxu0 %vm8775_vm1, %v12207_v2 }
  0xd6   :  { %v211_v16 = vpop.f32.mrb[0].mxu0 }
  0xd7   :  { %v8954_v17 = vadd.f32 %v211_v16, %v65_v15  ;;  %v6879_v18 = vpop.f32.mrb[1].mxu0 }
  0xd9   :  { %v280_v20 = vsel %vm279_vm3, %v8954_v17, 0.0 }
  0xda   :  { %281 = vadd.xlane.f32.xlu0 %v280_v20  ;;  %v216_v21 = vpop.f32.mrb[2].mxu0  ;;  %v92_v20 = vsel %vm79_vm4, %v89_v7, %v91_v13 }
  0xdb   :  { %v8961_v22 = vadd.f32 %v216_v21, %v66_v19  ;;  %v6882_v23 = vpop.f32.mrb[3].mxu0 }
  0xdd   :  { %v283_v25 = vsel %vm279_vm3, %v8961_v22, 0.0 }
  0xde   :  { %284 = vadd.xlane.f32.xlu0 %v283_v25  ;;  %v221_v26 = vpop.f32.mrb[4].mxu0 }
  0xdf   :  { %v8968_v27 = vadd.f32 %v221_v26, %v67_v24  ;;  %v6885_v28 = vpop.f32.mrb[5].mxu0 }
  0xe1   :  { %v286_v30 = vsel %vm279_vm3, %v8968_v27, 0.0 }
  0xe2   :  { %287 = vadd.xlane.f32.xlu1 %v286_v30  ;;  %v226_v31 = vpop.f32.mrb[6].mxu0 }
  0xe3   :  { %v8975_v32 = vadd.f32 %v226_v31, %v68_v29  ;;  %v6888_v33 = vpop.f32.mrb[7].mxu0 }
  0xe5   :  { %v289_v35 = vsel %vm279_vm3, %v8975_v32, 0.0 }
  0xe6   :  { %290 = vadd.xlane.f32.xlu1 %v289_v35  ;;  %v231_v36 = vpop.f32.mrb[8].mxu0 }
  0xe7   :  { %v8982_v37 = vadd.f32 %v231_v36, %v69_v34  ;;  %v6891_v38 = vpop.f32.mrb[9].mxu0 }
  0xe9   :  { %v292_v41 = vsel %vm279_vm3, %v8982_v37, 0.0 }
  0xea   :  { %293 = vadd.xlane.f32.xlu0 %v292_v41  ;;  %v236_v43 = vpop.f32.mrb[10].mxu0 }
  0xeb   :  { %v8992_v44 = vadd.f32 %v236_v43, %v70_v40  ;;  %v6894_v45 = vpop.f32.mrb[11].mxu0 }
  0xed   :  { %v295_v48 = vsel %vm279_vm3, %v8992_v44, 0.0 }
  0xee   :  { %296 = vadd.xlane.f32.xlu1 %v295_v48  ;;  %v241_v49 = vpop.f32.mrb[12].mxu0 }
  0xef   :  { %v8997_v50 = vadd.f32 %v241_v49, %v100_v47  ;;  %v6897_v51 = vpop.f32.mrb[13].mxu0 }
  0xf1   :  { %v298_v54 = vsel %vm279_vm3, %v8997_v50, 0.0 }
  0xf2   :  { %299 = vadd.xlane.f32.xlu0 %v298_v54  ;;  %v246_v55 = vpop.f32.mrb[14].mxu0 }
  0xf3   :  { %v9002_v56 = vadd.f32 %v246_v55, %v82_v53  ;;  %v6900_v57 = vpop.f32.mrb[15].mxu0 }
  0xf5   :  { %v301_v60 = vsel %vm279_vm3, %v9002_v56, 0.0 }
  0xf6   :  { %302 = vadd.xlane.f32.xlu1 %v301_v60  ;;  %v251_v61 = vpop.f32.mrb[16].mxu0 }
  0xf7   :  { %v9007_v62 = vadd.f32 %v251_v61, %v84_v59  ;;  %v6903_v63 = vpop.f32.mrb[17].mxu0 }
  0xf9   :  { %v304_v3 = vsel %vm279_vm3, %v9007_v62, 0.0 }
  0xfa   :  { %305 = vadd.xlane.f32.xlu0 %v304_v3  ;;  %v256_v4 = vpop.f32.mrb[18].mxu0 }
  0xfb   :  { %v9012_v5 = vadd.f32 %v256_v4, %v86_v1  ;;  %v6906_v6 = vpop.f32.mrb[19].mxu0 }
  0xfd   :  { %v307_v9 = vsel %vm279_vm3, %v9012_v5, 0.0 }
  0xfe   :  { %308 = vadd.xlane.f32.xlu1 %v307_v9  ;;  %v261_v10 = vpop.f32.mrb[20].mxu0 }
  0xff   :  { %v9017_v11 = vadd.f32 %v261_v10, %v88_v8  ;;  %v6909_v12 = vpop.f32.mrb[21].mxu0 }
 0x101   :  { %12217 = vst [vmem:[#allocation5_spill] sm:$0xff] %v9017_v11  ;;  %v310_v15 = vsel %vm279_vm3, %v9017_v11, 0.0 }
 0x102   :  { %311 = vadd.xlane.f32.xlu0 %v310_v15  ;;  %v266_v16 = vpop.f32.mrb[22].mxu0  ;;  %v490_v15 = vld [vmem:[%s12194_s5 + $0x8] sm:$0xff] }
 0x103   :  { %v9022_v18 = vadd.f32 %v266_v16, %v90_v14  ;;  %v6912_v19 = vpop.f32.mrb[23].mxu0  ;;  %v489_v14 = vld [vmem:[%s12194_s5] sm:$0xff] }
 0x104   :  { %v7818_v16 = vpack.c.bf16 %v490_v15, %v489_v14 }
 0x105   :  { %12218 = vst [vmem:[#allocation6_spill] sm:$0xff] %v9022_v18  ;;  %v313_v21 = vsel %vm279_vm3, %v9022_v18, 0.0 }
 0x106   :  { %314 = vadd.xlane.f32.xlu1 %v313_v21  ;;  %v271_v23 = vpop.f32.mrb[24].mxu0  ;;  %v12205_v21 = vmov 0.0|0.0  }
 0x107   :  { %v9027_v24 = vadd.f32 %v271_v23, %v92_v20  ;;  %v6915_v25 = vpop.f32.mrb[25].mxu0  ;;  %7817 = vmatprep.subr.bf16.mxu1 %v12205_v21  ;;  %7823 = vmatprep.subr.bf16.mxu0 %v12205_v21 }
 0x108   :  { %7819 = vmatpush3.bf16.msra.mxu1 %v7818_v16  ;;  %v9128_v16 = vld [vmem:[%s12192_s3] ss:$0 sm:$0xff] }
 0x109   :  { %12219 = vst [vmem:[#allocation7_spill] sm:$0xff] %v9027_v24  ;;  %v317_v26 = vsel %vm316_vm5, %v9027_v24, 0.0  ;;  %7820 = vmatprep.subr.bf16.mxu1 %v12205_v21 }
 0x10a   :  { %318 = vadd.xlane.f32.xlu0 %v317_v26 }
 0x167   :  { %v282_v28 = vpop.xlane.xlu0 %281 }
 0x168   :  { %v321_v29 = vmul.f32 0.03125, %v282_v28  ;;  %v491_v28 = vld [vmem:[%s12194_s5 + $0x10] sm:$0xff] }
 0x16a   :  { %v9032_v30 = vsub.f32 %v8954_v17, %v321_v29  ;;  %v492_v29 = vld [vmem:[%s12194_s5 + $0x18] sm:$0xff] }
 0x16b   :  { %v285_v31 = vpop.xlane.xlu0 %284 }
 0x16c   :  { %v322_v33 = vmul.f32 0.03125, %v285_v31  ;;  %v347_v34 = vmul.f32 %v9032_v30, %v9032_v30  ;;  %v7821_v31 = vpack.c.bf16 %v492_v29, %v491_v28 }
 0x16e   :  { %v9037_v35 = vsub.f32 %v8961_v22, %v322_v33  ;;  %v360_v36 = vsel %vm279_vm3, %v347_v34, 0.0  ;;  %7822 = vmatpush3.bf16.msra.mxu1 %v7821_v31 }
 0x16f   :  { %v288_v38 = vpop.xlane.xlu1 %287  ;;  %361 = vadd.xlane.f32.xlu1 %v360_v36  ;;  %7835 = vmatprep.subr.bf16.mxu1 %v12205_v21 }
 0x170   :  { %v323_v39 = vmul.f32 0.03125, %v288_v38  ;;  %v348_v40 = vmul.f32 %v9037_v35, %v9037_v35 }
 0x172   :  { %v9043_v41 = vsub.f32 %v8968_v27, %v323_v39  ;;  %v363_v42 = vsel %vm279_vm3, %v348_v40, 0.0 }
 0x173   :  { %v291_v43 = vpop.xlane.xlu1 %290  ;;  %364 = vadd.xlane.f32.xlu0 %v363_v42 }
 0x174   :  { %v324_v45 = vmul.f32 0.03125, %v291_v43  ;;  %v349_v46 = vmul.f32 %v9043_v41, %v9043_v41 }
 0x176   :  { %v9049_v47 = vsub.f32 %v8975_v32, %v324_v45  ;;  %v366_v48 = vsel %vm279_vm3, %v349_v46, 0.0 }
 0x177   :  { %v294_v49 = vpop.xlane.xlu0 %293  ;;  %367 = vadd.xlane.f32.xlu1 %v366_v48 }
 0x178   :  { %v325_v51 = vmul.f32 0.03125, %v294_v49  ;;  %v350_v52 = vmul.f32 %v9049_v47, %v9049_v47 }
 0x17a   :  { %v9055_v53 = vsub.f32 %v8982_v37, %v325_v51  ;;  %v369_v54 = vsel %vm279_vm3, %v350_v52, 0.0 }
 0x17b   :  { %v297_v55 = vpop.xlane.xlu1 %296  ;;  %370 = vadd.xlane.f32.xlu0 %v369_v54 }
 0x17c   :  { %v326_v57 = vmul.f32 0.03125, %v297_v55  ;;  %v351_v58 = vmul.f32 %v9055_v53, %v9055_v53 }
 0x17e   :  { %v9061_v59 = vsub.f32 %v8992_v44, %v326_v57  ;;  %v372_v60 = vsel %vm279_vm3, %v351_v58, 0.0 }
 0x17f   :  { %v300_v61 = vpop.xlane.xlu0 %299  ;;  %373 = vadd.xlane.f32.xlu1 %v372_v60 }
 0x180   :  { %v327_v63 = vmul.f32 0.03125, %v300_v61  ;;  %v352_v0 = vmul.f32 %v9061_v59, %v9061_v59 }
 0x182   :  { %v9067_v1 = vsub.f32 %v8997_v50, %v327_v63  ;;  %v375_v3 = vsel %vm279_vm3, %v352_v0, 0.0 }
 0x183   :  { %v303_v4 = vpop.xlane.xlu1 %302  ;;  %376 = vadd.xlane.f32.xlu0 %v375_v3 }
 0x184   :  { %v328_v6 = vmul.f32 0.03125, %v303_v4  ;;  %v353_v7 = vmul.f32 %v9067_v1, %v9067_v1 }
 0x186   :  { %v9073_v8 = vsub.f32 %v9002_v56, %v328_v6  ;;  %v378_v9 = vsel %vm279_vm3, %v353_v7, 0.0 }
 0x187   :  { %v306_v10 = vpop.xlane.xlu0 %305  ;;  %379 = vadd.xlane.f32.xlu1 %v378_v9 }
 0x188   :  { %v329_v12 = vmul.f32 0.03125, %v306_v10  ;;  %v354_v13 = vmul.f32 %v9073_v8, %v9073_v8 }
 0x18a   :  { %v9085_v19 = vsub.f32 %v9007_v62, %v329_v12  ;;  %v381_v20 = vsel %vm279_vm3, %v354_v13, 0.0 }
 0x18b   :  { %v309_v23 = vpop.xlane.xlu1 %308  ;;  %382 = vadd.xlane.f32.xlu0 %v381_v20 }
 0x18c   :  { %v330_v25 = vmul.f32 0.03125, %v309_v23  ;;  %v355_v26 = vmul.f32 %v9085_v19, %v9085_v19 }
 0x18e   :  { %v9100_v33 = vsub.f32 %v9012_v5, %v330_v25  ;;  %v384_v34 = vsel %vm279_vm3, %v355_v26, 0.0  ;;  %v9134_v26 = vld [vmem:[%s12193_s4] ss:$0 sm:$0xff] }
 0x18f   :  { %v312_v36 = vpop.xlane.xlu0 %311  ;;  %385 = vadd.xlane.f32.xlu1 %v384_v34 }
 0x190   :  { %v331_v38 = vmul.f32 0.03125, %v312_v36  ;;  %v356_v39 = vmul.f32 %v9100_v33, %v9100_v33 }
 0x192   :  { %v9107_v40 = vsub.f32 %v9017_v11, %v331_v38  ;;  %v387_v42 = vsel %vm279_vm3, %v356_v39, 0.0 }
 0x193   :  { %v315_v43 = vpop.xlane.xlu1 %314  ;;  %388 = vadd.xlane.f32.xlu0 %v387_v42 }
 0x194   :  { %v332_v45 = vmul.f32 0.03125, %v315_v43  ;;  %v357_v46 = vmul.f32 %v9107_v40, %v9107_v40 }
 0x196   :  { %v9113_v48 = vsub.f32 %v9022_v18, %v332_v45  ;;  %v390_v49 = vsel %vm279_vm3, %v357_v46, 0.0 }
 0x197   :  { %391 = vadd.xlane.f32.xlu1 %v390_v49  ;;  %v319_v51 = vpop.xlane.xlu0 %318 }
 0x198   :  { %v333_v52 = vmul.f32 0.03125, %v319_v51  ;;  %v358_v54 = vmul.f32 %v9113_v48, %v9113_v48 }
 0x19a   :  { %v9119_v55 = vsub.f32 %v9027_v24, %v333_v52  ;;  %v393_v57 = vsel %vm279_vm3, %v358_v54, 0.0 }
 0x19b   :  { %394 = vadd.xlane.f32.xlu0 %v393_v57 }
 0x19c   :  { %v359_v58 = vmul.f32 %v9119_v55, %v9119_v55 }
 0x19e   :  { %v396_v60 = vsel %vm316_vm5, %v359_v58, 0.0 }
 0x19f   :  { %397 = vadd.xlane.f32.xlu1 %v396_v60 }
 0x1fc   :  { %v362_v61 = vpop.xlane.xlu1 %361 }
 0x1fd   :  { %v399_v63 = vmul.f32 0.03125, %v362_v61 }
 0x1ff   :  { %v412_v0 = vadd.f32 1e-05, %v399_v63 }
 0x200   :  { %v365_v3 = vpop.xlane.xlu0 %364 }
 0x201   :  { %8314 = vrsqrt.f32 %v412_v0  ;;  %v400_v4 = vmul.f32 0.03125, %v365_v3 }
 0x203   :  { %v413_v6 = vadd.f32 1e-05, %v400_v4 }
 0x204   :  { %v368_v7 = vpop.xlane.xlu1 %367 }
 0x205   :  { %8316 = vrsqrt.f32 %v413_v6  ;;  %v401_v9 = vmul.f32 0.03125, %v368_v7 }
 0x207   :  { %v414_v10 = vadd.f32 1e-05, %v401_v9 }
 0x208   :  { %v371_v12 = vpop.xlane.xlu0 %370 }
 0x209   :  { %8318 = vrsqrt.f32 %v414_v10  ;;  %v402_v13 = vmul.f32 0.03125, %v371_v12 }
 0x20b   :  { %v8315_v14 = vpop.eup %8314  ;;  %v415_v15 = vadd.f32 1e-05, %v402_v13 }
 0x20c   :  { %v374_v20 = vpop.xlane.xlu1 %373  ;;  %v438_v23 = vmul.f32 %v8315_v14, %v9032_v30 }
 0x20d   :  { %8320 = vrsqrt.f32 %v415_v15  ;;  %v403_v25 = vmul.f32 0.03125, %v374_v20 }
 0x20e   :  { %v457_v28 = vmul.f32 %v9128_v16, %v438_v23 }
 0x20f   :  { %v8317_v29 = vpop.eup %8316  ;;  %v416_v31 = vadd.f32 1e-05, %v403_v25 }
 0x210   :  { %v377_v34 = vpop.xlane.xlu0 %376  ;;  %v476_v36 = vadd.f32 %v9134_v26, %v457_v28  ;;  %v439_v38 = vmul.f32 %v8317_v29, %v9037_v35 }
 0x211   :  { %8322 = vrsqrt.f32 %v416_v31  ;;  %v404_v39 = vmul.f32 0.03125, %v377_v34 }
 0x212   :  { %6925 = vmatmul.mubr.msk.f32.vlgmr.msra.gmra.mrb[0].mxu1 %vm279_vm3, %v476_v36  ;;  %v458_v30 = vmul.f32 %v9128_v16, %v439_v38 }
 0x213   :  { %v8319_v42 = vpop.eup %8318  ;;  %v417_v43 = vadd.f32 1e-05, %v404_v39  ;;  %6927 = vmatprep.mubr.msk.f32.mxu1 %vm8775_vm1, %v12207_v2 }
 0x214   :  { %v380_v45 = vpop.xlane.xlu1 %379  ;;  %v477_v46 = vadd.f32 %v9134_v26, %v458_v30  ;;  %v440_v49 = vmul.f32 %v8319_v42, %v9043_v41 }
 0x215   :  { %8324 = vrsqrt.f32 %v417_v43  ;;  %v405_v51 = vmul.f32 0.03125, %v380_v45 }
 0x216   :  { %6928 = vmatmul.mubr.msk.f32.gmra.mrb[2].mxu1 %vm279_vm3, %v477_v46  ;;  %v459_v35 = vmul.f32 %v9128_v16, %v440_v49 }
 0x217   :  { %v8321_v52 = vpop.eup %8320  ;;  %v418_v54 = vadd.f32 1e-05, %v405_v51  ;;  %6930 = vmatprep.mubr.msk.f32.mxu1 %vm8775_vm1, %v12207_v2 }
 0x218   :  { %v383_v57 = vpop.xlane.xlu0 %382  ;;  %v478_v58 = vadd.f32 %v9134_v26, %v459_v35  ;;  %v441_v60 = vmul.f32 %v8321_v52, %v9049_v47 }
 0x219   :  { %8326 = vrsqrt.f32 %v418_v54  ;;  %v406_v61 = vmul.f32 0.03125, %v383_v57 }
 0x21a   :  { %6931 = vmatmul.mubr.msk.f32.gmra.mrb[4].mxu1 %vm279_vm3, %v478_v58  ;;  %v460_v41 = vmul.f32 %v9128_v16, %v441_v60 }
 0x21b   :  { %v8323_v63 = vpop.eup %8322  ;;  %v419_v0 = vadd.f32 1e-05, %v406_v61  ;;  %6933 = vmatprep.mubr.msk.f32.mxu1 %vm8775_vm1, %v12207_v2 }
 0x21c   :  { %v386_v3 = vpop.xlane.xlu1 %385  ;;  %v479_v4 = vadd.f32 %v9134_v26, %v460_v41  ;;  %v442_v6 = vmul.f32 %v8323_v63, %v9055_v53 }
 0x21d   :  { %8328 = vrsqrt.f32 %v419_v0  ;;  %v407_v7 = vmul.f32 0.03125, %v386_v3 }
 0x21e   :  { %6934 = vmatmul.mubr.msk.f32.gmra.mrb[6].mxu1 %vm279_vm3, %v479_v4  ;;  %v461_v47 = vmul.f32 %v9128_v16, %v442_v6 }
 0x21f   :  { %v8325_v9 = vpop.eup %8324  ;;  %v420_v10 = vadd.f32 1e-05, %v407_v7  ;;  %6936 = vmatprep.mubr.msk.f32.mxu1 %vm8775_vm1, %v12207_v2 }
 0x220   :  { %v389_v12 = vpop.xlane.xlu0 %388  ;;  %v480_v13 = vadd.f32 %v9134_v26, %v461_v47  ;;  %v443_v14 = vmul.f32 %v8325_v9, %v9061_v59 }
 0x221   :  { %8330 = vrsqrt.f32 %v420_v10  ;;  %v408_v15 = vmul.f32 0.03125, %v389_v12 }
 0x222   :  { %6937 = vmatmul.mubr.msk.f32.gmra.mrb[8].mxu1 %vm279_vm3, %v480_v13  ;;  %v462_v53 = vmul.f32 %v9128_v16, %v443_v14 }
 0x223   :  { %v8327_v20 = vpop.eup %8326  ;;  %v421_v23 = vadd.f32 1e-05, %v408_v15  ;;  %6939 = vmatprep.mubr.msk.f32.mxu1 %vm8775_vm1, %v12207_v2 }
 0x224   :  { %v392_v25 = vpop.xlane.xlu1 %391  ;;  %v481_v28 = vadd.f32 %v9134_v26, %v462_v53  ;;  %v444_v29 = vmul.f32 %v8327_v20, %v9067_v1 }
 0x225   :  { %8332 = vrsqrt.f32 %v421_v23  ;;  %v409_v31 = vmul.f32 0.03125, %v392_v25 }
 0x226   :  { %6940 = vmatmul.mubr.msk.f32.gmra.mrb[10].mxu1 %vm279_vm3, %v481_v28  ;;  %v463_v59 = vmul.f32 %v9128_v16, %v444_v29 }
 0x227   :  { %v8329_v34 = vpop.eup %8328  ;;  %v422_v36 = vadd.f32 1e-05, %v409_v31  ;;  %6942 = vmatprep.mubr.msk.f32.mxu1 %vm8775_vm1, %v12207_v2 }
 0x228   :  { %v395_v38 = vpop.xlane.xlu0 %394  ;;  %v482_v39 = vadd.f32 %v9134_v26, %v463_v59  ;;  %v445_v30 = vmul.f32 %v8329_v34, %v9073_v8 }
 0x229   :  { %8334 = vrsqrt.f32 %v422_v36  ;;  %v410_v42 = vmul.f32 0.03125, %v395_v38 }
 0x22a   :  { %6943 = vmatmul.mubr.msk.f32.gmra.mrb[12].mxu1 %vm279_vm3, %v482_v39  ;;  %v464_v1 = vmul.f32 %v9128_v16, %v445_v30 }
 0x22b   :  { %v8331_v43 = vpop.eup %8330  ;;  %v423_v45 = vadd.f32 1e-05, %v410_v42  ;;  %6945 = vmatprep.mubr.msk.f32.mxu1 %vm8775_vm1, %v12207_v2 }
 0x22c   :  { %v398_v46 = vpop.xlane.xlu1 %397  ;;  %v483_v49 = vadd.f32 %v9134_v26, %v464_v1  ;;  %v446_v51 = vmul.f32 %v8331_v43, %v9085_v19 }
 0x22d   :  { %8336 = vrsqrt.f32 %v423_v45  ;;  %v411_v35 = vmul.f32 0.03125, %v398_v46 }
 0x22e   :  { %6946 = vmatmul.mubr.msk.f32.gmra.mrb[14].mxu1 %vm279_vm3, %v483_v49  ;;  %v465_v8 = vmul.f32 %v9128_v16, %v446_v51 }
 0x22f   :  { %v8333_v52 = vpop.eup %8332  ;;  %v424_v54 = vadd.f32 1e-05, %v411_v35  ;;  %6948 = vmatprep.mubr.msk.f32.mxu1 %vm8775_vm1, %v12207_v2 }
 0x230   :  { %v484_v57 = vadd.f32 %v9134_v26, %v465_v8  ;;  %v447_v58 = vmul.f32 %v8333_v52, %v9100_v33 }
 0x231   :  { %8338 = vrsqrt.f32 %v424_v54 }
 0x232   :  { %6949 = vmatmul.mubr.msk.f32.gmra.mrb[16].mxu1 %vm279_vm3, %v484_v57  ;;  %v466_v19 = vmul.f32 %v9128_v16, %v447_v58 }
 0x233   :  { %v8335_v60 = vpop.eup %8334  ;;  %6951 = vmatprep.mubr.msk.f32.mxu1 %vm8775_vm1, %v12207_v2 }
 0x234   :  { %v485_v61 = vadd.f32 %v9134_v26, %v466_v19  ;;  %v448_v41 = vmul.f32 %v8335_v60, %v9107_v40 }
 0x236   :  { %6952 = vmatmul.mubr.msk.f32.gmra.mrb[18].mxu1 %vm279_vm3, %v485_v61  ;;  %v467_v63 = vmul.f32 %v9128_v16, %v448_v41 }
 0x237   :  { %v8337_v0 = vpop.eup %8336  ;;  %6954 = vmatprep.mubr.msk.f32.mxu1 %vm8775_vm1, %v12207_v2 }
 0x238   :  { %v486_v33 = vadd.f32 %v9134_v26, %v467_v63  ;;  %v449_v3 = vmul.f32 %v8337_v0, %v9113_v48 }
 0x23a   :  { %6955 = vmatmul.mubr.msk.f32.gmra.mrb[20].mxu1 %vm279_vm3, %v486_v33  ;;  %v468_v4 = vmul.f32 %v9128_v16, %v449_v3 }
 0x23b   :  { %v8339_v6 = vpop.eup %8338  ;;  %6957 = vmatprep.mubr.msk.f32.mxu1 %vm8775_vm1, %v12207_v2 }
 0x23c   :  { %v487_v40 = vadd.f32 %v9134_v26, %v468_v4  ;;  %v450_v7 = vmul.f32 %v8339_v6, %v9119_v55  ;;  %v9216_v55 = vld [vmem:[%s12195_s6] ss:$0 sm:$0xff] }
 0x23e   :  { %6958 = vmatmul.mubr.msk.f32.gmra.mrb[22].mxu1 %vm279_vm3, %v487_v40  ;;  %v469_v47 = vmul.f32 %v9128_v16, %v450_v7 }
 0x23f   :  { %6960 = vmatprep.mubr.msk.f32.mxu1 %vm8775_vm1, %v12207_v2 }
 0x240   :  { %v488_v48 = vadd.f32 %v9134_v26, %v469_v47 }
 0x242   :  { %6961 = vmatmul.mubr.msk.f32.gmra.mrb[24].mxu1 %vm279_vm3, %v488_v48 }
 0x243   :  { %7012 = vmatprep.mubr.msk.f32.mxu1 %vm8775_vm1, %v12207_v2 }
 0x2e5   :  { %v605_v9 = vpop.f32.mrb[0].mxu1 }
 0x2e6   :  { %v6926_v10 = vpop.f32.mrb[1].mxu1  ;;  %v9219_v16 = vadd.f32 %v9216_v55, %v605_v9 }
 0x2e9   :  { %v610_v12 = vpop.f32.mrb[2].mxu1 }
 0x2ea   :  { %v9222_v13 = vadd.f32 %v9216_v55, %v610_v12  ;;  %v6929_v26 = vpop.f32.mrb[3].mxu1 }
 0x2ec   :  { %v9226_v14 = vpack.i.bf16 %v9222_v13, %v9219_v16 }
 0x2ed   :  { %v615_v15 = vpop.f32.mrb[4].mxu1 }
 0x2ee   :  { %8075 = vrot.lane.b32.xlu0 %v9226_v14, %s8777_s22  ;;  %v6932_v53 = vpop.f32.mrb[5].mxu1  ;;  %v9231_v23 = vadd.f32 %v9216_v55, %v615_v15 }
 0x2f1   :  { %v620_v20 = vpop.f32.mrb[6].mxu1 }
 0x2f2   :  { %v9234_v25 = vadd.f32 %v9216_v55, %v620_v20  ;;  %8090 = vrot.lane.b32.xlu0 %v9226_v14, %s8778_s23  ;;  %v6935_v28 = vpop.f32.mrb[7].mxu1 }
 0x2f4   :  { %v9240_v29 = vpack.i.bf16 %v9234_v25, %v9231_v23 }
 0x2f5   :  { %v625_v31 = vpop.f32.mrb[8].mxu1 }
 0x2f6   :  { %8080 = vrot.lane.b32.xlu1 %v9240_v29, %s8777_s22  ;;  %v6938_v59 = vpop.f32.mrb[9].mxu1  ;;  %v9245_v36 = vadd.f32 %v9216_v55, %v625_v31 }
 0x2f9   :  { %v630_v34 = vpop.f32.mrb[10].mxu1 }
 0x2fa   :  { %v9248_v38 = vadd.f32 %v9216_v55, %v630_v34  ;;  %v6941_v39 = vpop.f32.mrb[11].mxu1 }
 0x2fc   :  { %v9252_v30 = vpack.i.bf16 %v9248_v38, %v9245_v36 }
 0x2fd   :  { %v635_v42 = vpop.f32.mrb[12].mxu1 }
 0x2fe   :  { %8100 = vrot.lane.b32.xlu0 %v9252_v30, %s8778_s23  ;;  %8085 = vrot.lane.b32.xlu1 %v9252_v30, %s8777_s22  ;;  %v6944_v1 = vpop.f32.mrb[13].mxu1  ;;  %v9259_v43 = vadd.f32 %v9216_v55, %v635_v42 }
 0x300   :  { %v1459_v54 = vrot.slane %v9259_v43, 2 }
 0x301   :  { %v640_v45 = vpop.f32.mrb[14].mxu1 }
 0x302   :  { %v641_v46 = vadd.f32 %v9216_v55, %v640_v45  ;;  %688 = vrot.lane.b32.xlu1 %v9259_v43, %s8777_s22  ;;  %v6947_v49 = vpop.f32.mrb[15].mxu1 }
 0x304   :  { %v1460_v35 = vrot.slane %v641_v46, 2 }
 0x305   :  { %v645_v51 = vpop.f32.mrb[16].mxu1 }
 0x306   :  { %v646_v8 = vadd.f32 %v9216_v55, %v645_v51  ;;  %8095 = vrot.lane.b32.xlu1 %v9240_v29, %s8778_s23  ;;  %v6950_v52 = vpop.f32.mrb[17].mxu1  ;;  %v9269_v19 = vsel %vm1458_vm6, %v1459_v54, %v1460_v35 }
 0x308   :  { %v1462_v57 = vrot.slane %v646_v8, 2 }
 0x309   :  { %v650_v58 = vpop.f32.mrb[18].mxu1 }
 0x30a   :  { %v9272_v60 = vsel %vm1458_vm6, %v1460_v35, %v1462_v57  ;;  %v651_v61 = vadd.f32 %v9216_v55, %v650_v58  ;;  %1067 = vrot.lane.b32.xlu1 %v9259_v43, %s8778_s23  ;;  %v6953_v41 = vpop.f32.mrb[19].mxu1 }
 0x30b   :  { %v9279_v63 = vpack.i.bf16 %v9272_v60, %v9269_v19 }
 0x30c   :  { %v1464_v0 = vrot.slane %v651_v61, 2 }
 0x30d   :  { %8105 = vrot.lane.b32.xlu0 %v9279_v63, %s8777_s22  ;;  %v655_v33 = vpop.f32.mrb[20].mxu1 }
 0x30e   :  { %v9284_v3 = vsel %vm1458_vm6, %v1462_v57, %v1464_v0  ;;  %v656_v4 = vadd.f32 %v9216_v55, %v655_v33  ;;  %1041 = vrot.lane.b32.xlu1 %v9219_v16, %s8779_s24  ;;  %v6956_v6 = vpop.f32.mrb[21].mxu1 }
 0x310   :  { %v1466_v40 = vrot.slane %v656_v4, 2 }
 0x311   :  { %1043 = vrot.lane.b32.xlu0 %v9222_v13, %s8779_s24  ;;  %v660_v7 = vpop.f32.mrb[22].mxu1 }
 0x312   :  { %v9292_v47 = vsel %vm1458_vm6, %v1464_v0, %v1466_v40  ;;  %v661_v48 = vadd.f32 %v9216_v55, %v660_v7  ;;  %v6959_v9 = vpop.f32.mrb[23].mxu1 }
 0x313   :  { %v9297_v10 = vpack.i.bf16 %v9292_v47, %v9284_v3 }
 0x314   :  { %v1468_v12 = vrot.slane %v661_v48, 2 }
 0x315   :  { %1045 = vrot.lane.b32.xlu0 %v9231_v23, %s8779_s24  ;;  %8110 = vrot.lane.b32.xlu1 %v9297_v10, %s8777_s22  ;;  %v665_v26 = vpop.f32.mrb[24].mxu1 }
 0x316   :  { %v9304_v15 = vsel %vm1458_vm6, %v1466_v40, %v1468_v12  ;;  %v666_v53 = vadd.f32 %v9216_v55, %v665_v26  ;;  %v6962_v20 = vpop.f32.mrb[25].mxu1 }
 0x318   :  { %v9307_v28 = vrot.slane %v666_v53, 2 }
 0x319   :  { %1047 = vrot.lane.b32.xlu1 %v9234_v25, %s8779_s24 }
 0x31a   :  { %v9313_v31 = vsel %vm1458_vm6, %v1468_v12, %v9307_v28 }
 0x31b   :  { %v9317_v59 = vpack.i.bf16 %v9313_v31, %v9304_v15 }
 0x31d   :  { %1049 = vrot.lane.b32.xlu1 %v9245_v36, %s8779_s24  ;;  %8115 = vrot.lane.b32.xlu0 %v9317_v59, %s8777_s22 }
 0x321   :  { %1053 = vrot.lane.b32.xlu1 %v9259_v43, %s8779_s24  ;;  %1051 = vrot.lane.b32.xlu0 %v9248_v38, %s8779_s24 }
 0x325   :  { %8120 = vrot.lane.b32.xlu1 %v9279_v63, %s8778_s23  ;;  %1484 = vrot.lane.b32.xlu0 %v9307_v28, %s8777_s22 }
 0x329   :  { %8130 = vrot.lane.b32.xlu1 %v9317_v59, %s8778_s23  ;;  %8125 = vrot.lane.b32.xlu0 %v9297_v10, %s8778_s23 }
 0x32d   :  { %1834 = vrot.lane.b32.xlu1 %v9269_v19, %s8779_s24  ;;  %1860 = vrot.lane.b32.xlu0 %v9307_v28, %s8778_s23 }
 0x331   :  { %1838 = vrot.lane.b32.xlu1 %v9284_v3, %s8779_s24  ;;  %1836 = vrot.lane.b32.xlu0 %v9272_v60, %s8779_s24 }
 0x335   :  { %1842 = vrot.lane.b32.xlu1 %v9304_v15, %s8779_s24  ;;  %1840 = vrot.lane.b32.xlu0 %v9292_v47, %s8779_s24 }
 0x339   :  { %1846 = vrot.lane.b32.xlu1 %v9307_v28, %s8779_s24  ;;  %1844 = vrot.lane.b32.xlu0 %v9313_v31, %s8779_s24 }
 0x33d   :  { %8140 = vrot.lane.b32.xlu1 %v9240_v29, %s8780_s25  ;;  %8135 = vrot.lane.b32.xlu0 %v9226_v14, %s8780_s25 }
 0x341   :  { %910 = vrot.lane.b32.xlu1 %v9259_v43, %s8780_s25  ;;  %8145 = vrot.lane.b32.xlu0 %v9252_v30, %s8780_s25 }
 0x345   :  { %8150 = vrot.lane.b32.xlu1 %v9226_v14, %s8781_s2  ;;  %8155 = vrot.lane.b32.xlu0 %v9240_v29, %s8781_s2  ;;  %v12220_v14 = vmov 0 }
 0x346   :  { %v12221_v14 = vsel %vm9371_vm8, 4294967295, %v12220_v14 }
 0x347   :  { %12222 = vst [vmem:[#allocation8_spill] sm:$0xff] %v12221_v14 }
 0x349   :  { %1286 = vrot.lane.b32.xlu1 %v9259_v43, %s8781_s2  ;;  %8160 = vrot.lane.b32.xlu0 %v9252_v30, %s8781_s2 }
 0x34d   :  { %8165 = vrot.lane.b32.xlu0 %v9279_v63, %s8780_s25 }
 0x360   :  { %v8076_v55 = vpop.permute.xlu0 %8075 }
 0x361   :  { %v8078_v34 = vunpack.i.h.bf16 %v8076_v55  ;;  %v8077_v39 = vunpack.i.l.bf16 %v8076_v55 }
 0x363   :  { %v7824_v29 = vpack.c.bf16 %v8078_v34, %v8077_v39 }
 0x364   :  { %v8091_v52 = vpop.permute.xlu0 %8090 }
 0x365   :  { %7826 = vmatpush3.bf16.xpose.msk.msra.mxu0 %vm9371_vm8, %v7824_v29  ;;  %v8093_v57 = vunpack.i.h.bf16 %v8091_v52  ;;  %v8092_v58 = vunpack.i.l.bf16 %v8091_v52 }
 0x366   :  { %7827 = vmatprep.subr.bf16.mxu0 %v12205_v21 }
 0x367   :  { %v7845_v0 = vpack.c.bf16 %v8093_v57, %v8092_v58 }
 0x368   :  { %v8081_v30 = vpop.permute.xlu1 %8080 }
 0x369   :  { %v8083_v42 = vunpack.i.h.bf16 %v8081_v30  ;;  %v8082_v1 = vunpack.i.l.bf16 %v8081_v30 }
 0x36b   :  { %v7828_v45 = vpack.c.bf16 %v8083_v42, %v8082_v1 }
 0x36d   :  { %7830 = vmatpush3.bf16.xpose.msk.msra.mxu0 %vm9371_vm8, %v7828_v45 }
 0x36e   :  { %7831 = vmatprep.subr.bf16.mxu0 %v12205_v21 }
 0x370   :  { %v8086_v46 = vpop.permute.xlu1 %8085  ;;  %v8101_v61 = vpop.permute.xlu0 %8100 }
 0x371   :  { %v8088_v49 = vunpack.i.h.bf16 %v8086_v46  ;;  %v8087_v51 = vunpack.i.l.bf16 %v8086_v46  ;;  %v8103_v9 = vunpack.i.h.bf16 %v8101_v61  ;;  %v8102_v12 = vunpack.i.l.bf16 %v8101_v61 }
 0x373   :  { %v7832_v35 = vpack.c.bf16 %v8088_v49, %v8087_v51  ;;  %v7853_v53 = vpack.c.bf16 %v8103_v9, %v8102_v12 }
 0x374   :  { %v689_v8 = vpop.permute.xlu1 %688 }
 0x375   :  { %7834 = vmatpush3.bf16.xpose.msk.msra.mxu0 %vm9371_vm8, %v7832_v35 }
 0x376   :  { %6975 = vmatprep.subr.mxu0 %v12207_v2 }
 0x378   :  { %v8096_v54 = vpop.permute.xlu1 %8095 }
 0x379   :  { %v8098_v4 = vunpack.i.h.bf16 %v8096_v54  ;;  %v8097_v6 = vunpack.i.l.bf16 %v8096_v54 }
 0x37b   :  { %v7849_v48 = vpack.c.bf16 %v8098_v4, %v8097_v6 }
 0x37c   :  { %v1068_v41 = vpop.permute.xlu1 %1067 }
 0x37d   :  { %6976 = vmatpush3.xpose.msk.msra.mxu0 %vm690_vm7, %v689_v8 }
 0x37e   :  { %7844 = vmatprep.subr.bf16.mxu0 %v12205_v21 }
 0x37f   :  { %v8106_v33 = vpop.permute.xlu0 %8105 }
 0x380   :  { %6978 = vmatmul.mubr.msk.f32.vlgmr.msra.gmra.mrb[26].mxu0 %vm690_vm7, %v9219_v16  ;;  %v1042_v40 = vpop.permute.xlu1 %1041  ;;  %v8107_v39 = vunpack.i.l.bf16 %v8106_v33 }
 0x381   :  { %7847 = vmatpush3.bf16.xpose.msk.msra.mxu0 %vm9371_vm8, %v7845_v0  ;;  %6980 = vmatprep.mubr.msk.f32.mxu0 %vm8775_vm1, %v12207_v2 }
 0x382   :  { %7848 = vmatprep.subr.bf16.mxu0 %v12205_v21 }
 0x383   :  { %v1044_v7 = vpop.permute.xlu0 %1043 }
 0x384   :  { %6981 = vmatmul.mubr.msk.f32.gmra.mrb[28].mxu0 %vm690_vm7, %v9222_v13 }
 0x385   :  { %6983 = vmatprep.mubr.msk.f32.mxu0 %vm8775_vm1, %v12207_v2 }
 0x387   :  { %v8111_v16 = vpop.permute.xlu1 %8110  ;;  %v1046_v13 = vpop.permute.xlu0 %1045 }
 0x388   :  { %6984 = vmatmul.mubr.msk.f32.gmra.mrb[30].mxu0 %vm690_vm7, %v9231_v23  ;;  %v8112_v1 = vunpack.i.l.bf16 %v8111_v16 }
 0x389   :  { %7851 = vmatpush3.bf16.xpose.msk.msra.mxu0 %vm9371_vm8, %v7849_v48  ;;  %6986 = vmatprep.mubr.msk.f32.mxu0 %vm8775_vm1, %v12207_v2 }
 0x38a   :  { %7852 = vmatprep.subr.bf16.mxu0 %v12205_v21 }
 0x38b   :  { %v1048_v26 = vpop.permute.xlu1 %1047 }
 0x38c   :  { %6987 = vmatmul.mubr.msk.f32.gmra.mrb[32].mxu0 %vm690_vm7, %v9234_v25  ;;  %v8108_v25 = vunpack.i.h.bf16 %v8106_v33 }
 0x38d   :  { %6989 = vmatprep.mubr.msk.f32.mxu0 %vm8775_vm1, %v12207_v2 }
 0x38e   :  { %v7866_v30 = vpack.c.bf16 %v8108_v25, %v8107_v39 }
 0x38f   :  { %v1050_v23 = vpop.permute.xlu1 %1049  ;;  %v8116_v20 = vpop.permute.xlu0 %8115 }
 0x390   :  { %6990 = vmatmul.mubr.msk.f32.gmra.mrb[34].mxu0 %vm690_vm7, %v9245_v36  ;;  %v8118_v8 = vunpack.i.h.bf16 %v8116_v20  ;;  %v8117_v52 = vunpack.i.l.bf16 %v8116_v20 }
 0x391   :  { %7855 = vmatpush3.bf16.xpose.msk.msra.mxu0 %vm9371_vm8, %v7853_v53  ;;  %6992 = vmatprep.mubr.msk.f32.mxu0 %vm8775_vm1, %v12207_v2 }
 0x392   :  { %7045 = vmatprep.subr.mxu0 %v12207_v2  ;;  %v7874_v58 = vpack.c.bf16 %v8118_v8, %v8117_v52 }
 0x393   :  { %v1054_v55 = vpop.permute.xlu1 %1053  ;;  %v1052_v34 = vpop.permute.xlu0 %1051 }
 0x394   :  { %6993 = vmatmul.mubr.msk.f32.gmra.mrb[36].mxu0 %vm690_vm7, %v9248_v38 }
 0x395   :  { %6995 = vmatprep.mubr.msk.f32.mxu0 %vm8775_vm1, %v12207_v2 }
 0x397   :  { %v8121_v29 = vpop.permute.xlu1 %8120  ;;  %v1485_v36 = vpop.permute.xlu0 %1484 }
 0x398   :  { %6996 = vmatmul.mubr.msk.f32.gmra.mrb[38].mxu0 %vm690_vm7, %v9259_v43  ;;  %v8113_v43 = vunpack.i.h.bf16 %v8111_v16  ;;  %v8123_v16 = vunpack.i.h.bf16 %v8121_v29  ;;  %v8122_v9 = vunpack.i.l.bf16 %v8121_v29 }
 0x399   :  { %7046 = vmatpush3.xpose.msk.msra.mxu0 %vm690_vm7, %v1068_v41  ;;  %7047 = vmatprep.mubr.msk.f32.mxu0 %vm8775_vm1, %v12207_v2 }
 0x39a   :  { %7865 = vmatprep.subr.bf16.mxu0 %v12205_v21  ;;  %v7870_v49 = vpack.c.bf16 %v8113_v43, %v8112_v1 }
 0x39b   :  { %v9425_v42 = vpop.permute.xlu1 %8130  ;;  %v9427_v38 = vpop.permute.xlu0 %8125 }
 0x39c   :  { %7048 = vmatmul.mubr.msk.f32.vlgmr.msra.gmra.mrb[40].mxu0 %vm690_vm7, %v1042_v40  ;;  %v8132_v39 = vunpack.i.l.bf16 %v9425_v42 }
 0x39d   :  { %7868 = vmatpush3.bf16.xpose.msk.msra.mxu0 %vm9371_vm8, %v7866_v30  ;;  %7050 = vmatprep.mubr.msk.f32.mxu0 %vm8775_vm1, %v12207_v2 }
 0x39e   :  { %7869 = vmatprep.subr.bf16.mxu0 %v12205_v21 }
 0x39f   :  { %v9435_v45 = vpop.permute.xlu1 %1834  ;;  %v9437_v46 = vpop.permute.xlu0 %1860 }
 0x3a0   :  { %7051 = vmatmul.mubr.msk.f32.gmra.mrb[42].mxu0 %vm690_vm7, %v1044_v7 }
 0x3a1   :  { %7053 = vmatprep.mubr.msk.f32.mxu0 %vm8775_vm1, %v12207_v2 }
 0x3a3   :  { %v9442_v51 = vpop.permute.xlu1 %1838  ;;  %v9444_v35 = vpop.permute.xlu0 %1836 }
 0x3a4   :  { %7054 = vmatmul.mubr.msk.f32.gmra.mrb[44].mxu0 %vm690_vm7, %v1046_v13 }
 0x3a5   :  { %7872 = vmatpush3.bf16.xpose.msk.msra.mxu0 %vm9371_vm8, %v7870_v49  ;;  %7056 = vmatprep.mubr.msk.f32.mxu0 %vm8775_vm1, %v12207_v2 }
 0x3a6   :  { %7873 = vmatprep.subr.bf16.mxu0 %v12205_v21 }
 0x3a7   :  { %v9452_v54 = vpop.permute.xlu1 %1842  ;;  %v9454_v57 = vpop.permute.xlu0 %1840 }
 0x3a8   :  { %7057 = vmatmul.mubr.msk.f32.gmra.mrb[46].mxu0 %vm690_vm7, %v1048_v26 }
 0x3a9   :  { %7059 = vmatprep.mubr.msk.f32.mxu0 %vm8775_vm1, %v12207_v2 }
 0x3ab   :  { %v9459_v61 = vpop.permute.xlu1 %1846  ;;  %v9461_v41 = vpop.permute.xlu0 %1844 }
 0x3ac   :  { %7060 = vmatmul.mubr.msk.f32.gmra.mrb[48].mxu0 %vm690_vm7, %v1050_v23  ;;  %v7887_v23 = vpack.c.bf16 %v8123_v16, %v8122_v9 }
 0x3ad   :  { %7876 = vmatpush3.bf16.xpose.msk.msra.mxu0 %vm9371_vm8, %v7874_v58  ;;  %7062 = vmatprep.mubr.msk.f32.mxu0 %vm8775_vm1, %v12207_v2 }
 0x3ae   :  { %7115 = vmatprep.subr.mxu0 %v12207_v2 }
 0x3af   :  { %v8141_v0 = vpop.permute.xlu1 %8140  ;;  %v8136_v33 = vpop.permute.xlu0 %8135 }
 0x3b0   :  { %v8138_v4 = vunpack.i.h.bf16 %v8136_v33  ;;  %v8137_v6 = vunpack.i.l.bf16 %v8136_v33  ;;  %7063 = vmatmul.mubr.msk.f32.gmra.mrb[50].mxu0 %vm690_vm7, %v1052_v34  ;;  %v8143_v40 = vunpack.i.h.bf16 %v8141_v0  ;;  %v8142_v7 = vunpack.i.l.bf16 %v8141_v0 }
 0x3b1   :  { %7065 = vmatprep.mubr.msk.f32.mxu0 %vm8775_vm1, %v12207_v2  ;;  %v8127_v34 = vunpack.i.l.bf16 %v9427_v38 }
 0x3b2   :  { %v7836_v48 = vpack.c.bf16 %v8138_v4, %v8137_v6  ;;  %v7839_v13 = vpack.c.bf16 %v8143_v40, %v8142_v7 }
 0x3b3   :  { %v8146_v12 = vpop.permute.xlu0 %8145  ;;  %v911_v25 = vpop.permute.xlu1 %910 }
 0x3b4   :  { %7837 = vmatpush3.bf16.msra.mxu1 %v7836_v48  ;;  %7066 = vmatmul.mubr.msk.f32.gmra.mrb[52].mxu0 %vm690_vm7, %v1054_v55  ;;  %v8148_v26 = vunpack.i.h.bf16 %v8146_v12  ;;  %v8147_v53 = vunpack.i.l.bf16 %v8146_v12  ;;  %v8128_v55 = vunpack.i.h.bf16 %v9427_v38 }
 0x3b5   :  { %7116 = vmatpush3.xpose.msk.msra.mxu0 %vm690_vm7, %v1485_v36  ;;  %7838 = vmatprep.subr.bf16.mxu1 %v12205_v21 }
 0x3b6   :  { %7117 = vmatprep.mubr.msk.f32.mxu0 %vm8775_vm1, %v12207_v2  ;;  %7886 = vmatprep.subr.bf16.mxu0 %v12205_v21  ;;  %v7842_v20 = vpack.c.bf16 %v8148_v26, %v8147_v53 }
 0x3b8   :  { %7840 = vmatpush3.bf16.msra.mxu1 %v7839_v13  ;;  %7118 = vmatmul.mubr.msk.f32.vlgmr.msra.gmra.mrb[54].mxu0 %vm690_vm7, %v9269_v19  ;;  %v7891_v19 = vpack.c.bf16 %v8128_v55, %v8127_v34 }
 0x3b9   :  { %7889 = vmatpush3.bf16.xpose.msk.msra.mxu0 %vm9371_vm8, %v7887_v23  ;;  %7841 = vmatprep.subr.bf16.mxu1 %v12205_v21 }
 0x3ba   :  { %7120 = vmatprep.mubr.msk.f32.mxu0 %vm8775_vm1, %v12207_v2  ;;  %7890 = vmatprep.subr.bf16.mxu0 %v12205_v21 }
 0x3bc   :  { %7843 = vmatpush3.bf16.msra.mxu1 %v7842_v20  ;;  %7121 = vmatmul.mubr.msk.f32.gmra.mrb[56].mxu0 %vm690_vm7, %v9272_v60  ;;  %v8133_v60 = vunpack.i.h.bf16 %v9425_v42 }
 0x3bd   :  { %7010 = vmatprep.subr.mxu1 %v12207_v2  ;;  %7123 = vmatprep.mubr.msk.f32.mxu0 %vm8775_vm1, %v12207_v2 }
 0x3c0   :  { %7011 = vmatpush3.msk.msra.mxu1 %vm79_vm4, %v911_v25  ;;  %7124 = vmatmul.mubr.msk.f32.gmra.mrb[58].mxu0 %vm690_vm7, %v9284_v3  ;;  %v7895_v3 = vpack.c.bf16 %v8133_v60, %v8132_v39 }
 0x3c1   :  { %7893 = vmatpush3.bf16.xpose.msk.msra.mxu0 %vm9371_vm8, %v7891_v19  ;;  %7126 = vmatprep.mubr.msk.f32.mxu0 %vm8775_vm1, %v12207_v2 }
 0x3c2   :  { %7894 = vmatprep.subr.bf16.mxu0 %v12205_v21  ;;  %7856 = vmatprep.subr.bf16.mxu1 %v12205_v21 }
 0x3c4   :  { %7127 = vmatmul.mubr.msk.f32.gmra.mrb[60].mxu0 %vm690_vm7, %v9292_v47 }
 0x3c5   :  { %7129 = vmatprep.mubr.msk.f32.mxu0 %vm8775_vm1, %v12207_v2 }
 0x3c8   :  { %7130 = vmatmul.mubr.msk.f32.gmra.mrb[62].mxu0 %vm690_vm7, %v9304_v15 }
 0x3c9   :  { %7897 = vmatpush3.bf16.xpose.msk.msra.mxu0 %vm9371_vm8, %v7895_v3  ;;  %7132 = vmatprep.mubr.msk.f32.mxu0 %vm8775_vm1, %v12207_v2 }
 0x3ca   :  { %7185 = vmatprep.subr.mxu0 %v12207_v2 }
 0x3cc   :  { %7133 = vmatmul.mubr.msk.f32.gmra.mrb[64].mxu0 %vm690_vm7, %v9313_v31 }
 0x3cd   :  { %7135 = vmatprep.mubr.msk.f32.mxu0 %vm8775_vm1, %v12207_v2 }
 0x3d0   :  { %7136 = vmatmul.mubr.msk.f32.gmra.mrb[66].mxu0 %vm690_vm7, %v9307_v28 }
 0x3d1   :  { %7186 = vmatpush3.xpose.msk.msra.mxu0 %vm690_vm7, %v9437_v46  ;;  %7187 = vmatprep.mubr.msk.f32.mxu0 %vm8775_vm1, %v12207_v2 }
 0x3d2   :  { %7907 = vmatprep.subr.bf16.mxu0 %v12205_v21 }
 0x3d4   :  { %7188 = vmatmul.mubr.msk.f32.vlgmr.msra.gmra.mrb[68].mxu0 %vm690_vm7, %v9435_v45 }
 0x3d5   :  { %7190 = vmatprep.mubr.msk.f32.mxu0 %vm8775_vm1, %v12207_v2 }
 0x3d8   :  { %7191 = vmatmul.mubr.msk.f32.gmra.mrb[70].mxu0 %vm690_vm7, %v9444_v35 }
 0x3d9   :  { %7193 = vmatprep.mubr.msk.f32.mxu0 %vm8775_vm1, %v12207_v2 }
 0x3dc   :  { %7194 = vmatmul.mubr.msk.f32.gmra.mrb[72].mxu0 %vm690_vm7, %v9442_v51 }
 0x3dd   :  { %7196 = vmatprep.mubr.msk.f32.mxu0 %vm8775_vm1, %v12207_v2 }
 0x3e0   :  { %7197 = vmatmul.mubr.msk.f32.gmra.mrb[74].mxu0 %vm690_vm7, %v9454_v57 }
 0x3e1   :  { %7199 = vmatprep.mubr.msk.f32.mxu0 %vm8775_vm1, %v12207_v2 }
 0x3e4   :  { %7200 = vmatmul.mubr.msk.f32.gmra.mrb[76].mxu0 %vm690_vm7, %v9452_v54 }
 0x3e5   :  { %7202 = vmatprep.mubr.msk.f32.mxu0 %vm8775_vm1, %v12207_v2 }
 0x3e8   :  { %7203 = vmatmul.mubr.msk.f32.gmra.mrb[78].mxu0 %vm690_vm7, %v9461_v41 }
 0x3e9   :  { %7205 = vmatprep.mubr.msk.f32.mxu0 %vm8775_vm1, %v12207_v2 }
 0x3ec   :  { %7206 = vmatmul.mubr.msk.f32.gmra.mrb[80].mxu0 %vm690_vm7, %v9459_v61 }
 0x3ed   :  { %7251 = vmatprep.mubr.msk.f32.mxu0 %vm8775_vm1, %v12207_v2 }
 0x453   :  { %v9554_v47 = vpop.f32.mrb[26].mxu0 }
 0x454   :  { %v6979_v15 = vpop.f32.mrb[27].mxu0  ;;  %v820_v31 = vsel %vm819_vm9, %v9554_v47, -inf }
 0x455   :  { %821 = vmax.xlane.f32.xlu0 %v820_v31 }
 0x457   :  { %v9558_v29 = vpop.f32.mrb[28].mxu0 }
 0x458   :  { %v6982_v36 = vpop.f32.mrb[29].mxu0  ;;  %v823_v30 = vsel %vm819_vm9, %v9558_v29, -inf }
 0x459   :  { %824 = vmax.xlane.f32.xlu1 %v823_v30 }
 0x45b   :  { %v9562_v42 = vpop.f32.mrb[30].mxu0 }
 0x45c   :  { %v6985_v38 = vpop.f32.mrb[31].mxu0  ;;  %v826_v43 = vsel %vm819_vm9, %v9562_v42, -inf }
 0x45d   :  { %827 = vmax.xlane.f32.xlu0 %v826_v43 }
 0x45f   :  { %v9566_v1 = vpop.f32.mrb[32].mxu0 }
 0x460   :  { %v6988_v45 = vpop.f32.mrb[33].mxu0  ;;  %v829_v46 = vsel %vm819_vm9, %v9566_v1, -inf }
 0x461   :  { %830 = vmax.xlane.f32.xlu0 %v829_v46 }
 0x463   :  { %v9570_v49 = vpop.f32.mrb[34].mxu0 }
 0x464   :  { %v6991_v51 = vpop.f32.mrb[35].mxu0  ;;  %v832_v35 = vsel %vm819_vm9, %v9570_v49, -inf }
 0x465   :  { %833 = vmax.xlane.f32.xlu0 %v832_v35 }
 0x467   :  { %v9574_v8 = vpop.f32.mrb[36].mxu0 }
 0x468   :  { %v6994_v52 = vpop.f32.mrb[37].mxu0  ;;  %v835_v54 = vsel %vm819_vm9, %v9574_v8, -inf }
 0x469   :  { %836 = vmax.xlane.f32.xlu1 %v835_v54 }
 0x46b   :  { %v9578_v57 = vpop.f32.mrb[38].mxu0 }
 0x46c   :  { %v6997_v58 = vpop.f32.mrb[39].mxu0  ;;  %v839_v61 = vsel %vm838_vm10, %v9578_v57, -inf }
 0x46d   :  { %840 = vmax.xlane.f32.xlu0 %v839_v61 }
 0x46f   :  { %v9582_v41 = vpop.f32.mrb[40].mxu0 }
 0x470   :  { %v7049_v0 = vpop.f32.mrb[41].mxu0  ;;  %v1197_v33 = vsel %vm819_vm9, %v9582_v41, -inf }
 0x471   :  { %1198 = vmax.xlane.f32.xlu1 %v1197_v33 }
 0x473   :  { %v9586_v4 = vpop.f32.mrb[42].mxu0 }
 0x474   :  { %v7052_v6 = vpop.f32.mrb[43].mxu0  ;;  %v1200_v40 = vsel %vm819_vm9, %v9586_v4, -inf }
 0x475   :  { %1201 = vmax.xlane.f32.xlu0 %v1200_v40 }
 0x477   :  { %v9590_v7 = vpop.f32.mrb[44].mxu0 }
 0x478   :  { %v7055_v48 = vpop.f32.mrb[45].mxu0  ;;  %v1203_v16 = vsel %vm819_vm9, %v9590_v7, -inf }
 0x479   :  { %1204 = vmax.xlane.f32.xlu1 %v1203_v16 }
 0x47b   :  { %v9594_v9 = vpop.f32.mrb[46].mxu0 }
 0x47c   :  { %v7058_v12 = vpop.f32.mrb[47].mxu0  ;;  %v1206_v13 = vsel %vm819_vm9, %v9594_v9, -inf }
 0x47d   :  { %1207 = vmax.xlane.f32.xlu0 %v1206_v13 }
 0x47f   :  { %v9598_v26 = vpop.f32.mrb[48].mxu0 }
 0x480   :  { %v7061_v53 = vpop.f32.mrb[49].mxu0  ;;  %v1209_v23 = vsel %vm819_vm9, %v9598_v26, -inf }
 0x481   :  { %1210 = vmax.xlane.f32.xlu1 %v1209_v23 }
 0x483   :  { %v9602_v20 = vpop.f32.mrb[50].mxu0 }
 0x484   :  { %v7064_v55 = vpop.f32.mrb[51].mxu0  ;;  %v1212_v34 = vsel %vm819_vm9, %v9602_v20, -inf }
 0x485   :  { %1213 = vmax.xlane.f32.xlu0 %v1212_v34 }
 0x487   :  { %v9606_v19 = vpop.f32.mrb[52].mxu0 }
 0x488   :  { %v7067_v25 = vpop.f32.mrb[53].mxu0  ;;  %v1215_v60 = vsel %vm838_vm10, %v9606_v19, -inf }
 0x489   :  { %1216 = vmax.xlane.f32.xlu1 %v1215_v60 }
 0x48b   :  { %v9610_v39 = vpop.f32.mrb[54].mxu0 }
 0x48c   :  { %v7119_v3 = vpop.f32.mrb[55].mxu0  ;;  %v1614_v15 = vsel %vm819_vm9, %v9610_v39, -inf }
 0x48d   :  { %1615 = vmax.xlane.f32.xlu0 %v1614_v15 }
 0x48f   :  { %v9614_v31 = vpop.f32.mrb[56].mxu0 }
 0x490   :  { %v7122_v36 = vpop.f32.mrb[57].mxu0  ;;  %v1617_v30 = vsel %vm819_vm9, %v9614_v31, -inf }
 0x491   :  { %1618 = vmax.xlane.f32.xlu1 %v1617_v30 }
 0x493   :  { %v9618_v38 = vpop.f32.mrb[58].mxu0 }
 0x494   :  { %v7125_v43 = vpop.f32.mrb[59].mxu0  ;;  %v1620_v45 = vsel %vm819_vm9, %v9618_v38, -inf }
 0x495   :  { %1621 = vmax.xlane.f32.xlu0 %v1620_v45 }
 0x497   :  { %v9622_v46 = vpop.f32.mrb[60].mxu0 }
 0x498   :  { %v7128_v51 = vpop.f32.mrb[61].mxu0 }
 0x499   :  { %v1623_v51 = vsel %vm819_vm9, %v9622_v46, -inf }
 0x49b   :  { %v9624_v35 = vpop.f32.mrb[62].mxu0 }
 0x49c   :  { %v7131_v52 = vpop.f32.mrb[63].mxu0  ;;  %v1626_v54 = vsel %vm819_vm9, %v9624_v35, -inf }
 0x49d   :  { %1627 = vmax.xlane.f32.xlu0 %v1626_v54 }
 0x49f   :  { %v9628_v58 = vpop.f32.mrb[64].mxu0 }
 0x4a0   :  { %v7134_v61 = vpop.f32.mrb[65].mxu0  ;;  %v1629_v52 = vsel %vm819_vm9, %v9628_v58, -inf }
 0x4a2   :  { %8170 = vrot.lane.b32.xlu1 %v9297_v10, %s8780_s25 }
 0x4a3   :  { %v9632_v0 = vpop.f32.mrb[66].mxu0 }
 0x4a4   :  { %v7137_v33 = vpop.f32.mrb[67].mxu0  ;;  %v1632_v6 = vsel %vm838_vm10, %v9632_v0, -inf }
 0x4a5   :  { %1633 = vmax.xlane.f32.xlu0 %v1632_v6  ;;  %v9664_v33 = vpop.permute.xlu0 %8155 }
 0x4a7   :  { %v9636_v40 = vpop.f32.mrb[68].mxu0 }
 0x4a8   :  { %v7189_v48 = vpop.f32.mrb[69].mxu0  ;;  %v1990_v54 = vsel %vm819_vm9, %v9636_v40, -inf }
 0x4a9   :  { %v9668_v48 = vpop.permute.xlu0 %8160 }
 0x4ab   :  { %v9638_v16 = vpop.f32.mrb[70].mxu0 }
 0x4ac   :  { %v7192_v12 = vpop.f32.mrb[71].mxu0  ;;  %v1993_v61 = vsel %vm819_vm9, %v9638_v16, -inf }
 0x4af   :  { %v9640_v13 = vpop.f32.mrb[72].mxu0 }
 0x4b0   :  { %v7195_v53 = vpop.f32.mrb[73].mxu0  ;;  %v1996_v6 = vsel %vm819_vm9, %v9640_v13, -inf }
 0x4b1   :  { %v9672_v53 = vpop.permute.xlu1 %8150 }
 0x4b3   :  { %v9642_v23 = vpop.f32.mrb[74].mxu0 }
 0x4b4   :  { %v7198_v55 = vpop.f32.mrb[75].mxu0  ;;  %v1999_v34 = vsel %vm819_vm9, %v9642_v23, -inf }
 0x4b5   :  { %2000 = vmax.xlane.f32.xlu0 %v1999_v34  ;;  %v9674_v55 = vpop.permute.xlu0 %8165  ;;  %v9676_v34 = vpop.permute.xlu1 %1286 }
 0x4b7   :  { %v9646_v25 = vpop.f32.mrb[76].mxu0 }
 0x4b8   :  { %v7201_v60 = vpop.f32.mrb[77].mxu0  ;;  %v2002_v3 = vsel %vm819_vm9, %v9646_v25, -inf }
 0x4b9   :  { %2003 = vmax.xlane.f32.xlu0 %v2002_v3 }
 0x4bb   :  { %v9650_v15 = vpop.f32.mrb[78].mxu0 }
 0x4bc   :  { %v7204_v36 = vpop.f32.mrb[79].mxu0  ;;  %v2005_v30 = vsel %vm819_vm9, %v9650_v15, -inf }
 0x4bd   :  { %2006 = vmax.xlane.f32.xlu0 %v2005_v30 }
 0x4bf   :  { %v9654_v43 = vpop.f32.mrb[80].mxu0 }
 0x4c0   :  { %v7207_v45 = vpop.f32.mrb[81].mxu0  ;;  %v2008_v12 = vsel %vm838_vm10, %v9654_v43, -inf }
 0x4c6   :  { %1624 = vmax.xlane.f32.xlu1 %v1623_v51 }
 0x4ca   :  { %1630 = vmax.xlane.f32.xlu1 %v1629_v52 }
 0x4ce   :  { %1991 = vmax.xlane.f32.xlu1 %v1990_v54 }
 0x4d2   :  { %1994 = vmax.xlane.f32.xlu1 %v1993_v61 }
 0x4d6   :  { %1997 = vmax.xlane.f32.xlu1 %v1996_v6 }
 0x4da   :  { %2009 = vmax.xlane.f32.xlu1 %v2008_v12 }
 0x4e2   :  { %v822_v60 = vpop.xlane.xlu0 %821 }
 0x4e3   :  { %v842_v3 = vsub.f32 %v9554_v47, %v822_v60 }
 0x4e5   :  { %v849_v36 = vmul.f32 1.442695, %v842_v3 }
 0x4e6   :  { %v825_v30 = vpop.xlane.xlu1 %824 }
 0x4e7   :  { %8340 = vpow2.f32 %v849_v36  ;;  %v843_v45 = vsub.f32 %v9558_v29, %v825_v30 }
 0x4e9   :  { %v851_v51 = vmul.f32 1.442695, %v843_v45 }
 0x4ea   :  { %v828_v52 = vpop.xlane.xlu0 %827 }
 0x4eb   :  { %8342 = vpow2.f32 %v851_v51 }
 0x4ee   :  { %v831_v54 = vpop.xlane.xlu0 %830 }
 0x4ef   :  { %v845_v61 = vsub.f32 %v9566_v1, %v831_v54 }
 0x4f1   :  { %v9681_v6 = vpop.eup %8340  ;;  %v855_v12 = vmul.f32 1.442695, %v845_v61 }
 0x4f2   :  { %v834_v21 = vpop.xlane.xlu0 %833  ;;  %v863_v2 = vsel %vm819_vm9, %v9681_v6, 0.0 }
 0x4f3   :  { %8344 = vpow2.f32 %v855_v12  ;;  %v846_v47 = vsub.f32 %v9570_v49, %v834_v21  ;;  %864 = vadd.xlane.f32.xlu0 %v863_v2 }
 0x4f5   :  { %v9686_v60 = vpop.eup %8342  ;;  %v857_v29 = vmul.f32 1.442695, %v846_v47 }
 0x4f6   :  { %v866_v3 = vsel %vm819_vm9, %v9686_v60, 0.0  ;;  %v837_v1 = vpop.xlane.xlu1 %836 }
 0x4f7   :  { %8346 = vpow2.f32 %v857_v29  ;;  %867 = vadd.xlane.f32.xlu1 %v866_v3 }
 0x4fa   :  { %v841_v36 = vpop.xlane.xlu0 %840 }
 0x4fb   :  { %v848_v30 = vsub.f32 %v9578_v57, %v841_v36 }
 0x4fd   :  { %v9691_v45 = vpop.eup %8344  ;;  %v861_v51 = vmul.f32 1.442695, %v848_v30  ;;  %v844_v30 = vsub.f32 %v9562_v42, %v828_v52 }
 0x4fe   :  { %v1199_v54 = vpop.xlane.xlu1 %1198  ;;  %v872_v21 = vsel %vm819_vm9, %v9691_v45, 0.0 }
 0x4ff   :  { %8348 = vpow2.f32 %v861_v51  ;;  %v1218_v2 = vsub.f32 %v9582_v41, %v1199_v54  ;;  %873 = vadd.xlane.f32.xlu1 %v872_v21 }
 0x501   :  { %v9696_v49 = vpop.eup %8346  ;;  %v1225_v61 = vmul.f32 1.442695, %v1218_v2  ;;  %v853_v2 = vmul.f32 1.442695, %v844_v30 }
 0x502   :  { %v875_v12 = vsel %vm819_vm9, %v9696_v49, 0.0  ;;  %v1202_v47 = vpop.xlane.xlu0 %1201 }
 0x503   :  { %8350 = vpow2.f32 %v1225_v61  ;;  %876 = vadd.xlane.f32.xlu1 %v875_v12  ;;  %v847_v61 = vsub.f32 %v9574_v8, %v837_v1 }
 0x505   :  { %v859_v12 = vmul.f32 1.442695, %v847_v61 }
 0x506   :  { %v1205_v14 = vpop.xlane.xlu1 %1204 }
 0x507   :  { %v1220_v18 = vsub.f32 %v9590_v7, %v1205_v14 }
 0x509   :  { %v9700_v57 = vpop.eup %8348  ;;  %8175 = vrot.lane.b32.xlu0 %v9317_v59, %s8780_s25  ;;  %v1229_v42 = vmul.f32 1.442695, %v1220_v18 }
 0x50a   :  { %v881_v29 = vsel %vm838_vm10, %v9700_v57, 0.0  ;;  %v1208_v3 = vpop.xlane.xlu0 %1207 }
 0x50b   :  { %882 = vadd.xlane.f32.xlu1 %v881_v29  ;;  %v1219_v29 = vsub.f32 %v9586_v4, %v1202_v47 }
 0x50d   :  { %v9706_v41 = vpop.eup %8350  ;;  %v1227_v24 = vmul.f32 1.442695, %v1219_v29 }
 0x50e   :  { %v1239_v36 = vsel %vm819_vm9, %v9706_v41, 0.0  ;;  %v1211_v1 = vpop.xlane.xlu1 %1210 }
 0x50f   :  { %1240 = vadd.xlane.f32.xlu1 %v1239_v36  ;;  %v1222_v7 = vsub.f32 %v9598_v26, %v1211_v1 }
 0x512   :  { %v1214_v51 = vpop.xlane.xlu0 %1213 }
 0x513   :  { %v1223_v54 = vsub.f32 %v9602_v20, %v1214_v51  ;;  %v1221_v20 = vsub.f32 %v9594_v9, %v1208_v3  ;;  %v1233_v9 = vmul.f32 1.442695, %v1222_v7 }
 0x515   :  { %v1235_v21 = vmul.f32 1.442695, %v1223_v54  ;;  %v1231_v14 = vmul.f32 1.442695, %v1221_v20 }
 0x516   :  { %v1217_v51 = vpop.xlane.xlu1 %1216 }
 0x517   :  { %8352 = vpow2.f32 %v1235_v21 }
 0x518   :  { %8354 = vpow2.f32 %v853_v2 }
 0x519   :  { %8356 = vpow2.f32 %v859_v12 }
 0x51a   :  { %v1616_v36 = vpop.xlane.xlu0 %1615  ;;  %8358 = vpow2.f32 %v1227_v24 }
 0x51b   :  { %8360 = vpow2.f32 %v1229_v42  ;;  %v1635_v21 = vsub.f32 %v9610_v39, %v1616_v36 }
 0x51e   :  { %v1619_v2 = vpop.xlane.xlu1 %1618 }
 0x51f   :  { %v1636_v42 = vsub.f32 %v9614_v31, %v1619_v2 }
 0x521   :  { %v9715_v11 = vpop.eup %8352 }
 0x522   :  { %v1622_v52 = vpop.xlane.xlu0 %1621  ;;  %v1254_v8 = vsel %vm819_vm9, %v9715_v11, 0.0  ;;  %v9721_v4 = vpop.eup %8354 }
 0x523   :  { %v1637_v30 = vsub.f32 %v9618_v38, %v1622_v52  ;;  %1255 = vadd.xlane.f32.xlu1 %v1254_v8  ;;  %v869_v18 = vsel %vm819_vm9, %v9721_v4, 0.0  ;;  %v9726_v24 = vpop.eup %8356  ;;  %v1224_v38 = vsub.f32 %v9606_v19, %v1217_v51  ;;  %v1642_v19 = vmul.f32 1.442695, %v1635_v21 }
 0x524   :  { %v878_v3 = vsel %vm819_vm9, %v9726_v24, 0.0  ;;  %v9731_v54 = vpop.eup %8358  ;;  %v1644_v52 = vmul.f32 1.442695, %v1636_v42 }
 0x525   :  { %v1646_v47 = vmul.f32 1.442695, %v1637_v30  ;;  %v1237_v26 = vmul.f32 1.442695, %v1224_v38  ;;  %v1242_v61 = vsel %vm819_vm9, %v9731_v54, 0.0  ;;  %v9736_v12 = vpop.eup %8360 }
 0x526   :  { %v1245_v39 = vsel %vm819_vm9, %v9736_v12, 0.0 }
 0x527   :  { %8362 = vpow2.f32 %v1646_v47 }
 0x528   :  { %870 = vadd.xlane.f32.xlu0 %v869_v18  ;;  %8364 = vpow2.f32 %v1231_v14 }
 0x529   :  { %8366 = vpow2.f32 %v1233_v9  ;;  %v9765_v9 = vpop.permute.xlu1 %8170 }
 0x52a   :  { %8368 = vpow2.f32 %v1237_v26  ;;  %v1628_v38 = vpop.xlane.xlu0 %1627 }
 0x52b   :  { %8370 = vpow2.f32 %v1642_v19 }
 0x52c   :  { %879 = vadd.xlane.f32.xlu0 %v878_v3  ;;  %8372 = vpow2.f32 %v1644_v52  ;;  %v1639_v3 = vsub.f32 %v9624_v35, %v1628_v38 }
 0x530   :  { %1243 = vadd.xlane.f32.xlu0 %v1242_v61  ;;  %v1650_v61 = vmul.f32 1.442695, %v1639_v3 }
 0x531   :  { %v9738_v29 = vpop.eup %8362 }
 0x532   :  { %v1662_v20 = vsel %vm819_vm9, %v9738_v29, 0.0  ;;  %v9745_v36 = vpop.eup %8364  ;;  %v1634_v26 = vpop.xlane.xlu0 %1633 }
 0x533   :  { %1663 = vadd.xlane.f32.xlu1 %v1662_v20  ;;  %v1248_v8 = vsel %vm819_vm9, %v9745_v36, 0.0  ;;  %v9749_v1 = vpop.eup %8366  ;;  %v1641_v19 = vsub.f32 %v9632_v0, %v1634_v26 }
 0x534   :  { %1246 = vadd.xlane.f32.xlu0 %v1245_v39  ;;  %v1251_v31 = vsel %vm819_vm9, %v9749_v1, 0.0  ;;  %v9753_v30 = vpop.eup %8368 }
 0x535   :  { %v1257_v47 = vsel %vm838_vm10, %v9753_v30, 0.0  ;;  %v9757_v14 = vpop.eup %8370  ;;  %v1654_v52 = vmul.f32 1.442695, %v1641_v19 }
 0x536   :  { %v1656_v7 = vsel %vm819_vm9, %v9757_v14, 0.0  ;;  %v9761_v51 = vpop.eup %8372 }
 0x537   :  { %v1659_v18 = vsel %vm819_vm9, %v9761_v51, 0.0 }
 0x538   :  { %1249 = vadd.xlane.f32.xlu0 %v1248_v8 }
 0x53c   :  { %1252 = vadd.xlane.f32.xlu0 %v1251_v31 }
 0x540   :  { %1258 = vadd.xlane.f32.xlu0 %v1257_v47 }
 0x542   :  { %v2001_v3 = vpop.xlane.xlu0 %2000 }
 0x544   :  { %1657 = vadd.xlane.f32.xlu0 %v1656_v7 }
 0x548   :  { %1660 = vadd.xlane.f32.xlu0 %v1659_v18 }
 0x553   :  { %v1625_v21 = vpop.xlane.xlu1 %1624 }
 0x554   :  { %v1638_v2 = vsub.f32 %v9622_v46, %v1625_v21  ;;  %v2004_v21 = vpop.xlane.xlu0 %2003 }
 0x556   :  { %v1648_v42 = vmul.f32 1.442695, %v1638_v2 }
 0x557   :  { %v1631_v20 = vpop.xlane.xlu1 %1630 }
 0x558   :  { %8374 = vpow2.f32 %v1648_v42  ;;  %v1640_v39 = vsub.f32 %v9628_v58, %v1631_v20 }
 0x559   :  { %8376 = vpow2.f32 %v1650_v61  ;;  %v2007_v61 = vpop.xlane.xlu0 %2006 }
 0x55a   :  { %v1652_v8 = vmul.f32 1.442695, %v1640_v39 }
 0x55b   :  { %v1992_v38 = vpop.xlane.xlu1 %1991 }
 0x55c   :  { %8378 = vpow2.f32 %v1652_v8  ;;  %v2011_v39 = vsub.f32 %v9636_v40, %v1992_v38  ;;  %v8152_v8 = vunpack.i.l.bf16 %v9672_v53  ;;  %v12223_v38 = vmov 0.0  }
 0x55d   :  { %8380 = vpow2.f32 %v1654_v52  ;;  %v8153_v52 = vunpack.i.h.bf16 %v9672_v53 }
 0x55f   :  { %v1995_v26 = vpop.xlane.xlu1 %1994 }
 0x562   :  { %v9771_v31 = vpop.eup %8374 }
 0x563   :  { %v1665_v35 = vsel %vm819_vm9, %v9771_v31, 0.0  ;;  %v9775_v47 = vpop.eup %8376  ;;  %v1998_v2 = vpop.xlane.xlu1 %1997 }
 0x564   :  { %1666 = vadd.xlane.f32.xlu0 %v1665_v35  ;;  %v1668_v0 = vsel %vm819_vm9, %v9775_v47, 0.0 }
 0x566   :  { %v9777_v46 = vpop.eup %8378 }
 0x567   :  { %v1671_v58 = vsel %vm819_vm9, %v9777_v46, 0.0  ;;  %v9783_v7 = vpop.eup %8380  ;;  %v2010_v19 = vpop.xlane.xlu1 %2009 }
 0x568   :  { %1669 = vadd.xlane.f32.xlu0 %v1668_v0  ;;  %1672 = vadd.xlane.f32.xlu1 %v1671_v58  ;;  %v1674_v18 = vsel %vm838_vm10, %v9783_v7, 0.0  ;;  %v2018_v0 = vmul.f32 1.442695, %v2011_v39  ;;  %v2012_v58 = vsub.f32 %v9638_v16, %v1995_v26  ;;  %v12224_v16 = vmov 0.0|0.0  }
 0x56a   :  { %v2020_v53 = vmul.f32 1.442695, %v2012_v58 }
 0x56c   :  { %1675 = vadd.xlane.f32.xlu0 %v1674_v18  ;;  %v7857_v18 = vpack.c.bf16 %v8153_v52, %v8152_v8  ;;  %v2016_v52 = vsub.f32 %v9650_v15, %v2007_v61  ;;  %v2017_v8 = vsub.f32 %v9654_v43, %v2010_v19 }
 0x579   :  { %1703 = vrot.lane.b32.xlu1 %v9307_v28, %s8780_s25 }
 0x580   :  { %v865_v42 = vpop.xlane.xlu0 %864 }
 0x581   :  { %8382 = vrcp.f32 %v865_v42  ;;  %v8158_v42 = vunpack.i.h.bf16 %v9664_v33 }
 0x582   :  { %8180 = vrot.lane.b32.xlu0 %v9279_v63, %s8781_s2 }
 0x584   :  { %v868_v20 = vpop.xlane.xlu1 %867 }
 0x585   :  { %8384 = vrcp.f32 %v868_v20  ;;  %v2015_v20 = vsub.f32 %v9646_v25, %v2004_v21  ;;  %v2028_v21 = vmul.f32 1.442695, %v2016_v52 }
 0x586   :  { %8185 = vrot.lane.b32.xlu0 %v9297_v10, %s8781_s2  ;;  %v8157_v10 = vunpack.i.l.bf16 %v9664_v33  ;;  %8386 = vpow2.f32 %v2018_v0  ;;  %v8163_v33 = vunpack.i.h.bf16 %v9668_v48 }
 0x587   :  { %8388 = vpow2.f32 %v2020_v53 }
 0x588   :  { %v7860_v26 = vpack.c.bf16 %v8158_v42, %v8157_v10 }
 0x58a   :  { %8190 = vrot.lane.b32.xlu0 %v9317_v59, %s8781_s2  ;;  %v2013_v59 = vsub.f32 %v9640_v13, %v1998_v2  ;;  %v2026_v2 = vmul.f32 1.442695, %v2015_v20 }
 0x58b   :  { %v8383_v35 = vpop.eup %8382 }
 0x58c   :  { %v891_v63 = vmul.f32 %v8383_v35, %v9681_v6  ;;  %v2022_v39 = vmul.f32 1.442695, %v2013_v59  ;;  %v874_v53 = vpop.xlane.xlu1 %873 }
 0x58e   :  { %2079 = vrot.lane.b32.xlu0 %v9307_v28, %s8781_s2  ;;  %7013 = vmatmul.mubr.msk.f32.vlgmr.msra.gmra.mrb[26].mxu1 %vm819_vm9, %v891_v63  ;;  %v8162_v28 = vunpack.i.l.bf16 %v9668_v48  ;;  %8390 = vpow2.f32 %v2022_v39 }
 0x58f   :  { %v8385_v40 = vpop.eup %8384  ;;  %7858 = vmatpush3.bf16.msra.mxu1 %v7857_v18  ;;  %7015 = vmatprep.mubr.msk.f32.mxu1 %vm8775_vm1, %v12223_v38  ;;  %8392 = vpow2.f32 %v2026_v2 }
 0x590   :  { %7859 = vmatprep.subr.bf16.mxu1 %v12224_v16  ;;  %v892_v6 = vmul.f32 %v8385_v40, %v9686_v60  ;;  %v7863_v13 = vpack.c.bf16 %v8163_v33, %v8162_v28  ;;  %v2014_v60 = vsub.f32 %v9642_v23, %v2001_v3  ;;  %v9820_v48 = vpop.eup %8386  ;;  %v2030_v3 = vmul.f32 1.442695, %v2017_v8  ;;  %v9852_v40 = vpop.permute.xlu0 %8175 }
 0x591   :  { %v2032_v23 = vsel %vm819_vm9, %v9820_v48, 0.0  ;;  %v9828_v15 = vpop.eup %8388 }
 0x592   :  { %7016 = vmatmul.mubr.msk.f32.gmra.mrb[28].mxu1 %vm819_vm9, %v892_v6  ;;  %v2024_v25 = vmul.f32 1.442695, %v2014_v60  ;;  %v2035_v61 = vsel %vm819_vm9, %v9828_v15, 0.0  ;;  %v877_v6 = vpop.xlane.xlu1 %876 }
 0x593   :  { %7861 = vmatpush3.bf16.msra.mxu1 %v7860_v26  ;;  %7018 = vmatprep.mubr.msk.f32.mxu1 %vm8775_vm1, %v12223_v38 }
 0x594   :  { %7862 = vmatprep.subr.bf16.mxu1 %v12224_v16  ;;  %8394 = vpow2.f32 %v2024_v25 }
 0x595   :  { %8396 = vpow2.f32 %v2028_v21 }
 0x596   :  { %8398 = vpow2.f32 %v2030_v3 }
 0x597   :  { %7864 = vmatpush3.bf16.msra.mxu1 %v7863_v13 }
 0x598   :  { %7080 = vmatprep.subr.mxu1 %v12223_v38  ;;  %v9832_v35 = vpop.eup %8390  ;;  %v883_v33 = vpop.xlane.xlu1 %882 }
 0x599   :  { %v2038_v43 = vsel %vm819_vm9, %v9832_v35, 0.0 }
 0x59b   :  { %7081 = vmatpush3.msk.msra.mxu1 %vm79_vm4, %v9676_v34  ;;  %v9836_v34 = vpop.eup %8392 }
 0x59c   :  { %7877 = vmatprep.subr.bf16.mxu1 %v12224_v16  ;;  %v2044_v0 = vsel %vm819_vm9, %v9836_v34, 0.0  ;;  %v1241_v60 = vpop.xlane.xlu1 %1240 }
 0x59d   :  { %2033 = vadd.xlane.f32.xlu1 %v2032_v23 }
 0x59e   :  { %v9838_v19 = vpop.eup %8394 }
 0x59f   :  { %v9842_v58 = vpop.eup %8396  ;;  %v2041_v63 = vsel %vm819_vm9, %v9838_v19, 0.0 }
 0x5a0   :  { %v2047_v18 = vsel %vm819_vm9, %v9842_v58, 0.0  ;;  %v9848_v42 = vpop.eup %8398 }
 0x5a1   :  { %2036 = vadd.xlane.f32.xlu1 %v2035_v61  ;;  %v2050_v10 = vsel %vm838_vm10, %v9848_v42, 0.0  ;;  %v8168_v61 = vunpack.i.h.bf16 %v9674_v55 }
 0x5a5   :  { %2039 = vadd.xlane.f32.xlu1 %v2038_v43  ;;  %v8167_v43 = vunpack.i.l.bf16 %v9674_v55 }
 0x5a9   :  { %2045 = vadd.xlane.f32.xlu1 %v2044_v0 }
 0x5ad   :  { %2042 = vadd.xlane.f32.xlu0 %v2041_v63  ;;  %2048 = vadd.xlane.f32.xlu1 %v2047_v18  ;;  %v7878_v18 = vpack.c.bf16 %v8168_v61, %v8167_v43 }
 0x5b0   :  { %v1256_v55 = vpop.xlane.xlu1 %1255 }
 0x5b1   :  { %2051 = vadd.xlane.f32.xlu1 %v2050_v10  ;;  %v8173_v10 = vunpack.i.h.bf16 %v9765_v9 }
 0x5b5   :  { %v871_v59 = vpop.xlane.xlu0 %870 }
 0x5b6   :  { %8400 = vrcp.f32 %v871_v59 }
 0x5b7   :  { %8402 = vrcp.f32 %v874_v53 }
 0x5b8   :  { %8404 = vrcp.f32 %v877_v6  ;;  %v8178_v6 = vunpack.i.h.bf16 %v9852_v40 }
 0x5b9   :  { %v880_v26 = vpop.xlane.xlu0 %879 }
 0x5ba   :  { %8406 = vrcp.f32 %v880_v26  ;;  %v8177_v26 = vunpack.i.l.bf16 %v9852_v40 }
 0x5bb   :  { %8408 = vrcp.f32 %v883_v33 }
 0x5bc   :  { %8410 = vrcp.f32 %v1241_v60 }
 0x5bd   :  { %v1244_v13 = vpop.xlane.xlu0 %1243 }
 0x5be   :  { %8412 = vrcp.f32 %v1244_v13 }
 0x5c0   :  { %v8401_v28 = vpop.eup %8400 }
 0x5c1   :  { %v893_v20 = vmul.f32 %v8401_v28, %v9721_v4  ;;  %v8403_v39 = vpop.eup %8402  ;;  %v1247_v25 = vpop.xlane.xlu0 %1246 }
 0x5c2   :  { %v894_v2 = vmul.f32 %v8403_v39, %v9691_v45  ;;  %v8405_v52 = vpop.eup %8404  ;;  %8414 = vrcp.f32 %v1247_v25 }
 0x5c3   :  { %7019 = vmatmul.mubr.msk.f32.gmra.mrb[30].mxu1 %vm819_vm9, %v893_v20  ;;  %v895_v4 = vmul.f32 %v8405_v52, %v9696_v49 }
 0x5c4   :  { %7021 = vmatprep.mubr.msk.f32.mxu1 %vm8775_vm1, %v12223_v38  ;;  %v8407_v21 = vpop.eup %8406 }
 0x5c5   :  { %v896_v8 = vmul.f32 %v8407_v21, %v9726_v24  ;;  %v8409_v45 = vpop.eup %8408  ;;  %v1250_v23 = vpop.xlane.xlu0 %1249 }
 0x5c6   :  { %v897_v3 = vmul.f32 %v8409_v45, %v9700_v57  ;;  %v8411_v49 = vpop.eup %8410  ;;  %8416 = vrcp.f32 %v1250_v23  ;;  %v8172_v57 = vunpack.i.l.bf16 %v9765_v9 }
 0x5c7   :  { %7022 = vmatmul.mubr.msk.f32.gmra.mrb[32].mxu1 %vm819_vm9, %v894_v2  ;;  %v1267_v24 = vmul.f32 %v8411_v49, %v9706_v41 }
 0x5c8   :  { %7024 = vmatprep.mubr.msk.f32.mxu1 %vm8775_vm1, %v12223_v38  ;;  %v8413_v63 = vpop.eup %8412  ;;  %v7881_v59 = vpack.c.bf16 %v8173_v10, %v8172_v57 }
 0x5c9   :  { %v1253_v0 = vpop.xlane.xlu0 %1252  ;;  %v1268_v53 = vmul.f32 %v8413_v63, %v9731_v54  ;;  %v7884_v54 = vpack.c.bf16 %v8178_v6, %v8177_v26 }
 0x5ca   :  { %8418 = vrcp.f32 %v1253_v0 }
 0x5cb   :  { %7025 = vmatmul.mubr.msk.f32.gmra.mrb[34].mxu1 %vm819_vm9, %v895_v4  ;;  %8420 = vrcp.f32 %v1256_v55 }
 0x5cc   :  { %7027 = vmatprep.mubr.msk.f32.mxu1 %vm8775_vm1, %v12223_v38  ;;  %v8415_v41 = vpop.eup %8414 }
 0x5cd   :  { %v1259_v9 = vpop.xlane.xlu0 %1258  ;;  %v1269_v33 = vmul.f32 %v8415_v41, %v9736_v12 }
 0x5ce   :  { %8422 = vrcp.f32 %v1259_v9 }
 0x5cf   :  { %7028 = vmatmul.mubr.msk.f32.gmra.mrb[36].mxu1 %vm819_vm9, %v896_v8 }
 0x5d0   :  { %7030 = vmatprep.mubr.msk.f32.mxu1 %vm8775_vm1, %v12223_v38  ;;  %v8417_v28 = vpop.eup %8416 }
 0x5d1   :  { %v1270_v40 = vmul.f32 %v8417_v28, %v9745_v36  ;;  %v1658_v13 = vpop.xlane.xlu0 %1657 }
 0x5d2   :  { %8424 = vrcp.f32 %v1658_v13 }
 0x5d3   :  { %7031 = vmatmul.mubr.msk.f32.gmra.mrb[38].mxu1 %vm819_vm9, %v897_v3 }
 0x5d4   :  { %7082 = vmatprep.mubr.msk.f32.mxu1 %vm8775_vm1, %v12223_v38  ;;  %v8419_v20 = vpop.eup %8418 }
 0x5d5   :  { %v1271_v12 = vmul.f32 %v8419_v20, %v9749_v1  ;;  %v8421_v39 = vpop.eup %8420  ;;  %v1661_v2 = vpop.xlane.xlu0 %1660 }
 0x5d6   :  { %v1272_v60 = vmul.f32 %v8421_v39, %v9715_v11  ;;  %8426 = vrcp.f32 %v1661_v2  ;;  %v1664_v1 = vpop.xlane.xlu1 %1663 }
 0x5d7   :  { %7083 = vmatmul.mubr.msk.f32.vlgmr.msra.gmra.mrb[40].mxu1 %vm819_vm9, %v1267_v24  ;;  %8428 = vrcp.f32 %v1664_v1 }
 0x5d8   :  { %7879 = vmatpush3.bf16.msra.mxu1 %v7878_v18  ;;  %7085 = vmatprep.mubr.msk.f32.mxu1 %vm8775_vm1, %v12223_v38  ;;  %v8423_v36 = vpop.eup %8422 }
 0x5d9   :  { %7880 = vmatprep.subr.bf16.mxu1 %v12224_v16  ;;  %v1273_v52 = vmul.f32 %v8423_v36, %v9753_v30 }
 0x5db   :  { %7086 = vmatmul.mubr.msk.f32.gmra.mrb[42].mxu1 %vm819_vm9, %v1268_v53 }
 0x5dc   :  { %7882 = vmatpush3.bf16.msra.mxu1 %v7881_v59  ;;  %7088 = vmatprep.mubr.msk.f32.mxu1 %vm8775_vm1, %v12223_v38  ;;  %v8425_v21 = vpop.eup %8424 }
 0x5dd   :  { %7883 = vmatprep.subr.bf16.mxu1 %v12224_v16  ;;  %v1684_v8 = vmul.f32 %v8425_v21, %v9757_v14 }
 0x5df   :  { %7089 = vmatmul.mubr.msk.f32.gmra.mrb[44].mxu1 %vm819_vm9, %v1269_v33 }
 0x5e0   :  { %7885 = vmatpush3.bf16.msra.mxu1 %v7884_v54  ;;  %7091 = vmatprep.mubr.msk.f32.mxu1 %vm8775_vm1, %v12223_v38  ;;  %v8427_v3 = vpop.eup %8426 }
 0x5e1   :  { %7150 = vmatprep.subr.mxu1 %v12223_v38  ;;  %v1685_v49 = vmul.f32 %v8427_v3, %v9761_v51  ;;  %v8429_v61 = vpop.eup %8428 }
 0x5e2   :  { %v1686_v63 = vmul.f32 %v8429_v61, %v9738_v29 }
 0x5e3   :  { %7092 = vmatmul.mubr.msk.f32.gmra.mrb[46].mxu1 %vm819_vm9, %v1270_v40 }
 0x5e4   :  { %7094 = vmatprep.mubr.msk.f32.mxu1 %vm8775_vm1, %v12223_v38 }
 0x5e7   :  { %7095 = vmatmul.mubr.msk.f32.gmra.mrb[48].mxu1 %vm819_vm9, %v1271_v12 }
 0x5e8   :  { %7097 = vmatprep.mubr.msk.f32.mxu1 %vm8775_vm1, %v12223_v38 }
 0x5eb   :  { %7098 = vmatmul.mubr.msk.f32.gmra.mrb[50].mxu1 %vm819_vm9, %v1272_v60 }
 0x5ec   :  { %7100 = vmatprep.mubr.msk.f32.mxu1 %vm8775_vm1, %v12223_v38 }
 0x5ef   :  { %7101 = vmatmul.mubr.msk.f32.gmra.mrb[52].mxu1 %vm819_vm9, %v1273_v52 }
 0x5f0   :  { %7152 = vmatprep.mubr.msk.f32.mxu1 %vm8775_vm1, %v12223_v38 }
 0x5f1   :  { %v1667_v25 = vpop.xlane.xlu0 %1666 }
 0x5f2   :  { %8430 = vrcp.f32 %v1667_v25 }
 0x5f5   :  { %v1670_v11 = vpop.xlane.xlu0 %1669  ;;  %v1673_v4 = vpop.xlane.xlu1 %1672 }
 0x5f6   :  { %8432 = vrcp.f32 %v1670_v11 }
 0x5f7   :  { %8434 = vrcp.f32 %v1673_v4 }
 0x5f9   :  { %v1676_v45 = vpop.xlane.xlu0 %1675  ;;  %v1704_v23 = vpop.permute.xlu1 %1703 }
 0x5fa   :  { %7151 = vmatpush3.msk.msra.mxu1 %vm79_vm4, %v1704_v23  ;;  %8436 = vrcp.f32 %v1676_v45 }
 0x5fb   :  { %7153 = vmatmul.mubr.msk.f32.vlgmr.msra.gmra.mrb[54].mxu1 %vm819_vm9, %v1684_v8  ;;  %7898 = vmatprep.subr.bf16.mxu1 %v12224_v16 }
 0x5fc   :  { %7155 = vmatprep.mubr.msk.f32.mxu1 %vm8775_vm1, %v12223_v38  ;;  %v8431_v18 = vpop.eup %8430 }
 0x5fd   :  { %v8181_v30 = vpop.permute.xlu0 %8180  ;;  %v1687_v53 = vmul.f32 %v8431_v18, %v9771_v31 }
 0x5fe   :  { %v8183_v43 = vunpack.i.h.bf16 %v8181_v30  ;;  %v8182_v24 = vunpack.i.l.bf16 %v8181_v30 }
 0x5ff   :  { %7156 = vmatmul.mubr.msk.f32.gmra.mrb[56].mxu1 %vm819_vm9, %v1685_v49 }
 0x600   :  { %v7899_v14 = vpack.c.bf16 %v8183_v43, %v8182_v24  ;;  %7158 = vmatprep.mubr.msk.f32.mxu1 %vm8775_vm1, %v12223_v38  ;;  %v8433_v41 = vpop.eup %8432 }
 0x601   :  { %v8186_v0 = vpop.permute.xlu0 %8185  ;;  %v1688_v26 = vmul.f32 %v8433_v41, %v9775_v47  ;;  %v8435_v9 = vpop.eup %8434 }
 0x602   :  { %v8188_v10 = vunpack.i.h.bf16 %v8186_v0  ;;  %v8187_v57 = vunpack.i.l.bf16 %v8186_v0  ;;  %7900 = vmatpush3.bf16.msra.mxu1 %v7899_v14  ;;  %v1689_v33 = vmul.f32 %v8435_v9, %v9777_v46 }
 0x603   :  { %7159 = vmatmul.mubr.msk.f32.gmra.mrb[58].mxu1 %vm819_vm9, %v1686_v63  ;;  %7901 = vmatprep.subr.bf16.mxu1 %v12224_v16 }
 0x604   :  { %v7902_v51 = vpack.c.bf16 %v8188_v10, %v8187_v57  ;;  %7161 = vmatprep.mubr.msk.f32.mxu1 %vm8775_vm1, %v12223_v38  ;;  %v8437_v28 = vpop.eup %8436 }
 0x605   :  { %v8191_v55 = vpop.permute.xlu0 %8190  ;;  %v1690_v47 = vmul.f32 %v8437_v28, %v9783_v7 }
 0x606   :  { %v8193_v59 = vunpack.i.h.bf16 %v8191_v55  ;;  %v8192_v6 = vunpack.i.l.bf16 %v8191_v55  ;;  %7903 = vmatpush3.bf16.msra.mxu1 %v7902_v51 }
 0x607   :  { %7162 = vmatmul.mubr.msk.f32.gmra.mrb[60].mxu1 %vm819_vm9, %v1687_v53  ;;  %7904 = vmatprep.subr.bf16.mxu1 %v12224_v16 }
 0x608   :  { %v7905_v29 = vpack.c.bf16 %v8193_v59, %v8192_v6  ;;  %7164 = vmatprep.mubr.msk.f32.mxu1 %vm8775_vm1, %v12223_v38 }
 0x609   :  { %v2080_v31 = vpop.permute.xlu0 %2079 }
 0x60a   :  { %7906 = vmatpush3.bf16.msra.mxu1 %v7905_v29 }
 0x60b   :  { %7165 = vmatmul.mubr.msk.f32.gmra.mrb[62].mxu1 %vm819_vm9, %v1688_v26  ;;  %7220 = vmatprep.subr.mxu1 %v12223_v38 }
 0x60c   :  { %7167 = vmatprep.mubr.msk.f32.mxu1 %vm8775_vm1, %v12223_v38 }
 0x60e   :  { %7221 = vmatpush3.msk.msra.mxu1 %vm79_vm4, %v2080_v31 }
 0x60f   :  { %7168 = vmatmul.mubr.msk.f32.gmra.mrb[64].mxu1 %vm819_vm9, %v1689_v33  ;;  %7913 = vmatprep.subr.bf16.mxu1 %v12224_v16 }
 0x610   :  { %7170 = vmatprep.mubr.msk.f32.mxu1 %vm8775_vm1, %v12223_v38 }
 0x613   :  { %7171 = vmatmul.mubr.msk.f32.gmra.mrb[66].mxu1 %vm819_vm9, %v1690_v47 }
 0x614   :  { %7222 = vmatprep.mubr.msk.f32.mxu1 %vm8775_vm1, %v12223_v38 }
 0x62a   :  { %v2034_v54 = vpop.xlane.xlu1 %2033 }
 0x62b   :  { %8438 = vrcp.f32 %v2034_v54 }
 0x62e   :  { %v2037_v46 = vpop.xlane.xlu1 %2036 }
 0x62f   :  { %8440 = vrcp.f32 %v2037_v46 }
 0x632   :  { %v2040_v40 = vpop.xlane.xlu1 %2039 }
 0x633   :  { %8442 = vrcp.f32 %v2040_v40 }
 0x635   :  { %v8439_v20 = vpop.eup %8438 }
 0x636   :  { %v2060_v12 = vmul.f32 %v8439_v20, %v9820_v48  ;;  %v2046_v39 = vpop.xlane.xlu1 %2045 }
 0x638   :  { %7223 = vmatmul.mubr.msk.f32.vlgmr.msra.gmra.mrb[68].mxu1 %vm819_vm9, %v2060_v12 }
 0x639   :  { %v8441_v13 = vpop.eup %8440  ;;  %7225 = vmatprep.mubr.msk.f32.mxu1 %vm8775_vm1, %v12223_v38 }
 0x63a   :  { %v2043_v7 = vpop.xlane.xlu0 %2042  ;;  %v2061_v60 = vmul.f32 %v8441_v13, %v9828_v15  ;;  %v2049_v36 = vpop.xlane.xlu1 %2048 }
 0x63b   :  { %8444 = vrcp.f32 %v2043_v7 }
 0x63c   :  { %7226 = vmatmul.mubr.msk.f32.gmra.mrb[70].mxu1 %vm819_vm9, %v2061_v60  ;;  %8446 = vrcp.f32 %v2046_v39 }
 0x63d   :  { %v8443_v2 = vpop.eup %8442  ;;  %7228 = vmatprep.mubr.msk.f32.mxu1 %vm8775_vm1, %v12223_v38  ;;  %8448 = vrcp.f32 %v2049_v36 }
 0x63e   :  { %v2062_v48 = vmul.f32 %v8443_v2, %v9832_v35  ;;  %v2052_v52 = vpop.xlane.xlu1 %2051 }
 0x63f   :  { %8450 = vrcp.f32 %v2052_v52 }
 0x640   :  { %7229 = vmatmul.mubr.msk.f32.gmra.mrb[72].mxu1 %vm819_vm9, %v2062_v48 }
 0x641   :  { %7231 = vmatprep.mubr.msk.f32.mxu1 %vm8775_vm1, %v12223_v38 }
 0x645   :  { %v8445_v1 = vpop.eup %8444 }
 0x646   :  { %v2063_v15 = vmul.f32 %v8445_v1, %v9838_v19  ;;  %v8447_v25 = vpop.eup %8446 }
 0x647   :  { %v2064_v11 = vmul.f32 %v8447_v25, %v9836_v34  ;;  %v8449_v35 = vpop.eup %8448 }
 0x648   :  { %7232 = vmatmul.mubr.msk.f32.gmra.mrb[74].mxu1 %vm819_vm9, %v2063_v15  ;;  %v2065_v4 = vmul.f32 %v8449_v35, %v9842_v58 }
 0x649   :  { %7234 = vmatprep.mubr.msk.f32.mxu1 %vm8775_vm1, %v12223_v38  ;;  %v8451_v21 = vpop.eup %8450 }
 0x64a   :  { %v2066_v19 = vmul.f32 %v8451_v21, %v9848_v42 }
 0x64c   :  { %7235 = vmatmul.mubr.msk.f32.gmra.mrb[76].mxu1 %vm819_vm9, %v2064_v11 }
 0x64d   :  { %7237 = vmatprep.mubr.msk.f32.mxu1 %vm8775_vm1, %v12223_v38 }
 0x650   :  { %7238 = vmatmul.mubr.msk.f32.gmra.mrb[78].mxu1 %vm819_vm9, %v2065_v4 }
 0x651   :  { %7240 = vmatprep.mubr.msk.f32.mxu1 %vm8775_vm1, %v12223_v38 }
 0x654   :  { %7241 = vmatmul.mubr.msk.f32.gmra.mrb[80].mxu1 %vm819_vm9, %v2066_v19 }
 0x655   :  { %7322 = vmatprep.mubr.msk.f32.mxu1 %vm8775_vm1, %v12223_v38 }
 0x661   :  { %v9974_v34 = vpop.f32.mrb[26].mxu1 }
 0x662   :  { %v7014_v8 = vpop.f32.mrb[27].mxu1 }
 0x665   :  { %v9976_v45 = vpop.f32.mrb[28].mxu1 }
 0x666   :  { %v7017_v23 = vpop.f32.mrb[29].mxu1 }
 0x696   :  { %v9978_v58 = vpop.f32.mrb[30].mxu1 }
 0x697   :  { %v7020_v3 = vpop.f32.mrb[31].mxu1 }
 0x69a   :  { %v9980_v30 = vpop.f32.mrb[32].mxu1 }
 0x69b   :  { %v7023_v49 = vpop.f32.mrb[33].mxu1 }
 0x69e   :  { %v9982_v61 = vpop.f32.mrb[34].mxu1 }
 0x69f   :  { %v7026_v42 = vpop.f32.mrb[35].mxu1 }
 0x6a2   :  { %v9984_v43 = vpop.f32.mrb[36].mxu1 }
 0x6a3   :  { %v7029_v24 = vpop.f32.mrb[37].mxu1 }
 0x6a6   :  { %v9986_v14 = vpop.f32.mrb[38].mxu1 }
 0x6a7   :  { %v7032_v0 = vpop.f32.mrb[39].mxu1 }
 0x6aa   :  { %v1383_v63 = vpop.f32.mrb[40].mxu1 }
 0x6ab   :  { %1424 = vrot.lane.b32.xlu1 %v1383_v63, %s8782_s26  ;;  %v7084_v18 = vpop.f32.mrb[41].mxu1 }
 0x6ae   :  { %v1388_v10 = vpop.f32.mrb[42].mxu1 }
 0x6af   :  { %1426 = vrot.lane.b32.xlu0 %v1388_v10, %s8782_s26  ;;  %v7087_v57 = vpop.f32.mrb[43].mxu1 }
 0x6b2   :  { %v1393_v51 = vpop.f32.mrb[44].mxu1 }
 0x6b3   :  { %1428 = vrot.lane.b32.xlu1 %v1393_v51, %s8782_s26  ;;  %v7090_v55 = vpop.f32.mrb[45].mxu1 }
 0x6b6   :  { %v1398_v53 = vpop.f32.mrb[46].mxu1 }
 0x6b7   :  { %1430 = vrot.lane.b32.xlu1 %v1398_v53, %s8782_s26  ;;  %v7093_v41 = vpop.f32.mrb[47].mxu1 }
 0x6ba   :  { %v1403_v59 = vpop.f32.mrb[48].mxu1 }
 0x6bb   :  { %1432 = vrot.lane.b32.xlu1 %v1403_v59, %s8782_s26  ;;  %v7096_v6 = vpop.f32.mrb[49].mxu1 }
 0x6be   :  { %v1408_v29 = vpop.f32.mrb[50].mxu1 }
 0x6bf   :  { %1434 = vrot.lane.b32.xlu1 %v1408_v29, %s8782_s26  ;;  %v7099_v26 = vpop.f32.mrb[51].mxu1 }
 0x6c2   :  { %v1413_v9 = vpop.f32.mrb[52].mxu1 }
 0x6c3   :  { %v7102_v31 = vpop.f32.mrb[53].mxu1 }
 0x6ce   :  { %v9994_v33 = vpop.f32.mrb[54].mxu1 }
 0x6cf   :  { %v7154_v28 = vpop.f32.mrb[55].mxu1 }
 0x6d2   :  { %v9996_v47 = vpop.f32.mrb[56].mxu1 }
 0x6d3   :  { %v7157_v54 = vpop.f32.mrb[57].mxu1 }
 0x6d6   :  { %v9998_v46 = vpop.f32.mrb[58].mxu1 }
 0x6d7   :  { %v7160_v40 = vpop.f32.mrb[59].mxu1 }
 0x6da   :  { %v10000_v20 = vpop.f32.mrb[60].mxu1 }
 0x6db   :  { %v7163_v12 = vpop.f32.mrb[61].mxu1 }
 0x6de   :  { %v10002_v39 = vpop.f32.mrb[62].mxu1 }
 0x6df   :  { %v7166_v13 = vpop.f32.mrb[63].mxu1 }
 0x6e2   :  { %v10004_v7 = vpop.f32.mrb[64].mxu1 }
 0x6e3   :  { %v7169_v60 = vpop.f32.mrb[65].mxu1 }
 0x6e6   :  { %v10006_v36 = vpop.f32.mrb[66].mxu1 }
 0x6e7   :  { %v7172_v2 = vpop.f32.mrb[67].mxu1 }
 0x70b   :  { %v2176_v48 = vpop.f32.mrb[68].mxu1 }
 0x70c   :  { %2217 = vrot.lane.b32.xlu1 %v2176_v48, %s8782_s26  ;;  %v7224_v52 = vpop.f32.mrb[69].mxu1 }
 0x70f   :  { %v2181_v1 = vpop.f32.mrb[70].mxu1 }
 0x710   :  { %1436 = vrot.lane.b32.xlu1 %v1413_v9, %s8782_s26  ;;  %2219 = vrot.lane.b32.xlu0 %v2181_v1, %s8782_s26  ;;  %v7227_v15 = vpop.f32.mrb[71].mxu1 }
 0x713   :  { %v2186_v25 = vpop.f32.mrb[72].mxu1 }
 0x714   :  { %2221 = vrot.lane.b32.xlu1 %v2186_v25, %s8782_s26  ;;  %v7230_v11 = vpop.f32.mrb[73].mxu1 }
 0x71b   :  { %v2191_v35 = vpop.f32.mrb[74].mxu1 }
 0x71c   :  { %2223 = vrot.lane.b32.xlu0 %v2191_v35, %s8782_s26  ;;  %v7233_v4 = vpop.f32.mrb[75].mxu1 }
 0x71d   :  { %v1425_v42 = vpop.permute.xlu1 %1424 }
 0x71e   :  { %v1445_v24 = vsel %vm690_vm7, %v9974_v34, %v1425_v42 }
 0x71f   :  { %v2196_v21 = vpop.f32.mrb[76].mxu1  ;;  %v10018_v0 = vadd.f32 %v1445_v24, %v8954_v17  ;;  %v12226_v24 = vld [vmem:[#allocation6_spill] sm:$0xff] }
 0x720   :  { %2225 = vrot.lane.b32.xlu1 %v2196_v21, %s8782_s26  ;;  %v7236_v19 = vpop.f32.mrb[77].mxu1 }
 0x721   :  { %v2286_v63 = vsel %vm279_vm3, %v10018_v0, 0.0  ;;  %v1427_v18 = vpop.permute.xlu0 %1426 }
 0x722   :  { %v1446_v57 = vsel %vm690_vm7, %v9976_v45, %v1427_v18 }
 0x723   :  { %v2201_v8 = vpop.f32.mrb[78].mxu1  ;;  %v10025_v51 = vadd.f32 %v1446_v57, %v8961_v22 }
 0x724   :  { %2227 = vrot.lane.b32.xlu1 %v2201_v8, %s8782_s26  ;;  %v7239_v23 = vpop.f32.mrb[79].mxu1 }
 0x725   :  { %v1429_v10 = vpop.permute.xlu1 %1428  ;;  %v2289_v17 = vsel %vm279_vm3, %v10025_v51, 0.0 }
 0x726   :  { %v1447_v53 = vsel %vm690_vm7, %v9978_v58, %v1429_v10 }
 0x727   :  { %v2206_v3 = vpop.f32.mrb[80].mxu1  ;;  %v10030_v34 = vadd.f32 %v1447_v53, %v8968_v27 }
 0x728   :  { %v7242_v49 = vpop.f32.mrb[81].mxu1 }
 0x729   :  { %v1431_v55 = vpop.permute.xlu1 %1430  ;;  %v2292_v22 = vsel %vm279_vm3, %v10030_v34, 0.0 }
 0x72a   :  { %v1448_v41 = vsel %vm690_vm7, %v9980_v30, %v1431_v55 }
 0x72b   :  { %v10037_v45 = vadd.f32 %v1448_v41, %v8975_v32 }
 0x72d   :  { %v1433_v59 = vpop.permute.xlu1 %1432  ;;  %v2295_v6 = vsel %vm279_vm3, %v10037_v45, 0.0 }
 0x72e   :  { %v1449_v58 = vsel %vm690_vm7, %v9982_v61, %v1433_v59  ;;  %v12227_v59 = vld [vmem:[#allocation7_spill] sm:$0xff] }
 0x72f   :  { %v10044_v27 = vadd.f32 %v1449_v58, %v8982_v37 }
 0x731   :  { %v2298_v32 = vsel %vm279_vm3, %v10044_v27, 0.0  ;;  %v1435_v30 = vpop.permute.xlu1 %1434 }
 0x732   :  { %v1450_v29 = vsel %vm690_vm7, %v9984_v43, %v1435_v30 }
 0x733   :  { %v10054_v61 = vadd.f32 %v1450_v29, %v8992_v44 }
 0x735   :  { %v2301_v37 = vsel %vm279_vm3, %v10054_v61, 0.0 }
 0x73b   :  { %2287 = vadd.xlane.f32.xlu0 %v2286_v63 }
 0x748   :  { %2290 = vadd.xlane.f32.xlu1 %v2289_v17 }
 0x74c   :  { %2293 = vadd.xlane.f32.xlu1 %v2292_v22 }
 0x750   :  { %2296 = vadd.xlane.f32.xlu1 %v2295_v6 }
 0x751   :  { %2229 = vrot.lane.b32.xlu0 %v2206_v3, %s8782_s26  ;;  %v12225_v3 = vld [vmem:[#allocation5_spill] sm:$0xff] }
 0x754   :  { %2299 = vadd.xlane.f32.xlu1 %v2298_v32 }
 0x770   :  { %2302 = vadd.xlane.f32.xlu0 %v2301_v37 }
 0x77e   :  { %v2218_v26 = vpop.permute.xlu1 %2217 }
 0x77f   :  { %v2238_v9 = vsel %vm690_vm7, %v9994_v33, %v2218_v26 }
 0x780   :  { %v2252_v31 = vrot.slane %v2238_v9, 6 }
 0x782   :  { %v2220_v28 = vpop.permute.xlu0 %2219  ;;  %v1437_v54 = vpop.permute.xlu1 %1436 }
 0x783   :  { %v2239_v40 = vsel %vm690_vm7, %v9996_v47, %v2220_v28  ;;  %v1451_v43 = vsel %vm690_vm7, %v9986_v14, %v1437_v54 }
 0x784   :  { %v2253_v12 = vrot.slane %v2239_v40, 6  ;;  %v2272_v44 = vsel %vm79_vm4, %v1451_v43, %v2252_v31 }
 0x785   :  { %v10066_v13 = vadd.f32 %v2272_v44, %v8997_v50 }
 0x786   :  { %v2254_v60 = vsel %vm79_vm4, %v2252_v31, %v2253_v12  ;;  %v2222_v2 = vpop.permute.xlu1 %2221 }
 0x787   :  { %v2240_v33 = vsel %vm690_vm7, %v9998_v46, %v2222_v2  ;;  %v2304_v48 = vsel %vm279_vm3, %v10066_v13, 0.0  ;;  %v10074_v47 = vadd.f32 %v2254_v60, %v9002_v56 }
 0x788   :  { %v2255_v52 = vrot.slane %v2240_v33, 6  ;;  %2305 = vadd.xlane.f32.xlu1 %v2304_v48 }
 0x789   :  { %v2307_v50 = vsel %vm279_vm3, %v10074_v47, 0.0 }
 0x78a   :  { %v2256_v14 = vsel %vm79_vm4, %v2253_v12, %v2255_v52 }
 0x78b   :  { %v10080_v1 = vadd.f32 %v2256_v14, %v9007_v62 }
 0x78c   :  { %2308 = vadd.xlane.f32.xlu1 %v2307_v50 }
 0x78d   :  { %v2310_v25 = vsel %vm279_vm3, %v10080_v1, 0.0 }
 0x78e   :  { %v2224_v15 = vpop.permute.xlu0 %2223 }
 0x78f   :  { %v2241_v46 = vsel %vm690_vm7, %v10000_v20, %v2224_v15  ;;  %v2493_v15 = vld [vmem:[%s12198_s9] sm:$0xff] }
 0x790   :  { %v2257_v56 = vrot.slane %v2241_v46, 6  ;;  %2311 = vadd.xlane.f32.xlu1 %v2310_v25  ;;  %v2494_v46 = vld [vmem:[%s12198_s9 + $0x8] sm:$0xff] }
 0x791   :  { %v7908_v25 = vpack.c.bf16 %v2494_v46, %v2493_v15 }
 0x792   :  { %v2258_v11 = vsel %vm79_vm4, %v2255_v52, %v2257_v56  ;;  %v2226_v35 = vpop.permute.xlu1 %2225 }
 0x793   :  { %v2242_v4 = vsel %vm690_vm7, %v10002_v39, %v2226_v35  ;;  %v10090_v21 = vadd.f32 %v2258_v11, %v9012_v5  ;;  %7909 = vmatpush3.bf16.msra.mxu0 %v7908_v25  ;;  %v2496_v11 = vld [vmem:[%s12198_s9 + $0x18] sm:$0xff] }
 0x794   :  { %v2259_v62 = vrot.slane %v2242_v4, 6  ;;  %7910 = vmatprep.subr.bf16.mxu0 %v12224_v16 }
 0x795   :  { %v2313_v19 = vsel %vm279_vm3, %v10090_v21, 0.0 }
 0x796   :  { %v2260_v20 = vsel %vm79_vm4, %v2257_v56, %v2259_v62  ;;  %2314 = vadd.xlane.f32.xlu1 %v2313_v19  ;;  %v2228_v8 = vpop.permute.xlu1 %2227  ;;  %v2495_v56 = vld [vmem:[%s12198_s9 + $0x10] sm:$0xff] }
 0x797   :  { %v2243_v23 = vsel %vm690_vm7, %v10004_v7, %v2228_v8  ;;  %v10098_v49 = vadd.f32 %v2260_v20, %v12225_v3  ;;  %v7911_v35 = vpack.c.bf16 %v2496_v11, %v2495_v56 }
 0x798   :  { %v2261_v42 = vrot.slane %v2243_v23, 6 }
 0x799   :  { %v2316_v39 = vsel %vm279_vm3, %v10098_v49, 0.0  ;;  %7912 = vmatpush3.bf16.msra.mxu0 %v7911_v35 }
 0x79a   :  { %v2262_v5 = vsel %vm79_vm4, %v2259_v62, %v2261_v42  ;;  %2317 = vadd.xlane.f32.xlu1 %v2316_v39  ;;  %7937 = vmatprep.subr.bf16.mxu0 %v12224_v16 }
 0x79b   :  { %v10104_v63 = vadd.f32 %v2262_v5, %v12226_v24 }
 0x79d   :  { %v2319_v18 = vsel %vm279_vm3, %v10104_v63, 0.0 }
 0x79e   :  { %2320 = vadd.xlane.f32.xlu1 %v2319_v18 }
 0x7c8   :  { %v2288_v10 = vpop.xlane.xlu0 %2287 }
 0x7c9   :  { %v2325_v57 = vmul.f32 0.03125, %v2288_v10 }
 0x7cb   :  { %v10111_v17 = vsub.f32 %v10018_v0, %v2325_v57 }
 0x7cc   :  { %v2230_v7 = vpop.permute.xlu0 %2229 }
 0x7cd   :  { %v2244_v55 = vsel %vm690_vm7, %v10006_v36, %v2230_v7  ;;  %v2351_v6 = vmul.f32 %v10111_v17, %v10111_v17 }
 0x7ce   :  { %v2263_v53 = vrot.slane %v2244_v55, 6 }
 0x7cf   :  { %v2364_v36 = vsel %vm279_vm3, %v2351_v6, 0.0 }
 0x7d0   :  { %v2264_v41 = vsel %vm79_vm4, %v2261_v42, %v2263_v53 }
 0x7d1   :  { %v10115_v22 = vadd.f32 %v2264_v41, %v12227_v59 }
 0x7d3   :  { %v2322_v58 = vsel %vm316_vm5, %v10115_v22, 0.0 }
 0x7d4   :  { %2323 = vadd.xlane.f32.xlu1 %v2322_v58 }
 0x7d5   :  { %v2291_v32 = vpop.xlane.xlu1 %2290 }
 0x7d6   :  { %v2326_v30 = vmul.f32 0.03125, %v2291_v32 }
 0x7d8   :  { %v10123_v29 = vsub.f32 %v10025_v51, %v2326_v30  ;;  %2365 = vadd.xlane.f32.xlu1 %v2364_v36 }
 0x7d9   :  { %v2294_v37 = vpop.xlane.xlu1 %2293 }
 0x7da   :  { %v2327_v26 = vmul.f32 0.03125, %v2294_v37  ;;  %v2352_v9 = vmul.f32 %v10123_v29, %v10123_v29 }
 0x7dc   :  { %v10128_v31 = vsub.f32 %v10030_v34, %v2327_v26  ;;  %v2367_v28 = vsel %vm279_vm3, %v2352_v9, 0.0 }
 0x7dd   :  { %2368 = vadd.xlane.f32.xlu0 %v2367_v28  ;;  %v2297_v54 = vpop.xlane.xlu1 %2296 }
 0x7de   :  { %v2328_v40 = vmul.f32 0.03125, %v2297_v54  ;;  %v2353_v43 = vmul.f32 %v10128_v31, %v10128_v31 }
 0x7e0   :  { %v10134_v12 = vsub.f32 %v10037_v45, %v2328_v40  ;;  %v2370_v44 = vsel %vm279_vm3, %v2353_v43, 0.0 }
 0x7e1   :  { %2371 = vadd.xlane.f32.xlu1 %v2370_v44  ;;  %v2300_v60 = vpop.xlane.xlu1 %2299 }
 0x7e2   :  { %v2329_v2 = vmul.f32 0.03125, %v2300_v60  ;;  %v2354_v33 = vmul.f32 %v10134_v12, %v10134_v12 }
 0x7e4   :  { %v10140_v48 = vsub.f32 %v10044_v27, %v2329_v2  ;;  %v2373_v52 = vsel %vm279_vm3, %v2354_v33, 0.0 }
 0x7e5   :  { %2374 = vadd.xlane.f32.xlu0 %v2373_v52 }
 0x7e6   :  { %v2355_v14 = vmul.f32 %v10140_v48, %v10140_v48 }
 0x7e8   :  { %v2376_v50 = vsel %vm279_vm3, %v2355_v14, 0.0 }
 0x7e9   :  { %2377 = vadd.xlane.f32.xlu1 %v2376_v50 }
 0x7fd   :  { %v2303_v4 = vpop.xlane.xlu0 %2302 }
 0x7fe   :  { %v2330_v62 = vmul.f32 0.03125, %v2303_v4 }
 0x800   :  { %v10161_v19 = vsub.f32 %v10054_v61, %v2330_v62 }
 0x802   :  { %v2356_v20 = vmul.f32 %v10161_v19, %v10161_v19 }
 0x804   :  { %v2379_v8 = vsel %vm279_vm3, %v2356_v20, 0.0 }
 0x805   :  { %2380 = vadd.xlane.f32.xlu0 %v2379_v8 }
 0x815   :  { %v2306_v23 = vpop.xlane.xlu1 %2305 }
 0x816   :  { %v2331_v3 = vmul.f32 0.03125, %v2306_v23 }
 0x818   :  { %v10167_v42 = vsub.f32 %v10066_v13, %v2331_v3 }
 0x819   :  { %v2309_v39 = vpop.xlane.xlu1 %2308 }
 0x81a   :  { %v2332_v5 = vmul.f32 0.03125, %v2309_v39  ;;  %v2357_v24 = vmul.f32 %v10167_v42, %v10167_v42 }
 0x81c   :  { %v10172_v18 = vsub.f32 %v10074_v47, %v2332_v5  ;;  %v2382_v10 = vsel %vm279_vm3, %v2357_v24, 0.0  ;;  %v10211_v24 = vld [vmem:[%s12196_s7] ss:$0 sm:$0xff] }
 0x81d   :  { %2383 = vadd.xlane.f32.xlu1 %v2382_v10  ;;  %v2312_v57 = vpop.xlane.xlu1 %2311 }
 0x81e   :  { %v2333_v7 = vmul.f32 0.03125, %v2312_v57  ;;  %v2358_v55 = vmul.f32 %v10172_v18, %v10172_v18 }
 0x820   :  { %v10178_v53 = vsub.f32 %v10080_v1, %v2333_v7  ;;  %v2385_v41 = vsel %vm279_vm3, %v2358_v55, 0.0  ;;  %v10217_v55 = vld [vmem:[%s12197_s8] ss:$0 sm:$0xff] }
 0x821   :  { %2386 = vadd.xlane.f32.xlu0 %v2385_v41 }
 0x822   :  { %v2359_v59 = vmul.f32 %v10178_v53, %v10178_v53 }
 0x823   :  { %v2315_v58 = vpop.xlane.xlu1 %2314 }
 0x824   :  { %v2334_v6 = vmul.f32 0.03125, %v2315_v58  ;;  %v2388_v32 = vsel %vm279_vm3, %v2359_v59, 0.0 }
 0x825   :  { %2389 = vadd.xlane.f32.xlu1 %v2388_v32 }
 0x826   :  { %v10185_v30 = vsub.f32 %v10090_v21, %v2334_v6 }
 0x827   :  { %v2318_v36 = vpop.xlane.xlu1 %2317 }
 0x828   :  { %v2335_v37 = vmul.f32 0.03125, %v2318_v36  ;;  %v2360_v26 = vmul.f32 %v10185_v30, %v10185_v30 }
 0x82a   :  { %v10190_v9 = vsub.f32 %v10098_v49, %v2335_v37  ;;  %v2391_v28 = vsel %vm279_vm3, %v2360_v26, 0.0 }
 0x82b   :  { %2392 = vadd.xlane.f32.xlu0 %v2391_v28  ;;  %v2321_v54 = vpop.xlane.xlu1 %2320 }
 0x82c   :  { %v2336_v40 = vmul.f32 0.03125, %v2321_v54  ;;  %v2361_v43 = vmul.f32 %v10190_v9, %v10190_v9 }
 0x82e   :  { %v10196_v44 = vsub.f32 %v10104_v63, %v2336_v40  ;;  %v2394_v60 = vsel %vm279_vm3, %v2361_v43, 0.0 }
 0x82f   :  { %2395 = vadd.xlane.f32.xlu1 %v2394_v60 }
 0x830   :  { %v2362_v2 = vmul.f32 %v10196_v44, %v10196_v44 }
 0x832   :  { %v2397_v33 = vsel %vm279_vm3, %v2362_v2, 0.0 }
 0x833   :  { %2398 = vadd.xlane.f32.xlu0 %v2397_v33 }
 0x861   :  { %v2324_v52 = vpop.xlane.xlu1 %2323 }
 0x862   :  { %v2337_v14 = vmul.f32 0.03125, %v2324_v52 }
 0x864   :  { %v10203_v50 = vsub.f32 %v10115_v22, %v2337_v14 }
 0x865   :  { %v2366_v15 = vpop.xlane.xlu1 %2365 }
 0x866   :  { %v2403_v46 = vmul.f32 0.03125, %v2366_v15  ;;  %v2363_v25 = vmul.f32 %v10203_v50, %v10203_v50 }
 0x868   :  { %v2416_v56 = vadd.f32 1e-05, %v2403_v46  ;;  %v2400_v11 = vsel %vm316_vm5, %v2363_v25, 0.0 }
 0x869   :  { %2401 = vadd.xlane.f32.xlu1 %v2400_v11 }
 0x86a   :  { %8452 = vrsqrt.f32 %v2416_v56  ;;  %v2369_v35 = vpop.xlane.xlu0 %2368 }
 0x86b   :  { %v2404_v4 = vmul.f32 0.03125, %v2369_v35 }
 0x86d   :  { %v2417_v62 = vadd.f32 1e-05, %v2404_v4 }
 0x86e   :  { %v2372_v20 = vpop.xlane.xlu1 %2371 }
 0x86f   :  { %8454 = vrsqrt.f32 %v2417_v62  ;;  %v2405_v8 = vmul.f32 0.03125, %v2372_v20 }
 0x871   :  { %v2418_v23 = vadd.f32 1e-05, %v2405_v8 }
 0x872   :  { %v2375_v3 = vpop.xlane.xlu0 %2374 }
 0x873   :  { %8456 = vrsqrt.f32 %v2418_v23  ;;  %v2406_v39 = vmul.f32 0.03125, %v2375_v3 }
 0x874   :  { %v8453_v5 = vpop.eup %8452 }
 0x875   :  { %v2442_v10 = vmul.f32 %v8453_v5, %v10111_v17  ;;  %v2419_v57 = vadd.f32 1e-05, %v2406_v39 }
 0x876   :  { %v2378_v7 = vpop.xlane.xlu1 %2377 }
 0x877   :  { %v2461_v41 = vmul.f32 %v10211_v24, %v2442_v10  ;;  %8458 = vrsqrt.f32 %v2419_v57  ;;  %v2407_v59 = vmul.f32 0.03125, %v2378_v7 }
 0x879   :  { %v8455_v58 = vpop.eup %8454  ;;  %v2420_v6 = vadd.f32 1e-05, %v2407_v59  ;;  %v2480_v32 = vadd.f32 %v10217_v55, %v2461_v41 }
 0x87a   :  { %v2443_v36 = vmul.f32 %v8455_v58, %v10123_v29 }
 0x87b   :  { %8460 = vrsqrt.f32 %v2420_v6  ;;  %7252 = vmatmul.mubr.msk.f32.vlgmr.msra.gmra.mrb[82].mxu0 %vm279_vm3, %v2480_v32 }
 0x87c   :  { %7254 = vmatprep.mubr.msk.f32.mxu0 %vm8775_vm1, %v12223_v38  ;;  %v2462_v17 = vmul.f32 %v10211_v24, %v2443_v36 }
 0x87d   :  { %v8457_v37 = vpop.eup %8456 }
 0x87e   :  { %v2481_v26 = vadd.f32 %v10217_v55, %v2462_v17  ;;  %v2444_v28 = vmul.f32 %v8457_v37, %v10128_v31 }
 0x880   :  { %7255 = vmatmul.mubr.msk.f32.gmra.mrb[84].mxu0 %vm279_vm3, %v2481_v26  ;;  %v2463_v54 = vmul.f32 %v10211_v24, %v2444_v28 }
 0x881   :  { %v8459_v40 = vpop.eup %8458  ;;  %7257 = vmatprep.mubr.msk.f32.mxu0 %vm8775_vm1, %v12223_v38 }
 0x882   :  { %v2482_v29 = vadd.f32 %v10217_v55, %v2463_v54  ;;  %v2445_v43 = vmul.f32 %v8459_v40, %v10134_v12 }
 0x884   :  { %7258 = vmatmul.mubr.msk.f32.gmra.mrb[86].mxu0 %vm279_vm3, %v2482_v29  ;;  %v2464_v60 = vmul.f32 %v10211_v24, %v2445_v43 }
 0x885   :  { %v8461_v2 = vpop.eup %8460  ;;  %7260 = vmatprep.mubr.msk.f32.mxu0 %vm8775_vm1, %v12223_v38 }
 0x886   :  { %v2483_v31 = vadd.f32 %v10217_v55, %v2464_v60  ;;  %v2446_v33 = vmul.f32 %v8461_v2, %v10140_v48 }
 0x888   :  { %7261 = vmatmul.mubr.msk.f32.gmra.mrb[88].mxu0 %vm279_vm3, %v2483_v31  ;;  %v2465_v52 = vmul.f32 %v10211_v24, %v2446_v33 }
 0x889   :  { %7263 = vmatprep.mubr.msk.f32.mxu0 %vm8775_vm1, %v12223_v38 }
 0x88a   :  { %v2484_v12 = vadd.f32 %v10217_v55, %v2465_v52 }
 0x88c   :  { %7264 = vmatmul.mubr.msk.f32.gmra.mrb[90].mxu0 %vm279_vm3, %v2484_v12 }
 0x88d   :  { %7266 = vmatprep.mubr.msk.f32.mxu0 %vm8775_vm1, %v12223_v38 }
 0x892   :  { %v2381_v14 = vpop.xlane.xlu0 %2380 }
 0x893   :  { %v2408_v15 = vmul.f32 0.03125, %v2381_v14 }
 0x895   :  { %v2421_v46 = vadd.f32 1e-05, %v2408_v15 }
 0x897   :  { %8462 = vrsqrt.f32 %v2421_v46 }
 0x8a1   :  { %v8463_v25 = vpop.eup %8462 }
 0x8a2   :  { %v2447_v48 = vmul.f32 %v8463_v25, %v10161_v19 }
 0x8a4   :  { %v2466_v56 = vmul.f32 %v10211_v24, %v2447_v48  ;;  %v3024_v48 = vld [vmem:[%s12200_s11] sm:$0xff] }
 0x8a6   :  { %v2485_v11 = vadd.f32 %v10217_v55, %v2466_v56 }
 0x8a8   :  { %7267 = vmatmul.mubr.msk.f32.gmra.mrb[92].mxu0 %vm279_vm3, %v2485_v11  ;;  %v3026_v11 = vld [vmem:[%s12200_s11 + $0x10] sm:$0xff] }
 0x8a9   :  { %7269 = vmatprep.mubr.msk.f32.mxu0 %vm8775_vm1, %v12223_v38 }
 0x8aa   :  { %v2384_v35 = vpop.xlane.xlu1 %2383 }
 0x8ab   :  { %v2409_v4 = vmul.f32 0.03125, %v2384_v35  ;;  %v3027_v35 = vld [vmem:[%s12200_s11 + $0x18] sm:$0xff] }
 0x8ad   :  { %v2422_v62 = vadd.f32 1e-05, %v2409_v4  ;;  %v7917_v4 = vpack.c.bf16 %v3027_v35, %v3026_v11 }
 0x8ae   :  { %v2387_v20 = vpop.xlane.xlu0 %2386 }
 0x8af   :  { %8464 = vrsqrt.f32 %v2422_v62  ;;  %v2410_v8 = vmul.f32 0.03125, %v2387_v20  ;;  %v3028_v62 = vld [vmem:[%s12200_s11 + $0x20] sm:$0xff]  ;;  %v3029_v20 = vld [vmem:[%s12200_s11 + $0x28] sm:$0xff] }
 0x8b1   :  { %v2423_v23 = vadd.f32 1e-05, %v2410_v8  ;;  %v7920_v8 = vpack.c.bf16 %v3029_v20, %v3028_v62 }
 0x8b2   :  { %v2390_v3 = vpop.xlane.xlu1 %2389 }
 0x8b3   :  { %8466 = vrsqrt.f32 %v2423_v23  ;;  %v2411_v39 = vmul.f32 0.03125, %v2390_v3  ;;  %v3030_v23 = vld [vmem:[%s12200_s11 + $0x30] sm:$0xff]  ;;  %v3031_v3 = vld [vmem:[%s12200_s11 + $0x38] sm:$0xff] }
 0x8b5   :  { %v2424_v19 = vadd.f32 1e-05, %v2411_v39  ;;  %v7923_v39 = vpack.c.bf16 %v3031_v3, %v3030_v23 }
 0x8b7   :  { %8468 = vrsqrt.f32 %v2424_v19  ;;  %v3032_v19 = vld [vmem:[%s12200_s11 + $0x40] sm:$0xff] }
 0x8b8   :  { %v2393_v5 = vpop.xlane.xlu0 %2392 }
 0x8b9   :  { %v8465_v10 = vpop.eup %8464  ;;  %v2412_v57 = vmul.f32 0.03125, %v2393_v5  ;;  %v3033_v5 = vld [vmem:[%s12200_s11 + $0x48] sm:$0xff] }
 0x8ba   :  { %v2448_v7 = vmul.f32 %v8465_v10, %v10167_v42  ;;  %v7926_v10 = vpack.c.bf16 %v3033_v5, %v3032_v19 }
 0x8bb   :  { %v2425_v41 = vadd.f32 1e-05, %v2412_v57  ;;  %v3034_v57 = vld [vmem:[%s12200_s11 + $0x50] sm:$0xff] }
 0x8bc   :  { %v2396_v59 = vpop.xlane.xlu1 %2395  ;;  %v2467_v58 = vmul.f32 %v10211_v24, %v2448_v7  ;;  %v3035_v7 = vld [vmem:[%s12200_s11 + $0x58] sm:$0xff] }
 0x8bd   :  { %v8467_v6 = vpop.eup %8466  ;;  %8470 = vrsqrt.f32 %v2425_v41  ;;  %v2413_v32 = vmul.f32 0.03125, %v2396_v59  ;;  %v7929_v41 = vpack.c.bf16 %v3035_v7, %v3034_v57 }
 0x8be   :  { %v2486_v36 = vadd.f32 %v10217_v55, %v2467_v58  ;;  %v2449_v17 = vmul.f32 %v8467_v6, %v10172_v18  ;;  %v3036_v6 = vld [vmem:[%s12200_s11 + $0x60] sm:$0xff] }
 0x8bf   :  { %v2426_v37 = vadd.f32 1e-05, %v2413_v32  ;;  %v3037_v32 = vld [vmem:[%s12200_s11 + $0x68] sm:$0xff] }
 0x8c0   :  { %v2399_v26 = vpop.xlane.xlu0 %2398  ;;  %7270 = vmatmul.mubr.msk.f32.gmra.mrb[94].mxu0 %vm279_vm3, %v2486_v36  ;;  %v2468_v28 = vmul.f32 %v10211_v24, %v2449_v17  ;;  %v7932_v36 = vpack.c.bf16 %v3037_v32, %v3036_v6 }
 0x8c1   :  { %v8469_v54 = vpop.eup %8468  ;;  %8472 = vrsqrt.f32 %v2426_v37  ;;  %v2414_v42 = vmul.f32 0.03125, %v2399_v26  ;;  %7272 = vmatprep.mubr.msk.f32.mxu0 %vm8775_vm1, %v12223_v38  ;;  %v3038_v37 = vld [vmem:[%s12200_s11 + $0x70] sm:$0xff]  ;;  %v3039_v26 = vld [vmem:[%s12200_s11 + $0x78] sm:$0xff] }
 0x8c2   :  { %v2487_v40 = vadd.f32 %v10217_v55, %v2468_v28  ;;  %v2450_v29 = vmul.f32 %v8469_v54, %v10178_v53  ;;  %v7935_v28 = vpack.c.bf16 %v3039_v26, %v3038_v37 }
 0x8c3   :  { %v2427_v43 = vadd.f32 1e-05, %v2414_v42 }
 0x8c4   :  { %7273 = vmatmul.mubr.msk.f32.gmra.mrb[96].mxu0 %vm279_vm3, %v2487_v40  ;;  %v2469_v18 = vmul.f32 %v10211_v24, %v2450_v29 }
 0x8c5   :  { %8474 = vrsqrt.f32 %v2427_v43  ;;  %7275 = vmatprep.mubr.msk.f32.mxu0 %vm8775_vm1, %v12223_v38  ;;  %v10355_v43 = vld [vmem:[%s12199_s10] ss:$0 sm:$0xff] }
 0x8c6   :  { %v2488_v60 = vadd.f32 %v10217_v55, %v2469_v18 }
 0x8c7   :  { %v8471_v2 = vpop.eup %8470 }
 0x8c8   :  { %7276 = vmatmul.mubr.msk.f32.gmra.mrb[98].mxu0 %vm279_vm3, %v2488_v60  ;;  %v2451_v31 = vmul.f32 %v8471_v2, %v10185_v30 }
 0x8c9   :  { %7278 = vmatprep.mubr.msk.f32.mxu0 %vm8775_vm1, %v12223_v38 }
 0x8ca   :  { %v2470_v53 = vmul.f32 %v10211_v24, %v2451_v31 }
 0x8cb   :  { %v8473_v33 = vpop.eup %8472 }
 0x8cc   :  { %v2489_v52 = vadd.f32 %v10217_v55, %v2470_v53  ;;  %v2452_v12 = vmul.f32 %v8473_v33, %v10190_v9 }
 0x8ce   :  { %7279 = vmatmul.mubr.msk.f32.gmra.mrb[100].mxu0 %vm279_vm3, %v2489_v52  ;;  %v2471_v14 = vmul.f32 %v10211_v24, %v2452_v12 }
 0x8cf   :  { %v8475_v15 = vpop.eup %8474  ;;  %7281 = vmatprep.mubr.msk.f32.mxu0 %vm8775_vm1, %v12223_v38 }
 0x8d0   :  { %v2490_v30 = vadd.f32 %v10217_v55, %v2471_v14  ;;  %v2453_v46 = vmul.f32 %v8475_v15, %v10196_v44  ;;  %v3025_v44 = vld [vmem:[%s12200_s11 + $0x8] sm:$0xff] }
 0x8d1   :  { %v7914_v56 = vpack.c.bf16 %v3025_v44, %v3024_v48 }
 0x8d2   :  { %7282 = vmatmul.mubr.msk.f32.gmra.mrb[102].mxu0 %vm279_vm3, %v2490_v30  ;;  %v2472_v25 = vmul.f32 %v10211_v24, %v2453_v46 }
 0x8d3   :  { %7284 = vmatprep.mubr.msk.f32.mxu0 %vm8775_vm1, %v12223_v38  ;;  %7915 = vmatpush3.bf16.msra.mxu1 %v7914_v56 }
 0x8d4   :  { %v2491_v9 = vadd.f32 %v10217_v55, %v2472_v25  ;;  %7916 = vmatprep.subr.bf16.mxu1 %v12224_v16 }
 0x8d6   :  { %7285 = vmatmul.mubr.msk.f32.gmra.mrb[104].mxu0 %vm279_vm3, %v2491_v9 }
 0x8d7   :  { %7287 = vmatprep.mubr.msk.f32.mxu0 %vm8775_vm1, %v12223_v38  ;;  %7918 = vmatpush3.bf16.msra.mxu1 %v7917_v4 }
 0x8d8   :  { %7919 = vmatprep.subr.bf16.mxu1 %v12224_v16 }
 0x8db   :  { %7921 = vmatpush3.bf16.msra.mxu1 %v7920_v8 }
 0x8dc   :  { %7922 = vmatprep.subr.bf16.mxu1 %v12224_v16 }
 0x8df   :  { %7924 = vmatpush3.bf16.msra.mxu1 %v7923_v39 }
 0x8e0   :  { %7925 = vmatprep.subr.bf16.mxu1 %v12224_v16 }
 0x8e3   :  { %7927 = vmatpush3.bf16.msra.mxu1 %v7926_v10 }
 0x8e4   :  { %7928 = vmatprep.subr.bf16.mxu1 %v12224_v16 }
 0x8e7   :  { %7930 = vmatpush3.bf16.msra.mxu1 %v7929_v41 }
 0x8e8   :  { %7931 = vmatprep.subr.bf16.mxu1 %v12224_v16 }
 0x8eb   :  { %7933 = vmatpush3.bf16.msra.mxu1 %v7932_v36 }
 0x8ec   :  { %7934 = vmatprep.subr.bf16.mxu1 %v12224_v16 }
 0x8ef   :  { %7936 = vmatpush3.bf16.msra.mxu1 %v7935_v28 }
 0x8f0   :  { %7943 = vmatprep.subr.bf16.mxu1 %v12224_v16 }
 0x8f6   :  { %v2402_v59 = vpop.xlane.xlu1 %2401 }
 0x8f7   :  { %v2415_v58 = vmul.f32 0.03125, %v2402_v59 }
 0x8f9   :  { %v2428_v17 = vadd.f32 1e-05, %v2415_v58 }
 0x8fb   :  { %8476 = vrsqrt.f32 %v2428_v17 }
 0x905   :  { %v8477_v54 = vpop.eup %8476 }
 0x906   :  { %v2454_v42 = vmul.f32 %v8477_v54, %v10203_v50 }
 0x908   :  { %v2473_v40 = vmul.f32 %v10211_v24, %v2454_v42 }
 0x90a   :  { %v2492_v29 = vadd.f32 %v10217_v55, %v2473_v40 }
 0x90c   :  { %7288 = vmatmul.mubr.msk.f32.gmra.mrb[106].mxu0 %vm279_vm3, %v2492_v29 }
 0x90d   :  { %7369 = vmatprep.mubr.msk.f32.mxu0 %vm8775_vm1, %v12223_v38 }
 0x94e   :  { %v2609_v18 = vpop.f32.mrb[82].mxu0 }
 0x94f   :  { %v10358_v60 = vadd.f32 %v10355_v43, %v2609_v18  ;;  %v7253_v2 = vpop.f32.mrb[83].mxu0 }
 0x951   :  { %v10361_v50 = vmul.f32 0.70710677, %v10358_v60 }
 0x953   :  { %v2725_v24 = vand.u32 2147483647, %v10361_v50  ;;  %v2614_v55 = vpop.f32.mrb[84].mxu0  ;;  %vm2699_vm11 = vcmp.ge.f32.partialorder %v10361_v50, 0.0 }
 0x954   :  { %v10365_v31 = vadd.f32 %v10355_v43, %v2614_v55  ;;  %v7256_v53 = vpop.f32.mrb[85].mxu0 }
 0x955   :  { %v2738_v33 = vmul.f32 0.3275911, %v2725_v24  ;;  %v2907_v4 = vsub.f32 0.0, %v2725_v24 }
 0x956   :  { %v10368_v52 = vmul.f32 0.70710677, %v10365_v31 }
 0x957   :  { %v2751_v12 = vadd.f32 1.0, %v2738_v33  ;;  %v2619_v14 = vpop.f32.mrb[86].mxu0  ;;  %v2920_v5 = vmul.f32 %v2907_v4, %v2725_v24 }
 0x958   :  { %v2726_v15 = vand.u32 2147483647, %v10368_v52  ;;  %v10372_v30 = vadd.f32 %v10355_v43, %v2619_v14  ;;  %v7259_v46 = vpop.f32.mrb[87].mxu0  ;;  %vm2700_vm12 = vcmp.ge.f32.partialorder %v10368_v52, 0.0 }
 0x959   :  { %8478 = vrcp.f32 %v2751_v12  ;;  %v2933_v36 = vmul.f32 1.442695, %v2920_v5 }
 0x95a   :  { %v2739_v25 = vmul.f32 0.3275911, %v2726_v15  ;;  %v10375_v9 = vmul.f32 0.70710677, %v10372_v30  ;;  %v2908_v59 = vsub.f32 0.0, %v2726_v15 }
 0x95b   :  { %v2624_v48 = vpop.f32.mrb[88].mxu0 }
 0x95c   :  { %v2752_v44 = vadd.f32 1.0, %v2739_v25  ;;  %v2727_v56 = vand.u32 2147483647, %v10375_v9  ;;  %v7262_v11 = vpop.f32.mrb[89].mxu0  ;;  %v10379_v35 = vadd.f32 %v10355_v43, %v2624_v48  ;;  %v2921_v28 = vmul.f32 %v2908_v59, %v2726_v15 }
 0x95d   :  { %vm2701_vm13 = vcmp.ge.f32.partialorder %v10375_v9, 0.0 }
 0x95e   :  { %8480 = vrcp.f32 %v2752_v44  ;;  %v2740_v62 = vmul.f32 0.3275911, %v2727_v56  ;;  %v10382_v20 = vmul.f32 0.70710677, %v10379_v35  ;;  %v2909_v54 = vsub.f32 0.0, %v2727_v56 }
 0x95f   :  { %v2629_v8 = vpop.f32.mrb[90].mxu0  ;;  %v2935_v55 = vmul.f32 1.442695, %v2921_v28 }
 0x960   :  { %v2753_v23 = vadd.f32 1.0, %v2740_v62  ;;  %v10385_v3 = vadd.f32 %v10355_v43, %v2629_v8  ;;  %v7265_v39 = vpop.f32.mrb[91].mxu0  ;;  %v2728_v19 = vand.u32 2147483647, %v10382_v20  ;;  %v2922_v53 = vmul.f32 %v2909_v54, %v2727_v56 }
 0x961   :  { %vm2702_vm14 = vcmp.ge.f32.partialorder %v10382_v20, 0.0 }
 0x962   :  { %8482 = vrcp.f32 %v2753_v23  ;;  %v2741_v57 = vmul.f32 0.3275911, %v2728_v19  ;;  %v10389_v7 = vmul.f32 0.70710677, %v10385_v3  ;;  %v2910_v33 = vsub.f32 0.0, %v2728_v19 }
 0x963   :  { %v8479_v10 = vpop.eup %8478  ;;  %v2937_v15 = vmul.f32 1.442695, %v2922_v53 }
 0x964   :  { %v2790_v41 = vmul.f32 1.0614054, %v8479_v10  ;;  %v2754_v58 = vadd.f32 1.0, %v2741_v57  ;;  %v2729_v6 = vand.u32 2147483647, %v10389_v7  ;;  %v2923_v4 = vmul.f32 %v2910_v33, %v2728_v19 }
 0x965   :  { %vm2703_vm15 = vcmp.ge.f32.partialorder %v10389_v7, 0.0 }
 0x966   :  { %v2803_v32 = vadd.f32 -1.4531521, %v2790_v41  ;;  %8484 = vrcp.f32 %v2754_v58  ;;  %v2742_v17 = vmul.f32 0.3275911, %v2729_v6  ;;  %v2911_v39 = vsub.f32 0.0, %v2729_v6 }
 0x967   :  { %8486 = vpow2.f32 %v2933_v36  ;;  %v2939_v36 = vmul.f32 1.442695, %v2923_v4 }
 0x968   :  { %v8481_v37 = vpop.eup %8480  ;;  %v2816_v26 = vmul.f32 %v8479_v10, %v2803_v32  ;;  %v2755_v42 = vadd.f32 1.0, %v2742_v17  ;;  %v2924_v28 = vmul.f32 %v2911_v39, %v2729_v6 }
 0x969   :  { %v2791_v40 = vmul.f32 1.0614054, %v8481_v37 }
 0x96a   :  { %v2829_v29 = vadd.f32 1.4214138, %v2816_v26  ;;  %8488 = vrcp.f32 %v2755_v42  ;;  %v2941_v6 = vmul.f32 1.442695, %v2924_v28 }
 0x96b   :  { %v2804_v18 = vadd.f32 -1.4531521, %v2791_v40  ;;  %8490 = vpow2.f32 %v2935_v55 }
 0x96c   :  { %v8483_v2 = vpop.eup %8482  ;;  %v2842_v24 = vmul.f32 %v8479_v10, %v2829_v29  ;;  %8492 = vpow2.f32 %v2937_v15 }
 0x96d   :  { %v2817_v12 = vmul.f32 %v8481_v37, %v2804_v18  ;;  %v2792_v14 = vmul.f32 1.0614054, %v8483_v2  ;;  %v12214_v18 = vmov -1.0   ;;  %8494 = vpow2.f32 %v2939_v36 }
 0x96e   :  { %v2855_v46 = vadd.f32 -0.28449672, %v2842_v24  ;;  %8496 = vpow2.f32 %v2941_v6 }
 0x96f   :  { %v2830_v25 = vadd.f32 1.4214138, %v2817_v12  ;;  %v2805_v48 = vadd.f32 -1.4531521, %v2792_v14 }
 0x970   :  { %v2868_v44 = vmul.f32 %v8479_v10, %v2855_v46  ;;  %v10392_v11 = vpop.eup %8484 }
 0x971   :  { %v2843_v62 = vmul.f32 %v8481_v37, %v2830_v25  ;;  %v2818_v8 = vmul.f32 %v8483_v2, %v2805_v48  ;;  %v2793_v5 = vmul.f32 1.0614054, %v10392_v11  ;;  %v8487_v41 = vpop.eup %8486  ;;  %v2673_v48 = vmul.f32 0.5, %v10358_v60 }
 0x972   :  { %v2881_v23 = vadd.f32 0.2548296, %v2868_v44 }
 0x973   :  { %v2856_v57 = vadd.f32 -0.28449672, %v2843_v62  ;;  %v2831_v56 = vadd.f32 1.4214138, %v2818_v8  ;;  %v2806_v58 = vadd.f32 -1.4531521, %v2793_v5 }
 0x974   :  { %v2894_v59 = vmul.f32 %v8479_v10, %v2881_v23  ;;  %v10395_v32 = vpop.eup %8488  ;;  %v2712_v10 = vsel %vm2699_vm11, 1.0, %v12214_v18  ;;  %v2713_v5 = vsel %vm2700_vm12, 1.0, %v12214_v18 }
 0x975   :  { %v2869_v17 = vmul.f32 %v8481_v37, %v2856_v57  ;;  %v2844_v26 = vmul.f32 %v8483_v2, %v2831_v56  ;;  %v2819_v54 = vmul.f32 %v10392_v11, %v2806_v58  ;;  %v2794_v42 = vmul.f32 1.0614054, %v10395_v32  ;;  %v8491_v12 = vpop.eup %8490 }
 0x976   :  { %v2959_v19 = vmul.f32 %v8487_v41, %v2894_v59  ;;  %v8493_v41 = vpop.eup %8492 }
 0x977   :  { %v2882_v40 = vadd.f32 0.2548296, %v2869_v17  ;;  %v2857_v29 = vadd.f32 -0.28449672, %v2844_v26  ;;  %v2832_v55 = vadd.f32 1.4214138, %v2819_v54 }
 0x978   :  { %v2972_v24 = vsub.f32 1.0, %v2959_v19  ;;  %v2807_v53 = vadd.f32 -1.4531521, %v2794_v42 }
 0x979   :  { %v2895_v50 = vmul.f32 %v8481_v37, %v2882_v40  ;;  %v2870_v33 = vmul.f32 %v8483_v2, %v2857_v29  ;;  %v2845_v46 = vmul.f32 %v10392_v11, %v2832_v55  ;;  %v2714_v40 = vsel %vm2701_vm13, 1.0, %v12214_v18 }
 0x97a   :  { %v2985_v14 = vmul.f32 %v2972_v24, %v2712_v10  ;;  %v2820_v25 = vmul.f32 %v10395_v32, %v2807_v53  ;;  %v8495_v10 = vpop.eup %8494 }
 0x97b   :  { %v2634_v44 = vpop.f32.mrb[92].mxu0  ;;  %v2960_v15 = vmul.f32 %v8491_v12, %v2895_v50  ;;  %v2883_v4 = vadd.f32 0.2548296, %v2870_v33  ;;  %v2858_v39 = vadd.f32 -0.28449672, %v2845_v46  ;;  %v2675_v33 = vmul.f32 0.5, %v10372_v30 }
 0x97c   :  { %v2998_v62 = vadd.f32 1.0, %v2985_v14  ;;  %v10406_v8 = vadd.f32 %v10355_v43, %v2634_v44  ;;  %v7268_v23 = vpop.f32.mrb[93].mxu0  ;;  %v2833_v37 = vadd.f32 1.4214138, %v2820_v25  ;;  %v2676_v30 = vmul.f32 0.5, %v10379_v35 }
 0x97d   :  { %v2973_v57 = vsub.f32 1.0, %v2960_v15  ;;  %v2896_v56 = vmul.f32 %v8483_v2, %v2883_v4  ;;  %v2871_v58 = vmul.f32 %v10392_v11, %v2858_v39  ;;  %v2674_v2 = vmul.f32 0.5, %v10365_v31 }
 0x97e   :  { %v3011_v59 = vmul.f32 %v2998_v62, %v2673_v48  ;;  %v10412_v60 = vmul.f32 0.70710677, %v10406_v8  ;;  %v2846_v26 = vmul.f32 %v10395_v32, %v2833_v37  ;;  %v8497_v48 = vpop.eup %8496  ;;  %v2716_v62 = vsel %vm2703_vm15, 1.0, %v12214_v18 }
 0x97f   :  { %v2986_v36 = vmul.f32 %v2973_v57, %v2713_v5  ;;  %v2961_v17 = vmul.f32 %v8493_v41, %v2896_v56  ;;  %v2884_v52 = vadd.f32 0.2548296, %v2871_v58 }
 0x980   :  { %v2730_v19 = vand.u32 2147483647, %v10412_v60  ;;  %7323 = vmatmul.mubr.f32.vlgmr.msra.gmra.mrb[82].mxu1 %v3011_v59  ;;  %v2859_v42 = vadd.f32 -0.28449672, %v2846_v26  ;;  %vm2704_vm0 = vcmp.ge.f32.partialorder %v10412_v60, 0.0 }
 0x981   :  { %7325 = vmatprep.mubr.msk.f32.mxu1 %vm8775_vm1, %v12223_v38  ;;  %v2999_v28 = vadd.f32 1.0, %v2986_v36  ;;  %v2974_v54 = vsub.f32 1.0, %v2961_v17  ;;  %v2897_v9 = vmul.f32 %v10392_v11, %v2884_v52  ;;  %v2715_v11 = vsel %vm2702_vm14, 1.0, %v12214_v18 }
 0x982   :  { %v2743_v29 = vmul.f32 0.3275911, %v2730_v19  ;;  %v2872_v53 = vmul.f32 %v10395_v32, %v2859_v42  ;;  %v2912_v23 = vsub.f32 0.0, %v2730_v19 }
 0x983   :  { %v3012_v24 = vmul.f32 %v2999_v28, %v2674_v2  ;;  %v2987_v55 = vmul.f32 %v2974_v54, %v2714_v40  ;;  %v2962_v31 = vmul.f32 %v8495_v10, %v2897_v9 }
 0x984   :  { %v2756_v50 = vadd.f32 1.0, %v2743_v29  ;;  %v2885_v14 = vadd.f32 0.2548296, %v2872_v53  ;;  %v2925_v57 = vmul.f32 %v2912_v23, %v2730_v19 }
 0x985   :  { %7326 = vmatmul.mubr.f32.gmra.mrb[84].mxu1 %v3012_v24  ;;  %v3000_v12 = vadd.f32 1.0, %v2987_v55  ;;  %v2975_v6 = vsub.f32 1.0, %v2962_v31 }
 0x986   :  { %8498 = vrcp.f32 %v2756_v50  ;;  %7328 = vmatprep.mubr.msk.f32.mxu1 %vm8775_vm1, %v12223_v38  ;;  %v2898_v25 = vmul.f32 %v10395_v32, %v2885_v14  ;;  %v2677_v32 = vmul.f32 0.5, %v10385_v3  ;;  %v2943_v58 = vmul.f32 1.442695, %v2925_v57 }
 0x987   :  { %v3013_v46 = vmul.f32 %v3000_v12, %v2675_v33  ;;  %v2988_v44 = vmul.f32 %v2975_v6, %v2715_v11 }
 0x988   :  { %v2963_v20 = vmul.f32 %v8497_v48, %v2898_v25  ;;  %8500 = vpow2.f32 %v2943_v58 }
 0x989   :  { %7329 = vmatmul.mubr.f32.gmra.mrb[86].mxu1 %v3013_v46  ;;  %v3001_v15 = vadd.f32 1.0, %v2988_v44 }
 0x98a   :  { %7331 = vmatprep.mubr.msk.f32.mxu1 %vm8775_vm1, %v12223_v38  ;;  %v2976_v4 = vsub.f32 1.0, %v2963_v20 }
 0x98b   :  { %v3014_v39 = vmul.f32 %v3001_v15, %v2676_v30 }
 0x98c   :  { %v2989_v37 = vmul.f32 %v2976_v4, %v2716_v62 }
 0x98d   :  { %7332 = vmatmul.mubr.f32.gmra.mrb[88].mxu1 %v3014_v39 }
 0x98e   :  { %7334 = vmatprep.mubr.msk.f32.mxu1 %vm8775_vm1, %v12223_v38  ;;  %v3002_v7 = vadd.f32 1.0, %v2989_v37 }
 0x990   :  { %v8499_v5 = vpop.eup %8498  ;;  %v3015_v35 = vmul.f32 %v3002_v7, %v2677_v32  ;;  %v2717_v32 = vsel %vm2704_vm0, 1.0, %v12214_v18 }
 0x991   :  { %v2795_v56 = vmul.f32 1.0614054, %v8499_v5 }
 0x992   :  { %7335 = vmatmul.mubr.f32.gmra.mrb[90].mxu1 %v3015_v35  ;;  %v8501_v48 = vpop.eup %8500 }
 0x993   :  { %v2639_v41 = vpop.f32.mrb[94].mxu0  ;;  %v2808_v59 = vadd.f32 -1.4531521, %v2795_v56  ;;  %7337 = vmatprep.mubr.msk.f32.mxu1 %vm8775_vm1, %v12223_v38 }
 0x994   :  { %v10439_v36 = vadd.f32 %v10355_v43, %v2639_v41  ;;  %v7271_v17 = vpop.f32.mrb[95].mxu0 }
 0x995   :  { %v2821_v3 = vmul.f32 %v8499_v5, %v2808_v59  ;;  %v2678_v17 = vmul.f32 0.5, %v10406_v8 }
 0x996   :  { %v10444_v26 = vmul.f32 0.70710677, %v10439_v36 }
 0x997   :  { %v2644_v52 = vpop.f32.mrb[96].mxu0  ;;  %v2834_v2 = vadd.f32 1.4214138, %v2821_v3 }
 0x998   :  { %v2731_v19 = vand.u32 2147483647, %v10444_v26  ;;  %v10448_v28 = vadd.f32 %v10355_v43, %v2644_v52  ;;  %v7274_v54 = vpop.f32.mrb[97].mxu0  ;;  %vm2705_vm2 = vcmp.ge.f32.partialorder %v10444_v26, 0.0 }
 0x999   :  { %v2847_v42 = vmul.f32 %v8499_v5, %v2834_v2 }
 0x99a   :  { %v2744_v40 = vmul.f32 0.3275911, %v2731_v19  ;;  %v10451_v29 = vmul.f32 0.70710677, %v10448_v28  ;;  %v2913_v30 = vsub.f32 0.0, %v2731_v19 }
 0x99b   :  { %v2649_v9 = vpop.f32.mrb[98].mxu0  ;;  %v2860_v10 = vadd.f32 -0.28449672, %v2847_v42 }
 0x99c   :  { %v2757_v24 = vadd.f32 1.0, %v2744_v40  ;;  %v2732_v55 = vand.u32 2147483647, %v10451_v29  ;;  %v7277_v53 = vpop.f32.mrb[99].mxu0  ;;  %v10455_v50 = vadd.f32 %v10355_v43, %v2649_v9  ;;  %v2926_v35 = vmul.f32 %v2913_v30, %v2731_v19 }
 0x99d   :  { %v2873_v31 = vmul.f32 %v8499_v5, %v2860_v10  ;;  %vm2706_vm11 = vcmp.ge.f32.partialorder %v10451_v29, 0.0 }
 0x99e   :  { %8502 = vrcp.f32 %v2757_v24  ;;  %v2745_v33 = vmul.f32 0.3275911, %v2732_v55  ;;  %v10458_v12 = vmul.f32 0.70710677, %v10455_v50  ;;  %v2914_v41 = vsub.f32 0.0, %v2732_v55 }
 0x99f   :  { %v2886_v14 = vadd.f32 0.2548296, %v2873_v31  ;;  %v2945_v9 = vmul.f32 1.442695, %v2926_v35 }
 0x9a0   :  { %v2758_v6 = vadd.f32 1.0, %v2745_v33  ;;  %v2733_v11 = vand.u32 2147483647, %v10458_v12  ;;  %v2927_v31 = vmul.f32 %v2914_v41, %v2732_v55  ;;  %vm2707_vm12 = vcmp.ge.f32.partialorder %v10458_v12, 0.0 }
 0x9a1   :  { %v2654_v46 = vpop.f32.mrb[100].mxu0  ;;  %v2899_v25 = vmul.f32 %v8499_v5, %v2886_v14 }
 0x9a2   :  { %8504 = vrcp.f32 %v2758_v6  ;;  %v10462_v44 = vadd.f32 %v10355_v43, %v2654_v46  ;;  %v7280_v20 = vpop.f32.mrb[101].mxu0  ;;  %v2746_v15 = vmul.f32 0.3275911, %v2733_v11  ;;  %v2915_v14 = vsub.f32 0.0, %v2733_v11 }
 0x9a3   :  { %v2964_v4 = vmul.f32 %v8501_v48, %v2899_v25  ;;  %v2947_v30 = vmul.f32 1.442695, %v2927_v31 }
 0x9a4   :  { %v10466_v62 = vmul.f32 0.70710677, %v10462_v44  ;;  %v2759_v23 = vadd.f32 1.0, %v2746_v15 }
 0x9a5   :  { %v2659_v39 = vpop.f32.mrb[102].mxu0  ;;  %v2977_v37 = vsub.f32 1.0, %v2964_v4  ;;  %v2928_v4 = vmul.f32 %v2915_v14, %v2733_v11 }
 0x9a6   :  { %v2734_v7 = vand.u32 2147483647, %v10466_v62  ;;  %v10471_v5 = vadd.f32 %v10355_v43, %v2659_v39  ;;  %v7283_v57 = vpop.f32.mrb[103].mxu0  ;;  %8506 = vrcp.f32 %v2759_v23  ;;  %vm2708_vm13 = vcmp.ge.f32.partialorder %v10466_v62, 0.0 }
 0x9a7   :  { %v2990_v60 = vmul.f32 %v2977_v37, %v2717_v32 }
 0x9a8   :  { %v8503_v56 = vpop.eup %8502  ;;  %v2747_v59 = vmul.f32 0.3275911, %v2734_v7  ;;  %v10474_v58 = vmul.f32 0.70710677, %v10471_v5  ;;  %v2916_v37 = vsub.f32 0.0, %v2734_v7 }
 0x9a9   :  { %v2664_v3 = vpop.f32.mrb[104].mxu0  ;;  %v3003_v52 = vadd.f32 1.0, %v2990_v60  ;;  %v2796_v2 = vmul.f32 1.0614054, %v8503_v56 }
 0x9aa   :  { %v2760_v54 = vadd.f32 1.0, %v2747_v59  ;;  %v2735_v42 = vand.u32 2147483647, %v10474_v58  ;;  %v7286_v40 = vpop.f32.mrb[105].mxu0  ;;  %v10479_v19 = vadd.f32 %v10355_v43, %v2664_v3  ;;  %vm2709_vm14 = vcmp.ge.f32.partialorder %v10474_v58, 0.0 }
 0x9ab   :  { %v3016_v10 = vmul.f32 %v3003_v52, %v2678_v17  ;;  %v2809_v24 = vadd.f32 -1.4531521, %v2796_v2  ;;  %v2949_v17 = vmul.f32 1.442695, %v2928_v4  ;;  %v2929_v2 = vmul.f32 %v2916_v37, %v2734_v7 }
 0x9ac   :  { %v10481_v53 = vpop.eup %8504  ;;  %8508 = vrcp.f32 %v2760_v54  ;;  %v2748_v33 = vmul.f32 0.3275911, %v2735_v42  ;;  %v10484_v8 = vmul.f32 0.70710677, %v10479_v19  ;;  %v2917_v54 = vsub.f32 0.0, %v2735_v42 }
 0x9ad   :  { %7338 = vmatmul.mubr.f32.gmra.mrb[92].mxu1 %v3016_v10  ;;  %v2822_v6 = vmul.f32 %v8503_v56, %v2809_v24  ;;  %v2797_v46 = vmul.f32 1.0614054, %v10481_v53  ;;  %8510 = vpow2.f32 %v2945_v9  ;;  %v2718_v37 = vsel %vm2705_vm2, 1.0, %v12214_v18 }
 0x9ae   :  { %v2761_v25 = vadd.f32 1.0, %v2748_v33  ;;  %7340 = vmatprep.mubr.msk.f32.mxu1 %vm8775_vm1, %v12223_v38  ;;  %v2736_v48 = vand.u32 2147483647, %v10484_v8  ;;  %v2930_v7 = vmul.f32 %v2917_v54, %v2735_v42  ;;  %vm2710_vm15 = vcmp.ge.f32.partialorder %v10484_v8, 0.0 }
 0x9af   :  { %v2835_v20 = vadd.f32 1.4214138, %v2822_v6  ;;  %v2810_v55 = vadd.f32 -1.4531521, %v2797_v46 }
 0x9b0   :  { %8512 = vrcp.f32 %v2761_v25  ;;  %v10490_v15 = vpop.eup %8506  ;;  %v2749_v23 = vmul.f32 0.3275911, %v2736_v48  ;;  %v2951_v25 = vmul.f32 1.442695, %v2929_v2 }
 0x9b1   :  { %v2848_v39 = vmul.f32 %v8503_v56, %v2835_v20  ;;  %v2823_v32 = vmul.f32 %v10481_v53, %v2810_v55  ;;  %v2798_v57 = vmul.f32 1.0614054, %v10490_v15  ;;  %8514 = vpow2.f32 %v2947_v30 }
 0x9b2   :  { %v2762_v35 = vadd.f32 1.0, %v2749_v23  ;;  %v2918_v55 = vsub.f32 0.0, %v2736_v48 }
 0x9b3   :  { %v2861_v60 = vadd.f32 -0.28449672, %v2848_v39  ;;  %v2836_v41 = vadd.f32 1.4214138, %v2823_v32  ;;  %v2811_v59 = vadd.f32 -1.4531521, %v2798_v57 }
 0x9b4   :  { %8516 = vrcp.f32 %v2762_v35 }
 0x9b5   :  { %v2874_v3 = vmul.f32 %v8503_v56, %v2861_v60  ;;  %v2849_v11 = vmul.f32 %v10481_v53, %v2836_v41  ;;  %v2824_v40 = vmul.f32 %v10490_v15, %v2811_v59  ;;  %8518 = vpow2.f32 %v2949_v17 }
 0x9b6   :  { %v10494_v52 = vpop.eup %8508  ;;  %8520 = vpow2.f32 %v2951_v25  ;;  %v2953_v60 = vmul.f32 1.442695, %v2930_v7 }
 0x9b7   :  { %v2887_v9 = vadd.f32 0.2548296, %v2874_v3  ;;  %v2799_v10 = vmul.f32 1.0614054, %v10494_v52  ;;  %v2862_v24 = vadd.f32 -0.28449672, %v2849_v11  ;;  %v8511_v33 = vpop.eup %8510  ;;  %v2931_v3 = vmul.f32 %v2918_v55, %v2736_v48 }
 0x9b8   :  { %v2837_v31 = vadd.f32 1.4214138, %v2824_v40  ;;  %v2679_v40 = vmul.f32 0.5, %v10439_v36  ;;  %8522 = vpow2.f32 %v2953_v60 }
 0x9b9   :  { %v2900_v14 = vmul.f32 %v8503_v56, %v2887_v9  ;;  %v2812_v6 = vadd.f32 -1.4531521, %v2799_v10  ;;  %v2875_v20 = vmul.f32 %v10481_v53, %v2862_v24 }
 0x9ba   :  { %v10500_v46 = vpop.eup %8512  ;;  %v2850_v30 = vmul.f32 %v10490_v15, %v2837_v31 }
 0x9bb   :  { %v2965_v4 = vmul.f32 %v8511_v33, %v2900_v14  ;;  %v2825_v23 = vmul.f32 %v10494_v52, %v2812_v6  ;;  %v2800_v39 = vmul.f32 1.0614054, %v10500_v46  ;;  %v2888_v26 = vadd.f32 0.2548296, %v2875_v20  ;;  %v8515_v42 = vpop.eup %8514 }
 0x9bc   :  { %v2863_v32 = vadd.f32 -0.28449672, %v2850_v30  ;;  %v2955_v20 = vmul.f32 1.442695, %v2931_v3 }
 0x9bd   :  { %v2978_v56 = vsub.f32 1.0, %v2965_v4  ;;  %v2838_v57 = vadd.f32 1.4214138, %v2825_v23  ;;  %v2813_v35 = vadd.f32 -1.4531521, %v2800_v39  ;;  %v2901_v41 = vmul.f32 %v10481_v53, %v2888_v26 }
 0x9be   :  { %v2876_v59 = vmul.f32 %v10490_v15, %v2863_v32  ;;  %v10510_v17 = vpop.eup %8516  ;;  %v2719_v53 = vsel %vm2706_vm11, 1.0, %v12214_v18  ;;  %v2680_v26 = vmul.f32 0.5, %v10448_v28  ;;  %8524 = vpow2.f32 %v2955_v20 }
 0x9bf   :  { %v2991_v2 = vmul.f32 %v2978_v56, %v2718_v37  ;;  %v2851_v54 = vmul.f32 %v10494_v52, %v2838_v57  ;;  %v2826_v11 = vmul.f32 %v10500_v46, %v2813_v35  ;;  %v2966_v9 = vmul.f32 %v8515_v42, %v2901_v41  ;;  %v8519_v7 = vpop.eup %8518 }
 0x9c0   :  { %v2889_v10 = vadd.f32 0.2548296, %v2876_v59  ;;  %v2801_v24 = vmul.f32 1.0614054, %v10510_v17  ;;  %v2720_v57 = vsel %vm2707_vm12, 1.0, %v12214_v18  ;;  %v8521_v42 = vpop.eup %8520 }
 0x9c1   :  { %v3004_v31 = vadd.f32 1.0, %v2991_v2  ;;  %v2864_v33 = vadd.f32 -0.28449672, %v2851_v54  ;;  %v2839_v14 = vadd.f32 1.4214138, %v2826_v11  ;;  %v2979_v48 = vsub.f32 1.0, %v2966_v9 }
 0x9c2   :  { %v2902_v6 = vmul.f32 %v10490_v15, %v2889_v10  ;;  %v2814_v25 = vadd.f32 -1.4531521, %v2801_v24  ;;  %v2681_v2 = vmul.f32 0.5, %v10455_v50  ;;  %v8523_v9 = vpop.eup %8522  ;;  %v2721_v10 = vsel %vm2708_vm13, 1.0, %v12214_v18 }
 0x9c3   :  { %v3017_v30 = vmul.f32 %v3004_v31, %v2679_v40  ;;  %v2877_v36 = vmul.f32 %v10494_v52, %v2864_v33  ;;  %v2852_v55 = vmul.f32 %v10500_v46, %v2839_v14  ;;  %v2992_v4 = vmul.f32 %v2979_v48, %v2719_v53 }
 0x9c4   :  { %v2967_v29 = vmul.f32 %v8519_v7, %v2902_v6  ;;  %v2827_v23 = vmul.f32 %v10510_v17, %v2814_v25  ;;  %v2682_v33 = vmul.f32 0.5, %v10462_v44 }
 0x9c5   :  { %7341 = vmatmul.mubr.f32.gmra.mrb[94].mxu1 %v3017_v30  ;;  %v2890_v39 = vadd.f32 0.2548296, %v2877_v36  ;;  %v2865_v37 = vadd.f32 -0.28449672, %v2852_v55  ;;  %v3005_v15 = vadd.f32 1.0, %v2992_v4  ;;  %v2683_v30 = vmul.f32 0.5, %v10471_v5 }
 0x9c6   :  { %7343 = vmatprep.mubr.msk.f32.mxu1 %vm8775_vm1, %v12223_v38  ;;  %v2980_v32 = vsub.f32 1.0, %v2967_v29  ;;  %v2840_v56 = vadd.f32 1.4214138, %v2827_v23  ;;  %v2723_v55 = vsel %vm2710_vm15, 1.0, %v12214_v18 }
 0x9c7   :  { %v2903_v12 = vmul.f32 %v10494_v52, %v2890_v39  ;;  %v2878_v35 = vmul.f32 %v10500_v46, %v2865_v37  ;;  %v3018_v60 = vmul.f32 %v3005_v15, %v2680_v26 }
 0x9c8   :  { %v2993_v41 = vmul.f32 %v2980_v32, %v2720_v57  ;;  %v2853_v59 = vmul.f32 %v10510_v17, %v2840_v56  ;;  %v8525_v25 = vpop.eup %8524 }
 0x9c9   :  { %v2968_v28 = vmul.f32 %v8521_v42, %v2903_v12  ;;  %v2891_v3 = vadd.f32 0.2548296, %v2878_v35  ;;  %7344 = vmatmul.mubr.f32.gmra.mrb[96].mxu1 %v3018_v60 }
 0x9ca   :  { %v3006_v54 = vadd.f32 1.0, %v2993_v41  ;;  %v2866_v11 = vadd.f32 -0.28449672, %v2853_v59  ;;  %7346 = vmatprep.mubr.msk.f32.mxu1 %vm8775_vm1, %v12223_v38 }
 0x9cb   :  { %v2981_v52 = vsub.f32 1.0, %v2968_v28  ;;  %v2904_v40 = vmul.f32 %v10500_v46, %v2891_v3  ;;  %v2722_v46 = vsel %vm2709_vm14, 1.0, %v12214_v18  ;;  %vm6190_vm14 = vcmask 74752  }
 0x9cc   :  { %v3019_v24 = vmul.f32 %v3006_v54, %v2681_v2  ;;  %v2879_v53 = vmul.f32 %v10510_v17, %v2866_v11 }
 0x9cd   :  { %v2994_v62 = vmul.f32 %v2981_v52, %v2721_v10  ;;  %v2969_v31 = vmul.f32 %v8523_v9, %v2904_v40 }
 0x9ce   :  { %7347 = vmatmul.mubr.f32.gmra.mrb[98].mxu1 %v3019_v24  ;;  %v2892_v50 = vadd.f32 0.2548296, %v2879_v53 }
 0x9cf   :  { %7349 = vmatprep.mubr.msk.f32.mxu1 %vm8775_vm1, %v12223_v38  ;;  %v3007_v14 = vadd.f32 1.0, %v2994_v62  ;;  %v2982_v48 = vsub.f32 1.0, %v2969_v31 }
 0x9d0   :  { %v2905_v6 = vmul.f32 %v10510_v17, %v2892_v50  ;;  %v2684_v17 = vmul.f32 0.5, %v10479_v19  ;;  %v10561_v50 = vld [vmem:[%s12201_s12] ss:$0 sm:$0xff] }
 0x9d1   :  { %v3020_v7 = vmul.f32 %v3007_v14, %v2682_v33  ;;  %v2995_v20 = vmul.f32 %v2982_v48, %v2722_v46 }
 0x9d2   :  { %v2970_v58 = vmul.f32 %v8525_v25, %v2905_v6 }
 0x9d3   :  { %7350 = vmatmul.mubr.f32.gmra.mrb[100].mxu1 %v3020_v7  ;;  %v3008_v36 = vadd.f32 1.0, %v2995_v20 }
 0x9d4   :  { %7352 = vmatprep.mubr.msk.f32.mxu1 %vm8775_vm1, %v12223_v38  ;;  %v2983_v44 = vsub.f32 1.0, %v2970_v58 }
 0x9d5   :  { %v3021_v4 = vmul.f32 %v3008_v36, %v2683_v30 }
 0x9d6   :  { %v2996_v29 = vmul.f32 %v2983_v44, %v2723_v55 }
 0x9d7   :  { %7353 = vmatmul.mubr.f32.gmra.mrb[102].mxu1 %v3021_v4 }
 0x9d8   :  { %7355 = vmatprep.mubr.msk.f32.mxu1 %vm8775_vm1, %v12223_v38  ;;  %v3009_v8 = vadd.f32 1.0, %v2996_v29 }
 0x9da   :  { %v3022_v23 = vmul.f32 %v3009_v8, %v2684_v17 }
 0x9dc   :  { %7356 = vmatmul.mubr.f32.gmra.mrb[104].mxu1 %v3022_v23 }
 0x9dd   :  { %7358 = vmatprep.mubr.msk.f32.mxu1 %vm8775_vm1, %v12223_v38 }
 0x9df   :  { %v2669_v5 = vpop.f32.mrb[106].mxu0 }
 0x9e0   :  { %v2670_v39 = vadd.f32 %v10355_v43, %v2669_v5  ;;  %v7289_v37 = vpop.f32.mrb[107].mxu0 }
 0x9e2   :  { %v2698_v26 = vmul.f32 0.70710677, %v2670_v39  ;;  %v2685_v24 = vmul.f32 0.5, %v2670_v39 }
 0x9e4   :  { %v2737_v15 = vand.u32 2147483647, %v2698_v26  ;;  %vm2711_vm0 = vcmp.ge.f32.partialorder %v2698_v26, 0.0 }
 0x9e5   :  { %v2724_v9 = vsel %vm2711_vm0, 1.0, %v12214_v18 }
 0x9e6   :  { %v2750_v32 = vmul.f32 0.3275911, %v2737_v15  ;;  %v2919_v57 = vsub.f32 0.0, %v2737_v15 }
 0x9e8   :  { %v2763_v56 = vadd.f32 1.0, %v2750_v32  ;;  %v2932_v12 = vmul.f32 %v2919_v57, %v2737_v15 }
 0x9ea   :  { %8526 = vrcp.f32 %v2763_v56  ;;  %v2957_v60 = vmul.f32 1.442695, %v2932_v12 }
 0x9ec   :  { %8528 = vpow2.f32 %v2957_v60 }
 0x9f4   :  { %v8527_v19 = vpop.eup %8526 }
 0x9f5   :  { %v2802_v35 = vmul.f32 1.0614054, %v8527_v19 }
 0x9f6   :  { %v8529_v11 = vpop.eup %8528 }
 0x9f7   :  { %v2815_v42 = vadd.f32 -1.4531521, %v2802_v35 }
 0x9f9   :  { %v2828_v41 = vmul.f32 %v8527_v19, %v2815_v42 }
 0x9fb   :  { %v2841_v59 = vadd.f32 1.4214138, %v2828_v41 }
 0x9fd   :  { %v2854_v28 = vmul.f32 %v8527_v19, %v2841_v59 }
 0x9ff   :  { %v2867_v3 = vadd.f32 -0.28449672, %v2854_v28 }
 0xa01   :  { %v2880_v2 = vmul.f32 %v8527_v19, %v2867_v3 }
 0xa03   :  { %v2893_v54 = vadd.f32 0.2548296, %v2880_v2 }
 0xa05   :  { %v2906_v43 = vmul.f32 %v8527_v19, %v2893_v54 }
 0xa07   :  { %v2971_v52 = vmul.f32 %v8529_v11, %v2906_v43 }
 0xa09   :  { %v2984_v40 = vsub.f32 1.0, %v2971_v52 }
 0xa0b   :  { %v2997_v10 = vmul.f32 %v2984_v40, %v2724_v9 }
 0xa0d   :  { %v3010_v53 = vadd.f32 1.0, %v2997_v10 }
 0xa0f   :  { %v3023_v62 = vmul.f32 %v3010_v53, %v2685_v24 }
 0xa11   :  { %7359 = vmatmul.mubr.f32.gmra.mrb[106].mxu1 %v3023_v62 }
 0xa12   :  { %7422 = vmatprep.mubr.msk.f32.mxu1 %vm8775_vm1, %v12223_v38 }
 0xa53   :  { %v3106_v31 = vpop.f32.mrb[82].mxu1 }
 0xa54   :  { %v3170_v33 = vadd.f32 %v3106_v31, %v10018_v0  ;;  %v7324_v14 = vpop.f32.mrb[83].mxu1 }
 0xa56   :  { %v10565_v48 = vadd.f32 %v10561_v50, %v3170_v33 }
 0xa58   :  { %v3111_v46 = vpop.f32.mrb[84].mxu1  ;;  %v3211_v6 = vsel %vm279_vm3, %v10565_v48, 0.0 }
 0xa59   :  { %v3171_v25 = vadd.f32 %v3111_v46, %v10025_v51  ;;  %3212 = vadd.xlane.f32.xlu0 %v3211_v6  ;;  %v7327_v7 = vpop.f32.mrb[85].mxu1 }
 0xa5b   :  { %v10571_v20 = vadd.f32 %v10561_v50, %v3171_v25 }
 0xa5c   :  { %v3116_v58 = vpop.f32.mrb[86].mxu1 }
 0xa5d   :  { %v3172_v30 = vadd.f32 %v3116_v58, %v10030_v34  ;;  %v7330_v36 = vpop.f32.mrb[87].mxu1  ;;  %v3214_v0 = vsel %vm279_vm3, %v10571_v20, 0.0 }
 0xa5e   :  { %3215 = vadd.xlane.f32.xlu1 %v3214_v0 }
 0xa5f   :  { %v10577_v44 = vadd.f32 %v10561_v50, %v3172_v30 }
 0xa60   :  { %v3121_v55 = vpop.f32.mrb[88].mxu1 }
 0xa61   :  { %v3217_v51 = vsel %vm279_vm3, %v10577_v44, 0.0  ;;  %v3173_v4 = vadd.f32 %v3121_v55, %v10037_v45  ;;  %v7333_v29 = vpop.f32.mrb[89].mxu1 }
 0xa62   :  { %3218 = vadd.xlane.f32.xlu0 %v3217_v51 }
 0xa63   :  { %v10583_v17 = vadd.f32 %v10561_v50, %v3173_v4 }
 0xa65   :  { %v3126_v34 = vpop.f32.mrb[90].mxu1  ;;  %v3220_v8 = vsel %vm279_vm3, %v10583_v17, 0.0 }
 0xa66   :  { %v3174_v23 = vadd.f32 %v3126_v34, %v10044_v27  ;;  %v7336_v5 = vpop.f32.mrb[91].mxu1  ;;  %3221 = vadd.xlane.f32.xlu1 %v3220_v8 }
 0xa68   :  { %v10589_v39 = vadd.f32 %v10561_v50, %v3174_v23 }
 0xa6a   :  { %v3223_v37 = vsel %vm279_vm3, %v10589_v39, 0.0 }
 0xa6b   :  { %3224 = vadd.xlane.f32.xlu0 %v3223_v37 }
 0xa80   :  { %v3131_v45 = vpop.f32.mrb[92].mxu1 }
 0xa81   :  { %v3175_v26 = vadd.f32 %v3131_v45, %v10054_v61  ;;  %v7339_v15 = vpop.f32.mrb[93].mxu1 }
 0xa83   :  { %v10595_v32 = vadd.f32 %v10561_v50, %v3175_v26 }
 0xa85   :  { %v3226_v56 = vsel %vm279_vm3, %v10595_v32, 0.0 }
 0xa86   :  { %3227 = vadd.xlane.f32.xlu1 %v3226_v56 }
 0xa98   :  { %v3136_v27 = vpop.f32.mrb[94].mxu1 }
 0xa99   :  { %v3176_v57 = vadd.f32 %v3136_v27, %v10066_v13  ;;  %v7342_v19 = vpop.f32.mrb[95].mxu1 }
 0xa9b   :  { %v10601_v12 = vadd.f32 %v10561_v50, %v3176_v57 }
 0xa9c   :  { %v3141_v35 = vpop.f32.mrb[96].mxu1 }
 0xa9d   :  { %v3229_v42 = vsel %vm279_vm3, %v10601_v12, 0.0  ;;  %v3177_v61 = vadd.f32 %v3141_v35, %v10074_v47  ;;  %v7345_v60 = vpop.f32.mrb[97].mxu1 }
 0xa9e   :  { %3230 = vadd.xlane.f32.xlu0 %v3229_v42  ;;  %v6359_v60 = vld [vmem:[%s12194_s5 + $0x28] sm:$0xff] }
 0xa9f   :  { %v10607_v41 = vadd.f32 %v10561_v50, %v3177_v61  ;;  %v6358_v61 = vld [vmem:[%s12194_s5 + $0x20] sm:$0xff] }
 0xaa1   :  { %v3146_v59 = vpop.f32.mrb[98].mxu1  ;;  %v3232_v13 = vsel %vm279_vm3, %v10607_v41, 0.0 }
 0xaa2   :  { %v3178_v28 = vadd.f32 %v3146_v59, %v10080_v1  ;;  %v7348_v3 = vpop.f32.mrb[99].mxu1  ;;  %3233 = vadd.xlane.f32.xlu1 %v3232_v13  ;;  %v7938_v59 = vpack.c.bf16 %v6359_v60, %v6358_v61 }
 0xaa3   :  { %v6361_v3 = vld [vmem:[%s12194_s5 + $0x38] sm:$0xff] }
 0xaa4   :  { %v10613_v2 = vadd.f32 %v10561_v50, %v3178_v28  ;;  %7939 = vmatpush3.bf16.msra.mxu0 %v7938_v59  ;;  %v6360_v28 = vld [vmem:[%s12194_s5 + $0x30] sm:$0xff] }
 0xaa5   :  { %7940 = vmatprep.subr.bf16.mxu0 %v12224_v16  ;;  %v7941_v13 = vpack.c.bf16 %v6361_v3, %v6360_v28 }
 0xaa6   :  { %v3235_v54 = vsel %vm279_vm3, %v10613_v2, 0.0  ;;  %v3151_v47 = vpop.f32.mrb[100].mxu1 }
 0xaa7   :  { %3236 = vadd.xlane.f32.xlu0 %v3235_v54  ;;  %v3179_v43 = vadd.f32 %v3151_v47, %v10090_v21  ;;  %v7351_v11 = vpop.f32.mrb[101].mxu1 }
 0xaa8   :  { %7942 = vmatpush3.bf16.msra.mxu0 %v7941_v13 }
 0xaa9   :  { %v10619_v52 = vadd.f32 %v10561_v50, %v3179_v43  ;;  %7964 = vmatprep.subr.bf16.mxu0 %v12224_v16 }
 0xaaa   :  { %v3156_v1 = vpop.f32.mrb[102].mxu1 }
 0xaab   :  { %v3180_v40 = vadd.f32 %v3156_v1, %v10098_v49  ;;  %v7354_v9 = vpop.f32.mrb[103].mxu1  ;;  %v3238_v10 = vsel %vm279_vm3, %v10619_v52, 0.0 }
 0xaac   :  { %3239 = vadd.xlane.f32.xlu1 %v3238_v10 }
 0xaad   :  { %v10625_v24 = vadd.f32 %v10561_v50, %v3180_v40 }
 0xaaf   :  { %v3161_v53 = vpop.f32.mrb[104].mxu1  ;;  %v3241_v62 = vsel %vm279_vm3, %v10625_v24, 0.0 }
 0xab0   :  { %v3181_v21 = vadd.f32 %v3161_v53, %v10104_v63  ;;  %v7357_v31 = vpop.f32.mrb[105].mxu1  ;;  %3242 = vadd.xlane.f32.xlu0 %v3241_v62 }
 0xab2   :  { %v10631_v33 = vadd.f32 %v10561_v50, %v3181_v21 }
 0xab4   :  { %v3244_v49 = vsel %vm279_vm3, %v10631_v33, 0.0 }
 0xab5   :  { %3245 = vadd.xlane.f32.xlu1 %v3244_v49 }
 0xae4   :  { %v3166_v14 = vpop.f32.mrb[106].mxu1 }
 0xae5   :  { %v3182_v46 = vadd.f32 %v3166_v14, %v10115_v22  ;;  %v7360_v6 = vpop.f32.mrb[107].mxu1 }
 0xae6   :  { %v3213_v25 = vpop.xlane.xlu0 %3212 }
 0xae7   :  { %v10637_v7 = vadd.f32 %v10561_v50, %v3182_v46  ;;  %v3250_v58 = vmul.f32 0.03125, %v3213_v25 }
 0xae9   :  { %12228 = vst [vmem:[#allocation5_spill] sm:$0xff] %v10637_v7  ;;  %v10640_v63 = vsub.f32 %v10565_v48, %v3250_v58  ;;  %v3247_v30 = vsel %vm316_vm5, %v10637_v7, 0.0 }
 0xaea   :  { %3248 = vadd.xlane.f32.xlu0 %v3247_v30 }
 0xaeb   :  { %v3216_v36 = vpop.xlane.xlu1 %3215  ;;  %v3276_v0 = vmul.f32 %v10640_v63, %v10640_v63 }
 0xaec   :  { %v3251_v55 = vmul.f32 0.03125, %v3216_v36 }
 0xaed   :  { %v3289_v22 = vsel %vm279_vm3, %v3276_v0, 0.0 }
 0xaee   :  { %v10648_v51 = vsub.f32 %v10571_v20, %v3251_v55  ;;  %3290 = vadd.xlane.f32.xlu1 %v3289_v22 }
 0xaef   :  { %v3219_v50 = vpop.xlane.xlu0 %3218 }
 0xaf0   :  { %v3252_v4 = vmul.f32 0.03125, %v3219_v50  ;;  %v3277_v29 = vmul.f32 %v10648_v51, %v10648_v51 }
 0xaf2   :  { %v10653_v34 = vsub.f32 %v10577_v44, %v3252_v4  ;;  %v3292_v8 = vsel %vm279_vm3, %v3277_v29, 0.0 }
 0xaf3   :  { %3293 = vadd.xlane.f32.xlu0 %v3292_v8  ;;  %v3222_v23 = vpop.xlane.xlu1 %3221 }
 0xaf4   :  { %v3278_v5 = vmul.f32 %v10653_v34, %v10653_v34  ;;  %v3253_v37 = vmul.f32 0.03125, %v3222_v23 }
 0xaf6   :  { %v3295_v45 = vsel %vm279_vm3, %v3278_v5, 0.0  ;;  %v10660_v26 = vsub.f32 %v10583_v17, %v3253_v37 }
 0xaf7   :  { %3296 = vadd.xlane.f32.xlu1 %v3295_v45 }
 0xaf8   :  { %v3225_v15 = vpop.xlane.xlu0 %3224  ;;  %v3279_v56 = vmul.f32 %v10660_v26, %v10660_v26 }
 0xaf9   :  { %v3254_v27 = vmul.f32 0.03125, %v3225_v15 }
 0xafa   :  { %v3298_v57 = vsel %vm279_vm3, %v3279_v56, 0.0 }
 0xafb   :  { %v10666_v19 = vsub.f32 %v10589_v39, %v3254_v27  ;;  %3299 = vadd.xlane.f32.xlu0 %v3298_v57 }
 0xafd   :  { %v3280_v35 = vmul.f32 %v10666_v19, %v10666_v19 }
 0xaff   :  { %v3301_v42 = vsel %vm279_vm3, %v3280_v35, 0.0 }
 0xb00   :  { %3302 = vadd.xlane.f32.xlu1 %v3301_v42 }
 0xb13   :  { %v3228_v54 = vpop.xlane.xlu1 %3227 }
 0xb14   :  { %v3255_v47 = vmul.f32 0.03125, %v3228_v54 }
 0xb16   :  { %v10686_v43 = vsub.f32 %v10595_v32, %v3255_v47 }
 0xb18   :  { %v3281_v11 = vmul.f32 %v10686_v43, %v10686_v43 }
 0xb1a   :  { %v3304_v1 = vsel %vm279_vm3, %v3281_v11, 0.0 }
 0xb1b   :  { %3305 = vadd.xlane.f32.xlu0 %v3304_v1 }
 0xb2b   :  { %v3231_v40 = vpop.xlane.xlu0 %3230 }
 0xb2c   :  { %v3256_v9 = vmul.f32 0.03125, %v3231_v40 }
 0xb2e   :  { %v10692_v10 = vsub.f32 %v10601_v12, %v3256_v9 }
 0xb2f   :  { %v3234_v53 = vpop.xlane.xlu1 %3233 }
 0xb30   :  { %v3282_v62 = vmul.f32 %v10692_v10, %v10692_v10  ;;  %v3257_v21 = vmul.f32 0.03125, %v3234_v53 }
 0xb32   :  { %v3307_v31 = vsel %vm279_vm3, %v3282_v62, 0.0  ;;  %v10698_v49 = vsub.f32 %v10607_v41, %v3257_v21  ;;  %v10736_v21 = vld [vmem:[%s12192_s3 + $0x1] ss:$0 sm:$0xff] }
 0xb33   :  { %3308 = vadd.xlane.f32.xlu1 %v3307_v31 }
 0xb34   :  { %v3237_v14 = vpop.xlane.xlu0 %3236  ;;  %v3283_v6 = vmul.f32 %v10698_v49, %v10698_v49 }
 0xb35   :  { %v3258_v46 = vmul.f32 0.03125, %v3237_v14 }
 0xb36   :  { %v3310_v58 = vsel %vm279_vm3, %v3283_v6, 0.0  ;;  %v10742_v6 = vld [vmem:[%s12193_s4 + $0x1] ss:$0 sm:$0xff] }
 0xb37   :  { %v10703_v25 = vsub.f32 %v10613_v2, %v3258_v46  ;;  %3311 = vadd.xlane.f32.xlu0 %v3310_v58 }
 0xb39   :  { %v3240_v30 = vpop.xlane.xlu1 %3239  ;;  %v3284_v36 = vmul.f32 %v10703_v25, %v10703_v25 }
 0xb3a   :  { %v3259_v0 = vmul.f32 0.03125, %v3240_v30 }
 0xb3b   :  { %v3313_v55 = vsel %vm279_vm3, %v3284_v36, 0.0 }
 0xb3c   :  { %v10710_v22 = vsub.f32 %v10619_v52, %v3259_v0  ;;  %3314 = vadd.xlane.f32.xlu1 %v3313_v55 }
 0xb3d   :  { %v3243_v50 = vpop.xlane.xlu0 %3242 }
 0xb3e   :  { %v3260_v4 = vmul.f32 0.03125, %v3243_v50  ;;  %v3285_v29 = vmul.f32 %v10710_v22, %v10710_v22 }
 0xb40   :  { %v10715_v8 = vsub.f32 %v10625_v24, %v3260_v4  ;;  %v3316_v23 = vsel %vm279_vm3, %v3285_v29, 0.0 }
 0xb41   :  { %3317 = vadd.xlane.f32.xlu0 %v3316_v23 }
 0xb42   :  { %v3246_v5 = vpop.xlane.xlu1 %3245  ;;  %v3286_v37 = vmul.f32 %v10715_v8, %v10715_v8 }
 0xb43   :  { %v3261_v45 = vmul.f32 0.03125, %v3246_v5 }
 0xb44   :  { %v3319_v15 = vsel %vm279_vm3, %v3286_v37, 0.0 }
 0xb45   :  { %v10722_v56 = vsub.f32 %v10631_v33, %v3261_v45  ;;  %3320 = vadd.xlane.f32.xlu1 %v3319_v15 }
 0xb47   :  { %v3287_v27 = vmul.f32 %v10722_v56, %v10722_v56 }
 0xb49   :  { %v3322_v57 = vsel %vm279_vm3, %v3287_v27, 0.0 }
 0xb4a   :  { %3323 = vadd.xlane.f32.xlu0 %v3322_v57 }
 0xb77   :  { %v3249_v35 = vpop.xlane.xlu0 %3248 }
 0xb78   :  { %v3262_v42 = vmul.f32 0.03125, %v3249_v35 }
 0xb7a   :  { %v10728_v61 = vsub.f32 %v10637_v7, %v3262_v42 }
 0xb7b   :  { %v3291_v60 = vpop.xlane.xlu1 %3290 }
 0xb7c   :  { %v3328_v59 = vmul.f32 0.03125, %v3291_v60  ;;  %v3288_v28 = vmul.f32 %v10728_v61, %v10728_v61 }
 0xb7e   :  { %v3341_v3 = vadd.f32 1e-05, %v3328_v59  ;;  %v3325_v13 = vsel %vm316_vm5, %v3288_v28, 0.0 }
 0xb7f   :  { %3326 = vadd.xlane.f32.xlu1 %v3325_v13 }
 0xb80   :  { %8530 = vrsqrt.f32 %v3341_v3  ;;  %v3294_v54 = vpop.xlane.xlu0 %3293 }
 0xb81   :  { %v3329_v47 = vmul.f32 0.03125, %v3294_v54 }
 0xb83   :  { %v3342_v11 = vadd.f32 1e-05, %v3329_v47 }
 0xb84   :  { %v3297_v1 = vpop.xlane.xlu1 %3296 }
 0xb85   :  { %8532 = vrsqrt.f32 %v3342_v11  ;;  %v3330_v40 = vmul.f32 0.03125, %v3297_v1 }
 0xb87   :  { %v3343_v9 = vadd.f32 1e-05, %v3330_v40 }
 0xb88   :  { %v3300_v53 = vpop.xlane.xlu0 %3299 }
 0xb89   :  { %8534 = vrsqrt.f32 %v3343_v9  ;;  %v3331_v31 = vmul.f32 0.03125, %v3300_v53 }
 0xb8a   :  { %v8531_v62 = vpop.eup %8530 }
 0xb8b   :  { %v3367_v14 = vmul.f32 %v8531_v62, %v10640_v63  ;;  %v3344_v46 = vadd.f32 1e-05, %v3331_v31 }
 0xb8d   :  { %v3386_v58 = vmul.f32 %v10736_v21, %v3367_v14  ;;  %8536 = vrsqrt.f32 %v3344_v46  ;;  %v3303_v30 = vpop.xlane.xlu1 %3302 }
 0xb8e   :  { %v3332_v0 = vmul.f32 0.03125, %v3303_v30 }
 0xb8f   :  { %v8533_v36 = vpop.eup %8532  ;;  %v3405_v55 = vadd.f32 %v10742_v6, %v3386_v58 }
 0xb90   :  { %v3368_v50 = vmul.f32 %v8533_v36, %v10648_v51  ;;  %v3345_v4 = vadd.f32 1e-05, %v3332_v0 }
 0xb91   :  { %7370 = vmatmul.mubr.msk.f32.vlgmr.msra.gmra.mrb[108].mxu0 %vm279_vm3, %v3405_v55 }
 0xb92   :  { %7372 = vmatprep.mubr.msk.f32.mxu0 %vm8775_vm1, %v12223_v38  ;;  %v3387_v63 = vmul.f32 %v10736_v21, %v3368_v50  ;;  %8538 = vrsqrt.f32 %v3345_v4 }
 0xb93   :  { %v8535_v29 = vpop.eup %8534 }
 0xb94   :  { %v3406_v23 = vadd.f32 %v10742_v6, %v3387_v63  ;;  %v3369_v5 = vmul.f32 %v8535_v29, %v10653_v34 }
 0xb96   :  { %7373 = vmatmul.mubr.msk.f32.gmra.mrb[110].mxu0 %vm279_vm3, %v3406_v23  ;;  %v3388_v37 = vmul.f32 %v10736_v21, %v3369_v5 }
 0xb97   :  { %7375 = vmatprep.mubr.msk.f32.mxu0 %vm8775_vm1, %v12223_v38  ;;  %v8537_v51 = vpop.eup %8536 }
 0xb98   :  { %v3407_v45 = vadd.f32 %v10742_v6, %v3388_v37  ;;  %v3370_v15 = vmul.f32 %v8537_v51, %v10660_v26 }
 0xb9a   :  { %7376 = vmatmul.mubr.msk.f32.gmra.mrb[112].mxu0 %vm279_vm3, %v3407_v45  ;;  %v3389_v27 = vmul.f32 %v10736_v21, %v3370_v15 }
 0xb9b   :  { %7378 = vmatprep.mubr.msk.f32.mxu0 %vm8775_vm1, %v12223_v38 }
 0xb9c   :  { %v8539_v34 = vpop.eup %8538  ;;  %v3408_v57 = vadd.f32 %v10742_v6, %v3389_v27 }
 0xb9d   :  { %v3371_v35 = vmul.f32 %v8539_v34, %v10666_v19 }
 0xb9e   :  { %7379 = vmatmul.mubr.msk.f32.gmra.mrb[114].mxu0 %vm279_vm3, %v3408_v57 }
 0xb9f   :  { %7381 = vmatprep.mubr.msk.f32.mxu0 %vm8775_vm1, %v12223_v38  ;;  %v3390_v42 = vmul.f32 %v10736_v21, %v3371_v35 }
 0xba1   :  { %v3409_v26 = vadd.f32 %v10742_v6, %v3390_v42 }
 0xba3   :  { %7382 = vmatmul.mubr.msk.f32.gmra.mrb[116].mxu0 %vm279_vm3, %v3409_v26 }
 0xba4   :  { %7384 = vmatprep.mubr.msk.f32.mxu0 %vm8775_vm1, %v12223_v38 }
 0xba8   :  { %v3306_v60 = vpop.xlane.xlu0 %3305 }
 0xba9   :  { %v3333_v59 = vmul.f32 0.03125, %v3306_v60 }
 0xbab   :  { %v3346_v28 = vadd.f32 1e-05, %v3333_v59 }
 0xbad   :  { %8540 = vrsqrt.f32 %v3346_v28 }
 0xbb7   :  { %v8541_v3 = vpop.eup %8540 }
 0xbb8   :  { %v3372_v19 = vmul.f32 %v8541_v3, %v10686_v43 }
 0xbba   :  { %v3391_v13 = vmul.f32 %v10736_v21, %v3372_v19 }
 0xbbc   :  { %v3410_v54 = vadd.f32 %v10742_v6, %v3391_v13 }
 0xbbe   :  { %7385 = vmatmul.mubr.msk.f32.gmra.mrb[118].mxu0 %vm279_vm3, %v3410_v54 }
 0xbbf   :  { %7387 = vmatprep.mubr.msk.f32.mxu0 %vm8775_vm1, %v12223_v38 }
 0xbc0   :  { %v3309_v47 = vpop.xlane.xlu1 %3308 }
 0xbc1   :  { %v3334_v11 = vmul.f32 0.03125, %v3309_v47 }
 0xbc3   :  { %v3347_v1 = vadd.f32 1e-05, %v3334_v11 }
 0xbc4   :  { %v3312_v40 = vpop.xlane.xlu0 %3311 }
 0xbc5   :  { %8542 = vrsqrt.f32 %v3347_v1  ;;  %v3335_v9 = vmul.f32 0.03125, %v3312_v40 }
 0xbc7   :  { %v3348_v53 = vadd.f32 1e-05, %v3335_v9 }
 0xbc9   :  { %v3315_v62 = vpop.xlane.xlu1 %3314  ;;  %8544 = vrsqrt.f32 %v3348_v53 }
 0xbca   :  { %v3336_v31 = vmul.f32 0.03125, %v3315_v62  ;;  %v10824_v62 = vld [vmem:[%s12195_s6 + $0x1] ss:$0 sm:$0xff] }
 0xbcc   :  { %v3349_v43 = vadd.f32 1e-05, %v3336_v31 }
 0xbce   :  { %8546 = vrsqrt.f32 %v3349_v43  ;;  %v3318_v14 = vpop.xlane.xlu0 %3317 }
 0xbcf   :  { %v8543_v46 = vpop.eup %8542  ;;  %v3337_v58 = vmul.f32 0.03125, %v3318_v14 }
 0xbd0   :  { %v3373_v30 = vmul.f32 %v8543_v46, %v10692_v10 }
 0xbd1   :  { %v3350_v36 = vadd.f32 1e-05, %v3337_v58 }
 0xbd2   :  { %v3321_v0 = vpop.xlane.xlu1 %3320  ;;  %v3392_v55 = vmul.f32 %v10736_v21, %v3373_v30 }
 0xbd3   :  { %8548 = vrsqrt.f32 %v3350_v36  ;;  %v3338_v50 = vmul.f32 0.03125, %v3321_v0  ;;  %v8545_v4 = vpop.eup %8544 }
 0xbd4   :  { %v3411_v63 = vadd.f32 %v10742_v6, %v3392_v55  ;;  %v3374_v23 = vmul.f32 %v8545_v4, %v10698_v49 }
 0xbd5   :  { %v3351_v29 = vadd.f32 1e-05, %v3338_v50 }
 0xbd6   :  { %7388 = vmatmul.mubr.msk.f32.gmra.mrb[120].mxu0 %vm279_vm3, %v3411_v63  ;;  %v3393_v10 = vmul.f32 %v10736_v21, %v3374_v23 }
 0xbd7   :  { %8550 = vrsqrt.f32 %v3351_v29  ;;  %v3324_v5 = vpop.xlane.xlu0 %3323  ;;  %7390 = vmatprep.mubr.msk.f32.mxu0 %vm8775_vm1, %v12223_v38 }
 0xbd8   :  { %v8547_v37 = vpop.eup %8546  ;;  %v3339_v51 = vmul.f32 0.03125, %v3324_v5  ;;  %v3412_v45 = vadd.f32 %v10742_v6, %v3393_v10 }
 0xbd9   :  { %v3375_v15 = vmul.f32 %v8547_v37, %v10703_v25 }
 0xbda   :  { %v3352_v27 = vadd.f32 1e-05, %v3339_v51  ;;  %7391 = vmatmul.mubr.msk.f32.gmra.mrb[122].mxu0 %vm279_vm3, %v3412_v45 }
 0xbdb   :  { %v3394_v49 = vmul.f32 %v10736_v21, %v3375_v15  ;;  %7393 = vmatprep.mubr.msk.f32.mxu0 %vm8775_vm1, %v12223_v38 }
 0xbdc   :  { %8552 = vrsqrt.f32 %v3352_v27 }
 0xbdd   :  { %v8549_v34 = vpop.eup %8548  ;;  %v3413_v57 = vadd.f32 %v10742_v6, %v3394_v49 }
 0xbde   :  { %v3376_v35 = vmul.f32 %v8549_v34, %v10710_v22 }
 0xbdf   :  { %7394 = vmatmul.mubr.msk.f32.gmra.mrb[124].mxu0 %vm279_vm3, %v3413_v57 }
 0xbe0   :  { %7396 = vmatprep.mubr.msk.f32.mxu0 %vm8775_vm1, %v12223_v38  ;;  %v3395_v25 = vmul.f32 %v10736_v21, %v3376_v35 }
 0xbe1   :  { %v8551_v42 = vpop.eup %8550 }
 0xbe2   :  { %v3414_v26 = vadd.f32 %v10742_v6, %v3395_v25  ;;  %v3377_v60 = vmul.f32 %v8551_v42, %v10715_v8 }
 0xbe4   :  { %7397 = vmatmul.mubr.msk.f32.gmra.mrb[126].mxu0 %vm279_vm3, %v3414_v26  ;;  %v3396_v59 = vmul.f32 %v10736_v21, %v3377_v60 }
 0xbe5   :  { %7399 = vmatprep.mubr.msk.f32.mxu0 %vm8775_vm1, %v12223_v38 }
 0xbe6   :  { %v8553_v22 = vpop.eup %8552  ;;  %v3415_v28 = vadd.f32 %v10742_v6, %v3396_v59 }
 0xbe7   :  { %v3378_v3 = vmul.f32 %v8553_v22, %v10722_v56 }
 0xbe8   :  { %7400 = vmatmul.mubr.msk.f32.gmra.mrb[128].mxu0 %vm279_vm3, %v3415_v28 }
 0xbe9   :  { %7402 = vmatprep.mubr.msk.f32.mxu0 %vm8775_vm1, %v12223_v38  ;;  %v3397_v19 = vmul.f32 %v10736_v21, %v3378_v3 }
 0xbeb   :  { %v3416_v8 = vadd.f32 %v10742_v6, %v3397_v19 }
 0xbed   :  { %7403 = vmatmul.mubr.msk.f32.gmra.mrb[130].mxu0 %vm279_vm3, %v3416_v8 }
 0xbee   :  { %7405 = vmatprep.mubr.msk.f32.mxu0 %vm8775_vm1, %v12223_v38 }
 0xc0c   :  { %v3327_v13 = vpop.xlane.xlu1 %3326 }
 0xc0d   :  { %v3340_v54 = vmul.f32 0.03125, %v3327_v13 }
 0xc0f   :  { %v3353_v47 = vadd.f32 1e-05, %v3340_v54 }
 0xc11   :  { %8554 = vrsqrt.f32 %v3353_v47 }
 0xc1b   :  { %v8555_v11 = vpop.eup %8554 }
 0xc1c   :  { %v3379_v56 = vmul.f32 %v8555_v11, %v10728_v61 }
 0xc1e   :  { %v3398_v1 = vmul.f32 %v10736_v21, %v3379_v56 }
 0xc20   :  { %v3417_v40 = vadd.f32 %v10742_v6, %v3398_v1 }
 0xc22   :  { %7406 = vmatmul.mubr.msk.f32.gmra.mrb[132].mxu0 %vm279_vm3, %v3417_v40 }
 0xc23   :  { %7492 = vmatprep.mubr.msk.f32.mxu0 %vm8775_vm1, %v12223_v38 }
 0xc64   :  { %v3536_v9 = vpop.f32.mrb[108].mxu0 }
 0xc65   :  { %v7371_v53 = vpop.f32.mrb[109].mxu0  ;;  %v10827_v43 = vadd.f32 %v10824_v62, %v3536_v9 }
 0xc69   :  { %v3541_v31 = vpop.f32.mrb[110].mxu0 }
 0xc6a   :  { %v10830_v61 = vadd.f32 %v10824_v62, %v3541_v31  ;;  %v7374_v21 = vpop.f32.mrb[111].mxu0 }
 0xc6c   :  { %v10834_v6 = vpack.i.bf16 %v10830_v61, %v10827_v43 }
 0xc6d   :  { %v3546_v14 = vpop.f32.mrb[112].mxu0 }
 0xc6e   :  { %8195 = vrot.lane.b32.xlu0 %v10834_v6, %s8777_s22  ;;  %v7377_v46 = vpop.f32.mrb[113].mxu0  ;;  %v10839_v30 = vadd.f32 %v10824_v62, %v3546_v14 }
 0xc71   :  { %v3551_v58 = vpop.f32.mrb[114].mxu0 }
 0xc72   :  { %v10842_v36 = vadd.f32 %v10824_v62, %v3551_v58  ;;  %v7380_v0 = vpop.f32.mrb[115].mxu0 }
 0xc74   :  { %v10846_v55 = vpack.i.bf16 %v10842_v36, %v10839_v30 }
 0xc76   :  { %v3556_v50 = vpop.f32.mrb[116].mxu0  ;;  %8200 = vrot.lane.b32.xlu1 %v10846_v55, %s8777_s22 }
 0xc77   :  { %v7383_v4 = vpop.f32.mrb[117].mxu0  ;;  %v10851_v29 = vadd.f32 %v10824_v62, %v3556_v50 }
 0xc91   :  { %v3561_v63 = vpop.f32.mrb[118].mxu0 }
 0xc92   :  { %v10854_v23 = vadd.f32 %v10824_v62, %v3561_v63  ;;  %v7386_v5 = vpop.f32.mrb[119].mxu0 }
 0xc94   :  { %v10858_v10 = vpack.i.bf16 %v10854_v23, %v10851_v29 }
 0xc96   :  { %8205 = vrot.lane.b32.xlu1 %v10858_v10, %s8777_s22 }
 0xc9a   :  { %8210 = vrot.lane.b32.xlu1 %v10834_v6, %s8778_s23 }
 0xc9e   :  { %8220 = vrot.lane.b32.xlu1 %v10858_v10, %s8778_s23 }
 0xca9   :  { %v3566_v37 = vpop.f32.mrb[120].mxu0 }
 0xcaa   :  { %v10867_v51 = vadd.f32 %v10824_v62, %v3566_v37  ;;  %v7389_v45 = vpop.f32.mrb[121].mxu0 }
 0xcac   :  { %3619 = vrot.lane.b32.xlu0 %v10867_v51, %s8777_s22  ;;  %v4386_v42 = vrot.slane %v10867_v51, 2 }
 0xcad   :  { %v3571_v15 = vpop.f32.mrb[122].mxu0 }
 0xcae   :  { %v3572_v27 = vadd.f32 %v10824_v62, %v3571_v15  ;;  %v7392_v49 = vpop.f32.mrb[123].mxu0 }
 0xcb0   :  { %8215 = vrot.lane.b32.xlu0 %v10846_v55, %s8778_s23  ;;  %v4387_v57 = vrot.slane %v3572_v27, 2 }
 0xcb2   :  { %v3576_v34 = vpop.f32.mrb[124].mxu0  ;;  %v10879_v60 = vsel %vm1458_vm6, %v4386_v42, %v4387_v57 }
 0xcb3   :  { %v3577_v35 = vadd.f32 %v10824_v62, %v3576_v34  ;;  %v7395_v25 = vpop.f32.mrb[125].mxu0 }
 0xcb4   :  { %3995 = vrot.lane.b32.xlu0 %v10867_v51, %s8778_s23 }
 0xcb5   :  { %v4389_v26 = vrot.slane %v3577_v35, 2 }
 0xcb7   :  { %v10882_v59 = vsel %vm1458_vm6, %v4387_v57, %v4389_v26  ;;  %v3581_v22 = vpop.f32.mrb[126].mxu0 }
 0xcb8   :  { %v3582_v28 = vadd.f32 %v10824_v62, %v3581_v22  ;;  %3969 = vrot.lane.b32.xlu0 %v10827_v43, %s8779_s24  ;;  %v7398_v3 = vpop.f32.mrb[127].mxu0  ;;  %v10889_v19 = vpack.i.bf16 %v10882_v59, %v10879_v60 }
 0xcba   :  { %v4391_v8 = vrot.slane %v3582_v28, 2  ;;  %8225 = vrot.lane.b32.xlu1 %v10889_v19, %s8777_s22 }
 0xcbb   :  { %v3586_v13 = vpop.f32.mrb[128].mxu0 }
 0xcbc   :  { %v10894_v54 = vsel %vm1458_vm6, %v4389_v26, %v4391_v8  ;;  %v3587_v47 = vadd.f32 %v10824_v62, %v3586_v13  ;;  %v7401_v11 = vpop.f32.mrb[129].mxu0 }
 0xcbe   :  { %v4393_v56 = vrot.slane %v3587_v47, 2  ;;  %3971 = vrot.lane.b32.xlu1 %v10830_v61, %s8779_s24 }
 0xcc0   :  { %v10900_v1 = vsel %vm1458_vm6, %v4391_v8, %v4393_v56  ;;  %v3591_v40 = vpop.f32.mrb[130].mxu0 }
 0xcc1   :  { %v3592_v9 = vadd.f32 %v10824_v62, %v3591_v40  ;;  %v7404_v53 = vpop.f32.mrb[131].mxu0  ;;  %v10905_v31 = vpack.i.bf16 %v10900_v1, %v10894_v54 }
 0xcc2   :  { %3973 = vrot.lane.b32.xlu1 %v10839_v30, %s8779_s24 }
 0xcc3   :  { %v4395_v21 = vrot.slane %v3592_v9, 2  ;;  %8230 = vrot.lane.b32.xlu0 %v10905_v31, %s8777_s22 }
 0xcc5   :  { %v10912_v14 = vsel %vm1458_vm6, %v4393_v56, %v4395_v21 }
 0xcc7   :  { %3975 = vrot.lane.b32.xlu0 %v10842_v36, %s8779_s24 }
 0xccb   :  { %3977 = vrot.lane.b32.xlu0 %v10851_v29, %s8779_s24 }
 0xccf   :  { %3981 = vrot.lane.b32.xlu0 %v10867_v51, %s8779_s24 }
 0xcd3   :  { %8240 = vrot.lane.b32.xlu0 %v10889_v19, %s8778_s23 }
 0xce0   :  { %v8196_v46 = vpop.permute.xlu0 %8195 }
 0xce1   :  { %v8198_v58 = vunpack.i.h.bf16 %v8196_v46  ;;  %v8197_v0 = vunpack.i.l.bf16 %v8196_v46 }
 0xce3   :  { %v7944_v50 = vpack.c.bf16 %v8198_v58, %v8197_v0 }
 0xce5   :  { %7946 = vmatpush3.bf16.xpose.msk.msra.mxu1 %vm9371_vm8, %v7944_v50 }
 0xce6   :  { %7947 = vmatprep.subr.bf16.mxu1 %v12224_v16 }
 0xce8   :  { %v8201_v63 = vpop.permute.xlu1 %8200 }
 0xce9   :  { %v8203_v5 = vunpack.i.h.bf16 %v8201_v63  ;;  %v8202_v37 = vunpack.i.l.bf16 %v8201_v63 }
 0xceb   :  { %v7948_v45 = vpack.c.bf16 %v8203_v5, %v8202_v37 }
 0xced   :  { %7950 = vmatpush3.bf16.xpose.msk.msra.mxu1 %vm9371_vm8, %v7948_v45 }
 0xcee   :  { %7951 = vmatprep.subr.bf16.mxu1 %v12224_v16 }
 0xcf5   :  { %v3596_v15 = vpop.f32.mrb[132].mxu0 }
 0xcf6   :  { %v3597_v27 = vadd.f32 %v10824_v62, %v3596_v15  ;;  %v7407_v49 = vpop.f32.mrb[133].mxu0 }
 0xcf8   :  { %v10929_v34 = vrot.slane %v3597_v27, 2 }
 0xcfa   :  { %v10933_v57 = vsel %vm1458_vm6, %v4395_v21, %v10929_v34 }
 0xcfb   :  { %v10937_v35 = vpack.i.bf16 %v10933_v57, %v10912_v14 }
 0xcfd   :  { %8250 = vrot.lane.b32.xlu0 %v10937_v35, %s8778_s23  ;;  %8235 = vrot.lane.b32.xlu1 %v10937_v35, %s8777_s22 }
 0xd01   :  { %4761 = vrot.lane.b32.xlu0 %v10879_v60, %s8779_s24  ;;  %3979 = vrot.lane.b32.xlu1 %v10854_v23, %s8779_s24 }
 0xd05   :  { %8255 = vrot.lane.b32.xlu0 %v10834_v6, %s8780_s25  ;;  %4411 = vrot.lane.b32.xlu1 %v10929_v34, %s8777_s22 }
 0xd08   :  { %v8206_v62 = vpop.permute.xlu1 %8205 }
 0xd09   :  { %v8208_v25 = vunpack.i.h.bf16 %v8206_v62  ;;  %v8207_v42 = vunpack.i.l.bf16 %v8206_v62  ;;  %3838 = vrot.lane.b32.xlu0 %v10867_v51, %s8780_s25  ;;  %8245 = vrot.lane.b32.xlu1 %v10905_v31, %s8778_s23 }
 0xd0b   :  { %v7952_v26 = vpack.c.bf16 %v8208_v25, %v8207_v42 }
 0xd0c   :  { %v8211_v22 = vpop.permute.xlu1 %8210 }
 0xd0d   :  { %v8213_v28 = vunpack.i.h.bf16 %v8211_v22  ;;  %v8212_v3 = vunpack.i.l.bf16 %v8211_v22  ;;  %7954 = vmatpush3.bf16.xpose.msk.msra.mxu1 %vm9371_vm8, %v7952_v26  ;;  %8275 = vrot.lane.b32.xlu0 %v10846_v55, %s8781_s2 }
 0xd0e   :  { %4787 = vrot.lane.b32.xlu1 %v10929_v34, %s8778_s23  ;;  %7420 = vmatprep.subr.mxu1 %v12223_v38 }
 0xd0f   :  { %v7965_v8 = vpack.c.bf16 %v8213_v28, %v8212_v3 }
 0xd10   :  { %v8221_v56 = vpop.permute.xlu1 %8220 }
 0xd11   :  { %7967 = vmatpush3.bf16.xpose.msk.msra.mxu0 %vm9371_vm8, %v7965_v8  ;;  %4214 = vrot.lane.b32.xlu0 %v10867_v51, %s8781_s2 }
 0xd12   :  { %8260 = vrot.lane.b32.xlu1 %v10846_v55, %s8780_s25  ;;  %7968 = vmatprep.subr.bf16.mxu0 %v12224_v16 }
 0xd16   :  { %8265 = vrot.lane.b32.xlu1 %v10858_v10, %s8780_s25 }
 0xd1a   :  { %8270 = vrot.lane.b32.xlu1 %v10834_v6, %s8781_s2 }
 0xd1e   :  { %8280 = vrot.lane.b32.xlu1 %v10858_v10, %s8781_s2  ;;  %v3620_v13 = vpop.permute.xlu0 %3619  ;;  %v8222_v10 = vunpack.i.l.bf16 %v8221_v56 }
 0xd1f   :  { %7421 = vmatpush3.xpose.msk.msra.mxu1 %vm690_vm7, %v3620_v13 }
 0xd20   :  { %7955 = vmatprep.subr.bf16.mxu1 %v12224_v16 }
 0xd22   :  { %8285 = vrot.lane.b32.xlu1 %v10889_v19, %s8780_s25  ;;  %7423 = vmatmul.mubr.msk.f32.vlgmr.msra.gmra.mrb[108].mxu1 %vm690_vm7, %v10827_v43  ;;  %v8216_v55 = vpop.permute.xlu0 %8215  ;;  %v8223_v43 = vunpack.i.h.bf16 %v8221_v56 }
 0xd23   :  { %v8218_v47 = vunpack.i.h.bf16 %v8216_v55  ;;  %v8217_v11 = vunpack.i.l.bf16 %v8216_v55  ;;  %7425 = vmatprep.mubr.msk.f32.mxu1 %vm8775_vm1, %v12223_v38 }
 0xd24   :  { %v7973_v40 = vpack.c.bf16 %v8223_v43, %v8222_v10 }
 0xd25   :  { %v7969_v6 = vpack.c.bf16 %v8218_v47, %v8217_v11 }
 0xd26   :  { %7426 = vmatmul.mubr.msk.f32.gmra.mrb[110].mxu1 %vm690_vm7, %v10830_v61  ;;  %v3996_v61 = vpop.permute.xlu0 %3995 }
 0xd27   :  { %7971 = vmatpush3.bf16.xpose.msk.msra.mxu0 %vm9371_vm8, %v7969_v6  ;;  %7428 = vmatprep.mubr.msk.f32.mxu1 %vm8775_vm1, %v12223_v38 }
 0xd28   :  { %7972 = vmatprep.subr.bf16.mxu0 %v12224_v16 }
 0xd2a   :  { %7429 = vmatmul.mubr.msk.f32.gmra.mrb[112].mxu1 %vm690_vm7, %v10839_v30  ;;  %v3970_v21 = vpop.permute.xlu0 %3969 }
 0xd2b   :  { %7431 = vmatprep.mubr.msk.f32.mxu1 %vm8775_vm1, %v12223_v38 }
 0xd2c   :  { %v8226_v9 = vpop.permute.xlu1 %8225 }
 0xd2d   :  { %v8228_v30 = vunpack.i.h.bf16 %v8226_v9  ;;  %v8227_v53 = vunpack.i.l.bf16 %v8226_v9 }
 0xd2e   :  { %7432 = vmatmul.mubr.msk.f32.gmra.mrb[114].mxu1 %vm690_vm7, %v10842_v36 }
 0xd2f   :  { %7975 = vmatpush3.bf16.xpose.msk.msra.mxu0 %vm9371_vm8, %v7973_v40  ;;  %7434 = vmatprep.mubr.msk.f32.mxu1 %vm8775_vm1, %v12223_v38  ;;  %v7986_v36 = vpack.c.bf16 %v8228_v30, %v8227_v53 }
 0xd30   :  { %7490 = vmatprep.subr.mxu0 %v12223_v38 }
 0xd32   :  { %7435 = vmatmul.mubr.msk.f32.gmra.mrb[116].mxu1 %vm690_vm7, %v10851_v29  ;;  %v3972_v29 = vpop.permute.xlu1 %3971 }
 0xd33   :  { %7437 = vmatprep.mubr.msk.f32.mxu1 %vm8775_vm1, %v12223_v38 }
 0xd35   :  { %v8231_v46 = vpop.permute.xlu0 %8230 }
 0xd36   :  { %7438 = vmatmul.mubr.msk.f32.gmra.mrb[118].mxu1 %vm690_vm7, %v10854_v23  ;;  %v8233_v23 = vunpack.i.h.bf16 %v8231_v46  ;;  %v8232_v58 = vunpack.i.l.bf16 %v8231_v46 }
 0xd37   :  { %7491 = vmatpush3.xpose.msk.msra.mxu0 %vm690_vm7, %v3996_v61  ;;  %7440 = vmatprep.mubr.msk.f32.mxu1 %vm8775_vm1, %v12223_v38 }
 0xd38   :  { %7985 = vmatprep.subr.bf16.mxu0 %v12224_v16  ;;  %v7990_v0 = vpack.c.bf16 %v8233_v23, %v8232_v58 }
 0xd39   :  { %v3976_v50 = vpop.permute.xlu0 %3975 }
 0xd3a   :  { %7441 = vmatmul.mubr.msk.f32.gmra.mrb[120].mxu1 %vm690_vm7, %v10867_v51  ;;  %7493 = vmatmul.mubr.msk.f32.vlgmr.msra.gmra.mrb[134].mxu0 %vm690_vm7, %v3970_v21  ;;  %v3974_v51 = vpop.permute.xlu1 %3973 }
 0xd3b   :  { %7988 = vmatpush3.bf16.xpose.msk.msra.mxu0 %vm9371_vm8, %v7986_v36  ;;  %7495 = vmatprep.mubr.msk.f32.mxu0 %vm8775_vm1, %v12223_v38 }
 0xd3c   :  { %7989 = vmatprep.subr.bf16.mxu0 %v12224_v16  ;;  %7457 = vmatprep.mubr.msk.f32.mxu1 %vm8775_vm1, %v12223_v38 }
 0xd3d   :  { %v3978_v63 = vpop.permute.xlu0 %3977 }
 0xd3e   :  { %7496 = vmatmul.mubr.msk.f32.gmra.mrb[136].mxu0 %vm690_vm7, %v3972_v29 }
 0xd3f   :  { %7498 = vmatprep.mubr.msk.f32.mxu0 %vm8775_vm1, %v12223_v38 }
 0xd41   :  { %v3982_v5 = vpop.permute.xlu0 %3981 }
 0xd42   :  { %7499 = vmatmul.mubr.msk.f32.gmra.mrb[138].mxu0 %vm690_vm7, %v3974_v51 }
 0xd43   :  { %7992 = vmatpush3.bf16.xpose.msk.msra.mxu0 %vm9371_vm8, %v7990_v0  ;;  %7501 = vmatprep.mubr.msk.f32.mxu0 %vm8775_vm1, %v12223_v38 }
 0xd44   :  { %7993 = vmatprep.subr.bf16.mxu0 %v12224_v16 }
 0xd45   :  { %v8241_v37 = vpop.permute.xlu0 %8240 }
 0xd46   :  { %7502 = vmatmul.mubr.msk.f32.gmra.mrb[140].mxu0 %vm690_vm7, %v3976_v50  ;;  %v8243_v13 = vunpack.i.h.bf16 %v8241_v37  ;;  %v8242_v55 = vunpack.i.l.bf16 %v8241_v37 }
 0xd47   :  { %7504 = vmatprep.mubr.msk.f32.mxu0 %vm8775_vm1, %v12223_v38 }
 0xd48   :  { %v8007_v11 = vpack.c.bf16 %v8243_v13, %v8242_v55 }
 0xd4a   :  { %7505 = vmatmul.mubr.msk.f32.gmra.mrb[142].mxu0 %vm690_vm7, %v3978_v63 }
 0xd4b   :  { %7507 = vmatprep.mubr.msk.f32.mxu0 %vm8775_vm1, %v12223_v38 }
 0xd6f   :  { %v8251_v45 = vpop.permute.xlu0 %8250  ;;  %v8236_v15 = vpop.permute.xlu1 %8235 }
 0xd70   :  { %v8238_v27 = vunpack.i.h.bf16 %v8236_v15  ;;  %v8237_v49 = vunpack.i.l.bf16 %v8236_v15  ;;  %v8253_v36 = vunpack.i.h.bf16 %v8251_v45  ;;  %v8252_v46 = vunpack.i.l.bf16 %v8251_v45 }
 0xd72   :  { %v7994_v62 = vpack.c.bf16 %v8238_v27, %v8237_v49  ;;  %v8015_v23 = vpack.c.bf16 %v8253_v36, %v8252_v46 }
 0xd73   :  { %v11036_v25 = vpop.permute.xlu0 %4761  ;;  %v3980_v42 = vpop.permute.xlu1 %3979 }
 0xd74   :  { %7508 = vmatmul.mubr.msk.f32.gmra.mrb[144].mxu0 %vm690_vm7, %v3980_v42 }
 0xd75   :  { %7996 = vmatpush3.bf16.xpose.msk.msra.mxu0 %vm9371_vm8, %v7994_v62  ;;  %7510 = vmatprep.mubr.msk.f32.mxu0 %vm8775_vm1, %v12223_v38 }
 0xd76   :  { %7560 = vmatprep.subr.mxu0 %v12223_v38 }
 0xd77   :  { %v8256_v26 = vpop.permute.xlu0 %8255  ;;  %v4412_v22 = vpop.permute.xlu1 %4411 }
 0xd78   :  { %v8258_v28 = vunpack.i.h.bf16 %v8256_v26  ;;  %v8257_v3 = vunpack.i.l.bf16 %v8256_v26  ;;  %7511 = vmatmul.mubr.msk.f32.gmra.mrb[146].mxu0 %vm690_vm7, %v3982_v5 }
 0xd79   :  { %7562 = vmatprep.mubr.msk.f32.mxu0 %vm8775_vm1, %v12223_v38 }
 0xd7a   :  { %v7956_v8 = vpack.c.bf16 %v8258_v28, %v8257_v3 }
 0xd7b   :  { %v8246_v47 = vpop.permute.xlu1 %8245  ;;  %v3839_v58 = vpop.permute.xlu0 %3838 }
 0xd7c   :  { %7957 = vmatpush3.bf16.msra.mxu1 %v7956_v8  ;;  %v8248_v56 = vunpack.i.h.bf16 %v8246_v47  ;;  %v8247_v43 = vunpack.i.l.bf16 %v8246_v47 }
 0xd7d   :  { %7561 = vmatpush3.xpose.msk.msra.mxu0 %vm690_vm7, %v4412_v22  ;;  %7958 = vmatprep.subr.bf16.mxu1 %v12224_v16 }
 0xd7e   :  { %8006 = vmatprep.subr.bf16.mxu0 %v12224_v16 }
 0xd80   :  { %v4788_v6 = vpop.permute.xlu1 %4787  ;;  %7563 = vmatmul.mubr.msk.f32.vlgmr.msra.gmra.mrb[148].mxu0 %vm690_vm7, %v10879_v60  ;;  %v8011_v60 = vpack.c.bf16 %v8248_v56, %v8247_v43 }
 0xd81   :  { %8009 = vmatpush3.bf16.xpose.msk.msra.mxu0 %vm9371_vm8, %v8007_v11  ;;  %7565 = vmatprep.mubr.msk.f32.mxu0 %vm8775_vm1, %v12223_v38 }
 0xd82   :  { %8010 = vmatprep.subr.bf16.mxu0 %v12224_v16 }
 0xd84   :  { %v8261_v10 = vpop.permute.xlu1 %8260  ;;  %7566 = vmatmul.mubr.msk.f32.gmra.mrb[150].mxu0 %vm690_vm7, %v10882_v59 }
 0xd85   :  { %v8263_v40 = vunpack.i.h.bf16 %v8261_v10  ;;  %v8262_v61 = vunpack.i.l.bf16 %v8261_v10  ;;  %7568 = vmatprep.mubr.msk.f32.mxu0 %vm8775_vm1, %v12223_v38 }
 0xd87   :  { %v7959_v9 = vpack.c.bf16 %v8263_v40, %v8262_v61 }
 0xd88   :  { %v8266_v30 = vpop.permute.xlu1 %8265  ;;  %7569 = vmatmul.mubr.msk.f32.gmra.mrb[152].mxu0 %vm690_vm7, %v10894_v54 }
 0xd89   :  { %v8268_v53 = vunpack.i.h.bf16 %v8266_v30  ;;  %v8267_v21 = vunpack.i.l.bf16 %v8266_v30  ;;  %7960 = vmatpush3.bf16.msra.mxu1 %v7959_v9  ;;  %8013 = vmatpush3.bf16.xpose.msk.msra.mxu0 %vm9371_vm8, %v8011_v60 }
 0xd8a   :  { %7571 = vmatprep.mubr.msk.f32.mxu0 %vm8775_vm1, %v12223_v38  ;;  %7961 = vmatprep.subr.bf16.mxu1 %v12224_v16 }
 0xd8b   :  { %v7962_v29 = vpack.c.bf16 %v8268_v53, %v8267_v21  ;;  %8014 = vmatprep.subr.bf16.mxu0 %v12224_v16 }
 0xd8c   :  { %7572 = vmatmul.mubr.msk.f32.gmra.mrb[154].mxu0 %vm690_vm7, %v10900_v1 }
 0xd8d   :  { %7963 = vmatpush3.bf16.msra.mxu1 %v7962_v29  ;;  %7574 = vmatprep.mubr.msk.f32.mxu0 %vm8775_vm1, %v12223_v38 }
 0xd8e   :  { %7455 = vmatprep.subr.mxu1 %v12223_v38 }
 0xd90   :  { %7575 = vmatmul.mubr.msk.f32.gmra.mrb[156].mxu0 %vm690_vm7, %v10912_v14 }
 0xd91   :  { %7456 = vmatpush3.msk.msra.mxu1 %vm79_vm4, %v3839_v58  ;;  %8017 = vmatpush3.bf16.xpose.msk.msra.mxu0 %vm9371_vm8, %v8015_v23 }
 0xd92   :  { %7577 = vmatprep.mubr.msk.f32.mxu0 %vm8775_vm1, %v12223_v38  ;;  %7630 = vmatprep.subr.mxu0 %v12223_v38 }
 0xd93   :  { %7976 = vmatprep.subr.bf16.mxu1 %v12224_v16 }
 0xd94   :  { %7578 = vmatmul.mubr.msk.f32.gmra.mrb[158].mxu0 %vm690_vm7, %v10933_v57 }
 0xd95   :  { %7580 = vmatprep.mubr.msk.f32.mxu0 %vm8775_vm1, %v12223_v38 }
 0xd98   :  { %7581 = vmatmul.mubr.msk.f32.gmra.mrb[160].mxu0 %vm690_vm7, %v10929_v34 }
 0xd99   :  { %7631 = vmatpush3.xpose.msk.msra.mxu0 %vm690_vm7, %v4788_v6  ;;  %7632 = vmatprep.mubr.msk.f32.mxu0 %vm8775_vm1, %v12223_v38 }
 0xd9a   :  { %8027 = vmatprep.subr.bf16.mxu0 %v12224_v16 }
 0xd9c   :  { %7633 = vmatmul.mubr.msk.f32.vlgmr.msra.gmra.mrb[162].mxu0 %vm690_vm7, %v11036_v25 }
 0xd9d   :  { %7635 = vmatprep.mubr.msk.f32.mxu0 %vm8775_vm1, %v12223_v38 }
 0xdf5   :  { %v11097_v4 = vpop.f32.mrb[108].mxu1 }
 0xdf6   :  { %v7424_v51 = vpop.f32.mrb[109].mxu1  ;;  %v3749_v0 = vsel %vm819_vm9, %v11097_v4, -inf }
 0xdf7   :  { %3750 = vmax.xlane.f32.xlu1 %v3749_v0 }
 0xdf9   :  { %v11101_v50 = vpop.f32.mrb[110].mxu1 }
 0xdfa   :  { %v7427_v63 = vpop.f32.mrb[111].mxu1  ;;  %v3752_v5 = vsel %vm819_vm9, %v11101_v50, -inf }
 0xdfb   :  { %3753 = vmax.xlane.f32.xlu0 %v3752_v5 }
 0xdfd   :  { %v11105_v37 = vpop.f32.mrb[112].mxu1 }
 0xdfe   :  { %v7430_v45 = vpop.f32.mrb[113].mxu1  ;;  %v3755_v56 = vsel %vm819_vm9, %v11105_v37, -inf }
 0xe01   :  { %v11107_v15 = vpop.f32.mrb[114].mxu1 }
 0xe02   :  { %v7433_v27 = vpop.f32.mrb[115].mxu1  ;;  %v3758_v61 = vsel %vm819_vm9, %v11107_v15, -inf }
 0xe05   :  { %v11109_v49 = vpop.f32.mrb[116].mxu1 }
 0xe06   :  { %v7436_v62 = vpop.f32.mrb[117].mxu1  ;;  %v3761_v53 = vsel %vm819_vm9, %v11109_v49, -inf }
 0xe09   :  { %v11111_v25 = vpop.f32.mrb[118].mxu1 }
 0xe0a   :  { %v7439_v42 = vpop.f32.mrb[119].mxu1  ;;  %v3764_v36 = vsel %vm819_vm9, %v11111_v25, -inf }
 0xe0d   :  { %v11113_v26 = vpop.f32.mrb[120].mxu1  ;;  %v11115_v22 = vpop.f32.mrb[134].mxu0 }
 0xe0e   :  { %v7442_v28 = vpop.f32.mrb[121].mxu1  ;;  %v7494_v3 = vpop.f32.mrb[135].mxu0  ;;  %v4125_v8 = vsel %vm819_vm9, %v11115_v22, -inf  ;;  %v3767_v0 = vsel %vm838_vm10, %v11113_v26, -inf }
 0xe0f   :  { %4126 = vmax.xlane.f32.xlu1 %v4125_v8 }
 0xe11   :  { %v11119_v13 = vpop.f32.mrb[136].mxu0 }
 0xe12   :  { %v7497_v55 = vpop.f32.mrb[137].mxu0  ;;  %v4128_v47 = vsel %vm819_vm9, %v11119_v13, -inf }
 0xe13   :  { %4129 = vmax.xlane.f32.xlu0 %v4128_v47 }
 0xe15   :  { %v11123_v11 = vpop.f32.mrb[138].mxu0 }
 0xe16   :  { %v7500_v6 = vpop.f32.mrb[139].mxu0  ;;  %v4131_v43 = vsel %vm819_vm9, %v11123_v11, -inf }
 0xe17   :  { %3756 = vmax.xlane.f32.xlu0 %v3755_v56  ;;  %4132 = vmax.xlane.f32.xlu1 %v4131_v43 }
 0xe19   :  { %v11129_v10 = vpop.f32.mrb[140].mxu0 }
 0xe1a   :  { %v7503_v40 = vpop.f32.mrb[141].mxu0  ;;  %v4134_v60 = vsel %vm819_vm9, %v11129_v10, -inf }
 0xe1b   :  { %3759 = vmax.xlane.f32.xlu1 %v3758_v61  ;;  %4135 = vmax.xlane.f32.xlu0 %v4134_v60 }
 0xe1d   :  { %v11135_v9 = vpop.f32.mrb[142].mxu0 }
 0xe1e   :  { %v7506_v30 = vpop.f32.mrb[143].mxu0  ;;  %v4137_v21 = vsel %vm819_vm9, %v11135_v9, -inf }
 0xe1f   :  { %3762 = vmax.xlane.f32.xlu0 %v3761_v53  ;;  %4138 = vmax.xlane.f32.xlu1 %v4137_v21 }
 0xe23   :  { %3765 = vmax.xlane.f32.xlu1 %v3764_v36 }
 0xe47   :  { %v11143_v46 = vpop.f32.mrb[144].mxu0 }
 0xe48   :  { %v7509_v29 = vpop.f32.mrb[145].mxu0  ;;  %v4140_v23 = vsel %vm819_vm9, %v11143_v46, -inf }
 0xe49   :  { %4141 = vmax.xlane.f32.xlu0 %v4140_v23  ;;  %v11181_v23 = vpop.permute.xlu1 %8270 }
 0xe4b   :  { %v11147_v58 = vpop.f32.mrb[146].mxu0 }
 0xe4c   :  { %v7512_v51 = vpop.f32.mrb[147].mxu0  ;;  %v4143_v63 = vsel %vm838_vm10, %v11147_v58, -inf }
 0xe4d   :  { %3768 = vmax.xlane.f32.xlu0 %v3767_v0  ;;  %4144 = vmax.xlane.f32.xlu1 %v4143_v63  ;;  %v11183_v51 = vpop.permute.xlu1 %8280 }
 0xe51   :  { %v11187_v0 = vpop.permute.xlu1 %8285 }
 0xe53   :  { %v11153_v5 = vpop.f32.mrb[148].mxu0 }
 0xe54   :  { %v7564_v45 = vpop.f32.mrb[149].mxu0  ;;  %v4541_v27 = vsel %vm819_vm9, %v11153_v5, -inf }
 0xe55   :  { %4542 = vmax.xlane.f32.xlu0 %v4541_v27 }
 0xe57   :  { %v11157_v62 = vpop.f32.mrb[150].mxu0 }
 0xe58   :  { %v7567_v42 = vpop.f32.mrb[151].mxu0  ;;  %v4544_v28 = vsel %vm819_vm9, %v11157_v62, -inf }
 0xe59   :  { %4545 = vmax.xlane.f32.xlu1 %v4544_v28  ;;  %v11190_v42 = vpop.permute.xlu0 %8275 }
 0xe5b   :  { %v11161_v3 = vpop.f32.mrb[152].mxu0 }
 0xe5c   :  { %v7570_v8 = vpop.f32.mrb[153].mxu0  ;;  %v4547_v55 = vsel %vm819_vm9, %v11161_v3, -inf }
 0xe5d   :  { %4548 = vmax.xlane.f32.xlu0 %v4547_v55  ;;  %v11192_v28 = vpop.permute.xlu0 %4214 }
 0xe5f   :  { %v11165_v47 = vpop.f32.mrb[154].mxu0 }
 0xe60   :  { %v7573_v6 = vpop.f32.mrb[155].mxu0  ;;  %v4550_v56 = vsel %vm819_vm9, %v11165_v47, -inf }
 0xe61   :  { %4551 = vmax.xlane.f32.xlu1 %v4550_v56 }
 0xe63   :  { %v11169_v43 = vpop.f32.mrb[156].mxu0 }
 0xe64   :  { %v7576_v40 = vpop.f32.mrb[157].mxu0  ;;  %v4553_v61 = vsel %vm819_vm9, %v11169_v43, -inf }
 0xe65   :  { %4554 = vmax.xlane.f32.xlu0 %v4553_v61 }
 0xe67   :  { %v11173_v60 = vpop.f32.mrb[158].mxu0 }
 0xe68   :  { %v7579_v30 = vpop.f32.mrb[159].mxu0  ;;  %v4556_v8 = vsel %vm819_vm9, %v11173_v60, -inf }
 0xe6b   :  { %v11175_v53 = vpop.f32.mrb[160].mxu0 }
 0xe6c   :  { %v7582_v21 = vpop.f32.mrb[161].mxu0  ;;  %v4559_v6 = vsel %vm838_vm10, %v11175_v53, -inf }
 0xe6f   :  { %v11177_v36 = vpop.f32.mrb[162].mxu0 }
 0xe70   :  { %v7634_v29 = vpop.f32.mrb[163].mxu0  ;;  %v4917_v56 = vsel %vm819_vm9, %v11177_v36, -inf }
 0xe72   :  { %8295 = vrot.lane.b32.xlu1 %v10937_v35, %s8780_s25 }
 0xe7b   :  { %8290 = vrot.lane.b32.xlu0 %v10905_v31, %s8780_s25 }
 0xe84   :  { %v3751_v63 = vpop.xlane.xlu1 %3750 }
 0xe85   :  { %v3770_v45 = vsub.f32 %v11097_v4, %v3751_v63 }
 0xe87   :  { %v3777_v27 = vmul.f32 1.442695, %v3770_v45 }
 0xe88   :  { %v3754_v55 = vpop.xlane.xlu0 %3753 }
 0xe89   :  { %8556 = vpow2.f32 %v3777_v27  ;;  %v3771_v4 = vsub.f32 %v11101_v50, %v3754_v55 }
 0xe8b   :  { %v3779_v29 = vmul.f32 1.442695, %v3771_v4 }
 0xe93   :  { %v11200_v40 = vpop.eup %8556 }
 0xe94   :  { %v3791_v21 = vsel %vm819_vm9, %v11200_v40, 0.0 }
 0xe96   :  { %4557 = vmax.xlane.f32.xlu1 %v4556_v8 }
 0xe9a   :  { %4560 = vmax.xlane.f32.xlu0 %v4559_v6  ;;  %4918 = vmax.xlane.f32.xlu1 %v4917_v56 }
 0xe9c   :  { %v4127_v61 = vpop.xlane.xlu1 %4126 }
 0xe9d   :  { %v4146_v30 = vsub.f32 %v11115_v22, %v4127_v61 }
 0xe9e   :  { %3792 = vadd.xlane.f32.xlu0 %v3791_v21 }
 0xe9f   :  { %v4153_v63 = vmul.f32 1.442695, %v4146_v30 }
 0xea0   :  { %v4130_v45 = vpop.xlane.xlu0 %4129 }
 0xea1   :  { %8558 = vpow2.f32 %v4153_v63  ;;  %v4147_v27 = vsub.f32 %v11119_v13, %v4130_v45 }
 0xea2   :  { %8560 = vpow2.f32 %v3779_v29 }
 0xea3   :  { %v4155_v8 = vmul.f32 1.442695, %v4147_v27 }
 0xea4   :  { %v3757_v18 = vpop.xlane.xlu0 %3756  ;;  %v4133_v6 = vpop.xlane.xlu1 %4132 }
 0xea5   :  { %v3772_v56 = vsub.f32 %v11105_v37, %v3757_v18  ;;  %v4148_v50 = vsub.f32 %v11123_v11, %v4133_v6  ;;  %8562 = vpow2.f32 %v4155_v8 }
 0xea7   :  { %v3781_v22 = vmul.f32 1.442695, %v3772_v56  ;;  %v4157_v55 = vmul.f32 1.442695, %v4148_v50 }
 0xea8   :  { %v3760_v61 = vpop.xlane.xlu1 %3759  ;;  %v4136_v7 = vpop.xlane.xlu0 %4135 }
 0xea9   :  { %8564 = vpow2.f32 %v3781_v22  ;;  %v3773_v4 = vsub.f32 %v11107_v15, %v3760_v61  ;;  %v4149_v30 = vsub.f32 %v11129_v10, %v4136_v7 }
 0xeaa   :  { %8566 = vpow2.f32 %v4157_v55 }
 0xeab   :  { %v11211_v21 = vpop.eup %8558  ;;  %v3783_v13 = vmul.f32 1.442695, %v3773_v4  ;;  %v4159_v29 = vmul.f32 1.442695, %v4149_v30 }
 0xeac   :  { %v3763_v63 = vpop.xlane.xlu0 %3762  ;;  %v4139_v45 = vpop.xlane.xlu1 %4138  ;;  %v4167_v18 = vsel %vm819_vm9, %v11211_v21, 0.0 }
 0xead   :  { %v11215_v37 = vpop.eup %8560  ;;  %v3774_v11 = vsub.f32 %v11109_v49, %v3763_v63  ;;  %4168 = vadd.xlane.f32.xlu1 %v4167_v18  ;;  %8568 = vpow2.f32 %v4159_v29  ;;  %v4150_v7 = vsub.f32 %v11135_v9, %v4139_v45 }
 0xeae   :  { %8570 = vpow2.f32 %v3783_v13  ;;  %v3794_v27 = vsel %vm819_vm9, %v11215_v37, 0.0 }
 0xeaf   :  { %v3785_v15 = vmul.f32 1.442695, %v3774_v11  ;;  %v11221_v8 = vpop.eup %8562  ;;  %v4161_v50 = vmul.f32 1.442695, %v4150_v7 }
 0xeb0   :  { %v3766_v10 = vpop.xlane.xlu1 %3765  ;;  %v4170_v9 = vsel %vm819_vm9, %v11221_v8, 0.0 }
 0xeb1   :  { %v3775_v6 = vsub.f32 %v11111_v25, %v3766_v10  ;;  %3795 = vadd.xlane.f32.xlu1 %v3794_v27  ;;  %8572 = vpow2.f32 %v3785_v15 }
 0xeb3   :  { %v11224_v56 = vpop.eup %8564  ;;  %v3787_v49 = vmul.f32 1.442695, %v3775_v6 }
 0xeb4   :  { %v3797_v22 = vsel %vm819_vm9, %v11224_v56, 0.0  ;;  %v11230_v55 = vpop.eup %8566 }
 0xeb5   :  { %8574 = vpow2.f32 %v3787_v49  ;;  %3798 = vadd.xlane.f32.xlu0 %v3797_v22  ;;  %4171 = vadd.xlane.f32.xlu1 %v4170_v9  ;;  %v4173_v25 = vsel %vm819_vm9, %v11230_v55, 0.0 }
 0xeb6   :  { %8576 = vpow2.f32 %v4161_v50 }
 0xeb7   :  { %v11232_v61 = vpop.eup %8568 }
 0xeb8   :  { %v11236_v4 = vpop.eup %8570  ;;  %v4176_v30 = vsel %vm819_vm9, %v11232_v61, 0.0 }
 0xeb9   :  { %4174 = vadd.xlane.f32.xlu1 %v4173_v25  ;;  %4177 = vadd.xlane.f32.xlu0 %v4176_v30  ;;  %v3800_v13 = vsel %vm819_vm9, %v11236_v4, 0.0 }
 0xebb   :  { %v11242_v29 = vpop.eup %8572 }
 0xebc   :  { %v3803_v18 = vsel %vm819_vm9, %v11242_v29, 0.0 }
 0xebd   :  { %3801 = vadd.xlane.f32.xlu1 %v3800_v13 }
 0xebf   :  { %v11244_v63 = vpop.eup %8574 }
 0xec0   :  { %v3806_v45 = vsel %vm819_vm9, %v11244_v63, 0.0  ;;  %v11250_v11 = vpop.eup %8576 }
 0xec1   :  { %3807 = vadd.xlane.f32.xlu0 %v3806_v45  ;;  %3804 = vadd.xlane.f32.xlu1 %v3803_v18  ;;  %v4179_v15 = vsel %vm819_vm9, %v11250_v11, 0.0 }
 0xec5   :  { %4180 = vadd.xlane.f32.xlu1 %v4179_v15 }
 0xed6   :  { %v4142_v7 = vpop.xlane.xlu0 %4141 }
 0xed7   :  { %v4151_v10 = vsub.f32 %v11143_v46, %v4142_v7 }
 0xed9   :  { %v4163_v27 = vmul.f32 1.442695, %v4151_v10 }
 0xeda   :  { %v3769_v6 = vpop.xlane.xlu0 %3768  ;;  %v4145_v50 = vpop.xlane.xlu1 %4144 }
 0xedb   :  { %8578 = vpow2.f32 %v4163_v27  ;;  %v3776_v49 = vsub.f32 %v11113_v26, %v3769_v6  ;;  %v4152_v22 = vsub.f32 %v11147_v58, %v4145_v50 }
 0xedd   :  { %v3789_v9 = vmul.f32 1.442695, %v3776_v49  ;;  %v4165_v25 = vmul.f32 1.442695, %v4152_v22 }
 0xedf   :  { %8580 = vpow2.f32 %v3789_v9 }
 0xee0   :  { %8582 = vpow2.f32 %v4165_v25 }
 0xee2   :  { %v4543_v30 = vpop.xlane.xlu0 %4542 }
 0xee3   :  { %v4562_v13 = vsub.f32 %v11153_v5, %v4543_v30 }
 0xee5   :  { %v11258_v45 = vpop.eup %8578  ;;  %v4569_v18 = vmul.f32 1.442695, %v4562_v13 }
 0xee6   :  { %v4182_v46 = vsel %vm819_vm9, %v11258_v45, 0.0  ;;  %v4546_v27 = vpop.xlane.xlu1 %4545 }
 0xee7   :  { %8584 = vpow2.f32 %v4569_v18  ;;  %4183 = vadd.xlane.f32.xlu0 %v4182_v46  ;;  %v4563_v6 = vsub.f32 %v11157_v62, %v4546_v27 }
 0xee9   :  { %v11262_v15 = vpop.eup %8580  ;;  %v4571_v49 = vmul.f32 1.442695, %v4563_v6 }
 0xeea   :  { %v3809_v26 = vsel %vm838_vm10, %v11262_v15, 0.0  ;;  %v11266_v58 = vpop.eup %8582  ;;  %v4549_v50 = vpop.xlane.xlu0 %4548 }
 0xeeb   :  { %3810 = vadd.xlane.f32.xlu1 %v3809_v26  ;;  %v4185_v7 = vsel %vm838_vm10, %v11266_v58, 0.0  ;;  %v4564_v22 = vsub.f32 %v11161_v3, %v4549_v50  ;;  %8586 = vpow2.f32 %v4571_v49 }
 0xeed   :  { %v4573_v25 = vmul.f32 1.442695, %v4564_v22 }
 0xeee   :  { %v4552_v9 = vpop.xlane.xlu1 %4551 }
 0xeef   :  { %4186 = vadd.xlane.f32.xlu1 %v4185_v7  ;;  %v4565_v30 = vsub.f32 %v11165_v47, %v4552_v9  ;;  %8588 = vpow2.f32 %v4573_v25 }
 0xef1   :  { %v11270_v5 = vpop.eup %8584 }
 0xef2   :  { %v4583_v10 = vsel %vm819_vm9, %v11270_v5, 0.0  ;;  %v4555_v13 = vpop.xlane.xlu0 %4554  ;;  %v11284_v18 = vpop.permute.xlu1 %8295 }
 0xef3   :  { %4584 = vadd.xlane.f32.xlu0 %v4583_v10 }
 0xef5   :  { %v11288_v7 = vpop.eup %8586 }
 0xef6   :  { %v11286_v26 = vpop.permute.xlu0 %8290  ;;  %v4586_v6 = vsel %vm819_vm9, %v11288_v7, 0.0 }
 0xef9   :  { %v11293_v50 = vpop.eup %8588 }
 0xf00   :  { %8300 = vrot.lane.b32.xlu1 %v10889_v19, %s8781_s2  ;;  %v4575_v19 = vmul.f32 1.442695, %v4565_v30 }
 0xf02   :  { %8590 = vpow2.f32 %v4575_v19 }
 0xf04   :  { %8305 = vrot.lane.b32.xlu1 %v10905_v31, %s8781_s2  ;;  %v4566_v31 = vsub.f32 %v11169_v43, %v4555_v13 }
 0xf06   :  { %v4577_v46 = vmul.f32 1.442695, %v4566_v31 }
 0xf08   :  { %8592 = vpow2.f32 %v4577_v46 }
 0xf09   :  { %4630 = vrot.lane.b32.xlu0 %v10929_v34, %s8780_s25 }
 0xf0c   :  { %v11299_v30 = vpop.eup %8590 }
 0xf0d   :  { %v4592_v13 = vsel %vm819_vm9, %v11299_v30, 0.0 }
 0xf12   :  { %v11303_v19 = vpop.eup %8592 }
 0xf13   :  { %v4595_v31 = vsel %vm819_vm9, %v11303_v19, 0.0 }
 0xf23   :  { %v4558_v62 = vpop.xlane.xlu1 %4557 }
 0xf24   :  { %v4567_v3 = vsub.f32 %v11173_v60, %v4558_v62  ;;  %v4589_v60 = vsel %vm819_vm9, %v11293_v50, 0.0  ;;  %v8273_v62 = vunpack.i.h.bf16 %v11181_v23 }
 0xf26   :  { %v4579_v10 = vmul.f32 1.442695, %v4567_v3  ;;  %v8272_v3 = vunpack.i.l.bf16 %v11181_v23 }
 0xf27   :  { %v4561_v27 = vpop.xlane.xlu0 %4560  ;;  %v4919_v47 = vpop.xlane.xlu1 %4918 }
 0xf28   :  { %8594 = vpow2.f32 %v4579_v10  ;;  %v4568_v43 = vsub.f32 %v11175_v53, %v4561_v27  ;;  %v4938_v49 = vsub.f32 %v11177_v36, %v4919_v47  ;;  %4587 = vadd.xlane.f32.xlu1 %v4586_v6 }
 0xf2a   :  { %v4581_v22 = vmul.f32 1.442695, %v4568_v43  ;;  %v4945_v9 = vmul.f32 1.442695, %v4938_v49  ;;  %v8278_v49 = vunpack.i.h.bf16 %v11190_v42 }
 0xf2b   :  { %v3793_v25 = vpop.xlane.xlu0 %3792 }
 0xf2c   :  { %8596 = vpow2.f32 %v4581_v22  ;;  %4590 = vadd.xlane.f32.xlu1 %v4589_v60  ;;  %v8277_v22 = vunpack.i.l.bf16 %v11190_v42  ;;  %v8283_v60 = vunpack.i.h.bf16 %v11183_v51 }
 0xf2d   :  { %8598 = vpow2.f32 %v4945_v9  ;;  %v7977_v9 = vpack.c.bf16 %v8273_v62, %v8272_v3 }
 0xf2e   :  { %8600 = vrcp.f32 %v3793_v25  ;;  %v7980_v23 = vpack.c.bf16 %v8278_v49, %v8277_v22  ;;  %v8288_v22 = vunpack.i.h.bf16 %v11187_v0 }
 0xf30   :  { %4593 = vadd.xlane.f32.xlu1 %v4592_v13 }
 0xf32   :  { %v11305_v53 = vpop.eup %8594 }
 0xf33   :  { %v4598_v36 = vsel %vm819_vm9, %v11305_v53, 0.0 }
 0xf34   :  { %4599 = vadd.xlane.f32.xlu0 %v4598_v36  ;;  %4596 = vadd.xlane.f32.xlu1 %v4595_v31 }
 0xf36   :  { %v11311_v46 = vpop.eup %8596 }
 0xf37   :  { %v11315_v10 = vpop.eup %8598  ;;  %v4601_v27 = vsel %vm838_vm10, %v11311_v46, 0.0 }
 0xf38   :  { %v8601_v47 = vpop.eup %8600  ;;  %v4959_v6 = vsel %vm819_vm9, %v11315_v10, 0.0  ;;  %4602 = vadd.xlane.f32.xlu1 %v4601_v27 }
 0xf39   :  { %v3819_v43 = vmul.f32 %v8601_v47, %v11200_v40  ;;  %4960 = vadd.xlane.f32.xlu0 %v4959_v6  ;;  %v8282_v40 = vunpack.i.l.bf16 %v11183_v51 }
 0xf3a   :  { %v4169_v25 = vpop.xlane.xlu1 %4168 }
 0xf3b   :  { %7458 = vmatmul.mubr.msk.f32.vlgmr.msra.gmra.mrb[122].mxu1 %vm819_vm9, %v3819_v43  ;;  %v7983_v42 = vpack.c.bf16 %v8283_v60, %v8282_v40  ;;  %v8293_v60 = vunpack.i.h.bf16 %v11286_v26  ;;  %v8292_v40 = vunpack.i.l.bf16 %v11286_v26 }
 0xf3c   :  { %7978 = vmatpush3.bf16.msra.mxu1 %v7977_v9  ;;  %7460 = vmatprep.mubr.msk.f32.mxu1 %vm8775_vm1, %v12223_v38  ;;  %v8287_v9 = vunpack.i.l.bf16 %v11187_v0 }
 0xf3d   :  { %7979 = vmatprep.subr.bf16.mxu1 %v12224_v16 }
 0xf3e   :  { %v3796_v13 = vpop.xlane.xlu1 %3795 }
 0xf3f   :  { %8602 = vrcp.f32 %v3796_v13 }
 0xf40   :  { %7981 = vmatpush3.bf16.msra.mxu1 %v7980_v23 }
 0xf41   :  { %7982 = vmatprep.subr.bf16.mxu1 %v12224_v16 }
 0xf42   :  { %v3799_v36 = vpop.xlane.xlu0 %3798  ;;  %v4172_v31 = vpop.xlane.xlu1 %4171 }
 0xf43   :  { %8604 = vrcp.f32 %v3799_v36  ;;  %v8001_v36 = vpack.c.bf16 %v8293_v60, %v8292_v40 }
 0xf44   :  { %7984 = vmatpush3.bf16.msra.mxu1 %v7983_v42  ;;  %v8297_v42 = vunpack.i.l.bf16 %v11284_v18 }
 0xf45   :  { %7525 = vmatprep.subr.mxu1 %v12223_v38 }
 0xf46   :  { %v4175_v62 = vpop.xlane.xlu1 %4174  ;;  %v4178_v47 = vpop.xlane.xlu0 %4177 }
 0xf48   :  { %7526 = vmatpush3.msk.msra.mxu1 %vm79_vm4, %v11192_v28 }
 0xf49   :  { %v8603_v3 = vpop.eup %8602  ;;  %8310 = vrot.lane.b32.xlu1 %v10937_v35, %s8781_s2  ;;  %7997 = vmatprep.subr.bf16.mxu1 %v12224_v16 }
 0xf4a   :  { %v3802_v51 = vpop.xlane.xlu1 %3801  ;;  %v3820_v27 = vmul.f32 %v8603_v3, %v11215_v37 }
 0xf4b   :  { %8606 = vrcp.f32 %v3802_v51 }
 0xf4c   :  { %7461 = vmatmul.mubr.msk.f32.gmra.mrb[124].mxu1 %vm819_vm9, %v3820_v27 }
 0xf4d   :  { %v8605_v6 = vpop.eup %8604  ;;  %4765 = vrot.lane.b32.xlu1 %v10894_v54, %s8779_s24  ;;  %7463 = vmatprep.mubr.msk.f32.mxu1 %vm8775_vm1, %v12223_v38 }
 0xf4e   :  { %v3805_v28 = vpop.xlane.xlu1 %3804  ;;  %v3821_v43 = vmul.f32 %v8605_v6, %v11224_v56  ;;  %v3808_v35 = vpop.xlane.xlu0 %3807 }
 0xf4f   :  { %4763 = vrot.lane.b32.xlu0 %v10882_v59, %s8779_s24  ;;  %8608 = vrcp.f32 %v3805_v28 }
 0xf50   :  { %7464 = vmatmul.mubr.msk.f32.gmra.mrb[126].mxu1 %vm819_vm9, %v3821_v43  ;;  %8610 = vrcp.f32 %v3808_v35 }
 0xf51   :  { %4767 = vrot.lane.b32.xlu1 %v10900_v1, %s8779_s24  ;;  %7466 = vmatprep.mubr.msk.f32.mxu1 %vm8775_vm1, %v12223_v38 }
 0xf53   :  { %4771 = vrot.lane.b32.xlu0 %v10933_v57, %s8779_s24 }
 0xf55   :  { %v8607_v54 = vpop.eup %8606  ;;  %5006 = vrot.lane.b32.xlu1 %v10929_v34, %s8781_s2 }
 0xf56   :  { %v3822_v59 = vmul.f32 %v8607_v54, %v11236_v4 }
 0xf58   :  { %7467 = vmatmul.mubr.msk.f32.gmra.mrb[128].mxu1 %vm819_vm9, %v3822_v59 }
 0xf59   :  { %4769 = vrot.lane.b32.xlu1 %v10912_v14, %s8779_s24  ;;  %7469 = vmatprep.mubr.msk.f32.mxu1 %vm8775_vm1, %v12223_v38  ;;  %v8609_v1 = vpop.eup %8608  ;;  %v4181_v14 = vpop.xlane.xlu1 %4180 }
 0xf5a   :  { %v3823_v37 = vmul.f32 %v8609_v1, %v11242_v29  ;;  %v8611_v56 = vpop.eup %8610 }
 0xf5b   :  { %v3824_v57 = vmul.f32 %v8611_v56, %v11244_v63 }
 0xf5c   :  { %7470 = vmatmul.mubr.msk.f32.gmra.mrb[130].mxu1 %vm819_vm9, %v3823_v37 }
 0xf5d   :  { %4773 = vrot.lane.b32.xlu1 %v10929_v34, %s8779_s24  ;;  %7472 = vmatprep.mubr.msk.f32.mxu1 %vm8775_vm1, %v12223_v38 }
 0xf60   :  { %7473 = vmatmul.mubr.msk.f32.gmra.mrb[132].mxu1 %vm819_vm9, %v3824_v57 }
 0xf61   :  { %7475 = vmatprep.mubr.msk.f32.mxu1 %vm8775_vm1, %v12223_v38 }
 0xf74   :  { %v4184_v0 = vpop.xlane.xlu0 %4183 }
 0xf78   :  { %v3811_v4 = vpop.xlane.xlu1 %3810 }
 0xf79   :  { %8612 = vrcp.f32 %v3811_v4 }
 0xf7a   :  { %8614 = vrcp.f32 %v4169_v25  ;;  %v7998_v25 = vpack.c.bf16 %v8288_v22, %v8287_v9 }
 0xf7b   :  { %8616 = vrcp.f32 %v4172_v31 }
 0xf7c   :  { %8618 = vrcp.f32 %v4175_v62  ;;  %v4187_v26 = vpop.xlane.xlu1 %4186 }
 0xf7d   :  { %8620 = vrcp.f32 %v4178_v47 }
 0xf7e   :  { %8622 = vrcp.f32 %v4181_v14 }
 0xf7f   :  { %8624 = vrcp.f32 %v4184_v0 }
 0xf80   :  { %v4585_v31 = vpop.xlane.xlu0 %4584  ;;  %8626 = vrcp.f32 %v4187_v26 }
 0xf81   :  { %8628 = vrcp.f32 %v4585_v31 }
 0xf83   :  { %v8613_v29 = vpop.eup %8612 }
 0xf84   :  { %v3825_v49 = vmul.f32 %v8613_v29, %v11262_v15  ;;  %v8615_v34 = vpop.eup %8614  ;;  %v4631_v27 = vpop.permute.xlu0 %4630 }
 0xf85   :  { %v4195_v63 = vmul.f32 %v8615_v34, %v11211_v21  ;;  %v8617_v23 = vpop.eup %8616  ;;  %v8298_v21 = vunpack.i.h.bf16 %v11284_v18 }
 0xf86   :  { %7476 = vmatmul.mubr.msk.f32.gmra.mrb[134].mxu1 %vm819_vm9, %v3825_v49  ;;  %v4196_v15 = vmul.f32 %v8617_v23, %v11221_v8  ;;  %v8619_v13 = vpop.eup %8618 }
 0xf87   :  { %7527 = vmatprep.mubr.msk.f32.mxu1 %vm8775_vm1, %v12223_v38  ;;  %v4197_v62 = vmul.f32 %v8619_v13, %v11230_v55  ;;  %v8621_v8 = vpop.eup %8620  ;;  %v8004_v3 = vpack.c.bf16 %v8298_v21, %v8297_v42 }
 0xf88   :  { %v4198_v18 = vmul.f32 %v8621_v8, %v11232_v61  ;;  %v8623_v51 = vpop.eup %8622  ;;  %v8301_v61 = vpop.permute.xlu1 %8300 }
 0xf89   :  { %v4199_v55 = vmul.f32 %v8623_v51, %v11250_v11  ;;  %v8625_v47 = vpop.eup %8624  ;;  %v8303_v35 = vunpack.i.h.bf16 %v8301_v61  ;;  %v8302_v54 = vunpack.i.l.bf16 %v8301_v61 }
 0xf8a   :  { %7528 = vmatmul.mubr.msk.f32.vlgmr.msra.gmra.mrb[136].mxu1 %vm819_vm9, %v4195_v63  ;;  %v4200_v6 = vmul.f32 %v8625_v47, %v11258_v45  ;;  %v8627_v28 = vpop.eup %8626 }
 0xf8b   :  { %7999 = vmatpush3.bf16.msra.mxu1 %v7998_v25  ;;  %7530 = vmatprep.mubr.msk.f32.mxu1 %vm8775_vm1, %v12223_v38  ;;  %v4201_v43 = vmul.f32 %v8627_v28, %v11266_v58  ;;  %v8629_v11 = vpop.eup %8628  ;;  %v8019_v45 = vpack.c.bf16 %v8303_v35, %v8302_v54 }
 0xf8c   :  { %8000 = vmatprep.subr.bf16.mxu1 %v12224_v16  ;;  %v8306_v59 = vpop.permute.xlu1 %8305  ;;  %v4611_v1 = vmul.f32 %v8629_v11, %v11270_v5 }
 0xf8d   :  { %v8308_v37 = vunpack.i.h.bf16 %v8306_v59  ;;  %v8307_v56 = vunpack.i.l.bf16 %v8306_v59 }
 0xf8e   :  { %7531 = vmatmul.mubr.msk.f32.gmra.mrb[138].mxu1 %vm819_vm9, %v4196_v15 }
 0xf8f   :  { %8002 = vmatpush3.bf16.msra.mxu1 %v8001_v36  ;;  %7533 = vmatprep.mubr.msk.f32.mxu1 %vm8775_vm1, %v12223_v38  ;;  %v8022_v58 = vpack.c.bf16 %v8308_v37, %v8307_v56 }
 0xf90   :  { %8003 = vmatprep.subr.bf16.mxu1 %v12224_v16 }
 0xf92   :  { %7534 = vmatmul.mubr.msk.f32.gmra.mrb[140].mxu1 %vm819_vm9, %v4197_v62 }
 0xf93   :  { %8005 = vmatpush3.bf16.msra.mxu1 %v8004_v3  ;;  %7536 = vmatprep.mubr.msk.f32.mxu1 %vm8775_vm1, %v12223_v38 }
 0xf94   :  { %7595 = vmatprep.subr.mxu1 %v12223_v38 }
 0xf96   :  { %7537 = vmatmul.mubr.msk.f32.gmra.mrb[142].mxu1 %vm819_vm9, %v4198_v18 }
 0xf97   :  { %7596 = vmatpush3.msk.msra.mxu1 %vm79_vm4, %v4631_v27  ;;  %7539 = vmatprep.mubr.msk.f32.mxu1 %vm8775_vm1, %v12223_v38 }
 0xf98   :  { %8018 = vmatprep.subr.bf16.mxu1 %v12224_v16 }
 0xf9a   :  { %7540 = vmatmul.mubr.msk.f32.gmra.mrb[144].mxu1 %vm819_vm9, %v4199_v55 }
 0xf9b   :  { %7542 = vmatprep.mubr.msk.f32.mxu1 %vm8775_vm1, %v12223_v38 }
 0xf9e   :  { %7543 = vmatmul.mubr.msk.f32.gmra.mrb[146].mxu1 %vm819_vm9, %v4200_v6 }
 0xf9f   :  { %7545 = vmatprep.mubr.msk.f32.mxu1 %vm8775_vm1, %v12223_v38 }
 0xfa2   :  { %7546 = vmatmul.mubr.msk.f32.gmra.mrb[148].mxu1 %vm819_vm9, %v4201_v43 }
 0xfa3   :  { %7597 = vmatprep.mubr.msk.f32.mxu1 %vm8775_vm1, %v12223_v38 }
 0xfa6   :  { %7598 = vmatmul.mubr.msk.f32.vlgmr.msra.gmra.mrb[150].mxu1 %vm819_vm9, %v4611_v1 }
 0xfa7   :  { %8020 = vmatpush3.bf16.msra.mxu1 %v8019_v45  ;;  %7600 = vmatprep.mubr.msk.f32.mxu1 %vm8775_vm1, %v12223_v38 }
 0xfa8   :  { %8021 = vmatprep.subr.bf16.mxu1 %v12224_v16 }
 0xfab   :  { %8023 = vmatpush3.bf16.msra.mxu1 %v8022_v58 }
 0xfac   :  { %8024 = vmatprep.subr.bf16.mxu1 %v12224_v16 }
 0xfb5   :  { %v4588_v57 = vpop.xlane.xlu1 %4587 }
 0xfb6   :  { %8630 = vrcp.f32 %v4588_v57 }
 0xfb9   :  { %v4591_v14 = vpop.xlane.xlu1 %4590 }
 0xfba   :  { %8632 = vrcp.f32 %v4591_v14 }
 0xfbd   :  { %v4594_v5 = vpop.xlane.xlu1 %4593 }
 0xfbe   :  { %8634 = vrcp.f32 %v4594_v5 }
 0xfc0   :  { %v8631_v4 = vpop.eup %8630 }
 0xfc1   :  { %v4600_v29 = vpop.xlane.xlu0 %4599  ;;  %v4597_v49 = vpop.xlane.xlu1 %4596  ;;  %v4612_v34 = vmul.f32 %v8631_v4, %v11288_v7 }
 0xfc2   :  { %8636 = vrcp.f32 %v4597_v49 }
 0xfc3   :  { %7601 = vmatmul.mubr.msk.f32.gmra.mrb[152].mxu1 %vm819_vm9, %v4612_v34  ;;  %8638 = vrcp.f32 %v4600_v29 }
 0xfc4   :  { %v8633_v22 = vpop.eup %8632  ;;  %7603 = vmatprep.mubr.msk.f32.mxu1 %vm8775_vm1, %v12223_v38 }
 0xfc5   :  { %v4603_v9 = vpop.xlane.xlu1 %4602  ;;  %v4613_v63 = vmul.f32 %v8633_v22, %v11293_v50 }
 0xfc6   :  { %v4961_v23 = vpop.xlane.xlu0 %4960  ;;  %8640 = vrcp.f32 %v4603_v9 }
 0xfc7   :  { %7604 = vmatmul.mubr.msk.f32.gmra.mrb[154].mxu1 %vm819_vm9, %v4613_v63  ;;  %8642 = vrcp.f32 %v4961_v23 }
 0xfc8   :  { %v8635_v25 = vpop.eup %8634  ;;  %7606 = vmatprep.mubr.msk.f32.mxu1 %vm8775_vm1, %v12223_v38 }
 0xfc9   :  { %v8311_v7 = vpop.permute.xlu1 %8310  ;;  %v4614_v60 = vmul.f32 %v8635_v25, %v11299_v30 }
 0xfca   :  { %v4764_v40 = vpop.permute.xlu0 %4763  ;;  %v8313_v0 = vunpack.i.h.bf16 %v8311_v7  ;;  %v8312_v15 = vunpack.i.l.bf16 %v8311_v7 }
 0xfcb   :  { %7636 = vmatmul.mubr.msk.f32.gmra.mrb[164].mxu0 %vm690_vm7, %v4764_v40  ;;  %7607 = vmatmul.mubr.msk.f32.gmra.mrb[156].mxu1 %vm819_vm9, %v4614_v60 }
 0xfcc   :  { %v8025_v13 = vpack.c.bf16 %v8313_v0, %v8312_v15  ;;  %7638 = vmatprep.mubr.msk.f32.mxu0 %vm8775_vm1, %v12223_v38  ;;  %7609 = vmatprep.mubr.msk.f32.mxu1 %vm8775_vm1, %v12223_v38  ;;  %v8637_v50 = vpop.eup %8636 }
 0xfcd   :  { %v4766_v21 = vpop.permute.xlu1 %4765  ;;  %v4615_v30 = vmul.f32 %v8637_v50, %v11303_v19  ;;  %v8639_v42 = vpop.eup %8638 }
 0xfce   :  { %8026 = vmatpush3.bf16.msra.mxu1 %v8025_v13  ;;  %v4616_v26 = vmul.f32 %v8639_v42, %v11305_v53  ;;  %v4772_v18 = vpop.permute.xlu0 %4771 }
 0xfcf   :  { %7639 = vmatmul.mubr.msk.f32.gmra.mrb[166].mxu0 %vm690_vm7, %v4766_v21  ;;  %7665 = vmatprep.subr.mxu1 %v12223_v38 }
 0xfd0   :  { %7610 = vmatmul.mubr.msk.f32.gmra.mrb[158].mxu1 %vm819_vm9, %v4615_v30  ;;  %7641 = vmatprep.mubr.msk.f32.mxu0 %vm8775_vm1, %v12223_v38  ;;  %v8641_v31 = vpop.eup %8640 }
 0xfd1   :  { %v4768_v36 = vpop.permute.xlu1 %4767  ;;  %7612 = vmatprep.mubr.msk.f32.mxu1 %vm8775_vm1, %v12223_v38  ;;  %v4617_v62 = vmul.f32 %v8641_v31, %v11311_v46  ;;  %v8643_v8 = vpop.eup %8642 }
 0xfd2   :  { %v4987_v3 = vmul.f32 %v8643_v8, %v11315_v10 }
 0xfd3   :  { %7642 = vmatmul.mubr.msk.f32.gmra.mrb[168].mxu0 %vm690_vm7, %v4768_v36 }
 0xfd4   :  { %7613 = vmatmul.mubr.msk.f32.gmra.mrb[160].mxu1 %vm819_vm9, %v4616_v26  ;;  %7644 = vmatprep.mubr.msk.f32.mxu0 %vm8775_vm1, %v12223_v38 }
 0xfd5   :  { %v5007_v19 = vpop.permute.xlu1 %5006  ;;  %7615 = vmatprep.mubr.msk.f32.mxu1 %vm8775_vm1, %v12223_v38 }
 0xfd6   :  { %7666 = vmatpush3.msk.msra.mxu1 %vm79_vm4, %v5007_v19 }
 0xfd7   :  { %8033 = vmatprep.subr.bf16.mxu1 %v12224_v16 }
 0xfd8   :  { %7616 = vmatmul.mubr.msk.f32.gmra.mrb[162].mxu1 %vm819_vm9, %v4617_v62 }
 0xfd9   :  { %v4770_v53 = vpop.permute.xlu1 %4769  ;;  %7667 = vmatprep.mubr.msk.f32.mxu1 %vm8775_vm1, %v12223_v38 }
 0xfda   :  { %7645 = vmatmul.mubr.msk.f32.gmra.mrb[170].mxu0 %vm690_vm7, %v4770_v53 }
 0xfdb   :  { %7647 = vmatprep.mubr.msk.f32.mxu0 %vm8775_vm1, %v12223_v38 }
 0xfdc   :  { %7668 = vmatmul.mubr.msk.f32.vlgmr.msra.gmra.mrb[164].mxu1 %vm819_vm9, %v4987_v3 }
 0xfdd   :  { %7670 = vmatprep.mubr.msk.f32.mxu1 %vm8775_vm1, %v12223_v38  ;;  %v4774_v46 = vpop.permute.xlu1 %4773 }
 0xfde   :  { %7648 = vmatmul.mubr.msk.f32.gmra.mrb[172].mxu0 %vm690_vm7, %v4772_v18 }
 0xfdf   :  { %7650 = vmatprep.mubr.msk.f32.mxu0 %vm8775_vm1, %v12223_v38 }
 0xfe2   :  { %7651 = vmatmul.mubr.msk.f32.gmra.mrb[174].mxu0 %vm690_vm7, %v4774_v46 }
 0xfe3   :  { %7696 = vmatprep.mubr.msk.f32.mxu0 %vm8775_vm1, %v12223_v38 }
0x100e   :  { %v11469_v10 = vpop.f32.mrb[122].mxu1 }
0x100f   :  { %v7459_v51 = vpop.f32.mrb[123].mxu1 }
0x101f   :  { %v11471_v27 = vpop.f32.mrb[124].mxu1 }
0x1020   :  { %v7462_v55 = vpop.f32.mrb[125].mxu1 }
0x1023   :  { %v11473_v47 = vpop.f32.mrb[126].mxu1 }
0x1024   :  { %v7465_v61 = vpop.f32.mrb[127].mxu1 }
0x102b   :  { %v11475_v6 = vpop.f32.mrb[128].mxu1 }
0x102c   :  { %v7468_v28 = vpop.f32.mrb[129].mxu1 }
0x102f   :  { %v11477_v43 = vpop.f32.mrb[130].mxu1 }
0x1030   :  { %v7471_v11 = vpop.f32.mrb[131].mxu1 }
0x1033   :  { %v11479_v35 = vpop.f32.mrb[132].mxu1 }
0x1034   :  { %v7474_v54 = vpop.f32.mrb[133].mxu1 }
0x1059   :  { %v11481_v59 = vpop.f32.mrb[134].mxu1 }
0x105a   :  { %v7477_v1 = vpop.f32.mrb[135].mxu1 }
0x105d   :  { %v4311_v45 = vpop.f32.mrb[136].mxu1 }
0x105e   :  { %v7529_v37 = vpop.f32.mrb[137].mxu1 }
0x1061   :  { %v4316_v56 = vpop.f32.mrb[138].mxu1 }
0x1062   :  { %v7532_v58 = vpop.f32.mrb[139].mxu1 }
0x1065   :  { %v4321_v57 = vpop.f32.mrb[140].mxu1 }
0x1066   :  { %v7535_v14 = vpop.f32.mrb[141].mxu1 }
0x1069   :  { %v4326_v5 = vpop.f32.mrb[142].mxu1 }
0x106a   :  { %v7538_v4 = vpop.f32.mrb[143].mxu1 }
0x106d   :  { %v4331_v29 = vpop.f32.mrb[144].mxu1 }
0x106e   :  { %v7541_v49 = vpop.f32.mrb[145].mxu1 }
0x1071   :  { %v4336_v34 = vpop.f32.mrb[146].mxu1 }
0x1072   :  { %v7544_v22 = vpop.f32.mrb[147].mxu1 }
0x1075   :  { %v4341_v9 = vpop.f32.mrb[148].mxu1 }
0x1076   :  { %v7547_v63 = vpop.f32.mrb[149].mxu1 }
0x1079   :  { %v11483_v23 = vpop.f32.mrb[150].mxu1 }
0x107a   :  { %v7599_v25 = vpop.f32.mrb[151].mxu1 }
0x1096   :  { %v11485_v7 = vpop.f32.mrb[152].mxu1 }
0x1097   :  { %v7602_v60 = vpop.f32.mrb[153].mxu1 }
0x109a   :  { %v11487_v40 = vpop.f32.mrb[154].mxu1 }
0x109b   :  { %v7605_v0 = vpop.f32.mrb[155].mxu1 }
0x109e   :  { %v4888_v15 = vpop.f32.mrb[164].mxu0  ;;  %v11489_v13 = vpop.f32.mrb[156].mxu1 }
0x109f   :  { %v7637_v50 = vpop.f32.mrb[165].mxu0  ;;  %v4920_v21 = vsel %vm819_vm9, %v4888_v15, -inf  ;;  %v7608_v30 = vpop.f32.mrb[157].mxu1 }
0x10a0   :  { %4921 = vmax.xlane.f32.xlu0 %v4920_v21 }
0x10a2   :  { %v4893_v42 = vpop.f32.mrb[166].mxu0 }
0x10a3   :  { %v11492_v36 = vpop.f32.mrb[158].mxu1  ;;  %v7640_v26 = vpop.f32.mrb[167].mxu0  ;;  %v4923_v31 = vsel %vm819_vm9, %v4893_v42, -inf }
0x10a4   :  { %v7611_v19 = vpop.f32.mrb[159].mxu1  ;;  %4924 = vmax.xlane.f32.xlu1 %v4923_v31 }
0x10a6   :  { %v4898_v62 = vpop.f32.mrb[168].mxu0 }
0x10a7   :  { %v11495_v8 = vpop.f32.mrb[160].mxu1  ;;  %v7643_v53 = vpop.f32.mrb[169].mxu0  ;;  %v4926_v3 = vsel %vm819_vm9, %v4898_v62, -inf }
0x10a8   :  { %v7614_v18 = vpop.f32.mrb[161].mxu1  ;;  %4927 = vmax.xlane.f32.xlu1 %v4926_v3 }
0x10ab   :  { %v11498_v46 = vpop.f32.mrb[162].mxu1 }
0x10ac   :  { %v7617_v51 = vpop.f32.mrb[163].mxu1 }
0x10ad   :  { %v4903_v55 = vpop.f32.mrb[170].mxu0 }
0x10ae   :  { %v7646_v61 = vpop.f32.mrb[171].mxu0  ;;  %v4929_v28 = vsel %vm819_vm9, %v4903_v55, -inf }
0x10af   :  { %v5103_v11 = vpop.f32.mrb[164].mxu1  ;;  %4930 = vmax.xlane.f32.xlu0 %v4929_v28 }
0x10b0   :  { %v7669_v54 = vpop.f32.mrb[165].mxu1 }
0x10b1   :  { %v11501_v1 = vpop.f32.mrb[172].mxu0 }
0x10b2   :  { %v7649_v37 = vpop.f32.mrb[173].mxu0  ;;  %v4932_v4 = vsel %vm819_vm9, %v11501_v1, -inf }
0x10b5   :  { %v11503_v58 = vpop.f32.mrb[174].mxu0 }
0x10b6   :  { %v7652_v14 = vpop.f32.mrb[175].mxu0 }
0x10b9   :  { %4354 = vrot.lane.b32.xlu1 %v4316_v56, %s8782_s26  ;;  %v4935_v56 = vsel %vm838_vm10, %v11503_v58, -inf }
0x10bd   :  { %4358 = vrot.lane.b32.xlu1 %v4326_v5, %s8782_s26 }
0x10c1   :  { %4360 = vrot.lane.b32.xlu1 %v4331_v29, %s8782_s26 }
0x10c5   :  { %5144 = vrot.lane.b32.xlu1 %v5103_v11, %s8782_s26  ;;  %4352 = vrot.lane.b32.xlu0 %v4311_v45, %s8782_s26 }
0x10c9   :  { %4356 = vrot.lane.b32.xlu0 %v4321_v57, %s8782_s26 }
0x10cd   :  { %4362 = vrot.lane.b32.xlu0 %v4336_v34, %s8782_s26 }
0x10d1   :  { %4364 = vrot.lane.b32.xlu0 %v4341_v9, %s8782_s26 }
0x10e9   :  { %4933 = vmax.xlane.f32.xlu1 %v4932_v4 }
0x10f0   :  { %4936 = vmax.xlane.f32.xlu0 %v4935_v56 }
0x112d   :  { %v4922_v49 = vpop.xlane.xlu0 %4921 }
0x112e   :  { %v4939_v25 = vsub.f32 %v4888_v15, %v4922_v49 }
0x1130   :  { %v4947_v50 = vmul.f32 1.442695, %v4939_v25 }
0x1131   :  { %v4925_v5 = vpop.xlane.xlu1 %4924 }
0x1132   :  { %v4940_v57 = vsub.f32 %v4893_v42, %v4925_v5  ;;  %8644 = vpow2.f32 %v4947_v50 }
0x1134   :  { %v4949_v26 = vmul.f32 1.442695, %v4940_v57 }
0x1135   :  { %v4928_v29 = vpop.xlane.xlu1 %4927 }
0x1136   :  { %v4941_v21 = vsub.f32 %v4898_v62, %v4928_v29  ;;  %8646 = vpow2.f32 %v4949_v26 }
0x1139   :  { %v4355_v22 = vpop.permute.xlu1 %4354 }
0x113a   :  { %v4374_v34 = vsel %vm690_vm7, %v11471_v27, %v4355_v22 }
0x113b   :  { %v11525_v19 = vadd.f32 %v4374_v34, %v10571_v20 }
0x113c   :  { %v4931_v63 = vpop.xlane.xlu0 %4930 }
0x113d   :  { %v4359_v45 = vpop.permute.xlu1 %4358  ;;  %v4942_v31 = vsub.f32 %v4903_v55, %v4931_v63 }
0x113e   :  { %v4376_v27 = vsel %vm690_vm7, %v11475_v6, %v4359_v45 }
0x113f   :  { %v4953_v3 = vmul.f32 1.442695, %v4942_v31  ;;  %v11537_v18 = vadd.f32 %v4376_v27, %v10583_v17 }
0x1140   :  { %v4353_v60 = vpop.permute.xlu0 %4352 }
0x1141   :  { %v4361_v9 = vpop.permute.xlu1 %4360  ;;  %v4373_v0 = vsel %vm690_vm7, %v11469_v10, %v4353_v60 }
0x1142   :  { %v11522_v30 = vadd.f32 %v4373_v0, %v10565_v48  ;;  %v4377_v10 = vsel %vm690_vm7, %v11477_v43, %v4361_v9  ;;  %v4951_v48 = vmul.f32 1.442695, %v4941_v21 }
0x1143   :  { %v11540_v51 = vadd.f32 %v4377_v10, %v10589_v39 }
0x1144   :  { %v4357_v15 = vpop.permute.xlu0 %4356  ;;  %v5213_v42 = vsel %vm279_vm3, %v11522_v30, 0.0  ;;  %8648 = vpow2.f32 %v4951_v48 }
0x1145   :  { %v4375_v62 = vsel %vm690_vm7, %v11473_v47, %v4357_v15  ;;  %5214 = vadd.xlane.f32.xlu0 %v5213_v42  ;;  %v5145_v53 = vpop.permute.xlu1 %5144  ;;  %v5216_v47 = vsel %vm279_vm3, %v11525_v19, 0.0  ;;  %8650 = vpow2.f32 %v4953_v3  ;;  %v5225_v28 = vsel %vm279_vm3, %v11540_v51, 0.0 }
0x1146   :  { %v5202_v20 = vadd.f32 %v4375_v62, %v10577_v44  ;;  %v11547_v55 = vsel %vm690_vm7, %v11483_v23, %v5145_v53  ;;  %v5222_v23 = vsel %vm279_vm3, %v11537_v18, 0.0 }
0x1147   :  { %v5179_v17 = vrot.slane %v11547_v55, 6 }
0x1148   :  { %v4363_v6 = vpop.permute.xlu0 %4362  ;;  %v5219_v43 = vsel %vm279_vm3, %v5202_v20, 0.0 }
0x1149   :  { %v4378_v44 = vsel %vm690_vm7, %v11479_v35, %v4363_v6  ;;  %5220 = vadd.xlane.f32.xlu1 %v5219_v43  ;;  %5217 = vadd.xlane.f32.xlu0 %v5216_v47 }
0x114a   :  { %v11553_v39 = vadd.f32 %v4378_v44, %v10595_v32  ;;  %v11567_v32 = vpop.eup %8644 }
0x114b   :  { %v11571_v14 = vpop.eup %8646  ;;  %v4962_v56 = vsel %vm819_vm9, %v11567_v32, 0.0 }
0x114c   :  { %v4365_v61 = vpop.permute.xlu0 %4364  ;;  %v5228_v37 = vsel %vm279_vm3, %v11553_v39, 0.0 }
0x114d   :  { %v4379_v11 = vsel %vm690_vm7, %v11481_v59, %v4365_v61  ;;  %5226 = vadd.xlane.f32.xlu1 %v5225_v28  ;;  %5223 = vadd.xlane.f32.xlu0 %v5222_v23 }
0x114e   :  { %v5199_v35 = vsel %vm79_vm4, %v4379_v11, %v5179_v17  ;;  %v11575_v4 = vpop.eup %8648 }
0x114f   :  { %v11565_v54 = vadd.f32 %v5199_v35, %v10601_v12  ;;  %v11579_v5 = vpop.eup %8650  ;;  %v4965_v12 = vsel %vm819_vm9, %v11571_v14, 0.0  ;;  %v4968_v29 = vsel %vm819_vm9, %v11575_v4, 0.0 }
0x1150   :  { %v4971_v49 = vsel %vm819_vm9, %v11579_v5, 0.0 }
0x1151   :  { %5229 = vadd.xlane.f32.xlu0 %v5228_v37  ;;  %v5231_v59 = vsel %vm279_vm3, %v11565_v54, 0.0 }
0x1152   :  { %5232 = vadd.xlane.f32.xlu1 %v5231_v59 }
0x1155   :  { %4963 = vadd.xlane.f32.xlu0 %v4962_v56 }
0x1156   :  { %4966 = vadd.xlane.f32.xlu1 %v4965_v12 }
0x1159   :  { %4969 = vadd.xlane.f32.xlu0 %v4968_v29 }
0x115a   :  { %4972 = vadd.xlane.f32.xlu1 %v4971_v49 }
0x1176   :  { %v4934_v22 = vpop.xlane.xlu1 %4933 }
0x1177   :  { %v4943_v63 = vsub.f32 %v11501_v1, %v4934_v22 }
0x1179   :  { %v4955_v45 = vmul.f32 1.442695, %v4943_v63 }
0x117b   :  { %8652 = vpow2.f32 %v4955_v45 }
0x117d   :  { %v4937_v25 = vpop.xlane.xlu0 %4936 }
0x117e   :  { %v4944_v57 = vsub.f32 %v11503_v58, %v4937_v25 }
0x1180   :  { %v4957_v60 = vmul.f32 1.442695, %v4944_v57 }
0x1182   :  { %8654 = vpow2.f32 %v4957_v60 }
0x1185   :  { %v11589_v34 = vpop.eup %8652 }
0x1186   :  { %v4974_v9 = vsel %vm819_vm9, %v11589_v34, 0.0 }
0x1187   :  { %4975 = vadd.xlane.f32.xlu0 %v4974_v9 }
0x118c   :  { %v11593_v0 = vpop.eup %8654 }
0x118d   :  { %v4977_v50 = vsel %vm838_vm10, %v11593_v0, 0.0 }
0x118e   :  { %4978 = vadd.xlane.f32.xlu1 %v4977_v50 }
0x11d2   :  { %v5215_v1 = vpop.xlane.xlu0 %5214 }
0x11d3   :  { %v5252_v21 = vmul.f32 0.03125, %v5215_v1 }
0x11d5   :  { %v11598_v26 = vsub.f32 %v11522_v30, %v5252_v21 }
0x11d6   :  { %v5221_v58 = vpop.xlane.xlu1 %5220  ;;  %v5218_v31 = vpop.xlane.xlu0 %5217 }
0x11d7   :  { %v5254_v15 = vmul.f32 0.03125, %v5221_v58  ;;  %v5253_v42 = vmul.f32 0.03125, %v5218_v31  ;;  %v5278_v27 = vmul.f32 %v11598_v26, %v11598_v26 }
0x11d9   :  { %v11602_v10 = vsub.f32 %v5202_v20, %v5254_v15  ;;  %v11605_v62 = vsub.f32 %v11525_v19, %v5253_v42  ;;  %v5291_v48 = vsel %vm279_vm3, %v5278_v27, 0.0  ;;  %v6468_v42 = vld [vmem:[%s12198_s9 + $0x28] sm:$0xff] }
0x11da   :  { %v5227_v53 = vpop.xlane.xlu1 %5226  ;;  %5292 = vadd.xlane.f32.xlu0 %v5291_v48  ;;  %v5224_v3 = vpop.xlane.xlu0 %5223  ;;  %v6470_v48 = vld [vmem:[%s12198_s9 + $0x38] sm:$0xff] }
0x11db   :  { %v5256_v6 = vmul.f32 0.03125, %v5227_v53  ;;  %v5255_v43 = vmul.f32 0.03125, %v5224_v3  ;;  %v5280_v47 = vmul.f32 %v11602_v10, %v11602_v10  ;;  %v5279_v44 = vmul.f32 %v11605_v62, %v11605_v62 }
0x11dd   :  { %v11613_v61 = vsub.f32 %v11540_v51, %v5256_v6  ;;  %v11616_v20 = vsub.f32 %v11537_v18, %v5255_v43  ;;  %v5297_v19 = vsel %vm279_vm3, %v5280_v47, 0.0  ;;  %v5294_v28 = vsel %vm279_vm3, %v5279_v44, 0.0 }
0x11de   :  { %5298 = vadd.xlane.f32.xlu0 %v5297_v19  ;;  %5295 = vadd.xlane.f32.xlu1 %v5294_v28  ;;  %v5230_v23 = vpop.xlane.xlu0 %5229 }
0x11df   :  { %v5257_v11 = vmul.f32 0.03125, %v5230_v23  ;;  %v5233_v35 = vpop.xlane.xlu1 %5232  ;;  %v5282_v37 = vmul.f32 %v11613_v61, %v11613_v61  ;;  %v5281_v59 = vmul.f32 %v11616_v20, %v11616_v20 }
0x11e0   :  { %v5258_v51 = vmul.f32 0.03125, %v5233_v35 }
0x11e1   :  { %v11625_v56 = vsub.f32 %v11553_v39, %v5257_v11  ;;  %v5303_v18 = vsel %vm279_vm3, %v5282_v37, 0.0  ;;  %v5300_v12 = vsel %vm279_vm3, %v5281_v59, 0.0 }
0x11e2   :  { %v11630_v29 = vsub.f32 %v11565_v54, %v5258_v51  ;;  %5304 = vadd.xlane.f32.xlu0 %v5303_v18  ;;  %5301 = vadd.xlane.f32.xlu1 %v5300_v12  ;;  %v4964_v49 = vpop.xlane.xlu0 %4963 }
0x11e3   :  { %8656 = vrcp.f32 %v4964_v49  ;;  %v4967_v22 = vpop.xlane.xlu1 %4966  ;;  %v5283_v63 = vmul.f32 %v11625_v56, %v11625_v56 }
0x11e4   :  { %v5284_v45 = vmul.f32 %v11630_v29, %v11630_v29  ;;  %8658 = vrcp.f32 %v4967_v22 }
0x11e5   :  { %v5306_v39 = vsel %vm279_vm3, %v5283_v63, 0.0 }
0x11e6   :  { %5307 = vadd.xlane.f32.xlu1 %v5306_v39  ;;  %v4970_v25 = vpop.xlane.xlu0 %4969  ;;  %v5309_v57 = vsel %vm279_vm3, %v5284_v45, 0.0 }
0x11e7   :  { %5310 = vadd.xlane.f32.xlu0 %v5309_v57  ;;  %8660 = vrcp.f32 %v4970_v25  ;;  %v4973_v60 = vpop.xlane.xlu1 %4972 }
0x11e8   :  { %8662 = vrcp.f32 %v4973_v60  ;;  %v11679_v60 = vld [vmem:[%s12196_s7 + $0x1] ss:$0 sm:$0xff] }
0x11ed   :  { %v8657_v9 = vpop.eup %8656 }
0x11ee   :  { %v4988_v50 = vmul.f32 %v8657_v9, %v11567_v32  ;;  %v8659_v1 = vpop.eup %8658  ;;  %v6467_v32 = vld [vmem:[%s12198_s9 + $0x20] sm:$0xff] }
0x11ef   :  { %v4989_v21 = vmul.f32 %v8659_v1, %v11571_v14  ;;  %v8028_v14 = vpack.c.bf16 %v6468_v42, %v6467_v32 }
0x11f0   :  { %7671 = vmatmul.mubr.msk.f32.gmra.mrb[166].mxu1 %vm819_vm9, %v4988_v50 }
0x11f1   :  { %7673 = vmatprep.mubr.msk.f32.mxu1 %vm8775_vm1, %v12223_v38  ;;  %v8661_v58 = vpop.eup %8660  ;;  %8029 = vmatpush3.bf16.msra.mxu0 %v8028_v14 }
0x11f2   :  { %v4990_v31 = vmul.f32 %v8661_v58, %v11575_v4  ;;  %v8663_v15 = vpop.eup %8662  ;;  %8030 = vmatprep.subr.bf16.mxu0 %v12224_v16  ;;  %v6469_v4 = vld [vmem:[%s12198_s9 + $0x30] sm:$0xff] }
0x11f3   :  { %v4991_v27 = vmul.f32 %v8663_v15, %v11579_v5  ;;  %v8031_v53 = vpack.c.bf16 %v6470_v48, %v6469_v4 }
0x11f4   :  { %7674 = vmatmul.mubr.msk.f32.gmra.mrb[168].mxu1 %vm819_vm9, %v4989_v21  ;;  %v11685_v21 = vld [vmem:[%s12197_s8 + $0x1] ss:$0 sm:$0xff] }
0x11f5   :  { %7676 = vmatprep.mubr.msk.f32.mxu1 %vm8775_vm1, %v12223_v38  ;;  %8032 = vmatpush3.bf16.msra.mxu0 %v8031_v53 }
0x11f6   :  { %8057 = vmatprep.subr.bf16.mxu0 %v12224_v16 }
0x11f8   :  { %7677 = vmatmul.mubr.msk.f32.gmra.mrb[170].mxu1 %vm819_vm9, %v4990_v31 }
0x11f9   :  { %7679 = vmatprep.mubr.msk.f32.mxu1 %vm8775_vm1, %v12223_v38 }
0x11fc   :  { %7680 = vmatmul.mubr.msk.f32.gmra.mrb[172].mxu1 %vm819_vm9, %v4991_v27 }
0x11fd   :  { %7682 = vmatprep.mubr.msk.f32.mxu1 %vm8775_vm1, %v12223_v38 }
0x1214   :  { %v4976_v5 = vpop.xlane.xlu0 %4975 }
0x1215   :  { %8664 = vrcp.f32 %v4976_v5 }
0x121b   :  { %v4979_v3 = vpop.xlane.xlu1 %4978 }
0x121c   :  { %8666 = vrcp.f32 %v4979_v3 }
0x121f   :  { %v8665_v6 = vpop.eup %8664 }
0x1220   :  { %v4992_v43 = vmul.f32 %v8665_v6, %v11589_v34 }
0x1222   :  { %7683 = vmatmul.mubr.msk.f32.gmra.mrb[174].mxu1 %vm819_vm9, %v4992_v43 }
0x1223   :  { %7685 = vmatprep.mubr.msk.f32.mxu1 %vm8775_vm1, %v12223_v38 }
0x1226   :  { %v8667_v47 = vpop.eup %8666 }
0x1227   :  { %v4993_v44 = vmul.f32 %v8667_v47, %v11593_v0 }
0x1229   :  { %7686 = vmatmul.mubr.msk.f32.gmra.mrb[176].mxu1 %vm819_vm9, %v4993_v44 }
0x122a   :  { %7767 = vmatprep.mubr.msk.f32.mxu1 %vm8775_vm1, %v12223_v38 }
0x1267   :  { %v5293_v19 = vpop.xlane.xlu0 %5292 }
0x1268   :  { %v5330_v28 = vmul.f32 0.03125, %v5293_v19 }
0x126a   :  { %v5343_v23 = vadd.f32 1e-05, %v5330_v28 }
0x126b   :  { %v5296_v11 = vpop.xlane.xlu1 %5295  ;;  %v5299_v35 = vpop.xlane.xlu0 %5298 }
0x126c   :  { %8668 = vrsqrt.f32 %v5343_v23  ;;  %v5331_v34 = vmul.f32 0.03125, %v5296_v11  ;;  %v5332_v37 = vmul.f32 0.03125, %v5299_v35 }
0x126e   :  { %v5344_v59 = vadd.f32 1e-05, %v5331_v34  ;;  %v5345_v51 = vadd.f32 1e-05, %v5332_v37 }
0x126f   :  { %v5302_v18 = vpop.xlane.xlu1 %5301  ;;  %v5305_v12 = vpop.xlane.xlu0 %5304 }
0x1270   :  { %8670 = vrsqrt.f32 %v5344_v59  ;;  %v5333_v49 = vmul.f32 0.03125, %v5302_v18  ;;  %v5334_v0 = vmul.f32 0.03125, %v5305_v12 }
0x1271   :  { %8672 = vrsqrt.f32 %v5345_v51 }
0x1272   :  { %v5346_v22 = vadd.f32 1e-05, %v5333_v49  ;;  %v5347_v63 = vadd.f32 1e-05, %v5334_v0  ;;  %v6486_v0 = vld [vmem:[%s12200_s11 + $0x80] sm:$0xff] }
0x1273   :  { %v5308_v45 = vpop.xlane.xlu1 %5307 }
0x1274   :  { %8674 = vrsqrt.f32 %v5346_v22  ;;  %v5335_v39 = vmul.f32 0.03125, %v5308_v45  ;;  %v5311_v25 = vpop.xlane.xlu0 %5310  ;;  %v6487_v22 = vld [vmem:[%s12200_s11 + $0x88] sm:$0xff]  ;;  %v6488_v45 = vld [vmem:[%s12200_s11 + $0x90] sm:$0xff] }
0x1275   :  { %8676 = vrsqrt.f32 %v5347_v63  ;;  %v5336_v50 = vmul.f32 0.03125, %v5311_v25  ;;  %v8034_v63 = vpack.c.bf16 %v6487_v22, %v6486_v0 }
0x1276   :  { %v8669_v57 = vpop.eup %8668  ;;  %v5348_v9 = vadd.f32 1e-05, %v5335_v39  ;;  %v6489_v39 = vld [vmem:[%s12200_s11 + $0x98] sm:$0xff] }
0x1277   :  { %v5369_v1 = vmul.f32 %v8669_v57, %v11598_v26  ;;  %v5349_v15 = vadd.f32 1e-05, %v5336_v50  ;;  %8035 = vmatpush3.bf16.msra.mxu1 %v8034_v63  ;;  %v8037_v25 = vpack.c.bf16 %v6489_v39, %v6488_v45  ;;  %v6490_v57 = vld [vmem:[%s12200_s11 + $0xa0] sm:$0xff] }
0x1278   :  { %8678 = vrsqrt.f32 %v5348_v9  ;;  %8036 = vmatprep.subr.bf16.mxu1 %v12224_v16  ;;  %v6491_v9 = vld [vmem:[%s12200_s11 + $0xa8] sm:$0xff] }
0x1279   :  { %v5388_v58 = vmul.f32 %v11679_v60, %v5369_v1  ;;  %8680 = vrsqrt.f32 %v5349_v15  ;;  %v8040_v50 = vpack.c.bf16 %v6491_v9, %v6490_v57  ;;  %v6492_v1 = vld [vmem:[%s12200_s11 + $0xb0] sm:$0xff]  ;;  %v6494_v15 = vld [vmem:[%s12200_s11 + $0xc0] sm:$0xff] }
0x127a   :  { %v8671_v31 = vpop.eup %8670 }
0x127b   :  { %v8673_v32 = vpop.eup %8672  ;;  %v5407_v42 = vadd.f32 %v11685_v21, %v5388_v58  ;;  %v5370_v14 = vmul.f32 %v8671_v31, %v11605_v62  ;;  %8038 = vmatpush3.bf16.msra.mxu1 %v8037_v25  ;;  %v6493_v58 = vld [vmem:[%s12200_s11 + $0xb8] sm:$0xff] }
0x127c   :  { %v5371_v27 = vmul.f32 %v8673_v32, %v11602_v10  ;;  %8039 = vmatprep.subr.bf16.mxu1 %v12224_v16  ;;  %v8043_v31 = vpack.c.bf16 %v6493_v58, %v6492_v1  ;;  %v6495_v32 = vld [vmem:[%s12200_s11 + $0xc8] sm:$0xff] }
0x127d   :  { %7697 = vmatmul.mubr.msk.f32.vlgmr.msra.gmra.mrb[176].mxu0 %vm279_vm3, %v5407_v42  ;;  %v5389_v26 = vmul.f32 %v11679_v60, %v5370_v14  ;;  %v8046_v14 = vpack.c.bf16 %v6495_v32, %v6494_v15 }
0x127e   :  { %v8675_v4 = vpop.eup %8674  ;;  %7699 = vmatprep.mubr.msk.f32.mxu0 %vm8775_vm1, %v12223_v38  ;;  %v5390_v53 = vmul.f32 %v11679_v60, %v5371_v27 }
0x127f   :  { %v5408_v48 = vadd.f32 %v11685_v21, %v5389_v26  ;;  %v5372_v5 = vmul.f32 %v8675_v4, %v11616_v20  ;;  %v8677_v3 = vpop.eup %8676  ;;  %8041 = vmatpush3.bf16.msra.mxu1 %v8040_v50  ;;  %v6496_v26 = vld [vmem:[%s12200_s11 + $0xd0] sm:$0xff]  ;;  %v6497_v4 = vld [vmem:[%s12200_s11 + $0xd8] sm:$0xff] }
0x1280   :  { %v5409_v10 = vadd.f32 %v11685_v21, %v5390_v53  ;;  %v5373_v6 = vmul.f32 %v8677_v3, %v11613_v61  ;;  %8042 = vmatprep.subr.bf16.mxu1 %v12224_v16  ;;  %v6499_v3 = vld [vmem:[%s12200_s11 + $0xe8] sm:$0xff] }
0x1281   :  { %7700 = vmatmul.mubr.msk.f32.gmra.mrb[178].mxu0 %vm279_vm3, %v5408_v48  ;;  %v5391_v62 = vmul.f32 %v11679_v60, %v5372_v5  ;;  %v8049_v48 = vpack.c.bf16 %v6497_v4, %v6496_v26  ;;  %v6498_v5 = vld [vmem:[%s12200_s11 + $0xe0] sm:$0xff] }
0x1282   :  { %7702 = vmatprep.mubr.msk.f32.mxu0 %vm8775_vm1, %v12223_v38  ;;  %v8679_v43 = vpop.eup %8678  ;;  %v5392_v47 = vmul.f32 %v11679_v60, %v5373_v6  ;;  %v6500_v6 = vld [vmem:[%s12200_s11 + $0xf0] sm:$0xff] }
0x1283   :  { %v5410_v20 = vadd.f32 %v11685_v21, %v5391_v62  ;;  %v5374_v44 = vmul.f32 %v8679_v43, %v11625_v56  ;;  %v8681_v19 = vpop.eup %8680  ;;  %8044 = vmatpush3.bf16.msra.mxu1 %v8043_v31  ;;  %v8052_v62 = vpack.c.bf16 %v6499_v3, %v6498_v5  ;;  %v6501_v43 = vld [vmem:[%s12200_s11 + $0xf8] sm:$0xff] }
0x1284   :  { %v5411_v61 = vadd.f32 %v11685_v21, %v5392_v47  ;;  %v5375_v23 = vmul.f32 %v8681_v19, %v11630_v29  ;;  %8045 = vmatprep.subr.bf16.mxu1 %v12224_v16 }
0x1285   :  { %7703 = vmatmul.mubr.msk.f32.gmra.mrb[180].mxu0 %vm279_vm3, %v5409_v10  ;;  %v5393_v28 = vmul.f32 %v11679_v60, %v5374_v44 }
0x1286   :  { %7705 = vmatprep.mubr.msk.f32.mxu0 %vm8775_vm1, %v12223_v38  ;;  %v5394_v56 = vmul.f32 %v11679_v60, %v5375_v23 }
0x1287   :  { %v5412_v11 = vadd.f32 %v11685_v21, %v5393_v28  ;;  %8047 = vmatpush3.bf16.msra.mxu1 %v8046_v14 }
0x1288   :  { %v5413_v35 = vadd.f32 %v11685_v21, %v5394_v56  ;;  %8048 = vmatprep.subr.bf16.mxu1 %v12224_v16 }
0x1289   :  { %7706 = vmatmul.mubr.msk.f32.gmra.mrb[182].mxu0 %vm279_vm3, %v5410_v20  ;;  %v8055_v20 = vpack.c.bf16 %v6501_v43, %v6500_v6 }
0x128a   :  { %7708 = vmatprep.mubr.msk.f32.mxu0 %vm8775_vm1, %v12223_v38 }
0x128b   :  { %8050 = vmatpush3.bf16.msra.mxu1 %v8049_v48 }
0x128c   :  { %8051 = vmatprep.subr.bf16.mxu1 %v12224_v16 }
0x128d   :  { %7709 = vmatmul.mubr.msk.f32.gmra.mrb[184].mxu0 %vm279_vm3, %v5411_v61 }
0x128e   :  { %7711 = vmatprep.mubr.msk.f32.mxu0 %vm8775_vm1, %v12223_v38 }
0x128f   :  { %8053 = vmatpush3.bf16.msra.mxu1 %v8052_v62 }
0x1290   :  { %8054 = vmatprep.subr.bf16.mxu1 %v12224_v16 }
0x1291   :  { %7712 = vmatmul.mubr.msk.f32.gmra.mrb[186].mxu0 %vm279_vm3, %v5412_v11 }
0x1292   :  { %7714 = vmatprep.mubr.msk.f32.mxu0 %vm8775_vm1, %v12223_v38 }
0x1293   :  { %8056 = vmatpush3.bf16.msra.mxu1 %v8055_v20 }
0x1295   :  { %7715 = vmatmul.mubr.msk.f32.gmra.mrb[188].mxu0 %vm279_vm3, %v5413_v35 }
0x1296   :  { %7717 = vmatprep.mubr.msk.f32.mxu0 %vm8775_vm1, %v12223_v38 }
0x12c3   :  { %v5108_v29 = vpop.f32.mrb[166].mxu1 }
0x12c4   :  { %5146 = vrot.lane.b32.xlu1 %v5108_v29, %s8782_s26  ;;  %v7672_v34 = vpop.f32.mrb[167].mxu1 }
0x12c7   :  { %v5113_v37 = vpop.f32.mrb[168].mxu1 }
0x12c8   :  { %5148 = vrot.lane.b32.xlu0 %v5113_v37, %s8782_s26  ;;  %v7675_v59 = vpop.f32.mrb[169].mxu1 }
0x12cb   :  { %v5118_v51 = vpop.f32.mrb[170].mxu1 }
0x12cc   :  { %5150 = vrot.lane.b32.xlu1 %v5118_v51, %s8782_s26  ;;  %v7678_v18 = vpop.f32.mrb[171].mxu1 }
0x12cf   :  { %v5123_v12 = vpop.f32.mrb[172].mxu1 }
0x12d0   :  { %5152 = vrot.lane.b32.xlu1 %v5123_v12, %s8782_s26  ;;  %v7681_v49 = vpop.f32.mrb[173].mxu1 }
0x12f5   :  { %v5128_v42 = vpop.f32.mrb[174].mxu1 }
0x12f6   :  { %5154 = vrot.lane.b32.xlu0 %v5128_v42, %s8782_s26  ;;  %v7684_v27 = vpop.f32.mrb[175].mxu1 }
0x12fc   :  { %v5133_v53 = vpop.f32.mrb[176].mxu1 }
0x12fd   :  { %5156 = vrot.lane.b32.xlu1 %v5133_v53, %s8782_s26  ;;  %v7687_v10 = vpop.f32.mrb[177].mxu1 }
0x1336   :  { %v5147_v47 = vpop.permute.xlu1 %5146 }
0x1337   :  { %v5166_v44 = vsel %vm690_vm7, %v11485_v7, %v5147_v47 }
0x1338   :  { %v5180_v19 = vrot.slane %v5166_v44, 6 }
0x133a   :  { %v5149_v61 = vpop.permute.xlu0 %5148  ;;  %v5181_v28 = vsel %vm79_vm4, %v5179_v17, %v5180_v19 }
0x133b   :  { %v5167_v23 = vsel %vm690_vm7, %v11487_v40, %v5149_v61  ;;  %v11797_v11 = vadd.f32 %v5181_v28, %v10607_v41 }
0x133c   :  { %v5182_v56 = vrot.slane %v5167_v23, 6 }
0x133d   :  { %v5234_v35 = vsel %vm279_vm3, %v11797_v11, 0.0 }
0x133e   :  { %v5151_v29 = vpop.permute.xlu1 %5150  ;;  %5235 = vadd.xlane.f32.xlu0 %v5234_v35  ;;  %v5183_v7 = vsel %vm79_vm4, %v5180_v19, %v5182_v56 }
0x133f   :  { %v5168_v34 = vsel %vm690_vm7, %v11489_v13, %v5151_v29  ;;  %v11805_v55 = vadd.f32 %v5183_v7, %v10613_v2 }
0x1340   :  { %v5184_v17 = vrot.slane %v5168_v34, 6 }
0x1341   :  { %v5237_v40 = vsel %vm279_vm3, %v11805_v55, 0.0 }
0x1342   :  { %v5153_v41 = vpop.permute.xlu1 %5152  ;;  %5238 = vadd.xlane.f32.xlu1 %v5237_v40  ;;  %v5185_v37 = vsel %vm79_vm4, %v5182_v56, %v5184_v17 }
0x1343   :  { %v11812_v59 = vsel %vm690_vm7, %v11492_v36, %v5153_v41  ;;  %v11815_v51 = vadd.f32 %v5185_v37, %v10619_v52  ;;  %v11831_v52 = vld [vmem:[%s12199_s10 + $0x1] ss:$0 sm:$0xff] }
0x1344   :  { %v5186_v13 = vrot.slane %v11812_v59, 6 }
0x1345   :  { %v5240_v2 = vsel %vm279_vm3, %v11815_v51, 0.0 }
0x1346   :  { %5241 = vadd.xlane.f32.xlu0 %v5240_v2  ;;  %v5187_v18 = vsel %vm79_vm4, %v5184_v17, %v5186_v13 }
0x1347   :  { %v11824_v12 = vadd.f32 %v5187_v18, %v10625_v24 }
0x1349   :  { %v5243_v36 = vsel %vm279_vm3, %v11824_v12, 0.0 }
0x134a   :  { %5244 = vadd.xlane.f32.xlu0 %v5243_v36 }
0x1350   :  { %v5538_v49 = vpop.f32.mrb[176].mxu0 }
0x1351   :  { %v5539_v0 = vadd.f32 %v11831_v52, %v5538_v49  ;;  %v7698_v22 = vpop.f32.mrb[177].mxu0 }
0x1353   :  { %v5615_v63 = vmul.f32 0.70710677, %v5539_v0 }
0x1354   :  { %v5543_v45 = vpop.f32.mrb[178].mxu0 }
0x1355   :  { %v5654_v39 = vand.u32 2147483647, %v5615_v63  ;;  %v11835_v25 = vadd.f32 %v11831_v52, %v5543_v45  ;;  %v7701_v24 = vpop.f32.mrb[179].mxu0  ;;  %vm5628_vm6 = vcmp.ge.f32.partialorder %v5615_v63, 0.0 }
0x1357   :  { %v5667_v57 = vmul.f32 0.3275911, %v5654_v39  ;;  %v11838_v9 = vmul.f32 0.70710677, %v11835_v25  ;;  %v5836_v10 = vsub.f32 0.0, %v5654_v39 }
0x1358   :  { %v5548_v50 = vpop.f32.mrb[180].mxu0 }
0x1359   :  { %v5680_v1 = vadd.f32 1.0, %v5667_v57  ;;  %v5655_v58 = vand.u32 2147483647, %v11838_v9  ;;  %v7704_v31 = vpop.f32.mrb[181].mxu0  ;;  %v11842_v15 = vadd.f32 %v11831_v52, %v5548_v50  ;;  %v5849_v28 = vmul.f32 %v5836_v10, %v5654_v39 }
0x135b   :  { %8682 = vrcp.f32 %v5680_v1  ;;  %v5668_v32 = vmul.f32 0.3275911, %v5655_v58  ;;  %v11845_v42 = vmul.f32 0.70710677, %v11842_v15  ;;  %v5837_v23 = vsub.f32 0.0, %v5655_v58 }
0x135c   :  { %v5553_v14 = vpop.f32.mrb[182].mxu0  ;;  %v5862_v2 = vmul.f32 1.442695, %v5849_v28  ;;  %v11885_v1 = vmul.f32 0.5, %v5539_v0 }
0x135d   :  { %v5681_v27 = vadd.f32 1.0, %v5668_v32  ;;  %v11848_v26 = vadd.f32 %v11831_v52, %v5553_v14  ;;  %v7707_v4 = vpop.f32.mrb[183].mxu0  ;;  %v5656_v48 = vand.u32 2147483647, %v11845_v42  ;;  %v5850_v18 = vmul.f32 %v5837_v23, %v5655_v58 }
0x135e   :  { %v12230_v32 = vmov -1.0  }
0x135f   :  { %8684 = vrcp.f32 %v5681_v27  ;;  %v5669_v53 = vmul.f32 0.3275911, %v5656_v48  ;;  %v11852_v5 = vmul.f32 0.70710677, %v11848_v26  ;;  %v5838_v24 = vsub.f32 0.0, %v5656_v48 }
0x1360   :  { %v5558_v3 = vpop.f32.mrb[184].mxu0  ;;  %v11889_v58 = vsel %vm5628_vm6, 1.0, %v12230_v32  ;;  %v5864_v4 = vmul.f32 1.442695, %v5850_v18 }
0x1361   :  { %v11855_v62 = vadd.f32 %v11831_v52, %v5558_v3  ;;  %v7710_v6 = vpop.f32.mrb[185].mxu0  ;;  %v5682_v43 = vadd.f32 1.0, %v5669_v53  ;;  %v11858_v20 = vand.u32 2147483647, %v11852_v5  ;;  %v5851_v10 = vmul.f32 %v5838_v24, %v5656_v48 }
0x1362   :  { %vm5631_vm8 = vcmp.ge.f32.partialorder %v11852_v5, 0.0 }
0x1363   :  { %v11861_v47 = vmul.f32 0.70710677, %v11855_v62  ;;  %8686 = vrcp.f32 %v5682_v43  ;;  %v5670_v44 = vmul.f32 0.3275911, %v11858_v20  ;;  %v5839_v6 = vsub.f32 0.0, %v11858_v20 }
0x1364   :  { %v5563_v19 = vpop.f32.mrb[186].mxu0 }
0x1365   :  { %v11864_v61 = vpop.eup %8682  ;;  %v11867_v56 = vand.u32 2147483647, %v11861_v47  ;;  %v11870_v35 = vadd.f32 %v11831_v52, %v5563_v19  ;;  %v7713_v29 = vpop.f32.mrb[187].mxu0  ;;  %v5683_v34 = vadd.f32 1.0, %v5670_v44  ;;  %vm5632_vm9 = vcmp.ge.f32.partialorder %v11861_v47, 0.0 }
0x1366   :  { %v5719_v7 = vmul.f32 1.0614054, %v11864_v61  ;;  %v11911_v29 = vmul.f32 0.5, %v11835_v25  ;;  %v5866_v25 = vmul.f32 1.442695, %v5851_v10 }
0x1367   :  { %v5671_v17 = vmul.f32 0.3275911, %v11867_v56  ;;  %8688 = vrcp.f32 %v5683_v34  ;;  %v11875_v41 = vmul.f32 0.70710677, %v11870_v35 }
0x1368   :  { %v5732_v40 = vadd.f32 -1.4531521, %v5719_v7  ;;  %v5155_v37 = vpop.permute.xlu0 %5154  ;;  %v5568_v22 = vpop.f32.mrb[188].mxu0  ;;  %v5840_v7 = vsub.f32 0.0, %v11867_v56 }
0x1369   :  { %v5684_v36 = vadd.f32 1.0, %v5671_v17  ;;  %v5170_v49 = vsel %vm690_vm7, %v11495_v8, %v5155_v37  ;;  %v11879_v45 = vpop.eup %8684  ;;  %v11883_v57 = vand.u32 2147483647, %v11875_v41  ;;  %v7716_v50 = vpop.f32.mrb[189].mxu0  ;;  %v11893_v27 = vadd.f32 %v11831_v52, %v5568_v22 }
0x136a   :  { %v5745_v39 = vmul.f32 %v11864_v61, %v5732_v40  ;;  %v5188_v31 = vrot.slane %v5170_v49, 6  ;;  %v5720_v0 = vmul.f32 1.0614054, %v11879_v45  ;;  %vm5633_vm10 = vcmp.ge.f32.partialorder %v11875_v41, 0.0 }
0x136b   :  { %8690 = vrcp.f32 %v5684_v36  ;;  %v5672_v8 = vmul.f32 0.3275911, %v11883_v57  ;;  %v11904_v44 = vmul.f32 0.70710677, %v11893_v27  ;;  %v5646_v47 = vsel %vm5633_vm10, 1.0, %v12230_v32 }
0x136c   :  { %v5758_v14 = vadd.f32 1.4214138, %v5745_v39  ;;  %8692 = vpow2.f32 %v5862_v2  ;;  %v5189_v53 = vsel %vm79_vm4, %v5186_v13, %v5188_v31  ;;  %v5733_v59 = vadd.f32 -1.4531521, %v5720_v0  ;;  %v12231_v39 = vld [vmem:[#allocation5_spill] sm:$0xff] }
0x136d   :  { %v11899_v3 = vpop.eup %8686  ;;  %v5685_v43 = vadd.f32 1.0, %v5672_v8  ;;  %v11907_v28 = vadd.f32 %v5189_v53, %v10631_v33  ;;  %v11917_v34 = vand.u32 2147483647, %v11904_v44  ;;  %v5841_v53 = vsub.f32 0.0, %v11883_v57 }
0x136e   :  { %v5771_v63 = vmul.f32 %v11864_v61, %v5758_v14  ;;  %v5721_v13 = vmul.f32 1.0614054, %v11899_v3  ;;  %v5746_v2 = vmul.f32 %v11879_v45, %v5733_v59  ;;  %vm5634_vm2 = vcmp.ge.f32.partialorder %v11904_v44, 0.0 }
0x136f   :  { %v5157_v19 = vpop.permute.xlu1 %5156  ;;  %8694 = vrcp.f32 %v5685_v43  ;;  %v5246_v33 = vsel %vm279_vm3, %v11907_v28, 0.0  ;;  %v5673_v18 = vmul.f32 0.3275911, %v11917_v34 }
0x1370   :  { %v5784_v23 = vadd.f32 -0.28449672, %v5771_v63  ;;  %v5171_v48 = vsel %vm690_vm7, %v11498_v46, %v5157_v19  ;;  %8696 = vpow2.f32 %v5864_v4  ;;  %5247 = vadd.xlane.f32.xlu1 %v5246_v33  ;;  %v5852_v46 = vmul.f32 %v5839_v6, %v11858_v20 }
0x1371   :  { %v5190_v17 = vrot.slane %v5171_v48, 6  ;;  %v11921_v40 = vpop.eup %8688  ;;  %v5734_v49 = vadd.f32 -1.4531521, %v5721_v13  ;;  %v5759_v50 = vadd.f32 1.4214138, %v5746_v2  ;;  %v5853_v4 = vmul.f32 %v5840_v7, %v11867_v56 }
0x1372   :  { %v5797_v37 = vmul.f32 %v11864_v61, %v5784_v23  ;;  %v5722_v14 = vmul.f32 1.0614054, %v11921_v40  ;;  %v5686_v0 = vadd.f32 1.0, %v5673_v18  ;;  %v5868_v19 = vmul.f32 1.442695, %v5852_v46 }
0x1373   :  { %v5191_v36 = vsel %vm79_vm4, %v5188_v31, %v5190_v17  ;;  %v5747_v20 = vmul.f32 %v11899_v3, %v5734_v49  ;;  %v5772_v10 = vmul.f32 %v11879_v45, %v5759_v50  ;;  %vm5629_vm4 = vcmp.ge.f32.partialorder %v11838_v9, 0.0 }
0x1374   :  { %v5810_v22 = vadd.f32 0.2548296, %v5797_v37  ;;  %v11929_v24 = vadd.f32 %v5191_v36, %v12231_v39  ;;  %v5735_v6 = vadd.f32 -1.4531521, %v5722_v14  ;;  %8698 = vrcp.f32 %v5686_v0 }
0x1375   :  { %v11932_v8 = vpop.eup %8690  ;;  %v5760_v59 = vadd.f32 1.4214138, %v5747_v20  ;;  %8700 = vpow2.f32 %v5866_v25  ;;  %v5785_v23 = vadd.f32 -0.28449672, %v5772_v10  ;;  %v5854_v2 = vmul.f32 %v5841_v53, %v11883_v57 }
0x1376   :  { %v5823_v63 = vmul.f32 %v11864_v61, %v5810_v22  ;;  %v5249_v31 = vsel %vm316_vm5, %v11929_v24, 0.0  ;;  %v8693_v43 = vpop.eup %8692  ;;  %v5723_v56 = vmul.f32 1.0614054, %v11932_v8  ;;  %v5748_v48 = vmul.f32 %v11921_v40, %v5735_v6 }
0x1377   :  { %5250 = vadd.xlane.f32.xlu0 %v5249_v31  ;;  %v5870_v61 = vmul.f32 1.442695, %v5853_v4  ;;  %v5773_v7 = vmul.f32 %v11899_v3, %v5760_v59  ;;  %v5798_v46 = vmul.f32 %v11879_v45, %v5785_v23  ;;  %8702 = vpow2.f32 %v5868_v19 }
0x1378   :  { %v5888_v13 = vmul.f32 %v8693_v43, %v5823_v63  ;;  %v5736_v17 = vadd.f32 -1.4531521, %v5723_v56  ;;  %v5761_v18 = vadd.f32 1.4214138, %v5748_v48  ;;  %v5842_v50 = vsub.f32 0.0, %v11917_v34 }
0x1379   :  { %v11945_v33 = vpop.eup %8694  ;;  %v5786_v36 = vadd.f32 -0.28449672, %v5773_v7  ;;  %v5811_v14 = vadd.f32 0.2548296, %v5798_v46  ;;  %8704 = vpow2.f32 %v5870_v61  ;;  %v5872_v63 = vmul.f32 1.442695, %v5854_v2 }
0x137a   :  { %v5901_v37 = vsub.f32 1.0, %v5888_v13  ;;  %v5749_v25 = vmul.f32 %v11932_v8, %v5736_v17  ;;  %v5724_v49 = vmul.f32 1.0614054, %v11945_v33  ;;  %v8697_v22 = vpop.eup %8696  ;;  %v5774_v4 = vmul.f32 %v11921_v40, %v5761_v18 }
0x137b   :  { %v5799_v57 = vmul.f32 %v11899_v3, %v5786_v36  ;;  %v5824_v31 = vmul.f32 %v11879_v45, %v5811_v14  ;;  %v5642_v6 = vsel %vm5629_vm4, 1.0, %v12230_v32  ;;  %v5855_v56 = vmul.f32 %v5842_v50, %v11917_v34 }
0x137c   :  { %v5914_v39 = vmul.f32 %v5901_v37, %v11889_v58  ;;  %v5762_v53 = vadd.f32 1.4214138, %v5749_v25  ;;  %v5737_v0 = vadd.f32 -1.4531521, %v5724_v49  ;;  %v5787_v10 = vadd.f32 -0.28449672, %v5774_v4 }
0x137d   :  { %v5812_v58 = vadd.f32 0.2548296, %v5799_v57  ;;  %v5889_v13 = vmul.f32 %v8697_v22, %v5824_v31  ;;  %vm5630_vm7 = vcmp.ge.f32.partialorder %v11845_v42, 0.0  ;;  %8706 = vpow2.f32 %v5872_v63 }
0x137e   :  { %v5927_v20 = vadd.f32 1.0, %v5914_v39  ;;  %v5775_v43 = vmul.f32 %v11932_v8, %v5762_v53  ;;  %v5750_v19 = vmul.f32 %v11945_v33, %v5737_v0  ;;  %v5800_v23 = vmul.f32 %v11921_v40, %v5787_v10  ;;  %v11964_v48 = vpop.eup %8698 }
0x137f   :  { %v5825_v45 = vmul.f32 %v11899_v3, %v5812_v58  ;;  %v8701_v7 = vpop.eup %8700  ;;  %v5902_v17 = vsub.f32 1.0, %v5889_v13  ;;  %v5874_v3 = vmul.f32 1.442695, %v5855_v56  ;;  %v5604_v22 = vmul.f32 0.5, %v11842_v15 }
0x1380   :  { %v5940_v59 = vmul.f32 %v5927_v20, %v11885_v1  ;;  %v5788_v9 = vadd.f32 -0.28449672, %v5775_v43  ;;  %v5763_v61 = vadd.f32 1.4214138, %v5750_v19  ;;  %v5813_v37 = vadd.f32 0.2548296, %v5800_v23 }
0x1381   :  { %v5725_v1 = vmul.f32 1.0614054, %v11964_v48  ;;  %v5890_v34 = vmul.f32 %v8701_v7, %v5825_v45  ;;  %v5915_v18 = vmul.f32 %v5902_v17, %v5642_v6  ;;  %v8703_v49 = vpop.eup %8702  ;;  %v5643_v4 = vsel %vm5630_vm7, 1.0, %v12230_v32 }
0x1382   :  { %7768 = vmatmul.mubr.f32.vlgmr.msra.gmra.mrb[178].mxu1 %v5940_v59  ;;  %v5801_v2 = vmul.f32 %v11932_v8, %v5788_v9  ;;  %v5776_v46 = vmul.f32 %v11945_v33, %v5763_v61  ;;  %v5826_v36 = vmul.f32 %v11921_v40, %v5813_v37  ;;  %v5644_v40 = vsel %vm5631_vm8, 1.0, %v12230_v32 }
0x1383   :  { %7770 = vmatprep.mubr.msk.f32.mxu1 %vm8775_vm1, %v12223_v38  ;;  %v5738_v25 = vadd.f32 -1.4531521, %v5725_v1  ;;  %v5903_v39 = vsub.f32 1.0, %v5890_v34  ;;  %v5928_v57 = vadd.f32 1.0, %v5915_v18  ;;  %v8705_v20 = vpop.eup %8704  ;;  %8708 = vpow2.f32 %v5874_v3 }
0x1384   :  { %v5814_v50 = vadd.f32 0.2548296, %v5801_v2  ;;  %v5789_v14 = vadd.f32 -0.28449672, %v5776_v46  ;;  %v5891_v53 = vmul.f32 %v8703_v49, %v5826_v36  ;;  %v5645_v45 = vsel %vm5632_vm9, 1.0, %v12230_v32 }
0x1385   :  { %v5751_v0 = vmul.f32 %v11964_v48, %v5738_v25  ;;  %v5916_v63 = vmul.f32 %v5903_v39, %v5643_v4  ;;  %v5941_v10 = vmul.f32 %v5928_v57, %v11911_v29  ;;  %v5605_v29 = vmul.f32 0.5, %v11848_v26 }
0x1386   :  { %v5827_v31 = vmul.f32 %v11932_v8, %v5814_v50  ;;  %v5802_v15 = vmul.f32 %v11945_v33, %v5789_v14  ;;  %v5904_v42 = vsub.f32 1.0, %v5891_v53  ;;  %v5606_v26 = vmul.f32 0.5, %v11855_v62 }
0x1387   :  { %v5764_v6 = vadd.f32 1.4214138, %v5751_v0  ;;  %v5929_v58 = vadd.f32 1.0, %v5916_v63  ;;  %7771 = vmatmul.mubr.f32.gmra.mrb[180].mxu1 %v5941_v10  ;;  %v8707_v23 = vpop.eup %8706  ;;  %v5607_v25 = vmul.f32 0.5, %v11870_v35  ;;  %v5647_v39 = vsel %vm5634_vm2, 1.0, %v12230_v32 }
0x1388   :  { %v5892_v43 = vmul.f32 %v8705_v20, %v5827_v31  ;;  %v5815_v19 = vadd.f32 0.2548296, %v5802_v15  ;;  %v5917_v59 = vmul.f32 %v5904_v42, %v5644_v40  ;;  %7773 = vmatprep.mubr.msk.f32.mxu1 %vm8775_vm1, %v12223_v38 }
0x1389   :  { %v5777_v5 = vmul.f32 %v11964_v48, %v5764_v6  ;;  %v5942_v8 = vmul.f32 %v5929_v58, %v5604_v22 }
0x138a   :  { %v5905_v56 = vsub.f32 1.0, %v5892_v43  ;;  %v5828_v13 = vmul.f32 %v11945_v33, %v5815_v19  ;;  %v5930_v9 = vadd.f32 1.0, %v5917_v59 }
0x138b   :  { %v5790_v61 = vadd.f32 -0.28449672, %v5777_v5  ;;  %7774 = vmatmul.mubr.f32.gmra.mrb[182].mxu1 %v5942_v8 }
0x138c   :  { %v5918_v7 = vmul.f32 %v5905_v56, %v5645_v45  ;;  %v5893_v17 = vmul.f32 %v8707_v23, %v5828_v13  ;;  %v5943_v37 = vmul.f32 %v5930_v9, %v5605_v29  ;;  %7776 = vmatprep.mubr.msk.f32.mxu1 %vm8775_vm1, %v12223_v38 }
0x138d   :  { %v5803_v1 = vmul.f32 %v11964_v48, %v5790_v61  ;;  %v8709_v18 = vpop.eup %8708  ;;  %v6107_v61 = vld [vmem:[%s12202_s13 + $0x8] sm:$0xff] }
0x138e   :  { %v5931_v33 = vadd.f32 1.0, %v5918_v7  ;;  %v5906_v34 = vsub.f32 1.0, %v5893_v17  ;;  %v6109_v17 = vld [vmem:[%s12202_s13 + $0x18] sm:$0xff] }
0x138f   :  { %v5816_v2 = vadd.f32 0.2548296, %v5803_v1  ;;  %7777 = vmatmul.mubr.f32.gmra.mrb[184].mxu1 %v5943_v37 }
0x1390   :  { %v5919_v46 = vmul.f32 %v5906_v34, %v5646_v47  ;;  %v5944_v3 = vmul.f32 %v5931_v33, %v5606_v26  ;;  %7779 = vmatprep.mubr.msk.f32.mxu1 %vm8775_vm1, %v12223_v38 }
0x1391   :  { %v5829_v41 = vmul.f32 %v11964_v48, %v5816_v2  ;;  %v5608_v48 = vmul.f32 0.5, %v11893_v27 }
0x1392   :  { %v5932_v36 = vadd.f32 1.0, %v5919_v46 }
0x1393   :  { %v5894_v49 = vmul.f32 %v8709_v18, %v5829_v41  ;;  %7780 = vmatmul.mubr.f32.gmra.mrb[186].mxu1 %v5944_v3 }
0x1394   :  { %v5945_v62 = vmul.f32 %v5932_v36, %v5607_v25  ;;  %7782 = vmatprep.mubr.msk.f32.mxu1 %vm8775_vm1, %v12223_v38 }
0x1395   :  { %v5907_v22 = vsub.f32 1.0, %v5894_v49 }
0x1397   :  { %v5920_v50 = vmul.f32 %v5907_v22, %v5647_v39  ;;  %7783 = vmatmul.mubr.f32.gmra.mrb[188].mxu1 %v5945_v62 }
0x1398   :  { %7785 = vmatprep.mubr.msk.f32.mxu1 %vm8775_vm1, %v12223_v38 }
0x1399   :  { %v5933_v14 = vadd.f32 1.0, %v5920_v50 }
0x139b   :  { %v5946_v35 = vmul.f32 %v5933_v14, %v5608_v48 }
0x139d   :  { %7786 = vmatmul.mubr.f32.gmra.mrb[190].mxu1 %v5946_v35 }
0x139e   :  { %7788 = vmatprep.mubr.msk.f32.mxu1 %vm8775_vm1, %v12223_v38 }
0x13cb   :  { %v5236_v44 = vpop.xlane.xlu0 %5235 }
0x13cc   :  { %v5259_v4 = vmul.f32 0.03125, %v5236_v44 }
0x13ce   :  { %v12015_v57 = vsub.f32 %v11797_v11, %v5259_v4 }
0x13cf   :  { %v5239_v53 = vpop.xlane.xlu1 %5238 }
0x13d0   :  { %v5260_v0 = vmul.f32 0.03125, %v5239_v53  ;;  %v5285_v27 = vmul.f32 %v12015_v57, %v12015_v57 }
0x13d2   :  { %v12020_v20 = vsub.f32 %v11805_v55, %v5260_v0  ;;  %v5312_v40 = vsel %vm279_vm3, %v5285_v27, 0.0 }
0x13d3   :  { %5313 = vadd.xlane.f32.xlu1 %v5312_v40  ;;  %v5242_v63 = vpop.xlane.xlu0 %5241 }
0x13d4   :  { %v5261_v31 = vmul.f32 0.03125, %v5242_v63  ;;  %v5286_v15 = vmul.f32 %v12020_v20, %v12020_v20 }
0x13d6   :  { %v12026_v10 = vsub.f32 %v11815_v51, %v5261_v31  ;;  %v5315_v11 = vsel %vm279_vm3, %v5286_v15, 0.0 }
0x13d7   :  { %5316 = vadd.xlane.f32.xlu0 %v5315_v11  ;;  %v5245_v42 = vpop.xlane.xlu0 %5244 }
0x13d8   :  { %v5262_v6 = vmul.f32 0.03125, %v5245_v42  ;;  %v5287_v55 = vmul.f32 %v12026_v10, %v12026_v10 }
0x13da   :  { %v12032_v58 = vsub.f32 %v11824_v12, %v5262_v6  ;;  %v5318_v43 = vsel %vm279_vm3, %v5287_v55, 0.0  ;;  %v6503_v6 = vld [vmem:[%s12201_s12 + $0x1] ss:$0 sm:$0xff] }
0x13db   :  { %5319 = vadd.xlane.f32.xlu1 %v5318_v43 }
0x13dc   :  { %v5288_v19 = vmul.f32 %v12032_v58, %v12032_v58 }
0x13de   :  { %v5321_v51 = vsel %vm279_vm3, %v5288_v19, 0.0 }
0x13df   :  { %5322 = vadd.xlane.f32.xlu0 %v5321_v51 }
0x13fd   :  { %v5248_v59 = vpop.xlane.xlu1 %5247 }
0x13fe   :  { %v5263_v5 = vmul.f32 0.03125, %v5248_v59 }
0x1400   :  { %v12039_v8 = vsub.f32 %v11907_v28, %v5263_v5  ;;  %v6106_v28 = vld [vmem:[%s12202_s13] sm:$0xff] }
0x1401   :  { %v8058_v7 = vpack.c.bf16 %v6107_v61, %v6106_v28 }
0x1402   :  { %v5289_v56 = vmul.f32 %v12039_v8, %v12039_v8 }
0x1403   :  { %8059 = vmatpush3.bf16.msra.mxu0 %v8058_v7 }
0x1404   :  { %v5251_v13 = vpop.xlane.xlu0 %5250  ;;  %v5324_v23 = vsel %vm279_vm3, %v5289_v56, 0.0  ;;  %8060 = vmatprep.subr.bf16.mxu0 %v12224_v16 }
0x1405   :  { %v5264_v12 = vmul.f32 0.03125, %v5251_v13  ;;  %5325 = vadd.xlane.f32.xlu1 %v5324_v23 }
0x1407   :  { %v12045_v29 = vsub.f32 %v11929_v24, %v5264_v12  ;;  %v6108_v24 = vld [vmem:[%s12202_s13 + $0x10] sm:$0xff] }
0x1408   :  { %v8061_v37 = vpack.c.bf16 %v6109_v17, %v6108_v24 }
0x1409   :  { %v5290_v45 = vmul.f32 %v12045_v29, %v12045_v29 }
0x140a   :  { %8062 = vmatpush3.bf16.msra.mxu0 %v8061_v37 }
0x140b   :  { %v5327_v9 = vsel %vm316_vm5, %v5290_v45, 0.0  ;;  %vm6104_vm5 = vcmask 1040384  }
0x140c   :  { %5328 = vadd.xlane.f32.xlu0 %v5327_v9 }
0x1455   :  { %v6036_v1 = vpop.f32.mrb[178].mxu1 }
0x1456   :  { %v7769_v33 = vpop.f32.mrb[179].mxu1  ;;  %v6089_v63 = vadd.f32 %v6036_v1, %v11522_v30 }
0x145a   :  { %v6041_v34 = vpop.f32.mrb[180].mxu1 }
0x145b   :  { %v7772_v26 = vpop.f32.mrb[181].mxu1 }
0x145e   :  { %v6045_v2 = vpop.f32.mrb[182].mxu1 }
0x145f   :  { %v7775_v3 = vpop.f32.mrb[183].mxu1 }
0x1460   :  { %v5314_v47 = vpop.xlane.xlu1 %5313 }
0x1461   :  { %v5337_v46 = vmul.f32 0.03125, %v5314_v47 }
0x1462   :  { %v6049_v18 = vpop.f32.mrb[184].mxu1 }
0x1463   :  { %v5350_v41 = vadd.f32 1e-05, %v5337_v46  ;;  %v7778_v25 = vpop.f32.mrb[185].mxu1 }
0x1464   :  { %v5317_v16 = vpop.xlane.xlu0 %5316 }
0x1465   :  { %8710 = vrsqrt.f32 %v5350_v41  ;;  %v5338_v36 = vmul.f32 0.03125, %v5317_v16 }
0x1466   :  { %v6053_v22 = vpop.f32.mrb[186].mxu1 }
0x1467   :  { %v5351_v49 = vadd.f32 1e-05, %v5338_v36  ;;  %v7781_v50 = vpop.f32.mrb[187].mxu1 }
0x1468   :  { %v5320_v62 = vpop.xlane.xlu1 %5319 }
0x1469   :  { %8712 = vrsqrt.f32 %v5351_v49  ;;  %v5339_v39 = vmul.f32 0.03125, %v5320_v62 }
0x146a   :  { %v6057_v35 = vpop.f32.mrb[188].mxu1 }
0x146b   :  { %v5352_v48 = vadd.f32 1e-05, %v5339_v39  ;;  %v7784_v4 = vpop.f32.mrb[189].mxu1 }
0x146c   :  { %v5323_v14 = vpop.xlane.xlu0 %5322 }
0x146d   :  { %8714 = vrsqrt.f32 %v5352_v48  ;;  %v5340_v44 = vmul.f32 0.03125, %v5323_v14 }
0x146f   :  { %v8711_v53 = vpop.eup %8710  ;;  %v5353_v0 = vadd.f32 1e-05, %v5340_v44 }
0x1470   :  { %v5376_v27 = vmul.f32 %v8711_v53, %v12015_v57  ;;  %v6061_v40 = vpop.f32.mrb[190].mxu1  ;;  %v6099_v57 = vadd.f32 %v6503_v6, %v6089_v63 }
0x1471   :  { %8716 = vrsqrt.f32 %v5353_v0  ;;  %v6090_v31 = vadd.f32 %v6061_v40, %v11565_v54  ;;  %v7787_v15 = vpop.f32.mrb[191].mxu1 }
0x1472   :  { %v5395_v11 = vmul.f32 %v11679_v60, %v5376_v27 }
0x1473   :  { %v8713_v42 = vpop.eup %8712  ;;  %v6100_v55 = vadd.f32 %v6503_v6, %v6090_v31 }
0x1474   :  { %v5414_v43 = vadd.f32 %v11685_v21, %v5395_v11  ;;  %v5377_v19 = vmul.f32 %v8713_v42, %v12020_v20 }
0x1475   :  { %v6102_v51 = vrot.slane %v6100_v55, 1 }
0x1476   :  { %7718 = vmatmul.mubr.msk.f32.gmra.mrb[190].mxu0 %vm279_vm3, %v5414_v43  ;;  %v5396_v30 = vmul.f32 %v11679_v60, %v5377_v19 }
0x1477   :  { %v8715_v54 = vpop.eup %8714  ;;  %7720 = vmatprep.mubr.msk.f32.mxu0 %vm8775_vm1, %v12223_v38  ;;  %v6105_v59 = vsel %vm6104_vm5, %v6099_v57, %v6102_v51 }
0x1478   :  { %v5415_v5 = vadd.f32 %v11685_v21, %v5396_v30  ;;  %v5378_v56 = vmul.f32 %v8715_v54, %v12026_v10 }
0x147a   :  { %7721 = vmatmul.mubr.msk.f32.gmra.mrb[192].mxu0 %vm279_vm3, %v5415_v5  ;;  %v5397_v20 = vmul.f32 %v11679_v60, %v5378_v56 }
0x147b   :  { %v8717_v13 = vpop.eup %8716  ;;  %7723 = vmatprep.mubr.msk.f32.mxu0 %vm8775_vm1, %v12223_v38 }
0x147c   :  { %v5416_v12 = vadd.f32 %v11685_v21, %v5397_v20  ;;  %v5379_v23 = vmul.f32 %v8717_v13, %v12032_v58 }
0x147e   :  { %7724 = vmatmul.mubr.msk.f32.gmra.mrb[194].mxu0 %vm279_vm3, %v5416_v12  ;;  %v5398_v45 = vmul.f32 %v11679_v60, %v5379_v23 }
0x147f   :  { %7726 = vmatprep.mubr.msk.f32.mxu0 %vm8775_vm1, %v12223_v38 }
0x1480   :  { %v5417_v10 = vadd.f32 %v11685_v21, %v5398_v45 }
0x1482   :  { %7727 = vmatmul.mubr.msk.f32.gmra.mrb[196].mxu0 %vm279_vm3, %v5417_v10 }
0x1483   :  { %7729 = vmatprep.mubr.msk.f32.mxu0 %vm8775_vm1, %v12223_v38 }
0x1492   :  { %v5326_v9 = vpop.xlane.xlu1 %5325 }
0x1493   :  { %v5341_v28 = vmul.f32 0.03125, %v5326_v9 }
0x1495   :  { %v5354_v61 = vadd.f32 1e-05, %v5341_v28 }
0x1497   :  { %8718 = vrsqrt.f32 %v5354_v61 }
0x1499   :  { %v5329_v7 = vpop.xlane.xlu0 %5328 }
0x149a   :  { %v5342_v58 = vmul.f32 0.03125, %v5329_v7 }
0x149c   :  { %v5355_v24 = vadd.f32 1e-05, %v5342_v58 }
0x149e   :  { %8720 = vrsqrt.f32 %v5355_v24 }
0x14a1   :  { %v8719_v17 = vpop.eup %8718 }
0x14a2   :  { %v5380_v37 = vmul.f32 %v8719_v17, %v12039_v8 }
0x14a4   :  { %v5399_v1 = vmul.f32 %v11679_v60, %v5380_v37 }
0x14a6   :  { %v5418_v34 = vadd.f32 %v11685_v21, %v5399_v1 }
0x14a8   :  { %v8721_v33 = vpop.eup %8720  ;;  %7730 = vmatmul.mubr.msk.f32.gmra.mrb[198].mxu0 %vm279_vm3, %v5418_v34 }
0x14a9   :  { %v5381_v26 = vmul.f32 %v8721_v33, %v12045_v29  ;;  %7732 = vmatprep.mubr.msk.f32.mxu0 %vm8775_vm1, %v12223_v38 }
0x14ab   :  { %v5400_v47 = vmul.f32 %v11679_v60, %v5381_v26 }
0x14ad   :  { %v5419_v2 = vadd.f32 %v11685_v21, %v5400_v47 }
0x14af   :  { %7733 = vmatmul.mubr.msk.f32.gmra.mrb[200].mxu0 %vm279_vm3, %v5419_v2 }
0x14b0   :  { %7814 = vmatprep.mubr.msk.f32.mxu0 %vm8775_vm1, %v12223_v38 }
0x14b3   :  { %7815 = vmatmul.mubr.msk.f32.vlgmr.msra.gmra.mrb[202].mxu0 %vm279_vm3, %v6105_v59 }
0x1549   :  { %v5573_v8 = vpop.f32.mrb[190].mxu0 }
0x154a   :  { %v12106_v46 = vadd.f32 %v11831_v52, %v5573_v8  ;;  %v7719_v29 = vpop.f32.mrb[191].mxu0 }
0x154c   :  { %v12109_v3 = vmul.f32 0.70710677, %v12106_v46 }
0x154d   :  { %v5578_v41 = vpop.f32.mrb[192].mxu0 }
0x154e   :  { %v5661_v60 = vand.u32 2147483647, %v12109_v3  ;;  %v12113_v21 = vadd.f32 %v11831_v52, %v5578_v41  ;;  %v7722_v16 = vpop.f32.mrb[193].mxu0  ;;  %vm5635_vm3 = vcmp.ge.f32.partialorder %v12109_v3, 0.0  ;;  %v5609_v3 = vmul.f32 0.5, %v12106_v46 }
0x1550   :  { %v5674_v18 = vmul.f32 0.3275911, %v5661_v60  ;;  %v12116_v36 = vmul.f32 0.70710677, %v12113_v21  ;;  %v5843_v40 = vsub.f32 0.0, %v5661_v60 }
0x1551   :  { %v5583_v25 = vpop.f32.mrb[194].mxu0 }
0x1552   :  { %v5687_v49 = vadd.f32 1.0, %v5674_v18  ;;  %v5662_v62 = vand.u32 2147483647, %v12116_v36  ;;  %v7725_v22 = vpop.f32.mrb[195].mxu0  ;;  %v12120_v39 = vadd.f32 %v11831_v52, %v5583_v25  ;;  %v5856_v42 = vmul.f32 %v5843_v40, %v5661_v60 }
0x1553   :  { %vm5636_vm11 = vcmp.ge.f32.partialorder %v12116_v36, 0.0  ;;  %v5610_v36 = vmul.f32 0.5, %v12113_v21 }
0x1554   :  { %8722 = vrcp.f32 %v5687_v49  ;;  %v5675_v50 = vmul.f32 0.3275911, %v5662_v62  ;;  %v12123_v48 = vmul.f32 0.70710677, %v12120_v39  ;;  %v5844_v6 = vsub.f32 0.0, %v5662_v62 }
0x1555   :  { %v5588_v14 = vpop.f32.mrb[196].mxu0  ;;  %v5876_v51 = vmul.f32 1.442695, %v5856_v42 }
0x1556   :  { %v5688_v35 = vadd.f32 1.0, %v5675_v50  ;;  %v12126_v44 = vadd.f32 %v11831_v52, %v5588_v14  ;;  %v7728_v4 = vpop.f32.mrb[197].mxu0  ;;  %v5663_v53 = vand.u32 2147483647, %v12123_v48  ;;  %v5857_v30 = vmul.f32 %v5844_v6, %v5662_v62 }
0x1557   :  { %vm5637_vm12 = vcmp.ge.f32.partialorder %v12123_v48, 0.0 }
0x1558   :  { %8724 = vrcp.f32 %v5688_v35  ;;  %v5676_v0 = vmul.f32 0.3275911, %v5663_v53  ;;  %v12130_v27 = vmul.f32 0.70710677, %v12126_v44  ;;  %v5845_v54 = vsub.f32 0.0, %v5663_v53 }
0x1559   :  { %v5878_v13 = vmul.f32 1.442695, %v5857_v30 }
0x155a   :  { %v5689_v63 = vadd.f32 1.0, %v5676_v0  ;;  %v5664_v31 = vand.u32 2147483647, %v12130_v27  ;;  %v5858_v23 = vmul.f32 %v5845_v54, %v5663_v53  ;;  %v5648_v0 = vsel %vm5635_vm3, 1.0, %v12230_v32 }
0x155b   :  { %vm5638_vm13 = vcmp.ge.f32.partialorder %v12130_v27, 0.0 }
0x155c   :  { %8726 = vrcp.f32 %v5689_v63  ;;  %v5677_v15 = vmul.f32 0.3275911, %v5664_v31  ;;  %v5846_v45 = vsub.f32 0.0, %v5664_v31  ;;  %v5880_v17 = vmul.f32 1.442695, %v5858_v23 }
0x155e   :  { %v8723_v11 = vpop.eup %8722  ;;  %v5690_v55 = vadd.f32 1.0, %v5677_v15  ;;  %v5859_v37 = vmul.f32 %v5846_v45, %v5664_v31 }
0x155f   :  { %v5726_v43 = vmul.f32 1.0614054, %v8723_v11 }
0x1560   :  { %8728 = vrcp.f32 %v5690_v55  ;;  %v5882_v41 = vmul.f32 1.442695, %v5859_v37 }
0x1561   :  { %v5739_v19 = vadd.f32 -1.4531521, %v5726_v43  ;;  %8730 = vpow2.f32 %v5876_v51  ;;  %v5649_v43 = vsel %vm5636_vm11, 1.0, %v12230_v32 }
0x1562   :  { %v8725_v57 = vpop.eup %8724  ;;  %8732 = vpow2.f32 %v5878_v13 }
0x1563   :  { %v5752_v59 = vmul.f32 %v8723_v11, %v5739_v19  ;;  %v5727_v5 = vmul.f32 1.0614054, %v8725_v57  ;;  %8734 = vpow2.f32 %v5880_v17 }
0x1564   :  { %8736 = vpow2.f32 %v5882_v41 }
0x1565   :  { %v5765_v56 = vadd.f32 1.4214138, %v5752_v59  ;;  %v5740_v20 = vadd.f32 -1.4531521, %v5727_v5 }
0x1566   :  { %v8727_v12 = vpop.eup %8726 }
0x1567   :  { %v5778_v10 = vmul.f32 %v8723_v11, %v5765_v56  ;;  %v5753_v9 = vmul.f32 %v8725_v57, %v5740_v20  ;;  %v5728_v28 = vmul.f32 1.0614054, %v8727_v12 }
0x1569   :  { %v5791_v61 = vadd.f32 -0.28449672, %v5778_v10  ;;  %v5766_v7 = vadd.f32 1.4214138, %v5753_v9  ;;  %v5741_v58 = vadd.f32 -1.4531521, %v5728_v28 }
0x156a   :  { %v8729_v24 = vpop.eup %8728  ;;  %v5611_v28 = vmul.f32 0.5, %v12120_v39  ;;  %v5612_v39 = vmul.f32 0.5, %v12126_v44 }
0x156b   :  { %v5804_v1 = vmul.f32 %v8723_v11, %v5791_v61  ;;  %v5779_v33 = vmul.f32 %v8725_v57, %v5766_v7  ;;  %v5754_v34 = vmul.f32 %v8727_v12, %v5741_v58  ;;  %v5729_v26 = vmul.f32 1.0614054, %v8729_v24  ;;  %v8731_v18 = vpop.eup %8730 }
0x156c   :  { %v8733_v53 = vpop.eup %8732 }
0x156d   :  { %v5817_v47 = vadd.f32 0.2548296, %v5804_v1  ;;  %v5792_v2 = vadd.f32 -0.28449672, %v5779_v33  ;;  %v5767_v8 = vadd.f32 1.4214138, %v5754_v34 }
0x156e   :  { %v5742_v29 = vadd.f32 -1.4531521, %v5729_v26 }
0x156f   :  { %v5830_v60 = vmul.f32 %v8723_v11, %v5817_v47  ;;  %v5805_v16 = vmul.f32 %v8725_v57, %v5792_v2  ;;  %v5780_v25 = vmul.f32 %v8727_v12, %v5767_v8  ;;  %v6504_v47 = vld [vmem:[%s12203_s14] ss:$0 sm:$0xff]  ;;  %s8784_s14 = smov [#allocation2]  }
0x1570   :  { %v5755_v49 = vmul.f32 %v8729_v24, %v5742_v29  ;;  %s6209_s2 = sshll.u32 %s8784_s14, 4  ;;  %s6210_s2 = int_to_ptr.vmem [resolvable:$true] %s6209_s2 }
0x1571   :  { %v5895_v62 = vmul.f32 %v8731_v18, %v5830_v60  ;;  %v5818_v22 = vadd.f32 0.2548296, %v5805_v16  ;;  %v5793_v50 = vadd.f32 -0.28449672, %v5780_v25  ;;  %s8750_s1 = scalar_lea.vmem %s6210_s2, 32  ;;  %p8755_p1 = scmp.lt.s32.totalorder %s6210_s2, %s6210_s2 }
0x1572   :  { %v5768_v14 = vadd.f32 1.4214138, %v5755_v49  ;;  %p8751_p0 = scmp.ne.s32.totalorder %s6210_s2, %s8750_s1  ;;  %p8756_p2 = scmp.lt.s32.totalorder %s8750_s1, %s8750_s1 }
0x1573   :  { %v5908_v35 = vsub.f32 1.0, %v5895_v62  ;;  %v5831_v4 = vmul.f32 %v8725_v57, %v5818_v22  ;;  %v5806_v40 = vmul.f32 %v8727_v12, %v5793_v50  ;;  %v8735_v57 = vpop.eup %8734 }
0x1574   :  { %v5781_v63 = vmul.f32 %v8729_v24, %v5768_v14  ;;  %v8737_v13 = vpop.eup %8736  ;;  %p8757_p3 = por %p8756_p2, %p8755_p1 }
0x1575   :  { %v5921_v31 = vmul.f32 %v5908_v35, %v5648_v0  ;;  %v5896_v15 = vmul.f32 %v8733_v53, %v5831_v4  ;;  %v5819_v11 = vadd.f32 0.2548296, %v5806_v40 }
0x1576   :  { %v5794_v42 = vadd.f32 -0.28449672, %v5781_v63  ;;  %p8758_p4 = pnand %p8757_p3, %p8751_p0 }
0x1577   :  { %v5934_v6 = vadd.f32 1.0, %v5921_v31  ;;  %v5909_v55 = vsub.f32 1.0, %v5896_v15  ;;  %v5832_v19 = vmul.f32 %v8727_v12, %v5819_v11  ;;  %v5650_v12 = vsel %vm5637_vm12, 1.0, %v12230_v32 }
0x1578   :  { %v5807_v51 = vmul.f32 %v8729_v24, %v5794_v42 }
0x1579   :  { %v5947_v30 = vmul.f32 %v5934_v6, %v5609_v3  ;;  %v5922_v54 = vmul.f32 %v5909_v55, %v5649_v43  ;;  %v5897_v59 = vmul.f32 %v8735_v57, %v5832_v19 }
0x157a   :  { %v5820_v5 = vadd.f32 0.2548296, %v5807_v51 }
0x157b   :  { %7789 = vmatmul.mubr.f32.gmra.mrb[192].mxu1 %v5947_v30  ;;  %v5935_v56 = vadd.f32 1.0, %v5922_v54  ;;  %v5910_v46 = vsub.f32 1.0, %v5897_v59  ;;  %v5593_v23 = vpop.f32.mrb[198].mxu0 }
0x157c   :  { %7791 = vmatprep.mubr.msk.f32.mxu1 %vm8775_vm1, %v12223_v38  ;;  %v5833_v20 = vmul.f32 %v8729_v24, %v5820_v5  ;;  %v12145_v48 = vadd.f32 %v11831_v52, %v5593_v23  ;;  %v7731_v10 = vpop.f32.mrb[199].mxu0  ;;  %v5651_v24 = vsel %vm5638_vm13, 1.0, %v12230_v32 }
0x157d   :  { %v5948_v45 = vmul.f32 %v5935_v56, %v5610_v36  ;;  %v5923_v9 = vmul.f32 %v5910_v46, %v5650_v12 }
0x157e   :  { %v5898_v21 = vmul.f32 %v8737_v13, %v5833_v20  ;;  %v12149_v61 = vmul.f32 0.70710677, %v12145_v48  ;;  %v5613_v10 = vmul.f32 0.5, %v12145_v48 }
0x157f   :  { %7792 = vmatmul.mubr.f32.gmra.mrb[194].mxu1 %v5948_v45  ;;  %v5936_v7 = vadd.f32 1.0, %v5923_v9 }
0x1580   :  { %7794 = vmatprep.mubr.msk.f32.mxu1 %vm8775_vm1, %v12223_v38  ;;  %v5911_v58 = vsub.f32 1.0, %v5898_v21  ;;  %v5665_v27 = vand.u32 2147483647, %v12149_v61  ;;  %vm5639_vm15 = vcmp.ge.f32.partialorder %v12149_v61, 0.0 }
0x1581   :  { %v5949_v37 = vmul.f32 %v5936_v7, %v5611_v28  ;;  %v5652_v20 = vsel %vm5639_vm15, 1.0, %v12230_v32 }
0x1582   :  { %v5598_v17 = vpop.f32.mrb[200].mxu0  ;;  %v5924_v1 = vmul.f32 %v5911_v58, %v5651_v24  ;;  %v5678_v26 = vmul.f32 0.3275911, %v5665_v27  ;;  %v5847_v62 = vsub.f32 0.0, %v5665_v27 }
0x1583   :  { %v12156_v33 = vadd.f32 %v11831_v52, %v5598_v17  ;;  %v7734_v34 = vpop.f32.mrb[201].mxu0  ;;  %7795 = vmatmul.mubr.f32.gmra.mrb[196].mxu1 %v5949_v37 }
0x1584   :  { %v5937_v2 = vadd.f32 1.0, %v5924_v1  ;;  %7797 = vmatprep.mubr.msk.f32.mxu1 %vm8775_vm1, %v12223_v38  ;;  %v5691_v29 = vadd.f32 1.0, %v5678_v26  ;;  %v5860_v50 = vmul.f32 %v5847_v62, %v5665_v27 }
0x1585   :  { %v5627_v8 = vmul.f32 0.70710677, %v12156_v33  ;;  %v5614_v61 = vmul.f32 0.5, %v12156_v33 }
0x1586   :  { %v6186_v41 = vpop.f32.mrb[202].mxu0  ;;  %v5950_v60 = vmul.f32 %v5937_v2, %v5612_v39  ;;  %8738 = vrcp.f32 %v5691_v29  ;;  %v5884_v53 = vmul.f32 1.442695, %v5860_v50 }
0x1587   :  { %v5666_v52 = vand.u32 2147483647, %v5627_v8  ;;  %v6187_v16 = vadd.f32 %v6504_v47, %v6186_v41  ;;  %v7816_v18 = vpop.f32.mrb[203].mxu0  ;;  %vm5640_vm0 = vcmp.ge.f32.partialorder %v5627_v8, 0.0 }
0x1588   :  { %7798 = vmatmul.mubr.f32.gmra.mrb[198].mxu1 %v5950_v60  ;;  %v5653_v28 = vsel %vm5640_vm0, 1.0, %v12230_v32 }
0x1589   :  { %v5679_v44 = vmul.f32 0.3275911, %v5666_v52  ;;  %v6191_v25 = vsel %vm6190_vm14, %v6187_v16, -inf  ;;  %7800 = vmatprep.mubr.msk.f32.mxu1 %vm8775_vm1, %v12223_v38  ;;  %v5848_v14 = vsub.f32 0.0, %v5666_v52 }
0x158a   :  { %6192 = vmax.xlane.f32.xlu1 %v6191_v25 }
0x158b   :  { %v5692_v49 = vadd.f32 1.0, %v5679_v44  ;;  %v5861_v40 = vmul.f32 %v5848_v14, %v5666_v52 }
0x158d   :  { %8740 = vrcp.f32 %v5692_v49  ;;  %v5886_v42 = vmul.f32 1.442695, %v5861_v40 }
0x158e   :  { %8742 = vpow2.f32 %v5884_v53 }
0x158f   :  { %8744 = vpow2.f32 %v5886_v42 }
0x1590   :  { %v8739_v22 = vpop.eup %8738 }
0x1591   :  { %v5730_v35 = vmul.f32 1.0614054, %v8739_v22 }
0x1593   :  { %v5743_v4 = vadd.f32 -1.4531521, %v5730_v35 }
0x1595   :  { %v5756_v63 = vmul.f32 %v8739_v22, %v5743_v4 }
0x1597   :  { %v8741_v0 = vpop.eup %8740  ;;  %v5769_v15 = vadd.f32 1.4214138, %v5756_v63 }
0x1598   :  { %v5731_v31 = vmul.f32 1.0614054, %v8741_v0  ;;  %v8743_v59 = vpop.eup %8742 }
0x1599   :  { %v5782_v3 = vmul.f32 %v8739_v22, %v5769_v15  ;;  %v8745_v12 = vpop.eup %8744 }
0x159a   :  { %v5744_v11 = vadd.f32 -1.4531521, %v5731_v31 }
0x159b   :  { %v5795_v55 = vadd.f32 -0.28449672, %v5782_v3 }
0x159c   :  { %v5757_v6 = vmul.f32 %v8741_v0, %v5744_v11 }
0x159d   :  { %v5808_v19 = vmul.f32 %v8739_v22, %v5795_v55 }
0x159e   :  { %v5770_v43 = vadd.f32 1.4214138, %v5757_v6 }
0x159f   :  { %v5821_v57 = vadd.f32 0.2548296, %v5808_v19 }
0x15a0   :  { %v5783_v51 = vmul.f32 %v8741_v0, %v5770_v43 }
0x15a1   :  { %v5834_v54 = vmul.f32 %v8739_v22, %v5821_v57 }
0x15a2   :  { %v5796_v30 = vadd.f32 -0.28449672, %v5783_v51 }
0x15a3   :  { %v5899_v36 = vmul.f32 %v8743_v59, %v5834_v54 }
0x15a4   :  { %v5809_v5 = vmul.f32 %v8741_v0, %v5796_v30 }
0x15a5   :  { %v5912_v46 = vsub.f32 1.0, %v5899_v36 }
0x15a6   :  { %v5822_v56 = vadd.f32 0.2548296, %v5809_v5 }
0x15a7   :  { %v5925_v23 = vmul.f32 %v5912_v46, %v5652_v20 }
0x15a8   :  { %v5835_v13 = vmul.f32 %v8741_v0, %v5822_v56 }
0x15a9   :  { %v5938_v9 = vadd.f32 1.0, %v5925_v23 }
0x15aa   :  { %v5900_v45 = vmul.f32 %v8745_v12, %v5835_v13 }
0x15ab   :  { %v5951_v7 = vmul.f32 %v5938_v9, %v5613_v10 }
0x15ac   :  { %v5913_v21 = vsub.f32 1.0, %v5900_v45 }
0x15ad   :  { %7801 = vmatmul.mubr.f32.gmra.mrb[200].mxu1 %v5951_v7 }
0x15ae   :  { %v5926_v58 = vmul.f32 %v5913_v21, %v5653_v28  ;;  %7803 = vmatprep.mubr.msk.f32.mxu1 %vm8775_vm1, %v12223_v38 }
0x15b0   :  { %v5939_v24 = vadd.f32 1.0, %v5926_v58 }
0x15b2   :  { %v5952_v27 = vmul.f32 %v5939_v24, %v5614_v61 }
0x15b4   :  { %7804 = vmatmul.mubr.f32.gmra.mrb[202].mxu1 %v5952_v27 }
0x1617   :  { %v6193_v17 = vpop.xlane.xlu1 %6192 }
0x1618   :  { %v6194_v37 = vsub.f32 %v6187_v16, %v6193_v17 }
0x161a   :  { %v6195_v1 = vmul.f32 1.442695, %v6194_v37 }
0x161c   :  { %8746 = vpow2.f32 %v6195_v1 }
0x1626   :  { %v8747_v48 = vpop.eup %8746 }
0x1627   :  { %v6197_v34 = vsel %vm6190_vm14, %v8747_v48, 0.0 }
0x1628   :  { %6198 = vadd.xlane.f32.xlu0 %v6197_v34 }
0x164e   :  { %v6066_v32 = vpop.f32.mrb[192].mxu1 }
0x164f   :  { %v7790_v39 = vpop.f32.mrb[193].mxu1 }
0x1652   :  { %v6070_v26 = vpop.f32.mrb[194].mxu1 }
0x1653   :  { %v7793_v47 = vpop.f32.mrb[195].mxu1 }
0x1656   :  { %v6074_v2 = vpop.f32.mrb[196].mxu1 }
0x1657   :  { %v7796_v33 = vpop.f32.mrb[197].mxu1 }
0x165b   :  { %v6078_v8 = vpop.f32.mrb[198].mxu1 }
0x165c   :  { %v7799_v29 = vpop.f32.mrb[199].mxu1 }
0x1680   :  { %v6082_v38 = vpop.f32.mrb[200].mxu1 }
0x1681   :  { %v7802_v41 = vpop.f32.mrb[201].mxu1 }
0x1687   :  { %v6086_v60 = vpop.f32.mrb[202].mxu1 }
0x1688   :  { %v7805_v52 = vpop.f32.mrb[203].mxu1 }
0x16b5   :  { %v6199_v18 = vpop.xlane.xlu0 %6198 }
0x16b6   :  { %8748 = vrcp.f32 %v6199_v18 }
0x16c0   :  { %v8749_v16 = vpop.eup %8748 }
0x16c1   :  { %v6201_v44 = vmul.f32 %v8749_v16, %v8747_v48 }
0x16c3   :  { %6202 = vst.msk [vmem:[#allocation2] sm:$0x3] %vm6190_vm14, %v6201_v44 }
0x16c4   :  { %8761 = shalt.err (!%p8758_p4)
}
0x16c5   :  { %s8762_s28 = scalar_lea.hbm %s12204_s15, 32 }
0x16c6   :  { %p8763_p5 = scmp.ne.s32.totalorder %s12204_s15, %s8762_s28  ;;  %p8766_p6 = scmp.lt.u32.totalorder %s8762_s28, %s12204_s15 }
0x16c8   :  { %p8768_p7 = pnand %p8766_p6, %p8763_p5 }
0x16ca   :  { %8771 = shalt.err (!%p8768_p7)
}
0x16cb   :  { %6212 = dma.vmem_to_hbm [thread:$0]  %s6210_s2, 32, %s12204_s15, [#allocation3]  }
0x16cc   :  { %8772 = dma.done.wait [#allocation3], 32  }
0x16cd   :  { %8773 = vsyncadd [#allocation3], 4294967264 }
0x16ce   :  { %6216 = vsyncpa [#allocation3], 1 }

</bundles_post_ra>
